<compile_context>
chip_gen: v7x
topology: tpu7x:2x2x1
jax: 0.10.0
libtpu: 0.0.40
codegen_flags: <defaults>
</compile_context>

<pallas_src>
import functools

import jax
import jax.numpy as jnp
from jax.experimental import pallas as pl
from jax.experimental.pallas import tpu as pltpu


# ------------------------------ fused kernel -------------------------------

def _mvcvtn2_fused_kernel(
    wsm_ref,      # SMEM (2, 3)     softmax(h_t_weights) per direction
    yw_ref,       # SMEM (1, 3)     softmax(y_weights)
    x_ref,        # (2, M, L)       per-direction inputs, nodes x time (I==1)
    env_ref,      # (M, F)
    adjn_ref,     # (M, M)          kron(I_B, adj_norm)
    adjm_ref,     # (M, M)          kron(I_B, adj_mask)
    whg_ref,      # (2, H, 3H)      GRU hidden weights [Whr|Whz|Whn]
    wx_ref,       # (2, 1, 3H)      GRU input weights  [Wxr|Wxz|Wxn]
    gb_ref,       # (2, 1, 3H)      [bxr+bhr | bxz+bhz | bxn]
    bhn_ref,      # (2, 1, H)
    wdgx_ref,     # (2, K+1, 1, H)  DGCN x-stream weights
    bdg_ref,      # (2, 1, H)
    wdgh_ref,     # (2, (K+1)*H, H) DGCN state weights, vstacked over k
    wgh_ref,      # (2, H, nH*H)    GAT state proj, lane-concat over heads
    wgx_ref,      # (2, 1, nH*H)    GAT x proj
    wge_ref,      # (2, F, nH*H)    GAT env proj
    asrc_ref,     # (2, 1, nH*H)
    adst_ref,     # (2, 1, nH*H)
    wout_ref,     # (3, O, 2H)      output linears (pre-transposed)
    bout_ref,     # (3, 1, O)
    out_ref,      # (4, M, O)       [y, y_t, y_s, y_e]
    *, seq_steps, hidden_dim, out_dim, num_heads, max_diffusion_step, alpha):
  f32 = jnp.float32
  H = hidden_dim
  L = seq_steps
  K = max_diffusion_step
  nH = num_heads
  M = env_ref.shape[0]

  env = env_ref[...]
  adjn = adjn_ref[...]
  # LeakyReLU + adjacency mask collapsed: hoisted additive mask (one where).
  neg_mask = jnp.where(adjm_ref[...] > 0.0, 0.0, -1e9)

  dir_states = []
  for d in range(2):                       # fwd / bwd, same basic block
    w0 = wsm_ref[d, 0]
    w1 = wsm_ref[d, 1]
    w2 = wsm_ref[d, 2]
    X = x_ref[d]                           # (M, L) nodes x time
    whg = whg_ref[d]                       # (H, 3H)
    wx_row = wx_ref[d]                     # (1, 3H)
    gb_row = gb_ref[d]                     # (1, 3H)
    bhn_row = bhn_ref[d]                   # (1, H)
    bdg_row = bdg_ref[d]                   # (1, H)
    wdgh = wdgh_ref[d]                     # ((K+1)H, H)
    wgh = wgh_ref[d]                       # (H, nH*H)
    wgx_row = wgx_ref[d]                   # (1, nH*H)
    asrc_row = asrc_ref[d]                 # (1, nH*H)
    adst_row = adst_ref[d]                 # (1, nH*H)

    # -------- prologue: state-independent work, off the serial chain --------
    envW = jnp.dot(env, wge_ref[d], preferred_element_type=f32)   # (M, nH*H)
    AX = [X]
    for _ in range(K):                                            # A^k X
      AX.append(jnp.dot(adjn, AX[-1], preferred_element_type=f32))
    grux, dgx, gatx = [], [], []
    for t in range(L):
      xc = X[:, t:t + 1]                                          # (M, 1)
      grux.append(xc * wx_row + gb_row)                           # (M, 3H)
      acc = bdg_row + AX[0][:, t:t + 1] * wdgx_ref[d, 0]
      for k in range(1, K + 1):
        acc = acc + AX[k][:, t:t + 1] * wdgx_ref[d, k]
      dgx.append(acc)                                             # (M, H)
      gatx.append(xc * wgx_row + envW)                            # (M, nH*H)

    st = jnp.zeros((M, H), f32)
    ss = jnp.zeros((M, H), f32)
    se = jnp.zeros((M, H), f32)

    # TODO(synk): switch to lax.fori_loop carries if seq_len grows beyond ~8;
    # at L<=~8 the full unroll is fine and lets the scheduler overlap steps.
    for t in range(L):
      # ---- weighted state combine + GRUCell (one fused hidden matmul) ----
      h = w0 * st + w1 * ss + w2 * se
      g = jnp.dot(h, whg, preferred_element_type=f32)             # (M, 3H)
      pre = grux[t] + g
      r = jax.nn.sigmoid(pre[:, 0:H])
      z = jax.nn.sigmoid(pre[:, H:2 * H])
      n = jnp.tanh(grux[t][:, 2 * H:3 * H]
                   + r * (g[:, 2 * H:3 * H] + bhn_row))
      out_t = (1.0 - z) * n + z * h

      # ---- DGCN: serial A^k chain, then ONE stacked weight matmul ----
      xs = [out_t]
      for _ in range(K):
        xs.append(jnp.dot(adjn, xs[-1], preferred_element_type=f32))
      xh_cat = jnp.concatenate(xs, axis=1)                        # (M,(K+1)H)
      out_s = jnp.tanh(
          dgx[t] + jnp.dot(xh_cat, wdgh, preferred_element_type=f32))

      # ---- GAT: one fused all-head projection, per-head attention ----
      whp_all = gatx[t] + jnp.dot(out_t, wgh, preferred_element_type=f32)
      src_terms = whp_all * asrc_row
      acc_e = jnp.zeros((M, H), f32)
      for hd in range(nH):
        lo, hi = hd * H, (hd + 1) * H
        whp = whp_all[:, lo:hi]                                   # (M, H)
        a_s = jnp.sum(src_terms[:, lo:hi], axis=1, keepdims=True)  # (M, 1)
        a_d = jax.lax.dot_general(                                # (1, M)
            adst_row[:, lo:hi], whp,
            (((1,), (1,)), ((), ())), preferred_element_type=f32)
        sc = a_s + a_d                                            # (M, M)
        e = jnp.maximum(sc, alpha * sc) + neg_mask                # leaky+mask
        e = e - jnp.max(e, axis=-1, keepdims=True)
        p = jnp.exp(e)
        p = p * pl.reciprocal(jnp.sum(p, axis=-1, keepdims=True),
                              approx=True)
        acc_e = acc_e + jnp.dot(p, whp, preferred_element_type=f32)
      out_e = jnp.tanh(acc_e * (1.0 / nH))

      st, ss, se = out_t, out_s, out_e
    dir_states.append((st, ss, se))

  # ----------------- fused output head (no second pallas_call) -------------
  sf, sb = dir_states
  ys = []
  for j in range(3):
    hf, hb = sf[j], sb[j]
    w_row = wout_ref[j]                    # (O, 2H)
    b_row = bout_ref[j]                    # (1, O)
    if out_dim == 1:
      # VPU multiply + lane reduce: avoids 1-lane MXU outputs.
      yj = jnp.sum(hf * w_row[:, 0:H] + hb * w_row[:, H:2 * H],
                   axis=-1, keepdims=True) + b_row
    else:
      yj = jax.lax.dot_general(
          jnp.concatenate([hf, hb], axis=1), w_row,
          (((1,), (1,)), ((), ())), preferred_element_type=f32) + b_row
    ys.append(yj)
  y = yw_ref[0, 0] * ys[0] + yw_ref[0, 1] * ys[1] + yw_ref[0, 2] * ys[2]
  out_ref[0] = y
  out_ref[1] = ys[0]
  out_ref[2] = ys[1]
  out_ref[3] = ys[2]


# ----------------------------- model (JAX glue) ----------------------------

def _pack_direction(p, H, K, heads, Fd):
  g = p["gru"]
  whg = jnp.concatenate([g["whr"], g["whz"], g["whn"]], axis=1)        # (H,3H)
  wx = jnp.concatenate([g["wxr"], g["wxz"], g["wxn"]], axis=1)         # (1,3H)
  gb = jnp.concatenate([g["bxr"] + g["bhr"], g["bxz"] + g["bhz"],
                        g["bxn"]])[None, :]                            # (1,3H)
  bhn = g["bhn"][None, :]                                              # (1,H)
  dg = p["dgcn"]
  wdgx = dg["wx"]                                                      # (K+1,1,H)
  wdgh = dg["wh"].reshape((K + 1) * H, H)                              # ((K+1)H,H)
  bdg = dg["b"][None, :]                                               # (1,H)
  ga = p["gat"]
  wgh = jnp.transpose(ga["wh"], (1, 0, 2)).reshape(H, heads * H)
  wgx = jnp.transpose(ga["wx"], (1, 0, 2)).reshape(1, heads * H)
  wge = jnp.transpose(ga["we"], (1, 0, 2)).reshape(Fd, heads * H)
  asrc = ga["a_src"].reshape(1, heads * H)
  adst = ga["a_dst"].reshape(1, heads * H)
  wsm = jax.nn.softmax(p["h_t_weights"])
  return dict(whg=whg, wx=wx, gb=gb, bhn=bhn, wdgx=wdgx, wdgh=wdgh, bdg=bdg,
              wgh=wgh, wgx=wgx, wge=wge, asrc=asrc, adst=adst, wsm=wsm)


def mvcvtn2_forward(params, adj_norm, adj_mask, inputs, envs_feat, cfg):
  B, N, _ = inputs.shape
  H = cfg["hidden_dim"]
  O = cfg["output_dim"]
  Fd = cfg["feat_dim"]
  heads = cfg["num_heads"]
  K = cfg["max_diffusion_step"]
  seq_len = cfg["seq_len"]
  L = seq_len + 1
  M = B * N
  # The PyTorch forward feeds xi = inputs[:, :, i].unsqueeze(2) -> input_dim=1.
  assert cfg["input_dim"] == 1, "MVCVTN2 forward implies input_dim == 1"

  # ---------------- host-side packing (tiny, jit-fused XLA ops) -------------
  x_fwd = inputs[:, :, :L].reshape(M, L)
  x_bwd = jnp.flip(inputs[:, :, seq_len:seq_len + L], axis=2).reshape(M, L)
  x_mat = jnp.stack([x_fwd, x_bwd], axis=0).astype(jnp.float32)   # (2, M, L)

  env_flat = jnp.tile(envs_feat, (B, 1)).astype(jnp.float32)      # (M, F)
  eye_b = jnp.eye(B, dtype=jnp.float32)
  adjn_blk = jnp.kron(eye_b, adj_norm.astype(jnp.float32))        # (M, M)
  adjm_blk = jnp.kron(eye_b, adj_mask.astype(jnp.float32))        # (M, M)

  pf = _pack_direction(params["fwd"], H, K, heads, Fd)
  pb = _pack_direction(params["bwd"], H, K, heads, Fd)

  def S(name):
    return jnp.stack([pf[name], pb[name]], axis=0)

  wsm = S("wsm")                                                  # (2, 3)
  yw = jax.nn.softmax(params["y_weights"])[None, :]               # (1, 3)
  w_out = jnp.stack([params["out_t"]["w"].T, params["out_s"]["w"].T,
                     params["out_e"]["w"].T], axis=0)             # (3, O, 2H)
  b_out = jnp.stack([params["out_t"]["b"], params["out_s"]["b"],
                     params["out_e"]["b"]], axis=0)[:, None, :]   # (3, 1, O)

  kern = functools.partial(
      _mvcvtn2_fused_kernel, seq_steps=L, hidden_dim=H, out_dim=O,
      num_heads=heads, max_diffusion_step=K, alpha=cfg["alpha"])

  smem = pl.BlockSpec(memory_space=pltpu.MemorySpace.SMEM)
  vmem = pl.BlockSpec(memory_space=pltpu.MemorySpace.VMEM)

  y_all = pl.pallas_call(
      kern,
      out_shape=jax.ShapeDtypeStruct((4, M, O), jnp.float32),
      in_specs=[smem, smem] + [vmem] * 18,
      out_specs=vmem,
  )(wsm, yw, x_mat, env_flat, adjn_blk, adjm_blk,
    S("whg"), S("wx"), S("gb"), S("bhn"),
    S("wdgx"), S("bdg"), S("wdgh"),
    S("wgh"), S("wgx"), S("wge"), S("asrc"), S("adst"),
    w_out, b_out)

  def to_out(a):
    a = a.reshape(B, N, O)
    return jnp.squeeze(a, 2) if O == 1 else a   # like torch .squeeze(2)

  return (to_out(y_all[0]), to_out(y_all[1]),
          to_out(y_all[2]), to_out(y_all[3]))


# ----------------------------- parameter init ------------------------------

def _nrm(key, shape, scale=0.1):
  return scale * jax.random.normal(key, shape, dtype=jnp.float32)


def init_cell_params(key, cfg):
  I, H, Fd = cfg["input_dim"], cfg["hidden_dim"], cfg["feat_dim"]
  heads, K = cfg["num_heads"], cfg["max_diffusion_step"]
  ks = jax.random.split(key, 19)
  return {
      "h_t_weights": jnp.full((3,), 1.0 / 3.0, jnp.float32),
      "gru": {
          "wxr": _nrm(ks[0], (I, H)), "wxz": _nrm(ks[1], (I, H)),
          "wxn": _nrm(ks[2], (I, H)),
          "whr": _nrm(ks[3], (H, H)), "whz": _nrm(ks[4], (H, H)),
          "whn": _nrm(ks[5], (H, H)),
          "bxr": _nrm(ks[6], (H,)), "bxz": _nrm(ks[7], (H,)),
          "bxn": _nrm(ks[8], (H,)),
          "bhr": _nrm(ks[9], (H,)), "bhz": _nrm(ks[10], (H,)),
          "bhn": _nrm(ks[11], (H,)),
      },
      "dgcn": {
          "wx": _nrm(ks[12], (K + 1, I, H)),
          "wh": _nrm(ks[13], (K + 1, H, H)),
          "b": jnp.zeros((H,), jnp.float32),
      },
      "gat": {
          "wx": _nrm(ks[14], (heads, I, H)),
          "wh": _nrm(ks[15], (heads, H, H)),
          "we": _nrm(ks[16], (heads, Fd, H)),
          "a_src": _nrm(ks[17], (heads, H)),
          "a_dst": _nrm(ks[18], (heads, H)),
      },
  }


def init_params(key, cfg):
  H, O = cfg["hidden_dim"], cfg["output_dim"]
  k1, k2, k3, k4, k5 = jax.random.split(key, 5)
  return {
      "fwd": init_cell_params(k1, cfg),
      "bwd": init_cell_params(k2, cfg),
      "out_t": {"w": _nrm(k3, (2 * H, O)), "b": jnp.zeros((O,), jnp.float32)},
      "out_s": {"w": _nrm(k4, (2 * H, O)), "b": jnp.zeros((O,), jnp.float32)},
      "out_e": {"w": _nrm(k5, (2 * H, O)), "b": jnp.zeros((O,), jnp.float32)},
      "y_weights": jnp.full((3,), 1.0 / 3.0, jnp.float32),
  }


# --------------------------------- main -------------------------------------

if __name__ == "__main__":
  cfg = dict(input_dim=1, hidden_dim=16, output_dim=1, feat_dim=8,
             seq_len=4, num_nodes=8, max_diffusion_step=2, num_heads=2,
             alpha=0.2)
  B, N = 2, cfg["num_nodes"]
  T = 2 * cfg["seq_len"] + 1   # fwd uses [:L], bwd uses [seq_len:] flipped

  key = jax.random.PRNGKey(0)
  k_adj, k_in, k_env, k_par = jax.random.split(key, 4)

  # random adjacency with self-loops (deterministic)
  adj = (jax.random.uniform(k_adj, (N, N)) > 0.6).astype(jnp.float32)
  adj = jnp.maximum(adj, adj.T) + jnp.eye(N, dtype=jnp.float32)
  adj = jnp.minimum(adj, 1.0)
  adj_norm = adj / jnp.sum(adj, axis=1, keepdims=True)   # random-walk norm
  adj_mask = adj                                          # >0 means edge

  inputs = jax.random.normal(k_in, (B, N, T), dtype=jnp.float32)
  envs_feat = jax.random.normal(k_env, (N, cfg["feat_dim"]),
                                dtype=jnp.float32)
  params = init_params(k_par, cfg)

  fn = jax.jit(functools.partial(mvcvtn2_forward, cfg=cfg))
  y, y_t, y_s, y_e = fn(params, adj_norm, adj_mask, inputs, envs_feat)
  jax.block_until_ready((y, y_t, y_s, y_e))

  assert y.shape == (B, N) and y_t.shape == (B, N)
  assert y_s.shape == (B, N) and y_e.shape == (B, N)
  print("KERNEL_OK")
</pallas_src>

<mosaic_0001>
module attributes {stable_mosaic.version = 11 : i64} {
  func.func @_mvcvtn2_fused_kernel(%arg0: memref<2x3xf32, #tpu.memory_space<smem>>, %arg1: memref<1x3xf32, #tpu.memory_space<smem>>, %arg2: memref<2x16x5xf32, #tpu.memory_space<vmem>>, %arg3: memref<16x8xf32, #tpu.memory_space<vmem>>, %arg4: memref<16x16xf32, #tpu.memory_space<vmem>>, %arg5: memref<16x16xf32, #tpu.memory_space<vmem>>, %arg6: memref<2x16x48xf32, #tpu.memory_space<vmem>>, %arg7: memref<2x1x48xf32, #tpu.memory_space<vmem>>, %arg8: memref<2x1x48xf32, #tpu.memory_space<vmem>>, %arg9: memref<2x1x16xf32, #tpu.memory_space<vmem>>, %arg10: memref<2x3x1x16xf32, #tpu.memory_space<vmem>>, %arg11: memref<2x1x16xf32, #tpu.memory_space<vmem>>, %arg12: memref<2x48x16xf32, #tpu.memory_space<vmem>>, %arg13: memref<2x16x32xf32, #tpu.memory_space<vmem>>, %arg14: memref<2x1x32xf32, #tpu.memory_space<vmem>>, %arg15: memref<2x8x32xf32, #tpu.memory_space<vmem>>, %arg16: memref<2x1x32xf32, #tpu.memory_space<vmem>>, %arg17: memref<2x1x32xf32, #tpu.memory_space<vmem>>, %arg18: memref<3x1x32xf32, #tpu.memory_space<vmem>>, %arg19: memref<3x1x1xf32, #tpu.memory_space<vmem>>, %arg20: memref<4x16x1xf32, #tpu.memory_space<vmem>>) attributes {dimension_semantics = [], scalar_prefetch = 0 : i64, scratch_operands = 0 : i64, tpu.core_type = #tpu.core_type<tc>} {
    %c0 = arith.constant 0 : index
    %c0_0 = arith.constant 0 : index
    %0 = vector.load %arg3[%c0, %c0_0] : memref<16x8xf32, #tpu.memory_space<vmem>>, vector<16x8xf32>
    %c0_1 = arith.constant 0 : index
    %c0_2 = arith.constant 0 : index
    %1 = vector.load %arg4[%c0_1, %c0_2] : memref<16x16xf32, #tpu.memory_space<vmem>>, vector<16x16xf32>
    %c0_3 = arith.constant 0 : index
    %c0_4 = arith.constant 0 : index
    %2 = vector.load %arg5[%c0_3, %c0_4] : memref<16x16xf32, #tpu.memory_space<vmem>>, vector<16x16xf32>
    %cst = arith.constant 0.000000e+00 : f32
    %3 = vector.broadcast %cst : f32 to vector<16x16xf32>
    %4 = arith.cmpf ogt, %2, %3 : vector<16x16xf32>
    %cst_5 = arith.constant 0.000000e+00 : f32
    %cst_6 = arith.constant -1.000000e+09 : f32
    %5 = vector.broadcast %cst_5 : f32 to vector<16x16xf32>
    %6 = vector.broadcast %cst_6 : f32 to vector<16x16xf32>
    %7 = arith.select %4, %5, %6 : vector<16x16xi1>, vector<16x16xf32>
    %c0_7 = arith.constant 0 : index
    %c0_8 = arith.constant 0 : index
    %8 = memref.load %arg0[%c0_7, %c0_8] : memref<2x3xf32, #tpu.memory_space<smem>>
    %c0_9 = arith.constant 0 : index
    %c1 = arith.constant 1 : index
    %9 = memref.load %arg0[%c0_9, %c1] : memref<2x3xf32, #tpu.memory_space<smem>>
    %c0_10 = arith.constant 0 : index
    %c2 = arith.constant 2 : index
    %10 = memref.load %arg0[%c0_10, %c2] : memref<2x3xf32, #tpu.memory_space<smem>>
    %c0_11 = arith.constant 0 : index
    %c0_12 = arith.constant 0 : index
    %c0_13 = arith.constant 0 : index
    %11 = vector.load %arg2[%c0_11, %c0_12, %c0_13] : memref<2x16x5xf32, #tpu.memory_space<vmem>>, vector<1x16x5xf32>
    %12 = vector.shape_cast %11 : vector<1x16x5xf32> to vector<16x5xf32>
    %c0_14 = arith.constant 0 : index
    %c0_15 = arith.constant 0 : index
    %c0_16 = arith.constant 0 : index
    %13 = vector.load %arg6[%c0_14, %c0_15, %c0_16] : memref<2x16x48xf32, #tpu.memory_space<vmem>>, vector<1x16x48xf32>
    %14 = vector.shape_cast %13 : vector<1x16x48xf32> to vector<16x48xf32>
    %c0_17 = arith.constant 0 : index
    %c0_18 = arith.constant 0 : index
    %c0_19 = arith.constant 0 : index
    %15 = vector.load %arg7[%c0_17, %c0_18, %c0_19] : memref<2x1x48xf32, #tpu.memory_space<vmem>>, vector<1x1x48xf32>
    %16 = vector.shape_cast %15 : vector<1x1x48xf32> to vector<1x48xf32>
    %c0_20 = arith.constant 0 : index
    %c0_21 = arith.constant 0 : index
    %c0_22 = arith.constant 0 : index
    %17 = vector.load %arg8[%c0_20, %c0_21, %c0_22] : memref<2x1x48xf32, #tpu.memory_space<vmem>>, vector<1x1x48xf32>
    %18 = vector.shape_cast %17 : vector<1x1x48xf32> to vector<1x48xf32>
    %c0_23 = arith.constant 0 : index
    %c0_24 = arith.constant 0 : index
    %c0_25 = arith.constant 0 : index
    %19 = vector.load %arg9[%c0_23, %c0_24, %c0_25] : memref<2x1x16xf32, #tpu.memory_space<vmem>>, vector<1x1x16xf32>
    %20 = vector.shape_cast %19 : vector<1x1x16xf32> to vector<1x16xf32>
    %c0_26 = arith.constant 0 : index
    %c0_27 = arith.constant 0 : index
    %c0_28 = arith.constant 0 : index
    %21 = vector.load %arg11[%c0_26, %c0_27, %c0_28] : memref<2x1x16xf32, #tpu.memory_space<vmem>>, vector<1x1x16xf32>
    %22 = vector.shape_cast %21 : vector<1x1x16xf32> to vector<1x16xf32>
    %c0_29 = arith.constant 0 : index
    %c0_30 = arith.constant 0 : index
    %c0_31 = arith.constant 0 : index
    %23 = vector.load %arg12[%c0_29, %c0_30, %c0_31] : memref<2x48x16xf32, #tpu.memory_space<vmem>>, vector<1x48x16xf32>
    %24 = vector.shape_cast %23 : vector<1x48x16xf32> to vector<48x16xf32>
    %c0_32 = arith.constant 0 : index
    %c0_33 = arith.constant 0 : index
    %c0_34 = arith.constant 0 : index
    %25 = vector.load %arg13[%c0_32, %c0_33, %c0_34] : memref<2x16x32xf32, #tpu.memory_space<vmem>>, vector<1x16x32xf32>
    %26 = vector.shape_cast %25 : vector<1x16x32xf32> to vector<16x32xf32>
    %c0_35 = arith.constant 0 : index
    %c0_36 = arith.constant 0 : index
    %c0_37 = arith.constant 0 : index
    %27 = vector.load %arg14[%c0_35, %c0_36, %c0_37] : memref<2x1x32xf32, #tpu.memory_space<vmem>>, vector<1x1x32xf32>
    %28 = vector.shape_cast %27 : vector<1x1x32xf32> to vector<1x32xf32>
    %c0_38 = arith.constant 0 : index
    %c0_39 = arith.constant 0 : index
    %c0_40 = arith.constant 0 : index
    %29 = vector.load %arg16[%c0_38, %c0_39, %c0_40] : memref<2x1x32xf32, #tpu.memory_space<vmem>>, vector<1x1x32xf32>
    %30 = vector.shape_cast %29 : vector<1x1x32xf32> to vector<1x32xf32>
    %c0_41 = arith.constant 0 : index
    %c0_42 = arith.constant 0 : index
    %c0_43 = arith.constant 0 : index
    %31 = vector.load %arg17[%c0_41, %c0_42, %c0_43] : memref<2x1x32xf32, #tpu.memory_space<vmem>>, vector<1x1x32xf32>
    %32 = vector.shape_cast %31 : vector<1x1x32xf32> to vector<1x32xf32>
    %c0_44 = arith.constant 0 : index
    %c0_45 = arith.constant 0 : index
    %c0_46 = arith.constant 0 : index
    %33 = vector.load %arg15[%c0_44, %c0_45, %c0_46] : memref<2x8x32xf32, #tpu.memory_space<vmem>>, vector<1x8x32xf32>
    %34 = vector.shape_cast %33 : vector<1x8x32xf32> to vector<8x32xf32>
    %cst_47 = arith.constant dense<0.000000e+00> : vector<16x32xf32>
    %35 = tpu.matmul %0, %34, %cst_47 {dimension_numbers = #tpu.dot_dimension_numbers<[1], [0], [0], [1], [0, 0, 1, 1], [], []>} : vector<16x8xf32>, vector<8x32xf32>, vector<16x32xf32> -> vector<16x32xf32>
    %cst_48 = arith.constant dense<0.000000e+00> : vector<16x5xf32>
    %36 = tpu.matmul %1, %12, %cst_48 {dimension_numbers = #tpu.dot_dimension_numbers<[1], [0], [0], [1], [0, 0, 1, 1], [], []>} : vector<16x16xf32>, vector<16x5xf32>, vector<16x5xf32> -> vector<16x5xf32>
    %cst_49 = arith.constant dense<0.000000e+00> : vector<16x5xf32>
    %37 = tpu.matmul %1, %36, %cst_49 {dimension_numbers = #tpu.dot_dimension_numbers<[1], [0], [0], [1], [0, 0, 1, 1], [], []>} : vector<16x16xf32>, vector<16x5xf32>, vector<16x5xf32> -> vector<16x5xf32>
    %38 = vector.extract_strided_slice %12 {offsets = [0, 0], sizes = [16, 1], strides = [1, 1]} : vector<16x5xf32> to vector<16x1xf32>
    %39 = vector.broadcast %38 : vector<16x1xf32> to vector<16x48xf32>
    %40 = vector.broadcast %16 : vector<1x48xf32> to vector<16x48xf32>
    %41 = arith.mulf %39, %40 : vector<16x48xf32>
    %42 = vector.broadcast %18 : vector<1x48xf32> to vector<16x48xf32>
    %43 = arith.addf %41, %42 : vector<16x48xf32>
    %44 = vector.extract_strided_slice %12 {offsets = [0, 0], sizes = [16, 1], strides = [1, 1]} : vector<16x5xf32> to vector<16x1xf32>
    %c0_50 = arith.constant 0 : index
    %c0_51 = arith.constant 0 : index
    %c0_52 = arith.constant 0 : index
    %c0_53 = arith.constant 0 : index
    %45 = vector.load %arg10[%c0_50, %c0_51, %c0_52, %c0_53] : memref<2x3x1x16xf32, #tpu.memory_space<vmem>>, vector<1x1x1x16xf32>
    %46 = vector.shape_cast %45 : vector<1x1x1x16xf32> to vector<1x16xf32>
    %47 = vector.broadcast %44 : vector<16x1xf32> to vector<16x16xf32>
    %48 = vector.broadcast %46 : vector<1x16xf32> to vector<16x16xf32>
    %49 = arith.mulf %47, %48 : vector<16x16xf32>
    %50 = vector.broadcast %22 : vector<1x16xf32> to vector<16x16xf32>
    %51 = arith.addf %50, %49 : vector<16x16xf32>
    %52 = vector.extract_strided_slice %36 {offsets = [0, 0], sizes = [16, 1], strides = [1, 1]} : vector<16x5xf32> to vector<16x1xf32>
    %c0_54 = arith.constant 0 : index
    %c1_55 = arith.constant 1 : index
    %c0_56 = arith.constant 0 : index
    %c0_57 = arith.constant 0 : index
    %53 = vector.load %arg10[%c0_54, %c1_55, %c0_56, %c0_57] : memref<2x3x1x16xf32, #tpu.memory_space<vmem>>, vector<1x1x1x16xf32>
    %54 = vector.shape_cast %53 : vector<1x1x1x16xf32> to vector<1x16xf32>
    %55 = vector.broadcast %52 : vector<16x1xf32> to vector<16x16xf32>
    %56 = vector.broadcast %54 : vector<1x16xf32> to vector<16x16xf32>
    %57 = arith.mulf %55, %56 : vector<16x16xf32>
    %58 = arith.addf %51, %57 : vector<16x16xf32>
    %59 = vector.extract_strided_slice %37 {offsets = [0, 0], sizes = [16, 1], strides = [1, 1]} : vector<16x5xf32> to vector<16x1xf32>
    %c0_58 = arith.constant 0 : index
    %c2_59 = arith.constant 2 : index
    %c0_60 = arith.constant 0 : index
    %c0_61 = arith.constant 0 : index
    %60 = vector.load %arg10[%c0_58, %c2_59, %c0_60, %c0_61] : memref<2x3x1x16xf32, #tpu.memory_space<vmem>>, vector<1x1x1x16xf32>
    %61 = vector.shape_cast %60 : vector<1x1x1x16xf32> to vector<1x16xf32>
    %62 = vector.broadcast %59 : vector<16x1xf32> to vector<16x16xf32>
    %63 = vector.broadcast %61 : vector<1x16xf32> to vector<16x16xf32>
    %64 = arith.mulf %62, %63 : vector<16x16xf32>
    %65 = arith.addf %58, %64 : vector<16x16xf32>
    %66 = vector.broadcast %38 : vector<16x1xf32> to vector<16x32xf32>
    %67 = vector.broadcast %28 : vector<1x32xf32> to vector<16x32xf32>
    %68 = arith.mulf %66, %67 : vector<16x32xf32>
    %69 = arith.addf %68, %35 : vector<16x32xf32>
    %70 = vector.extract_strided_slice %12 {offsets = [0, 1], sizes = [16, 1], strides = [1, 1]} : vector<16x5xf32> to vector<16x1xf32>
    %71 = vector.broadcast %70 : vector<16x1xf32> to vector<16x48xf32>
    %72 = vector.broadcast %16 : vector<1x48xf32> to vector<16x48xf32>
    %73 = arith.mulf %71, %72 : vector<16x48xf32>
    %74 = vector.broadcast %18 : vector<1x48xf32> to vector<16x48xf32>
    %75 = arith.addf %73, %74 : vector<16x48xf32>
    %76 = vector.extract_strided_slice %12 {offsets = [0, 1], sizes = [16, 1], strides = [1, 1]} : vector<16x5xf32> to vector<16x1xf32>
    %c0_62 = arith.constant 0 : index
    %c0_63 = arith.constant 0 : index
    %c0_64 = arith.constant 0 : index
    %c0_65 = arith.constant 0 : index
    %77 = vector.load %arg10[%c0_62, %c0_63, %c0_64, %c0_65] : memref<2x3x1x16xf32, #tpu.memory_space<vmem>>, vector<1x1x1x16xf32>
    %78 = vector.shape_cast %77 : vector<1x1x1x16xf32> to vector<1x16xf32>
    %79 = vector.broadcast %76 : vector<16x1xf32> to vector<16x16xf32>
    %80 = vector.broadcast %78 : vector<1x16xf32> to vector<16x16xf32>
    %81 = arith.mulf %79, %80 : vector<16x16xf32>
    %82 = vector.broadcast %22 : vector<1x16xf32> to vector<16x16xf32>
    %83 = arith.addf %82, %81 : vector<16x16xf32>
    %84 = vector.extract_strided_slice %36 {offsets = [0, 1], sizes = [16, 1], strides = [1, 1]} : vector<16x5xf32> to vector<16x1xf32>
    %c0_66 = arith.constant 0 : index
    %c1_67 = arith.constant 1 : index
    %c0_68 = arith.constant 0 : index
    %c0_69 = arith.constant 0 : index
    %85 = vector.load %arg10[%c0_66, %c1_67, %c0_68, %c0_69] : memref<2x3x1x16xf32, #tpu.memory_space<vmem>>, vector<1x1x1x16xf32>
    %86 = vector.shape_cast %85 : vector<1x1x1x16xf32> to vector<1x16xf32>
    %87 = vector.broadcast %84 : vector<16x1xf32> to vector<16x16xf32>
    %88 = vector.broadcast %86 : vector<1x16xf32> to vector<16x16xf32>
    %89 = arith.mulf %87, %88 : vector<16x16xf32>
    %90 = arith.addf %83, %89 : vector<16x16xf32>
    %91 = vector.extract_strided_slice %37 {offsets = [0, 1], sizes = [16, 1], strides = [1, 1]} : vector<16x5xf32> to vector<16x1xf32>
    %c0_70 = arith.constant 0 : index
    %c2_71 = arith.constant 2 : index
    %c0_72 = arith.constant 0 : index
    %c0_73 = arith.constant 0 : index
    %92 = vector.load %arg10[%c0_70, %c2_71, %c0_72, %c0_73] : memref<2x3x1x16xf32, #tpu.memory_space<vmem>>, vector<1x1x1x16xf32>
    %93 = vector.shape_cast %92 : vector<1x1x1x16xf32> to vector<1x16xf32>
    %94 = vector.broadcast %91 : vector<16x1xf32> to vector<16x16xf32>
    %95 = vector.broadcast %93 : vector<1x16xf32> to vector<16x16xf32>
    %96 = arith.mulf %94, %95 : vector<16x16xf32>
    %97 = arith.addf %90, %96 : vector<16x16xf32>
    %98 = vector.broadcast %70 : vector<16x1xf32> to vector<16x32xf32>
    %99 = vector.broadcast %28 : vector<1x32xf32> to vector<16x32xf32>
    %100 = arith.mulf %98, %99 : vector<16x32xf32>
    %101 = arith.addf %100, %35 : vector<16x32xf32>
    %102 = vector.extract_strided_slice %12 {offsets = [0, 2], sizes = [16, 1], strides = [1, 1]} : vector<16x5xf32> to vector<16x1xf32>
    %103 = vector.broadcast %102 : vector<16x1xf32> to vector<16x48xf32>
    %104 = vector.broadcast %16 : vector<1x48xf32> to vector<16x48xf32>
    %105 = arith.mulf %103, %104 : vector<16x48xf32>
    %106 = vector.broadcast %18 : vector<1x48xf32> to vector<16x48xf32>
    %107 = arith.addf %105, %106 : vector<16x48xf32>
    %108 = vector.extract_strided_slice %12 {offsets = [0, 2], sizes = [16, 1], strides = [1, 1]} : vector<16x5xf32> to vector<16x1xf32>
    %c0_74 = arith.constant 0 : index
    %c0_75 = arith.constant 0 : index
    %c0_76 = arith.constant 0 : index
    %c0_77 = arith.constant 0 : index
    %109 = vector.load %arg10[%c0_74, %c0_75, %c0_76, %c0_77] : memref<2x3x1x16xf32, #tpu.memory_space<vmem>>, vector<1x1x1x16xf32>
    %110 = vector.shape_cast %109 : vector<1x1x1x16xf32> to vector<1x16xf32>
    %111 = vector.broadcast %108 : vector<16x1xf32> to vector<16x16xf32>
    %112 = vector.broadcast %110 : vector<1x16xf32> to vector<16x16xf32>
    %113 = arith.mulf %111, %112 : vector<16x16xf32>
    %114 = vector.broadcast %22 : vector<1x16xf32> to vector<16x16xf32>
    %115 = arith.addf %114, %113 : vector<16x16xf32>
    %116 = vector.extract_strided_slice %36 {offsets = [0, 2], sizes = [16, 1], strides = [1, 1]} : vector<16x5xf32> to vector<16x1xf32>
    %c0_78 = arith.constant 0 : index
    %c1_79 = arith.constant 1 : index
    %c0_80 = arith.constant 0 : index
    %c0_81 = arith.constant 0 : index
    %117 = vector.load %arg10[%c0_78, %c1_79, %c0_80, %c0_81] : memref<2x3x1x16xf32, #tpu.memory_space<vmem>>, vector<1x1x1x16xf32>
    %118 = vector.shape_cast %117 : vector<1x1x1x16xf32> to vector<1x16xf32>
    %119 = vector.broadcast %116 : vector<16x1xf32> to vector<16x16xf32>
    %120 = vector.broadcast %118 : vector<1x16xf32> to vector<16x16xf32>
    %121 = arith.mulf %119, %120 : vector<16x16xf32>
    %122 = arith.addf %115, %121 : vector<16x16xf32>
    %123 = vector.extract_strided_slice %37 {offsets = [0, 2], sizes = [16, 1], strides = [1, 1]} : vector<16x5xf32> to vector<16x1xf32>
    %c0_82 = arith.constant 0 : index
    %c2_83 = arith.constant 2 : index
    %c0_84 = arith.constant 0 : index
    %c0_85 = arith.constant 0 : index
    %124 = vector.load %arg10[%c0_82, %c2_83, %c0_84, %c0_85] : memref<2x3x1x16xf32, #tpu.memory_space<vmem>>, vector<1x1x1x16xf32>
    %125 = vector.shape_cast %124 : vector<1x1x1x16xf32> to vector<1x16xf32>
    %126 = vector.broadcast %123 : vector<16x1xf32> to vector<16x16xf32>
    %127 = vector.broadcast %125 : vector<1x16xf32> to vector<16x16xf32>
    %128 = arith.mulf %126, %127 : vector<16x16xf32>
    %129 = arith.addf %122, %128 : vector<16x16xf32>
    %130 = vector.broadcast %102 : vector<16x1xf32> to vector<16x32xf32>
    %131 = vector.broadcast %28 : vector<1x32xf32> to vector<16x32xf32>
    %132 = arith.mulf %130, %131 : vector<16x32xf32>
    %133 = arith.addf %132, %35 : vector<16x32xf32>
    %134 = vector.extract_strided_slice %12 {offsets = [0, 3], sizes = [16, 1], strides = [1, 1]} : vector<16x5xf32> to vector<16x1xf32>
    %135 = vector.broadcast %134 : vector<16x1xf32> to vector<16x48xf32>
    %136 = vector.broadcast %16 : vector<1x48xf32> to vector<16x48xf32>
    %137 = arith.mulf %135, %136 : vector<16x48xf32>
    %138 = vector.broadcast %18 : vector<1x48xf32> to vector<16x48xf32>
    %139 = arith.addf %137, %138 : vector<16x48xf32>
    %140 = vector.extract_strided_slice %12 {offsets = [0, 3], sizes = [16, 1], strides = [1, 1]} : vector<16x5xf32> to vector<16x1xf32>
    %c0_86 = arith.constant 0 : index
    %c0_87 = arith.constant 0 : index
    %c0_88 = arith.constant 0 : index
    %c0_89 = arith.constant 0 : index
    %141 = vector.load %arg10[%c0_86, %c0_87, %c0_88, %c0_89] : memref<2x3x1x16xf32, #tpu.memory_space<vmem>>, vector<1x1x1x16xf32>
    %142 = vector.shape_cast %141 : vector<1x1x1x16xf32> to vector<1x16xf32>
    %143 = vector.broadcast %140 : vector<16x1xf32> to vector<16x16xf32>
    %144 = vector.broadcast %142 : vector<1x16xf32> to vector<16x16xf32>
    %145 = arith.mulf %143, %144 : vector<16x16xf32>
    %146 = vector.broadcast %22 : vector<1x16xf32> to vector<16x16xf32>
    %147 = arith.addf %146, %145 : vector<16x16xf32>
    %148 = vector.extract_strided_slice %36 {offsets = [0, 3], sizes = [16, 1], strides = [1, 1]} : vector<16x5xf32> to vector<16x1xf32>
    %c0_90 = arith.constant 0 : index
    %c1_91 = arith.constant 1 : index
    %c0_92 = arith.constant 0 : index
    %c0_93 = arith.constant 0 : index
    %149 = vector.load %arg10[%c0_90, %c1_91, %c0_92, %c0_93] : memref<2x3x1x16xf32, #tpu.memory_space<vmem>>, vector<1x1x1x16xf32>
    %150 = vector.shape_cast %149 : vector<1x1x1x16xf32> to vector<1x16xf32>
    %151 = vector.broadcast %148 : vector<16x1xf32> to vector<16x16xf32>
    %152 = vector.broadcast %150 : vector<1x16xf32> to vector<16x16xf32>
    %153 = arith.mulf %151, %152 : vector<16x16xf32>
    %154 = arith.addf %147, %153 : vector<16x16xf32>
    %155 = vector.extract_strided_slice %37 {offsets = [0, 3], sizes = [16, 1], strides = [1, 1]} : vector<16x5xf32> to vector<16x1xf32>
    %c0_94 = arith.constant 0 : index
    %c2_95 = arith.constant 2 : index
    %c0_96 = arith.constant 0 : index
    %c0_97 = arith.constant 0 : index
    %156 = vector.load %arg10[%c0_94, %c2_95, %c0_96, %c0_97] : memref<2x3x1x16xf32, #tpu.memory_space<vmem>>, vector<1x1x1x16xf32>
    %157 = vector.shape_cast %156 : vector<1x1x1x16xf32> to vector<1x16xf32>
    %158 = vector.broadcast %155 : vector<16x1xf32> to vector<16x16xf32>
    %159 = vector.broadcast %157 : vector<1x16xf32> to vector<16x16xf32>
    %160 = arith.mulf %158, %159 : vector<16x16xf32>
    %161 = arith.addf %154, %160 : vector<16x16xf32>
    %162 = vector.broadcast %134 : vector<16x1xf32> to vector<16x32xf32>
    %163 = vector.broadcast %28 : vector<1x32xf32> to vector<16x32xf32>
    %164 = arith.mulf %162, %163 : vector<16x32xf32>
    %165 = arith.addf %164, %35 : vector<16x32xf32>
    %166 = vector.extract_strided_slice %12 {offsets = [0, 4], sizes = [16, 1], strides = [1, 1]} : vector<16x5xf32> to vector<16x1xf32>
    %167 = vector.broadcast %166 : vector<16x1xf32> to vector<16x48xf32>
    %168 = vector.broadcast %16 : vector<1x48xf32> to vector<16x48xf32>
    %169 = arith.mulf %167, %168 : vector<16x48xf32>
    %170 = vector.broadcast %18 : vector<1x48xf32> to vector<16x48xf32>
    %171 = arith.addf %169, %170 : vector<16x48xf32>
    %172 = vector.extract_strided_slice %12 {offsets = [0, 4], sizes = [16, 1], strides = [1, 1]} : vector<16x5xf32> to vector<16x1xf32>
    %c0_98 = arith.constant 0 : index
    %c0_99 = arith.constant 0 : index
    %c0_100 = arith.constant 0 : index
    %c0_101 = arith.constant 0 : index
    %173 = vector.load %arg10[%c0_98, %c0_99, %c0_100, %c0_101] : memref<2x3x1x16xf32, #tpu.memory_space<vmem>>, vector<1x1x1x16xf32>
    %174 = vector.shape_cast %173 : vector<1x1x1x16xf32> to vector<1x16xf32>
    %175 = vector.broadcast %172 : vector<16x1xf32> to vector<16x16xf32>
    %176 = vector.broadcast %174 : vector<1x16xf32> to vector<16x16xf32>
    %177 = arith.mulf %175, %176 : vector<16x16xf32>
    %178 = vector.broadcast %22 : vector<1x16xf32> to vector<16x16xf32>
    %179 = arith.addf %178, %177 : vector<16x16xf32>
    %180 = vector.extract_strided_slice %36 {offsets = [0, 4], sizes = [16, 1], strides = [1, 1]} : vector<16x5xf32> to vector<16x1xf32>
    %c0_102 = arith.constant 0 : index
    %c1_103 = arith.constant 1 : index
    %c0_104 = arith.constant 0 : index
    %c0_105 = arith.constant 0 : index
    %181 = vector.load %arg10[%c0_102, %c1_103, %c0_104, %c0_105] : memref<2x3x1x16xf32, #tpu.memory_space<vmem>>, vector<1x1x1x16xf32>
    %182 = vector.shape_cast %181 : vector<1x1x1x16xf32> to vector<1x16xf32>
    %183 = vector.broadcast %180 : vector<16x1xf32> to vector<16x16xf32>
    %184 = vector.broadcast %182 : vector<1x16xf32> to vector<16x16xf32>
    %185 = arith.mulf %183, %184 : vector<16x16xf32>
    %186 = arith.addf %179, %185 : vector<16x16xf32>
    %187 = vector.extract_strided_slice %37 {offsets = [0, 4], sizes = [16, 1], strides = [1, 1]} : vector<16x5xf32> to vector<16x1xf32>
    %c0_106 = arith.constant 0 : index
    %c2_107 = arith.constant 2 : index
    %c0_108 = arith.constant 0 : index
    %c0_109 = arith.constant 0 : index
    %188 = vector.load %arg10[%c0_106, %c2_107, %c0_108, %c0_109] : memref<2x3x1x16xf32, #tpu.memory_space<vmem>>, vector<1x1x1x16xf32>
    %189 = vector.shape_cast %188 : vector<1x1x1x16xf32> to vector<1x16xf32>
    %190 = vector.broadcast %187 : vector<16x1xf32> to vector<16x16xf32>
    %191 = vector.broadcast %189 : vector<1x16xf32> to vector<16x16xf32>
    %192 = arith.mulf %190, %191 : vector<16x16xf32>
    %193 = arith.addf %186, %192 : vector<16x16xf32>
    %194 = vector.broadcast %166 : vector<16x1xf32> to vector<16x32xf32>
    %195 = vector.broadcast %28 : vector<1x32xf32> to vector<16x32xf32>
    %196 = arith.mulf %194, %195 : vector<16x32xf32>
    %197 = arith.addf %196, %35 : vector<16x32xf32>
    %cst_110 = arith.constant 0.000000e+00 : f32
    %198 = vector.broadcast %cst_110 : f32 to vector<16x16xf32>
    %cst_111 = arith.constant 0.000000e+00 : f32
    %199 = vector.broadcast %cst_111 : f32 to vector<16x16xf32>
    %cst_112 = arith.constant 0.000000e+00 : f32
    %200 = vector.broadcast %cst_112 : f32 to vector<16x16xf32>
    %201 = vector.broadcast %8 : f32 to vector<16x16xf32>
    %202 = arith.mulf %201, %198 : vector<16x16xf32>
    %203 = vector.broadcast %9 : f32 to vector<16x16xf32>
    %204 = arith.mulf %203, %199 : vector<16x16xf32>
    %205 = arith.addf %202, %204 : vector<16x16xf32>
    %206 = vector.broadcast %10 : f32 to vector<16x16xf32>
    %207 = arith.mulf %206, %200 : vector<16x16xf32>
    %208 = arith.addf %205, %207 : vector<16x16xf32>
    %cst_113 = arith.constant dense<0.000000e+00> : vector<16x48xf32>
    %209 = tpu.matmul %208, %14, %cst_113 {dimension_numbers = #tpu.dot_dimension_numbers<[1], [0], [0], [1], [0, 0, 1, 1], [], []>} : vector<16x16xf32>, vector<16x48xf32>, vector<16x48xf32> -> vector<16x48xf32>
    %210 = arith.addf %43, %209 : vector<16x48xf32>
    %211 = vector.extract_strided_slice %210 {offsets = [0, 0], sizes = [16, 16], strides = [1, 1]} : vector<16x48xf32> to vector<16x16xf32>
    %212 = arith.negf %211 : vector<16x16xf32>
    %213 = math.exp %212 : vector<16x16xf32>
    %cst_114 = arith.constant 1.000000e+00 : f32
    %214 = vector.broadcast %cst_114 : f32 to vector<16x16xf32>
    %215 = arith.addf %214, %213 : vector<16x16xf32>
    %216 = arith.divf %214, %215 : vector<16x16xf32>
    %217 = vector.extract_strided_slice %210 {offsets = [0, 16], sizes = [16, 16], strides = [1, 1]} : vector<16x48xf32> to vector<16x16xf32>
    %218 = arith.negf %217 : vector<16x16xf32>
    %219 = math.exp %218 : vector<16x16xf32>
    %cst_115 = arith.constant 1.000000e+00 : f32
    %220 = vector.broadcast %cst_115 : f32 to vector<16x16xf32>
    %221 = arith.addf %220, %219 : vector<16x16xf32>
    %222 = arith.divf %220, %221 : vector<16x16xf32>
    %223 = vector.extract_strided_slice %43 {offsets = [0, 32], sizes = [16, 16], strides = [1, 1]} : vector<16x48xf32> to vector<16x16xf32>
    %224 = vector.extract_strided_slice %209 {offsets = [0, 32], sizes = [16, 16], strides = [1, 1]} : vector<16x48xf32> to vector<16x16xf32>
    %225 = vector.broadcast %20 : vector<1x16xf32> to vector<16x16xf32>
    %226 = arith.addf %224, %225 : vector<16x16xf32>
    %227 = arith.mulf %216, %226 : vector<16x16xf32>
    %228 = arith.addf %223, %227 : vector<16x16xf32>
    %229 = math.tanh %228 : vector<16x16xf32>
    %cst_116 = arith.constant 1.000000e+00 : f32
    %230 = vector.broadcast %cst_116 : f32 to vector<16x16xf32>
    %231 = arith.subf %230, %222 : vector<16x16xf32>
    %232 = arith.mulf %231, %229 : vector<16x16xf32>
    %233 = arith.mulf %222, %208 : vector<16x16xf32>
    %234 = arith.addf %232, %233 : vector<16x16xf32>
    %cst_117 = arith.constant dense<0.000000e+00> : vector<16x16xf32>
    %235 = tpu.matmul %1, %234, %cst_117 {dimension_numbers = #tpu.dot_dimension_numbers<[1], [0], [0], [1], [0, 0, 1, 1], [], []>} : vector<16x16xf32>, vector<16x16xf32>, vector<16x16xf32> -> vector<16x16xf32>
    %cst_118 = arith.constant dense<0.000000e+00> : vector<16x16xf32>
    %236 = tpu.matmul %1, %235, %cst_118 {dimension_numbers = #tpu.dot_dimension_numbers<[1], [0], [0], [1], [0, 0, 1, 1], [], []>} : vector<16x16xf32>, vector<16x16xf32>, vector<16x16xf32> -> vector<16x16xf32>
    %237 = tpu.concatenate %234, %235, %236 in 1 : vector<16x16xf32>, vector<16x16xf32>, vector<16x16xf32> -> vector<16x48xf32>
    %cst_119 = arith.constant dense<0.000000e+00> : vector<16x16xf32>
    %238 = tpu.matmul %237, %24, %cst_119 {dimension_numbers = #tpu.dot_dimension_numbers<[1], [0], [0], [1], [0, 0, 1, 1], [], []>} : vector<16x48xf32>, vector<48x16xf32>, vector<16x16xf32> -> vector<16x16xf32>
    %239 = arith.addf %65, %238 : vector<16x16xf32>
    %240 = math.tanh %239 : vector<16x16xf32>
    %cst_120 = arith.constant dense<0.000000e+00> : vector<16x32xf32>
    %241 = tpu.matmul %234, %26, %cst_120 {dimension_numbers = #tpu.dot_dimension_numbers<[1], [0], [0], [1], [0, 0, 1, 1], [], []>} : vector<16x16xf32>, vector<16x32xf32>, vector<16x32xf32> -> vector<16x32xf32>
    %242 = arith.addf %69, %241 : vector<16x32xf32>
    %243 = vector.broadcast %30 : vector<1x32xf32> to vector<16x32xf32>
    %244 = arith.mulf %242, %243 : vector<16x32xf32>
    %cst_121 = arith.constant 0.000000e+00 : f32
    %245 = vector.broadcast %cst_121 : f32 to vector<16x16xf32>
    %246 = vector.extract_strided_slice %242 {offsets = [0, 0], sizes = [16, 16], strides = [1, 1]} : vector<16x32xf32> to vector<16x16xf32>
    %247 = vector.extract_strided_slice %244 {offsets = [0, 0], sizes = [16, 16], strides = [1, 1]} : vector<16x32xf32> to vector<16x16xf32>
    %cst_122 = arith.constant dense<0.000000e+00> : vector<16xf32>
    %248 = vector.multi_reduction <add>, %247, %cst_122 [1] : vector<16x16xf32> to vector<16xf32>
    %249 = vector.shape_cast %248 : vector<16xf32> to vector<16x1xf32>
    %250 = vector.extract_strided_slice %32 {offsets = [0, 0], sizes = [1, 16], strides = [1, 1]} : vector<1x32xf32> to vector<1x16xf32>
    %cst_123 = arith.constant dense<0.000000e+00> : vector<1x16xf32>
    %251 = tpu.matmul %250, %246, %cst_123 {dimension_numbers = #tpu.dot_dimension_numbers<[1], [1], [0], [0], [0, 0, 1, 0], [], []>} : vector<1x16xf32>, vector<16x16xf32>, vector<1x16xf32> -> vector<1x16xf32>
    %252 = vector.broadcast %249 : vector<16x1xf32> to vector<16x16xf32>
    %253 = vector.broadcast %251 : vector<1x16xf32> to vector<16x16xf32>
    %254 = arith.addf %252, %253 : vector<16x16xf32>
    %cst_124 = arith.constant 2.000000e-01 : f32
    %255 = vector.broadcast %cst_124 : f32 to vector<16x16xf32>
    %256 = arith.mulf %255, %254 : vector<16x16xf32>
    %257 = arith.maximumf %254, %256 : vector<16x16xf32>
    %258 = arith.addf %257, %7 : vector<16x16xf32>
    %cst_125 = arith.constant dense<0xFF800000> : vector<16xf32>
    %259 = vector.multi_reduction <maximumf>, %258, %cst_125 [1] : vector<16x16xf32> to vector<16xf32>
    %260 = vector.shape_cast %259 : vector<16xf32> to vector<16x1xf32>
    %261 = vector.broadcast %260 : vector<16x1xf32> to vector<16x16xf32>
    %262 = arith.subf %258, %261 : vector<16x16xf32>
    %263 = math.exp %262 : vector<16x16xf32>
    %cst_126 = arith.constant dense<0.000000e+00> : vector<16xf32>
    %264 = vector.multi_reduction <add>, %263, %cst_126 [1] : vector<16x16xf32> to vector<16xf32>
    %265 = vector.shape_cast %264 : vector<16xf32> to vector<16x1xf32>
    %266 = tpu.reciprocal %265 {approx = true} : vector<16x1xf32> -> vector<16x1xf32>
    %267 = vector.broadcast %266 : vector<16x1xf32> to vector<16x16xf32>
    %268 = arith.mulf %263, %267 : vector<16x16xf32>
    %cst_127 = arith.constant dense<0.000000e+00> : vector<16x16xf32>
    %269 = tpu.matmul %268, %246, %cst_127 {dimension_numbers = #tpu.dot_dimension_numbers<[1], [0], [0], [1], [0, 0, 1, 1], [], []>} : vector<16x16xf32>, vector<16x16xf32>, vector<16x16xf32> -> vector<16x16xf32>
    %270 = arith.addf %245, %269 : vector<16x16xf32>
    %271 = vector.extract_strided_slice %242 {offsets = [0, 16], sizes = [16, 16], strides = [1, 1]} : vector<16x32xf32> to vector<16x16xf32>
    %272 = vector.extract_strided_slice %244 {offsets = [0, 16], sizes = [16, 16], strides = [1, 1]} : vector<16x32xf32> to vector<16x16xf32>
    %cst_128 = arith.constant dense<0.000000e+00> : vector<16xf32>
    %273 = vector.multi_reduction <add>, %272, %cst_128 [1] : vector<16x16xf32> to vector<16xf32>
    %274 = vector.shape_cast %273 : vector<16xf32> to vector<16x1xf32>
    %275 = vector.extract_strided_slice %32 {offsets = [0, 16], sizes = [1, 16], strides = [1, 1]} : vector<1x32xf32> to vector<1x16xf32>
    %cst_129 = arith.constant dense<0.000000e+00> : vector<1x16xf32>
    %276 = tpu.matmul %275, %271, %cst_129 {dimension_numbers = #tpu.dot_dimension_numbers<[1], [1], [0], [0], [0, 0, 1, 0], [], []>} : vector<1x16xf32>, vector<16x16xf32>, vector<1x16xf32> -> vector<1x16xf32>
    %277 = vector.broadcast %274 : vector<16x1xf32> to vector<16x16xf32>
    %278 = vector.broadcast %276 : vector<1x16xf32> to vector<16x16xf32>
    %279 = arith.addf %277, %278 : vector<16x16xf32>
    %cst_130 = arith.constant 2.000000e-01 : f32
    %280 = vector.broadcast %cst_130 : f32 to vector<16x16xf32>
    %281 = arith.mulf %280, %279 : vector<16x16xf32>
    %282 = arith.maximumf %279, %281 : vector<16x16xf32>
    %283 = arith.addf %282, %7 : vector<16x16xf32>
    %cst_131 = arith.constant dense<0xFF800000> : vector<16xf32>
    %284 = vector.multi_reduction <maximumf>, %283, %cst_131 [1] : vector<16x16xf32> to vector<16xf32>
    %285 = vector.shape_cast %284 : vector<16xf32> to vector<16x1xf32>
    %286 = vector.broadcast %285 : vector<16x1xf32> to vector<16x16xf32>
    %287 = arith.subf %283, %286 : vector<16x16xf32>
    %288 = math.exp %287 : vector<16x16xf32>
    %cst_132 = arith.constant dense<0.000000e+00> : vector<16xf32>
    %289 = vector.multi_reduction <add>, %288, %cst_132 [1] : vector<16x16xf32> to vector<16xf32>
    %290 = vector.shape_cast %289 : vector<16xf32> to vector<16x1xf32>
    %291 = tpu.reciprocal %290 {approx = true} : vector<16x1xf32> -> vector<16x1xf32>
    %292 = vector.broadcast %291 : vector<16x1xf32> to vector<16x16xf32>
    %293 = arith.mulf %288, %292 : vector<16x16xf32>
    %cst_133 = arith.constant dense<0.000000e+00> : vector<16x16xf32>
    %294 = tpu.matmul %293, %271, %cst_133 {dimension_numbers = #tpu.dot_dimension_numbers<[1], [0], [0], [1], [0, 0, 1, 1], [], []>} : vector<16x16xf32>, vector<16x16xf32>, vector<16x16xf32> -> vector<16x16xf32>
    %295 = arith.addf %270, %294 : vector<16x16xf32>
    %cst_134 = arith.constant 5.000000e-01 : f32
    %296 = vector.broadcast %cst_134 : f32 to vector<16x16xf32>
    %297 = arith.mulf %295, %296 : vector<16x16xf32>
    %298 = math.tanh %297 : vector<16x16xf32>
    %299 = vector.broadcast %8 : f32 to vector<16x16xf32>
    %300 = arith.mulf %299, %234 : vector<16x16xf32>
    %301 = vector.broadcast %9 : f32 to vector<16x16xf32>
    %302 = arith.mulf %301, %240 : vector<16x16xf32>
    %303 = arith.addf %300, %302 : vector<16x16xf32>
    %304 = vector.broadcast %10 : f32 to vector<16x16xf32>
    %305 = arith.mulf %304, %298 : vector<16x16xf32>
    %306 = arith.addf %303, %305 : vector<16x16xf32>
    %cst_135 = arith.constant dense<0.000000e+00> : vector<16x48xf32>
    %307 = tpu.matmul %306, %14, %cst_135 {dimension_numbers = #tpu.dot_dimension_numbers<[1], [0], [0], [1], [0, 0, 1, 1], [], []>} : vector<16x16xf32>, vector<16x48xf32>, vector<16x48xf32> -> vector<16x48xf32>
    %308 = arith.addf %75, %307 : vector<16x48xf32>
    %309 = vector.extract_strided_slice %308 {offsets = [0, 0], sizes = [16, 16], strides = [1, 1]} : vector<16x48xf32> to vector<16x16xf32>
    %310 = arith.negf %309 : vector<16x16xf32>
    %311 = math.exp %310 : vector<16x16xf32>
    %cst_136 = arith.constant 1.000000e+00 : f32
    %312 = vector.broadcast %cst_136 : f32 to vector<16x16xf32>
    %313 = arith.addf %312, %311 : vector<16x16xf32>
    %314 = arith.divf %312, %313 : vector<16x16xf32>
    %315 = vector.extract_strided_slice %308 {offsets = [0, 16], sizes = [16, 16], strides = [1, 1]} : vector<16x48xf32> to vector<16x16xf32>
    %316 = arith.negf %315 : vector<16x16xf32>
    %317 = math.exp %316 : vector<16x16xf32>
    %cst_137 = arith.constant 1.000000e+00 : f32
    %318 = vector.broadcast %cst_137 : f32 to vector<16x16xf32>
    %319 = arith.addf %318, %317 : vector<16x16xf32>
    %320 = arith.divf %318, %319 : vector<16x16xf32>
    %321 = vector.extract_strided_slice %75 {offsets = [0, 32], sizes = [16, 16], strides = [1, 1]} : vector<16x48xf32> to vector<16x16xf32>
    %322 = vector.extract_strided_slice %307 {offsets = [0, 32], sizes = [16, 16], strides = [1, 1]} : vector<16x48xf32> to vector<16x16xf32>
    %323 = vector.broadcast %20 : vector<1x16xf32> to vector<16x16xf32>
    %324 = arith.addf %322, %323 : vector<16x16xf32>
    %325 = arith.mulf %314, %324 : vector<16x16xf32>
    %326 = arith.addf %321, %325 : vector<16x16xf32>
    %327 = math.tanh %326 : vector<16x16xf32>
    %cst_138 = arith.constant 1.000000e+00 : f32
    %328 = vector.broadcast %cst_138 : f32 to vector<16x16xf32>
    %329 = arith.subf %328, %320 : vector<16x16xf32>
    %330 = arith.mulf %329, %327 : vector<16x16xf32>
    %331 = arith.mulf %320, %306 : vector<16x16xf32>
    %332 = arith.addf %330, %331 : vector<16x16xf32>
    %cst_139 = arith.constant dense<0.000000e+00> : vector<16x16xf32>
    %333 = tpu.matmul %1, %332, %cst_139 {dimension_numbers = #tpu.dot_dimension_numbers<[1], [0], [0], [1], [0, 0, 1, 1], [], []>} : vector<16x16xf32>, vector<16x16xf32>, vector<16x16xf32> -> vector<16x16xf32>
    %cst_140 = arith.constant dense<0.000000e+00> : vector<16x16xf32>
    %334 = tpu.matmul %1, %333, %cst_140 {dimension_numbers = #tpu.dot_dimension_numbers<[1], [0], [0], [1], [0, 0, 1, 1], [], []>} : vector<16x16xf32>, vector<16x16xf32>, vector<16x16xf32> -> vector<16x16xf32>
    %335 = tpu.concatenate %332, %333, %334 in 1 : vector<16x16xf32>, vector<16x16xf32>, vector<16x16xf32> -> vector<16x48xf32>
    %cst_141 = arith.constant dense<0.000000e+00> : vector<16x16xf32>
    %336 = tpu.matmul %335, %24, %cst_141 {dimension_numbers = #tpu.dot_dimension_numbers<[1], [0], [0], [1], [0, 0, 1, 1], [], []>} : vector<16x48xf32>, vector<48x16xf32>, vector<16x16xf32> -> vector<16x16xf32>
    %337 = arith.addf %97, %336 : vector<16x16xf32>
    %338 = math.tanh %337 : vector<16x16xf32>
    %cst_142 = arith.constant dense<0.000000e+00> : vector<16x32xf32>
    %339 = tpu.matmul %332, %26, %cst_142 {dimension_numbers = #tpu.dot_dimension_numbers<[1], [0], [0], [1], [0, 0, 1, 1], [], []>} : vector<16x16xf32>, vector<16x32xf32>, vector<16x32xf32> -> vector<16x32xf32>
    %340 = arith.addf %101, %339 : vector<16x32xf32>
    %341 = vector.broadcast %30 : vector<1x32xf32> to vector<16x32xf32>
    %342 = arith.mulf %340, %341 : vector<16x32xf32>
    %cst_143 = arith.constant 0.000000e+00 : f32
    %343 = vector.broadcast %cst_143 : f32 to vector<16x16xf32>
    %344 = vector.extract_strided_slice %340 {offsets = [0, 0], sizes = [16, 16], strides = [1, 1]} : vector<16x32xf32> to vector<16x16xf32>
    %345 = vector.extract_strided_slice %342 {offsets = [0, 0], sizes = [16, 16], strides = [1, 1]} : vector<16x32xf32> to vector<16x16xf32>
    %cst_144 = arith.constant dense<0.000000e+00> : vector<16xf32>
    %346 = vector.multi_reduction <add>, %345, %cst_144 [1] : vector<16x16xf32> to vector<16xf32>
    %347 = vector.shape_cast %346 : vector<16xf32> to vector<16x1xf32>
    %348 = vector.extract_strided_slice %32 {offsets = [0, 0], sizes = [1, 16], strides = [1, 1]} : vector<1x32xf32> to vector<1x16xf32>
    %cst_145 = arith.constant dense<0.000000e+00> : vector<1x16xf32>
    %349 = tpu.matmul %348, %344, %cst_145 {dimension_numbers = #tpu.dot_dimension_numbers<[1], [1], [0], [0], [0, 0, 1, 0], [], []>} : vector<1x16xf32>, vector<16x16xf32>, vector<1x16xf32> -> vector<1x16xf32>
    %350 = vector.broadcast %347 : vector<16x1xf32> to vector<16x16xf32>
    %351 = vector.broadcast %349 : vector<1x16xf32> to vector<16x16xf32>
    %352 = arith.addf %350, %351 : vector<16x16xf32>
    %cst_146 = arith.constant 2.000000e-01 : f32
    %353 = vector.broadcast %cst_146 : f32 to vector<16x16xf32>
    %354 = arith.mulf %353, %352 : vector<16x16xf32>
    %355 = arith.maximumf %352, %354 : vector<16x16xf32>
    %356 = arith.addf %355, %7 : vector<16x16xf32>
    %cst_147 = arith.constant dense<0xFF800000> : vector<16xf32>
    %357 = vector.multi_reduction <maximumf>, %356, %cst_147 [1] : vector<16x16xf32> to vector<16xf32>
    %358 = vector.shape_cast %357 : vector<16xf32> to vector<16x1xf32>
    %359 = vector.broadcast %358 : vector<16x1xf32> to vector<16x16xf32>
    %360 = arith.subf %356, %359 : vector<16x16xf32>
    %361 = math.exp %360 : vector<16x16xf32>
    %cst_148 = arith.constant dense<0.000000e+00> : vector<16xf32>
    %362 = vector.multi_reduction <add>, %361, %cst_148 [1] : vector<16x16xf32> to vector<16xf32>
    %363 = vector.shape_cast %362 : vector<16xf32> to vector<16x1xf32>
    %364 = tpu.reciprocal %363 {approx = true} : vector<16x1xf32> -> vector<16x1xf32>
    %365 = vector.broadcast %364 : vector<16x1xf32> to vector<16x16xf32>
    %366 = arith.mulf %361, %365 : vector<16x16xf32>
    %cst_149 = arith.constant dense<0.000000e+00> : vector<16x16xf32>
    %367 = tpu.matmul %366, %344, %cst_149 {dimension_numbers = #tpu.dot_dimension_numbers<[1], [0], [0], [1], [0, 0, 1, 1], [], []>} : vector<16x16xf32>, vector<16x16xf32>, vector<16x16xf32> -> vector<16x16xf32>
    %368 = arith.addf %343, %367 : vector<16x16xf32>
    %369 = vector.extract_strided_slice %340 {offsets = [0, 16], sizes = [16, 16], strides = [1, 1]} : vector<16x32xf32> to vector<16x16xf32>
    %370 = vector.extract_strided_slice %342 {offsets = [0, 16], sizes = [16, 16], strides = [1, 1]} : vector<16x32xf32> to vector<16x16xf32>
    %cst_150 = arith.constant dense<0.000000e+00> : vector<16xf32>
    %371 = vector.multi_reduction <add>, %370, %cst_150 [1] : vector<16x16xf32> to vector<16xf32>
    %372 = vector.shape_cast %371 : vector<16xf32> to vector<16x1xf32>
    %373 = vector.extract_strided_slice %32 {offsets = [0, 16], sizes = [1, 16], strides = [1, 1]} : vector<1x32xf32> to vector<1x16xf32>
    %cst_151 = arith.constant dense<0.000000e+00> : vector<1x16xf32>
    %374 = tpu.matmul %373, %369, %cst_151 {dimension_numbers = #tpu.dot_dimension_numbers<[1], [1], [0], [0], [0, 0, 1, 0], [], []>} : vector<1x16xf32>, vector<16x16xf32>, vector<1x16xf32> -> vector<1x16xf32>
    %375 = vector.broadcast %372 : vector<16x1xf32> to vector<16x16xf32>
    %376 = vector.broadcast %374 : vector<1x16xf32> to vector<16x16xf32>
    %377 = arith.addf %375, %376 : vector<16x16xf32>
    %cst_152 = arith.constant 2.000000e-01 : f32
    %378 = vector.broadcast %cst_152 : f32 to vector<16x16xf32>
    %379 = arith.mulf %378, %377 : vector<16x16xf32>
    %380 = arith.maximumf %377, %379 : vector<16x16xf32>
    %381 = arith.addf %380, %7 : vector<16x16xf32>
    %cst_153 = arith.constant dense<0xFF800000> : vector<16xf32>
    %382 = vector.multi_reduction <maximumf>, %381, %cst_153 [1] : vector<16x16xf32> to vector<16xf32>
    %383 = vector.shape_cast %382 : vector<16xf32> to vector<16x1xf32>
    %384 = vector.broadcast %383 : vector<16x1xf32> to vector<16x16xf32>
    %385 = arith.subf %381, %384 : vector<16x16xf32>
    %386 = math.exp %385 : vector<16x16xf32>
    %cst_154 = arith.constant dense<0.000000e+00> : vector<16xf32>
    %387 = vector.multi_reduction <add>, %386, %cst_154 [1] : vector<16x16xf32> to vector<16xf32>
    %388 = vector.shape_cast %387 : vector<16xf32> to vector<16x1xf32>
    %389 = tpu.reciprocal %388 {approx = true} : vector<16x1xf32> -> vector<16x1xf32>
    %390 = vector.broadcast %389 : vector<16x1xf32> to vector<16x16xf32>
    %391 = arith.mulf %386, %390 : vector<16x16xf32>
    %cst_155 = arith.constant dense<0.000000e+00> : vector<16x16xf32>
    %392 = tpu.matmul %391, %369, %cst_155 {dimension_numbers = #tpu.dot_dimension_numbers<[1], [0], [0], [1], [0, 0, 1, 1], [], []>} : vector<16x16xf32>, vector<16x16xf32>, vector<16x16xf32> -> vector<16x16xf32>
    %393 = arith.addf %368, %392 : vector<16x16xf32>
    %cst_156 = arith.constant 5.000000e-01 : f32
    %394 = vector.broadcast %cst_156 : f32 to vector<16x16xf32>
    %395 = arith.mulf %393, %394 : vector<16x16xf32>
    %396 = math.tanh %395 : vector<16x16xf32>
    %397 = vector.broadcast %8 : f32 to vector<16x16xf32>
    %398 = arith.mulf %397, %332 : vector<16x16xf32>
    %399 = vector.broadcast %9 : f32 to vector<16x16xf32>
    %400 = arith.mulf %399, %338 : vector<16x16xf32>
    %401 = arith.addf %398, %400 : vector<16x16xf32>
    %402 = vector.broadcast %10 : f32 to vector<16x16xf32>
    %403 = arith.mulf %402, %396 : vector<16x16xf32>
    %404 = arith.addf %401, %403 : vector<16x16xf32>
    %cst_157 = arith.constant dense<0.000000e+00> : vector<16x48xf32>
    %405 = tpu.matmul %404, %14, %cst_157 {dimension_numbers = #tpu.dot_dimension_numbers<[1], [0], [0], [1], [0, 0, 1, 1], [], []>} : vector<16x16xf32>, vector<16x48xf32>, vector<16x48xf32> -> vector<16x48xf32>
    %406 = arith.addf %107, %405 : vector<16x48xf32>
    %407 = vector.extract_strided_slice %406 {offsets = [0, 0], sizes = [16, 16], strides = [1, 1]} : vector<16x48xf32> to vector<16x16xf32>
    %408 = arith.negf %407 : vector<16x16xf32>
    %409 = math.exp %408 : vector<16x16xf32>
    %cst_158 = arith.constant 1.000000e+00 : f32
    %410 = vector.broadcast %cst_158 : f32 to vector<16x16xf32>
    %411 = arith.addf %410, %409 : vector<16x16xf32>
    %412 = arith.divf %410, %411 : vector<16x16xf32>
    %413 = vector.extract_strided_slice %406 {offsets = [0, 16], sizes = [16, 16], strides = [1, 1]} : vector<16x48xf32> to vector<16x16xf32>
    %414 = arith.negf %413 : vector<16x16xf32>
    %415 = math.exp %414 : vector<16x16xf32>
    %cst_159 = arith.constant 1.000000e+00 : f32
    %416 = vector.broadcast %cst_159 : f32 to vector<16x16xf32>
    %417 = arith.addf %416, %415 : vector<16x16xf32>
    %418 = arith.divf %416, %417 : vector<16x16xf32>
    %419 = vector.extract_strided_slice %107 {offsets = [0, 32], sizes = [16, 16], strides = [1, 1]} : vector<16x48xf32> to vector<16x16xf32>
    %420 = vector.extract_strided_slice %405 {offsets = [0, 32], sizes = [16, 16], strides = [1, 1]} : vector<16x48xf32> to vector<16x16xf32>
    %421 = vector.broadcast %20 : vector<1x16xf32> to vector<16x16xf32>
    %422 = arith.addf %420, %421 : vector<16x16xf32>
    %423 = arith.mulf %412, %422 : vector<16x16xf32>
    %424 = arith.addf %419, %423 : vector<16x16xf32>
    %425 = math.tanh %424 : vector<16x16xf32>
    %cst_160 = arith.constant 1.000000e+00 : f32
    %426 = vector.broadcast %cst_160 : f32 to vector<16x16xf32>
    %427 = arith.subf %426, %418 : vector<16x16xf32>
    %428 = arith.mulf %427, %425 : vector<16x16xf32>
    %429 = arith.mulf %418, %404 : vector<16x16xf32>
    %430 = arith.addf %428, %429 : vector<16x16xf32>
    %cst_161 = arith.constant dense<0.000000e+00> : vector<16x16xf32>
    %431 = tpu.matmul %1, %430, %cst_161 {dimension_numbers = #tpu.dot_dimension_numbers<[1], [0], [0], [1], [0, 0, 1, 1], [], []>} : vector<16x16xf32>, vector<16x16xf32>, vector<16x16xf32> -> vector<16x16xf32>
    %cst_162 = arith.constant dense<0.000000e+00> : vector<16x16xf32>
    %432 = tpu.matmul %1, %431, %cst_162 {dimension_numbers = #tpu.dot_dimension_numbers<[1], [0], [0], [1], [0, 0, 1, 1], [], []>} : vector<16x16xf32>, vector<16x16xf32>, vector<16x16xf32> -> vector<16x16xf32>
    %433 = tpu.concatenate %430, %431, %432 in 1 : vector<16x16xf32>, vector<16x16xf32>, vector<16x16xf32> -> vector<16x48xf32>
    %cst_163 = arith.constant dense<0.000000e+00> : vector<16x16xf32>
    %434 = tpu.matmul %433, %24, %cst_163 {dimension_numbers = #tpu.dot_dimension_numbers<[1], [0], [0], [1], [0, 0, 1, 1], [], []>} : vector<16x48xf32>, vector<48x16xf32>, vector<16x16xf32> -> vector<16x16xf32>
    %435 = arith.addf %129, %434 : vector<16x16xf32>
    %436 = math.tanh %435 : vector<16x16xf32>
    %cst_164 = arith.constant dense<0.000000e+00> : vector<16x32xf32>
    %437 = tpu.matmul %430, %26, %cst_164 {dimension_numbers = #tpu.dot_dimension_numbers<[1], [0], [0], [1], [0, 0, 1, 1], [], []>} : vector<16x16xf32>, vector<16x32xf32>, vector<16x32xf32> -> vector<16x32xf32>
    %438 = arith.addf %133, %437 : vector<16x32xf32>
    %439 = vector.broadcast %30 : vector<1x32xf32> to vector<16x32xf32>
    %440 = arith.mulf %438, %439 : vector<16x32xf32>
    %cst_165 = arith.constant 0.000000e+00 : f32
    %441 = vector.broadcast %cst_165 : f32 to vector<16x16xf32>
    %442 = vector.extract_strided_slice %438 {offsets = [0, 0], sizes = [16, 16], strides = [1, 1]} : vector<16x32xf32> to vector<16x16xf32>
    %443 = vector.extract_strided_slice %440 {offsets = [0, 0], sizes = [16, 16], strides = [1, 1]} : vector<16x32xf32> to vector<16x16xf32>
    %cst_166 = arith.constant dense<0.000000e+00> : vector<16xf32>
    %444 = vector.multi_reduction <add>, %443, %cst_166 [1] : vector<16x16xf32> to vector<16xf32>
    %445 = vector.shape_cast %444 : vector<16xf32> to vector<16x1xf32>
    %446 = vector.extract_strided_slice %32 {offsets = [0, 0], sizes = [1, 16], strides = [1, 1]} : vector<1x32xf32> to vector<1x16xf32>
    %cst_167 = arith.constant dense<0.000000e+00> : vector<1x16xf32>
    %447 = tpu.matmul %446, %442, %cst_167 {dimension_numbers = #tpu.dot_dimension_numbers<[1], [1], [0], [0], [0, 0, 1, 0], [], []>} : vector<1x16xf32>, vector<16x16xf32>, vector<1x16xf32> -> vector<1x16xf32>
    %448 = vector.broadcast %445 : vector<16x1xf32> to vector<16x16xf32>
    %449 = vector.broadcast %447 : vector<1x16xf32> to vector<16x16xf32>
    %450 = arith.addf %448, %449 : vector<16x16xf32>
    %cst_168 = arith.constant 2.000000e-01 : f32
    %451 = vector.broadcast %cst_168 : f32 to vector<16x16xf32>
    %452 = arith.mulf %451, %450 : vector<16x16xf32>
    %453 = arith.maximumf %450, %452 : vector<16x16xf32>
    %454 = arith.addf %453, %7 : vector<16x16xf32>
    %cst_169 = arith.constant dense<0xFF800000> : vector<16xf32>
    %455 = vector.multi_reduction <maximumf>, %454, %cst_169 [1] : vector<16x16xf32> to vector<16xf32>
    %456 = vector.shape_cast %455 : vector<16xf32> to vector<16x1xf32>
    %457 = vector.broadcast %456 : vector<16x1xf32> to vector<16x16xf32>
    %458 = arith.subf %454, %457 : vector<16x16xf32>
    %459 = math.exp %458 : vector<16x16xf32>
    %cst_170 = arith.constant dense<0.000000e+00> : vector<16xf32>
    %460 = vector.multi_reduction <add>, %459, %cst_170 [1] : vector<16x16xf32> to vector<16xf32>
    %461 = vector.shape_cast %460 : vector<16xf32> to vector<16x1xf32>
    %462 = tpu.reciprocal %461 {approx = true} : vector<16x1xf32> -> vector<16x1xf32>
    %463 = vector.broadcast %462 : vector<16x1xf32> to vector<16x16xf32>
    %464 = arith.mulf %459, %463 : vector<16x16xf32>
    %cst_171 = arith.constant dense<0.000000e+00> : vector<16x16xf32>
    %465 = tpu.matmul %464, %442, %cst_171 {dimension_numbers = #tpu.dot_dimension_numbers<[1], [0], [0], [1], [0, 0, 1, 1], [], []>} : vector<16x16xf32>, vector<16x16xf32>, vector<16x16xf32> -> vector<16x16xf32>
    %466 = arith.addf %441, %465 : vector<16x16xf32>
    %467 = vector.extract_strided_slice %438 {offsets = [0, 16], sizes = [16, 16], strides = [1, 1]} : vector<16x32xf32> to vector<16x16xf32>
    %468 = vector.extract_strided_slice %440 {offsets = [0, 16], sizes = [16, 16], strides = [1, 1]} : vector<16x32xf32> to vector<16x16xf32>
    %cst_172 = arith.constant dense<0.000000e+00> : vector<16xf32>
    %469 = vector.multi_reduction <add>, %468, %cst_172 [1] : vector<16x16xf32> to vector<16xf32>
    %470 = vector.shape_cast %469 : vector<16xf32> to vector<16x1xf32>
    %471 = vector.extract_strided_slice %32 {offsets = [0, 16], sizes = [1, 16], strides = [1, 1]} : vector<1x32xf32> to vector<1x16xf32>
    %cst_173 = arith.constant dense<0.000000e+00> : vector<1x16xf32>
    %472 = tpu.matmul %471, %467, %cst_173 {dimension_numbers = #tpu.dot_dimension_numbers<[1], [1], [0], [0], [0, 0, 1, 0], [], []>} : vector<1x16xf32>, vector<16x16xf32>, vector<1x16xf32> -> vector<1x16xf32>
    %473 = vector.broadcast %470 : vector<16x1xf32> to vector<16x16xf32>
    %474 = vector.broadcast %472 : vector<1x16xf32> to vector<16x16xf32>
    %475 = arith.addf %473, %474 : vector<16x16xf32>
    %cst_174 = arith.constant 2.000000e-01 : f32
    %476 = vector.broadcast %cst_174 : f32 to vector<16x16xf32>
    %477 = arith.mulf %476, %475 : vector<16x16xf32>
    %478 = arith.maximumf %475, %477 : vector<16x16xf32>
    %479 = arith.addf %478, %7 : vector<16x16xf32>
    %cst_175 = arith.constant dense<0xFF800000> : vector<16xf32>
    %480 = vector.multi_reduction <maximumf>, %479, %cst_175 [1] : vector<16x16xf32> to vector<16xf32>
    %481 = vector.shape_cast %480 : vector<16xf32> to vector<16x1xf32>
    %482 = vector.broadcast %481 : vector<16x1xf32> to vector<16x16xf32>
    %483 = arith.subf %479, %482 : vector<16x16xf32>
    %484 = math.exp %483 : vector<16x16xf32>
    %cst_176 = arith.constant dense<0.000000e+00> : vector<16xf32>
    %485 = vector.multi_reduction <add>, %484, %cst_176 [1] : vector<16x16xf32> to vector<16xf32>
    %486 = vector.shape_cast %485 : vector<16xf32> to vector<16x1xf32>
    %487 = tpu.reciprocal %486 {approx = true} : vector<16x1xf32> -> vector<16x1xf32>
    %488 = vector.broadcast %487 : vector<16x1xf32> to vector<16x16xf32>
    %489 = arith.mulf %484, %488 : vector<16x16xf32>
    %cst_177 = arith.constant dense<0.000000e+00> : vector<16x16xf32>
    %490 = tpu.matmul %489, %467, %cst_177 {dimension_numbers = #tpu.dot_dimension_numbers<[1], [0], [0], [1], [0, 0, 1, 1], [], []>} : vector<16x16xf32>, vector<16x16xf32>, vector<16x16xf32> -> vector<16x16xf32>
    %491 = arith.addf %466, %490 : vector<16x16xf32>
    %cst_178 = arith.constant 5.000000e-01 : f32
    %492 = vector.broadcast %cst_178 : f32 to vector<16x16xf32>
    %493 = arith.mulf %491, %492 : vector<16x16xf32>
    %494 = math.tanh %493 : vector<16x16xf32>
    %495 = vector.broadcast %8 : f32 to vector<16x16xf32>
    %496 = arith.mulf %495, %430 : vector<16x16xf32>
    %497 = vector.broadcast %9 : f32 to vector<16x16xf32>
    %498 = arith.mulf %497, %436 : vector<16x16xf32>
    %499 = arith.addf %496, %498 : vector<16x16xf32>
    %500 = vector.broadcast %10 : f32 to vector<16x16xf32>
    %501 = arith.mulf %500, %494 : vector<16x16xf32>
    %502 = arith.addf %499, %501 : vector<16x16xf32>
    %cst_179 = arith.constant dense<0.000000e+00> : vector<16x48xf32>
    %503 = tpu.matmul %502, %14, %cst_179 {dimension_numbers = #tpu.dot_dimension_numbers<[1], [0], [0], [1], [0, 0, 1, 1], [], []>} : vector<16x16xf32>, vector<16x48xf32>, vector<16x48xf32> -> vector<16x48xf32>
    %504 = arith.addf %139, %503 : vector<16x48xf32>
    %505 = vector.extract_strided_slice %504 {offsets = [0, 0], sizes = [16, 16], strides = [1, 1]} : vector<16x48xf32> to vector<16x16xf32>
    %506 = arith.negf %505 : vector<16x16xf32>
    %507 = math.exp %506 : vector<16x16xf32>
    %cst_180 = arith.constant 1.000000e+00 : f32
    %508 = vector.broadcast %cst_180 : f32 to vector<16x16xf32>
    %509 = arith.addf %508, %507 : vector<16x16xf32>
    %510 = arith.divf %508, %509 : vector<16x16xf32>
    %511 = vector.extract_strided_slice %504 {offsets = [0, 16], sizes = [16, 16], strides = [1, 1]} : vector<16x48xf32> to vector<16x16xf32>
    %512 = arith.negf %511 : vector<16x16xf32>
    %513 = math.exp %512 : vector<16x16xf32>
    %cst_181 = arith.constant 1.000000e+00 : f32
    %514 = vector.broadcast %cst_181 : f32 to vector<16x16xf32>
    %515 = arith.addf %514, %513 : vector<16x16xf32>
    %516 = arith.divf %514, %515 : vector<16x16xf32>
    %517 = vector.extract_strided_slice %139 {offsets = [0, 32], sizes = [16, 16], strides = [1, 1]} : vector<16x48xf32> to vector<16x16xf32>
    %518 = vector.extract_strided_slice %503 {offsets = [0, 32], sizes = [16, 16], strides = [1, 1]} : vector<16x48xf32> to vector<16x16xf32>
    %519 = vector.broadcast %20 : vector<1x16xf32> to vector<16x16xf32>
    %520 = arith.addf %518, %519 : vector<16x16xf32>
    %521 = arith.mulf %510, %520 : vector<16x16xf32>
    %522 = arith.addf %517, %521 : vector<16x16xf32>
    %523 = math.tanh %522 : vector<16x16xf32>
    %cst_182 = arith.constant 1.000000e+00 : f32
    %524 = vector.broadcast %cst_182 : f32 to vector<16x16xf32>
    %525 = arith.subf %524, %516 : vector<16x16xf32>
    %526 = arith.mulf %525, %523 : vector<16x16xf32>
    %527 = arith.mulf %516, %502 : vector<16x16xf32>
    %528 = arith.addf %526, %527 : vector<16x16xf32>
    %cst_183 = arith.constant dense<0.000000e+00> : vector<16x16xf32>
    %529 = tpu.matmul %1, %528, %cst_183 {dimension_numbers = #tpu.dot_dimension_numbers<[1], [0], [0], [1], [0, 0, 1, 1], [], []>} : vector<16x16xf32>, vector<16x16xf32>, vector<16x16xf32> -> vector<16x16xf32>
    %cst_184 = arith.constant dense<0.000000e+00> : vector<16x16xf32>
    %530 = tpu.matmul %1, %529, %cst_184 {dimension_numbers = #tpu.dot_dimension_numbers<[1], [0], [0], [1], [0, 0, 1, 1], [], []>} : vector<16x16xf32>, vector<16x16xf32>, vector<16x16xf32> -> vector<16x16xf32>
    %531 = tpu.concatenate %528, %529, %530 in 1 : vector<16x16xf32>, vector<16x16xf32>, vector<16x16xf32> -> vector<16x48xf32>
    %cst_185 = arith.constant dense<0.000000e+00> : vector<16x16xf32>
    %532 = tpu.matmul %531, %24, %cst_185 {dimension_numbers = #tpu.dot_dimension_numbers<[1], [0], [0], [1], [0, 0, 1, 1], [], []>} : vector<16x48xf32>, vector<48x16xf32>, vector<16x16xf32> -> vector<16x16xf32>
    %533 = arith.addf %161, %532 : vector<16x16xf32>
    %534 = math.tanh %533 : vector<16x16xf32>
    %cst_186 = arith.constant dense<0.000000e+00> : vector<16x32xf32>
    %535 = tpu.matmul %528, %26, %cst_186 {dimension_numbers = #tpu.dot_dimension_numbers<[1], [0], [0], [1], [0, 0, 1, 1], [], []>} : vector<16x16xf32>, vector<16x32xf32>, vector<16x32xf32> -> vector<16x32xf32>
    %536 = arith.addf %165, %535 : vector<16x32xf32>
    %537 = vector.broadcast %30 : vector<1x32xf32> to vector<16x32xf32>
    %538 = arith.mulf %536, %537 : vector<16x32xf32>
    %cst_187 = arith.constant 0.000000e+00 : f32
    %539 = vector.broadcast %cst_187 : f32 to vector<16x16xf32>
    %540 = vector.extract_strided_slice %536 {offsets = [0, 0], sizes = [16, 16], strides = [1, 1]} : vector<16x32xf32> to vector<16x16xf32>
    %541 = vector.extract_strided_slice %538 {offsets = [0, 0], sizes = [16, 16], strides = [1, 1]} : vector<16x32xf32> to vector<16x16xf32>
    %cst_188 = arith.constant dense<0.000000e+00> : vector<16xf32>
    %542 = vector.multi_reduction <add>, %541, %cst_188 [1] : vector<16x16xf32> to vector<16xf32>
    %543 = vector.shape_cast %542 : vector<16xf32> to vector<16x1xf32>
    %544 = vector.extract_strided_slice %32 {offsets = [0, 0], sizes = [1, 16], strides = [1, 1]} : vector<1x32xf32> to vector<1x16xf32>
    %cst_189 = arith.constant dense<0.000000e+00> : vector<1x16xf32>
    %545 = tpu.matmul %544, %540, %cst_189 {dimension_numbers = #tpu.dot_dimension_numbers<[1], [1], [0], [0], [0, 0, 1, 0], [], []>} : vector<1x16xf32>, vector<16x16xf32>, vector<1x16xf32> -> vector<1x16xf32>
    %546 = vector.broadcast %543 : vector<16x1xf32> to vector<16x16xf32>
    %547 = vector.broadcast %545 : vector<1x16xf32> to vector<16x16xf32>
    %548 = arith.addf %546, %547 : vector<16x16xf32>
    %cst_190 = arith.constant 2.000000e-01 : f32
    %549 = vector.broadcast %cst_190 : f32 to vector<16x16xf32>
    %550 = arith.mulf %549, %548 : vector<16x16xf32>
    %551 = arith.maximumf %548, %550 : vector<16x16xf32>
    %552 = arith.addf %551, %7 : vector<16x16xf32>
    %cst_191 = arith.constant dense<0xFF800000> : vector<16xf32>
    %553 = vector.multi_reduction <maximumf>, %552, %cst_191 [1] : vector<16x16xf32> to vector<16xf32>
    %554 = vector.shape_cast %553 : vector<16xf32> to vector<16x1xf32>
    %555 = vector.broadcast %554 : vector<16x1xf32> to vector<16x16xf32>
    %556 = arith.subf %552, %555 : vector<16x16xf32>
    %557 = math.exp %556 : vector<16x16xf32>
    %cst_192 = arith.constant dense<0.000000e+00> : vector<16xf32>
    %558 = vector.multi_reduction <add>, %557, %cst_192 [1] : vector<16x16xf32> to vector<16xf32>
    %559 = vector.shape_cast %558 : vector<16xf32> to vector<16x1xf32>
    %560 = tpu.reciprocal %559 {approx = true} : vector<16x1xf32> -> vector<16x1xf32>
    %561 = vector.broadcast %560 : vector<16x1xf32> to vector<16x16xf32>
    %562 = arith.mulf %557, %561 : vector<16x16xf32>
    %cst_193 = arith.constant dense<0.000000e+00> : vector<16x16xf32>
    %563 = tpu.matmul %562, %540, %cst_193 {dimension_numbers = #tpu.dot_dimension_numbers<[1], [0], [0], [1], [0, 0, 1, 1], [], []>} : vector<16x16xf32>, vector<16x16xf32>, vector<16x16xf32> -> vector<16x16xf32>
    %564 = arith.addf %539, %563 : vector<16x16xf32>
    %565 = vector.extract_strided_slice %536 {offsets = [0, 16], sizes = [16, 16], strides = [1, 1]} : vector<16x32xf32> to vector<16x16xf32>
    %566 = vector.extract_strided_slice %538 {offsets = [0, 16], sizes = [16, 16], strides = [1, 1]} : vector<16x32xf32> to vector<16x16xf32>
    %cst_194 = arith.constant dense<0.000000e+00> : vector<16xf32>
    %567 = vector.multi_reduction <add>, %566, %cst_194 [1] : vector<16x16xf32> to vector<16xf32>
    %568 = vector.shape_cast %567 : vector<16xf32> to vector<16x1xf32>
    %569 = vector.extract_strided_slice %32 {offsets = [0, 16], sizes = [1, 16], strides = [1, 1]} : vector<1x32xf32> to vector<1x16xf32>
    %cst_195 = arith.constant dense<0.000000e+00> : vector<1x16xf32>
    %570 = tpu.matmul %569, %565, %cst_195 {dimension_numbers = #tpu.dot_dimension_numbers<[1], [1], [0], [0], [0, 0, 1, 0], [], []>} : vector<1x16xf32>, vector<16x16xf32>, vector<1x16xf32> -> vector<1x16xf32>
    %571 = vector.broadcast %568 : vector<16x1xf32> to vector<16x16xf32>
    %572 = vector.broadcast %570 : vector<1x16xf32> to vector<16x16xf32>
    %573 = arith.addf %571, %572 : vector<16x16xf32>
    %cst_196 = arith.constant 2.000000e-01 : f32
    %574 = vector.broadcast %cst_196 : f32 to vector<16x16xf32>
    %575 = arith.mulf %574, %573 : vector<16x16xf32>
    %576 = arith.maximumf %573, %575 : vector<16x16xf32>
    %577 = arith.addf %576, %7 : vector<16x16xf32>
    %cst_197 = arith.constant dense<0xFF800000> : vector<16xf32>
    %578 = vector.multi_reduction <maximumf>, %577, %cst_197 [1] : vector<16x16xf32> to vector<16xf32>
    %579 = vector.shape_cast %578 : vector<16xf32> to vector<16x1xf32>
    %580 = vector.broadcast %579 : vector<16x1xf32> to vector<16x16xf32>
    %581 = arith.subf %577, %580 : vector<16x16xf32>
    %582 = math.exp %581 : vector<16x16xf32>
    %cst_198 = arith.constant dense<0.000000e+00> : vector<16xf32>
    %583 = vector.multi_reduction <add>, %582, %cst_198 [1] : vector<16x16xf32> to vector<16xf32>
    %584 = vector.shape_cast %583 : vector<16xf32> to vector<16x1xf32>
    %585 = tpu.reciprocal %584 {approx = true} : vector<16x1xf32> -> vector<16x1xf32>
    %586 = vector.broadcast %585 : vector<16x1xf32> to vector<16x16xf32>
    %587 = arith.mulf %582, %586 : vector<16x16xf32>
    %cst_199 = arith.constant dense<0.000000e+00> : vector<16x16xf32>
    %588 = tpu.matmul %587, %565, %cst_199 {dimension_numbers = #tpu.dot_dimension_numbers<[1], [0], [0], [1], [0, 0, 1, 1], [], []>} : vector<16x16xf32>, vector<16x16xf32>, vector<16x16xf32> -> vector<16x16xf32>
    %589 = arith.addf %564, %588 : vector<16x16xf32>
    %cst_200 = arith.constant 5.000000e-01 : f32
    %590 = vector.broadcast %cst_200 : f32 to vector<16x16xf32>
    %591 = arith.mulf %589, %590 : vector<16x16xf32>
    %592 = math.tanh %591 : vector<16x16xf32>
    %593 = vector.broadcast %8 : f32 to vector<16x16xf32>
    %594 = arith.mulf %593, %528 : vector<16x16xf32>
    %595 = vector.broadcast %9 : f32 to vector<16x16xf32>
    %596 = arith.mulf %595, %534 : vector<16x16xf32>
    %597 = arith.addf %594, %596 : vector<16x16xf32>
    %598 = vector.broadcast %10 : f32 to vector<16x16xf32>
    %599 = arith.mulf %598, %592 : vector<16x16xf32>
    %600 = arith.addf %597, %599 : vector<16x16xf32>
    %cst_201 = arith.constant dense<0.000000e+00> : vector<16x48xf32>
    %601 = tpu.matmul %600, %14, %cst_201 {dimension_numbers = #tpu.dot_dimension_numbers<[1], [0], [0], [1], [0, 0, 1, 1], [], []>} : vector<16x16xf32>, vector<16x48xf32>, vector<16x48xf32> -> vector<16x48xf32>
    %602 = arith.addf %171, %601 : vector<16x48xf32>
    %603 = vector.extract_strided_slice %602 {offsets = [0, 0], sizes = [16, 16], strides = [1, 1]} : vector<16x48xf32> to vector<16x16xf32>
    %604 = arith.negf %603 : vector<16x16xf32>
    %605 = math.exp %604 : vector<16x16xf32>
    %cst_202 = arith.constant 1.000000e+00 : f32
    %606 = vector.broadcast %cst_202 : f32 to vector<16x16xf32>
    %607 = arith.addf %606, %605 : vector<16x16xf32>
    %608 = arith.divf %606, %607 : vector<16x16xf32>
    %609 = vector.extract_strided_slice %602 {offsets = [0, 16], sizes = [16, 16], strides = [1, 1]} : vector<16x48xf32> to vector<16x16xf32>
    %610 = arith.negf %609 : vector<16x16xf32>
    %611 = math.exp %610 : vector<16x16xf32>
    %cst_203 = arith.constant 1.000000e+00 : f32
    %612 = vector.broadcast %cst_203 : f32 to vector<16x16xf32>
    %613 = arith.addf %612, %611 : vector<16x16xf32>
    %614 = arith.divf %612, %613 : vector<16x16xf32>
    %615 = vector.extract_strided_slice %171 {offsets = [0, 32], sizes = [16, 16], strides = [1, 1]} : vector<16x48xf32> to vector<16x16xf32>
    %616 = vector.extract_strided_slice %601 {offsets = [0, 32], sizes = [16, 16], strides = [1, 1]} : vector<16x48xf32> to vector<16x16xf32>
    %617 = vector.broadcast %20 : vector<1x16xf32> to vector<16x16xf32>
    %618 = arith.addf %616, %617 : vector<16x16xf32>
    %619 = arith.mulf %608, %618 : vector<16x16xf32>
    %620 = arith.addf %615, %619 : vector<16x16xf32>
    %621 = math.tanh %620 : vector<16x16xf32>
    %cst_204 = arith.constant 1.000000e+00 : f32
    %622 = vector.broadcast %cst_204 : f32 to vector<16x16xf32>
    %623 = arith.subf %622, %614 : vector<16x16xf32>
    %624 = arith.mulf %623, %621 : vector<16x16xf32>
    %625 = arith.mulf %614, %600 : vector<16x16xf32>
    %626 = arith.addf %624, %625 : vector<16x16xf32>
    %cst_205 = arith.constant dense<0.000000e+00> : vector<16x16xf32>
    %627 = tpu.matmul %1, %626, %cst_205 {dimension_numbers = #tpu.dot_dimension_numbers<[1], [0], [0], [1], [0, 0, 1, 1], [], []>} : vector<16x16xf32>, vector<16x16xf32>, vector<16x16xf32> -> vector<16x16xf32>
    %cst_206 = arith.constant dense<0.000000e+00> : vector<16x16xf32>
    %628 = tpu.matmul %1, %627, %cst_206 {dimension_numbers = #tpu.dot_dimension_numbers<[1], [0], [0], [1], [0, 0, 1, 1], [], []>} : vector<16x16xf32>, vector<16x16xf32>, vector<16x16xf32> -> vector<16x16xf32>
    %629 = tpu.concatenate %626, %627, %628 in 1 : vector<16x16xf32>, vector<16x16xf32>, vector<16x16xf32> -> vector<16x48xf32>
    %cst_207 = arith.constant dense<0.000000e+00> : vector<16x16xf32>
    %630 = tpu.matmul %629, %24, %cst_207 {dimension_numbers = #tpu.dot_dimension_numbers<[1], [0], [0], [1], [0, 0, 1, 1], [], []>} : vector<16x48xf32>, vector<48x16xf32>, vector<16x16xf32> -> vector<16x16xf32>
    %631 = arith.addf %193, %630 : vector<16x16xf32>
    %632 = math.tanh %631 : vector<16x16xf32>
    %cst_208 = arith.constant dense<0.000000e+00> : vector<16x32xf32>
    %633 = tpu.matmul %626, %26, %cst_208 {dimension_numbers = #tpu.dot_dimension_numbers<[1], [0], [0], [1], [0, 0, 1, 1], [], []>} : vector<16x16xf32>, vector<16x32xf32>, vector<16x32xf32> -> vector<16x32xf32>
    %634 = arith.addf %197, %633 : vector<16x32xf32>
    %635 = vector.broadcast %30 : vector<1x32xf32> to vector<16x32xf32>
    %636 = arith.mulf %634, %635 : vector<16x32xf32>
    %cst_209 = arith.constant 0.000000e+00 : f32
    %637 = vector.broadcast %cst_209 : f32 to vector<16x16xf32>
    %638 = vector.extract_strided_slice %634 {offsets = [0, 0], sizes = [16, 16], strides = [1, 1]} : vector<16x32xf32> to vector<16x16xf32>
    %639 = vector.extract_strided_slice %636 {offsets = [0, 0], sizes = [16, 16], strides = [1, 1]} : vector<16x32xf32> to vector<16x16xf32>
    %cst_210 = arith.constant dense<0.000000e+00> : vector<16xf32>
    %640 = vector.multi_reduction <add>, %639, %cst_210 [1] : vector<16x16xf32> to vector<16xf32>
    %641 = vector.shape_cast %640 : vector<16xf32> to vector<16x1xf32>
    %642 = vector.extract_strided_slice %32 {offsets = [0, 0], sizes = [1, 16], strides = [1, 1]} : vector<1x32xf32> to vector<1x16xf32>
    %cst_211 = arith.constant dense<0.000000e+00> : vector<1x16xf32>
    %643 = tpu.matmul %642, %638, %cst_211 {dimension_numbers = #tpu.dot_dimension_numbers<[1], [1], [0], [0], [0, 0, 1, 0], [], []>} : vector<1x16xf32>, vector<16x16xf32>, vector<1x16xf32> -> vector<1x16xf32>
    %644 = vector.broadcast %641 : vector<16x1xf32> to vector<16x16xf32>
    %645 = vector.broadcast %643 : vector<1x16xf32> to vector<16x16xf32>
    %646 = arith.addf %644, %645 : vector<16x16xf32>
    %cst_212 = arith.constant 2.000000e-01 : f32
    %647 = vector.broadcast %cst_212 : f32 to vector<16x16xf32>
    %648 = arith.mulf %647, %646 : vector<16x16xf32>
    %649 = arith.maximumf %646, %648 : vector<16x16xf32>
    %650 = arith.addf %649, %7 : vector<16x16xf32>
    %cst_213 = arith.constant dense<0xFF800000> : vector<16xf32>
    %651 = vector.multi_reduction <maximumf>, %650, %cst_213 [1] : vector<16x16xf32> to vector<16xf32>
    %652 = vector.shape_cast %651 : vector<16xf32> to vector<16x1xf32>
    %653 = vector.broadcast %652 : vector<16x1xf32> to vector<16x16xf32>
    %654 = arith.subf %650, %653 : vector<16x16xf32>
    %655 = math.exp %654 : vector<16x16xf32>
    %cst_214 = arith.constant dense<0.000000e+00> : vector<16xf32>
    %656 = vector.multi_reduction <add>, %655, %cst_214 [1] : vector<16x16xf32> to vector<16xf32>
    %657 = vector.shape_cast %656 : vector<16xf32> to vector<16x1xf32>
    %658 = tpu.reciprocal %657 {approx = true} : vector<16x1xf32> -> vector<16x1xf32>
    %659 = vector.broadcast %658 : vector<16x1xf32> to vector<16x16xf32>
    %660 = arith.mulf %655, %659 : vector<16x16xf32>
    %cst_215 = arith.constant dense<0.000000e+00> : vector<16x16xf32>
    %661 = tpu.matmul %660, %638, %cst_215 {dimension_numbers = #tpu.dot_dimension_numbers<[1], [0], [0], [1], [0, 0, 1, 1], [], []>} : vector<16x16xf32>, vector<16x16xf32>, vector<16x16xf32> -> vector<16x16xf32>
    %662 = arith.addf %637, %661 : vector<16x16xf32>
    %663 = vector.extract_strided_slice %634 {offsets = [0, 16], sizes = [16, 16], strides = [1, 1]} : vector<16x32xf32> to vector<16x16xf32>
    %664 = vector.extract_strided_slice %636 {offsets = [0, 16], sizes = [16, 16], strides = [1, 1]} : vector<16x32xf32> to vector<16x16xf32>
    %cst_216 = arith.constant dense<0.000000e+00> : vector<16xf32>
    %665 = vector.multi_reduction <add>, %664, %cst_216 [1] : vector<16x16xf32> to vector<16xf32>
    %666 = vector.shape_cast %665 : vector<16xf32> to vector<16x1xf32>
    %667 = vector.extract_strided_slice %32 {offsets = [0, 16], sizes = [1, 16], strides = [1, 1]} : vector<1x32xf32> to vector<1x16xf32>
    %cst_217 = arith.constant dense<0.000000e+00> : vector<1x16xf32>
    %668 = tpu.matmul %667, %663, %cst_217 {dimension_numbers = #tpu.dot_dimension_numbers<[1], [1], [0], [0], [0, 0, 1, 0], [], []>} : vector<1x16xf32>, vector<16x16xf32>, vector<1x16xf32> -> vector<1x16xf32>
    %669 = vector.broadcast %666 : vector<16x1xf32> to vector<16x16xf32>
    %670 = vector.broadcast %668 : vector<1x16xf32> to vector<16x16xf32>
    %671 = arith.addf %669, %670 : vector<16x16xf32>
    %cst_218 = arith.constant 2.000000e-01 : f32
    %672 = vector.broadcast %cst_218 : f32 to vector<16x16xf32>
    %673 = arith.mulf %672, %671 : vector<16x16xf32>
    %674 = arith.maximumf %671, %673 : vector<16x16xf32>
    %675 = arith.addf %674, %7 : vector<16x16xf32>
    %cst_219 = arith.constant dense<0xFF800000> : vector<16xf32>
    %676 = vector.multi_reduction <maximumf>, %675, %cst_219 [1] : vector<16x16xf32> to vector<16xf32>
    %677 = vector.shape_cast %676 : vector<16xf32> to vector<16x1xf32>
    %678 = vector.broadcast %677 : vector<16x1xf32> to vector<16x16xf32>
    %679 = arith.subf %675, %678 : vector<16x16xf32>
    %680 = math.exp %679 : vector<16x16xf32>
    %cst_220 = arith.constant dense<0.000000e+00> : vector<16xf32>
    %681 = vector.multi_reduction <add>, %680, %cst_220 [1] : vector<16x16xf32> to vector<16xf32>
    %682 = vector.shape_cast %681 : vector<16xf32> to vector<16x1xf32>
    %683 = tpu.reciprocal %682 {approx = true} : vector<16x1xf32> -> vector<16x1xf32>
    %684 = vector.broadcast %683 : vector<16x1xf32> to vector<16x16xf32>
    %685 = arith.mulf %680, %684 : vector<16x16xf32>
    %cst_221 = arith.constant dense<0.000000e+00> : vector<16x16xf32>
    %686 = tpu.matmul %685, %663, %cst_221 {dimension_numbers = #tpu.dot_dimension_numbers<[1], [0], [0], [1], [0, 0, 1, 1], [], []>} : vector<16x16xf32>, vector<16x16xf32>, vector<16x16xf32> -> vector<16x16xf32>
    %687 = arith.addf %662, %686 : vector<16x16xf32>
    %cst_222 = arith.constant 5.000000e-01 : f32
    %688 = vector.broadcast %cst_222 : f32 to vector<16x16xf32>
    %689 = arith.mulf %687, %688 : vector<16x16xf32>
    %690 = math.tanh %689 : vector<16x16xf32>
    %c1_223 = arith.constant 1 : index
    %c0_224 = arith.constant 0 : index
    %691 = memref.load %arg0[%c1_223, %c0_224] : memref<2x3xf32, #tpu.memory_space<smem>>
    %c1_225 = arith.constant 1 : index
    %c1_226 = arith.constant 1 : index
    %692 = memref.load %arg0[%c1_225, %c1_226] : memref<2x3xf32, #tpu.memory_space<smem>>
    %c1_227 = arith.constant 1 : index
    %c2_228 = arith.constant 2 : index
    %693 = memref.load %arg0[%c1_227, %c2_228] : memref<2x3xf32, #tpu.memory_space<smem>>
    %c1_229 = arith.constant 1 : index
    %c0_230 = arith.constant 0 : index
    %c0_231 = arith.constant 0 : index
    %694 = vector.load %arg2[%c1_229, %c0_230, %c0_231] : memref<2x16x5xf32, #tpu.memory_space<vmem>>, vector<1x16x5xf32>
    %695 = vector.shape_cast %694 : vector<1x16x5xf32> to vector<16x5xf32>
    %c1_232 = arith.constant 1 : index
    %c0_233 = arith.constant 0 : index
    %c0_234 = arith.constant 0 : index
    %696 = vector.load %arg6[%c1_232, %c0_233, %c0_234] : memref<2x16x48xf32, #tpu.memory_space<vmem>>, vector<1x16x48xf32>
    %697 = vector.shape_cast %696 : vector<1x16x48xf32> to vector<16x48xf32>
    %c1_235 = arith.constant 1 : index
    %c0_236 = arith.constant 0 : index
    %c0_237 = arith.constant 0 : index
    %698 = vector.load %arg7[%c1_235, %c0_236, %c0_237] : memref<2x1x48xf32, #tpu.memory_space<vmem>>, vector<1x1x48xf32>
    %699 = vector.shape_cast %698 : vector<1x1x48xf32> to vector<1x48xf32>
    %c1_238 = arith.constant 1 : index
    %c0_239 = arith.constant 0 : index
    %c0_240 = arith.constant 0 : index
    %700 = vector.load %arg8[%c1_238, %c0_239, %c0_240] : memref<2x1x48xf32, #tpu.memory_space<vmem>>, vector<1x1x48xf32>
    %701 = vector.shape_cast %700 : vector<1x1x48xf32> to vector<1x48xf32>
    %c1_241 = arith.constant 1 : index
    %c0_242 = arith.constant 0 : index
    %c0_243 = arith.constant 0 : index
    %702 = vector.load %arg9[%c1_241, %c0_242, %c0_243] : memref<2x1x16xf32, #tpu.memory_space<vmem>>, vector<1x1x16xf32>
    %703 = vector.shape_cast %702 : vector<1x1x16xf32> to vector<1x16xf32>
    %c1_244 = arith.constant 1 : index
    %c0_245 = arith.constant 0 : index
    %c0_246 = arith.constant 0 : index
    %704 = vector.load %arg11[%c1_244, %c0_245, %c0_246] : memref<2x1x16xf32, #tpu.memory_space<vmem>>, vector<1x1x16xf32>
    %705 = vector.shape_cast %704 : vector<1x1x16xf32> to vector<1x16xf32>
    %c1_247 = arith.constant 1 : index
    %c0_248 = arith.constant 0 : index
    %c0_249 = arith.constant 0 : index
    %706 = vector.load %arg12[%c1_247, %c0_248, %c0_249] : memref<2x48x16xf32, #tpu.memory_space<vmem>>, vector<1x48x16xf32>
    %707 = vector.shape_cast %706 : vector<1x48x16xf32> to vector<48x16xf32>
    %c1_250 = arith.constant 1 : index
    %c0_251 = arith.constant 0 : index
    %c0_252 = arith.constant 0 : index
    %708 = vector.load %arg13[%c1_250, %c0_251, %c0_252] : memref<2x16x32xf32, #tpu.memory_space<vmem>>, vector<1x16x32xf32>
    %709 = vector.shape_cast %708 : vector<1x16x32xf32> to vector<16x32xf32>
    %c1_253 = arith.constant 1 : index
    %c0_254 = arith.constant 0 : index
    %c0_255 = arith.constant 0 : index
    %710 = vector.load %arg14[%c1_253, %c0_254, %c0_255] : memref<2x1x32xf32, #tpu.memory_space<vmem>>, vector<1x1x32xf32>
    %711 = vector.shape_cast %710 : vector<1x1x32xf32> to vector<1x32xf32>
    %c1_256 = arith.constant 1 : index
    %c0_257 = arith.constant 0 : index
    %c0_258 = arith.constant 0 : index
    %712 = vector.load %arg16[%c1_256, %c0_257, %c0_258] : memref<2x1x32xf32, #tpu.memory_space<vmem>>, vector<1x1x32xf32>
    %713 = vector.shape_cast %712 : vector<1x1x32xf32> to vector<1x32xf32>
    %c1_259 = arith.constant 1 : index
    %c0_260 = arith.constant 0 : index
    %c0_261 = arith.constant 0 : index
    %714 = vector.load %arg17[%c1_259, %c0_260, %c0_261] : memref<2x1x32xf32, #tpu.memory_space<vmem>>, vector<1x1x32xf32>
    %715 = vector.shape_cast %714 : vector<1x1x32xf32> to vector<1x32xf32>
    %c1_262 = arith.constant 1 : index
    %c0_263 = arith.constant 0 : index
    %c0_264 = arith.constant 0 : index
    %716 = vector.load %arg15[%c1_262, %c0_263, %c0_264] : memref<2x8x32xf32, #tpu.memory_space<vmem>>, vector<1x8x32xf32>
    %717 = vector.shape_cast %716 : vector<1x8x32xf32> to vector<8x32xf32>
    %cst_265 = arith.constant dense<0.000000e+00> : vector<16x32xf32>
    %718 = tpu.matmul %0, %717, %cst_265 {dimension_numbers = #tpu.dot_dimension_numbers<[1], [0], [0], [1], [0, 0, 1, 1], [], []>} : vector<16x8xf32>, vector<8x32xf32>, vector<16x32xf32> -> vector<16x32xf32>
    %cst_266 = arith.constant dense<0.000000e+00> : vector<16x5xf32>
    %719 = tpu.matmul %1, %695, %cst_266 {dimension_numbers = #tpu.dot_dimension_numbers<[1], [0], [0], [1], [0, 0, 1, 1], [], []>} : vector<16x16xf32>, vector<16x5xf32>, vector<16x5xf32> -> vector<16x5xf32>
    %cst_267 = arith.constant dense<0.000000e+00> : vector<16x5xf32>
    %720 = tpu.matmul %1, %719, %cst_267 {dimension_numbers = #tpu.dot_dimension_numbers<[1], [0], [0], [1], [0, 0, 1, 1], [], []>} : vector<16x16xf32>, vector<16x5xf32>, vector<16x5xf32> -> vector<16x5xf32>
    %721 = vector.extract_strided_slice %695 {offsets = [0, 0], sizes = [16, 1], strides = [1, 1]} : vector<16x5xf32> to vector<16x1xf32>
    %722 = vector.broadcast %721 : vector<16x1xf32> to vector<16x48xf32>
    %723 = vector.broadcast %699 : vector<1x48xf32> to vector<16x48xf32>
    %724 = arith.mulf %722, %723 : vector<16x48xf32>
    %725 = vector.broadcast %701 : vector<1x48xf32> to vector<16x48xf32>
    %726 = arith.addf %724, %725 : vector<16x48xf32>
    %727 = vector.extract_strided_slice %695 {offsets = [0, 0], sizes = [16, 1], strides = [1, 1]} : vector<16x5xf32> to vector<16x1xf32>
    %c1_268 = arith.constant 1 : index
    %c0_269 = arith.constant 0 : index
    %c0_270 = arith.constant 0 : index
    %c0_271 = arith.constant 0 : index
    %728 = vector.load %arg10[%c1_268, %c0_269, %c0_270, %c0_271] : memref<2x3x1x16xf32, #tpu.memory_space<vmem>>, vector<1x1x1x16xf32>
    %729 = vector.shape_cast %728 : vector<1x1x1x16xf32> to vector<1x16xf32>
    %730 = vector.broadcast %727 : vector<16x1xf32> to vector<16x16xf32>
    %731 = vector.broadcast %729 : vector<1x16xf32> to vector<16x16xf32>
    %732 = arith.mulf %730, %731 : vector<16x16xf32>
    %733 = vector.broadcast %705 : vector<1x16xf32> to vector<16x16xf32>
    %734 = arith.addf %733, %732 : vector<16x16xf32>
    %735 = vector.extract_strided_slice %719 {offsets = [0, 0], sizes = [16, 1], strides = [1, 1]} : vector<16x5xf32> to vector<16x1xf32>
    %c1_272 = arith.constant 1 : index
    %c1_273 = arith.constant 1 : index
    %c0_274 = arith.constant 0 : index
    %c0_275 = arith.constant 0 : index
    %736 = vector.load %arg10[%c1_272, %c1_273, %c0_274, %c0_275] : memref<2x3x1x16xf32, #tpu.memory_space<vmem>>, vector<1x1x1x16xf32>
    %737 = vector.shape_cast %736 : vector<1x1x1x16xf32> to vector<1x16xf32>
    %738 = vector.broadcast %735 : vector<16x1xf32> to vector<16x16xf32>
    %739 = vector.broadcast %737 : vector<1x16xf32> to vector<16x16xf32>
    %740 = arith.mulf %738, %739 : vector<16x16xf32>
    %741 = arith.addf %734, %740 : vector<16x16xf32>
    %742 = vector.extract_strided_slice %720 {offsets = [0, 0], sizes = [16, 1], strides = [1, 1]} : vector<16x5xf32> to vector<16x1xf32>
    %c1_276 = arith.constant 1 : index
    %c2_277 = arith.constant 2 : index
    %c0_278 = arith.constant 0 : index
    %c0_279 = arith.constant 0 : index
    %743 = vector.load %arg10[%c1_276, %c2_277, %c0_278, %c0_279] : memref<2x3x1x16xf32, #tpu.memory_space<vmem>>, vector<1x1x1x16xf32>
    %744 = vector.shape_cast %743 : vector<1x1x1x16xf32> to vector<1x16xf32>
    %745 = vector.broadcast %742 : vector<16x1xf32> to vector<16x16xf32>
    %746 = vector.broadcast %744 : vector<1x16xf32> to vector<16x16xf32>
    %747 = arith.mulf %745, %746 : vector<16x16xf32>
    %748 = arith.addf %741, %747 : vector<16x16xf32>
    %749 = vector.broadcast %721 : vector<16x1xf32> to vector<16x32xf32>
    %750 = vector.broadcast %711 : vector<1x32xf32> to vector<16x32xf32>
    %751 = arith.mulf %749, %750 : vector<16x32xf32>
    %752 = arith.addf %751, %718 : vector<16x32xf32>
    %753 = vector.extract_strided_slice %695 {offsets = [0, 1], sizes = [16, 1], strides = [1, 1]} : vector<16x5xf32> to vector<16x1xf32>
    %754 = vector.broadcast %753 : vector<16x1xf32> to vector<16x48xf32>
    %755 = vector.broadcast %699 : vector<1x48xf32> to vector<16x48xf32>
    %756 = arith.mulf %754, %755 : vector<16x48xf32>
    %757 = vector.broadcast %701 : vector<1x48xf32> to vector<16x48xf32>
    %758 = arith.addf %756, %757 : vector<16x48xf32>
    %759 = vector.extract_strided_slice %695 {offsets = [0, 1], sizes = [16, 1], strides = [1, 1]} : vector<16x5xf32> to vector<16x1xf32>
    %c1_280 = arith.constant 1 : index
    %c0_281 = arith.constant 0 : index
    %c0_282 = arith.constant 0 : index
    %c0_283 = arith.constant 0 : index
    %760 = vector.load %arg10[%c1_280, %c0_281, %c0_282, %c0_283] : memref<2x3x1x16xf32, #tpu.memory_space<vmem>>, vector<1x1x1x16xf32>
    %761 = vector.shape_cast %760 : vector<1x1x1x16xf32> to vector<1x16xf32>
    %762 = vector.broadcast %759 : vector<16x1xf32> to vector<16x16xf32>
    %763 = vector.broadcast %761 : vector<1x16xf32> to vector<16x16xf32>
    %764 = arith.mulf %762, %763 : vector<16x16xf32>
    %765 = vector.broadcast %705 : vector<1x16xf32> to vector<16x16xf32>
    %766 = arith.addf %765, %764 : vector<16x16xf32>
    %767 = vector.extract_strided_slice %719 {offsets = [0, 1], sizes = [16, 1], strides = [1, 1]} : vector<16x5xf32> to vector<16x1xf32>
    %c1_284 = arith.constant 1 : index
    %c1_285 = arith.constant 1 : index
    %c0_286 = arith.constant 0 : index
    %c0_287 = arith.constant 0 : index
    %768 = vector.load %arg10[%c1_284, %c1_285, %c0_286, %c0_287] : memref<2x3x1x16xf32, #tpu.memory_space<vmem>>, vector<1x1x1x16xf32>
    %769 = vector.shape_cast %768 : vector<1x1x1x16xf32> to vector<1x16xf32>
    %770 = vector.broadcast %767 : vector<16x1xf32> to vector<16x16xf32>
    %771 = vector.broadcast %769 : vector<1x16xf32> to vector<16x16xf32>
    %772 = arith.mulf %770, %771 : vector<16x16xf32>
    %773 = arith.addf %766, %772 : vector<16x16xf32>
    %774 = vector.extract_strided_slice %720 {offsets = [0, 1], sizes = [16, 1], strides = [1, 1]} : vector<16x5xf32> to vector<16x1xf32>
    %c1_288 = arith.constant 1 : index
    %c2_289 = arith.constant 2 : index
    %c0_290 = arith.constant 0 : index
    %c0_291 = arith.constant 0 : index
    %775 = vector.load %arg10[%c1_288, %c2_289, %c0_290, %c0_291] : memref<2x3x1x16xf32, #tpu.memory_space<vmem>>, vector<1x1x1x16xf32>
    %776 = vector.shape_cast %775 : vector<1x1x1x16xf32> to vector<1x16xf32>
    %777 = vector.broadcast %774 : vector<16x1xf32> to vector<16x16xf32>
    %778 = vector.broadcast %776 : vector<1x16xf32> to vector<16x16xf32>
    %779 = arith.mulf %777, %778 : vector<16x16xf32>
    %780 = arith.addf %773, %779 : vector<16x16xf32>
    %781 = vector.broadcast %753 : vector<16x1xf32> to vector<16x32xf32>
    %782 = vector.broadcast %711 : vector<1x32xf32> to vector<16x32xf32>
    %783 = arith.mulf %781, %782 : vector<16x32xf32>
    %784 = arith.addf %783, %718 : vector<16x32xf32>
    %785 = vector.extract_strided_slice %695 {offsets = [0, 2], sizes = [16, 1], strides = [1, 1]} : vector<16x5xf32> to vector<16x1xf32>
    %786 = vector.broadcast %785 : vector<16x1xf32> to vector<16x48xf32>
    %787 = vector.broadcast %699 : vector<1x48xf32> to vector<16x48xf32>
    %788 = arith.mulf %786, %787 : vector<16x48xf32>
    %789 = vector.broadcast %701 : vector<1x48xf32> to vector<16x48xf32>
    %790 = arith.addf %788, %789 : vector<16x48xf32>
    %791 = vector.extract_strided_slice %695 {offsets = [0, 2], sizes = [16, 1], strides = [1, 1]} : vector<16x5xf32> to vector<16x1xf32>
    %c1_292 = arith.constant 1 : index
    %c0_293 = arith.constant 0 : index
    %c0_294 = arith.constant 0 : index
    %c0_295 = arith.constant 0 : index
    %792 = vector.load %arg10[%c1_292, %c0_293, %c0_294, %c0_295] : memref<2x3x1x16xf32, #tpu.memory_space<vmem>>, vector<1x1x1x16xf32>
    %793 = vector.shape_cast %792 : vector<1x1x1x16xf32> to vector<1x16xf32>
    %794 = vector.broadcast %791 : vector<16x1xf32> to vector<16x16xf32>
    %795 = vector.broadcast %793 : vector<1x16xf32> to vector<16x16xf32>
    %796 = arith.mulf %794, %795 : vector<16x16xf32>
    %797 = vector.broadcast %705 : vector<1x16xf32> to vector<16x16xf32>
    %798 = arith.addf %797, %796 : vector<16x16xf32>
    %799 = vector.extract_strided_slice %719 {offsets = [0, 2], sizes = [16, 1], strides = [1, 1]} : vector<16x5xf32> to vector<16x1xf32>
    %c1_296 = arith.constant 1 : index
    %c1_297 = arith.constant 1 : index
    %c0_298 = arith.constant 0 : index
    %c0_299 = arith.constant 0 : index
    %800 = vector.load %arg10[%c1_296, %c1_297, %c0_298, %c0_299] : memref<2x3x1x16xf32, #tpu.memory_space<vmem>>, vector<1x1x1x16xf32>
    %801 = vector.shape_cast %800 : vector<1x1x1x16xf32> to vector<1x16xf32>
    %802 = vector.broadcast %799 : vector<16x1xf32> to vector<16x16xf32>
    %803 = vector.broadcast %801 : vector<1x16xf32> to vector<16x16xf32>
    %804 = arith.mulf %802, %803 : vector<16x16xf32>
    %805 = arith.addf %798, %804 : vector<16x16xf32>
    %806 = vector.extract_strided_slice %720 {offsets = [0, 2], sizes = [16, 1], strides = [1, 1]} : vector<16x5xf32> to vector<16x1xf32>
    %c1_300 = arith.constant 1 : index
    %c2_301 = arith.constant 2 : index
    %c0_302 = arith.constant 0 : index
    %c0_303 = arith.constant 0 : index
    %807 = vector.load %arg10[%c1_300, %c2_301, %c0_302, %c0_303] : memref<2x3x1x16xf32, #tpu.memory_space<vmem>>, vector<1x1x1x16xf32>
    %808 = vector.shape_cast %807 : vector<1x1x1x16xf32> to vector<1x16xf32>
    %809 = vector.broadcast %806 : vector<16x1xf32> to vector<16x16xf32>
    %810 = vector.broadcast %808 : vector<1x16xf32> to vector<16x16xf32>
    %811 = arith.mulf %809, %810 : vector<16x16xf32>
    %812 = arith.addf %805, %811 : vector<16x16xf32>
    %813 = vector.broadcast %785 : vector<16x1xf32> to vector<16x32xf32>
    %814 = vector.broadcast %711 : vector<1x32xf32> to vector<16x32xf32>
    %815 = arith.mulf %813, %814 : vector<16x32xf32>
    %816 = arith.addf %815, %718 : vector<16x32xf32>
    %817 = vector.extract_strided_slice %695 {offsets = [0, 3], sizes = [16, 1], strides = [1, 1]} : vector<16x5xf32> to vector<16x1xf32>
    %818 = vector.broadcast %817 : vector<16x1xf32> to vector<16x48xf32>
    %819 = vector.broadcast %699 : vector<1x48xf32> to vector<16x48xf32>
    %820 = arith.mulf %818, %819 : vector<16x48xf32>
    %821 = vector.broadcast %701 : vector<1x48xf32> to vector<16x48xf32>
    %822 = arith.addf %820, %821 : vector<16x48xf32>
    %823 = vector.extract_strided_slice %695 {offsets = [0, 3], sizes = [16, 1], strides = [1, 1]} : vector<16x5xf32> to vector<16x1xf32>
    %c1_304 = arith.constant 1 : index
    %c0_305 = arith.constant 0 : index
    %c0_306 = arith.constant 0 : index
    %c0_307 = arith.constant 0 : index
    %824 = vector.load %arg10[%c1_304, %c0_305, %c0_306, %c0_307] : memref<2x3x1x16xf32, #tpu.memory_space<vmem>>, vector<1x1x1x16xf32>
    %825 = vector.shape_cast %824 : vector<1x1x1x16xf32> to vector<1x16xf32>
    %826 = vector.broadcast %823 : vector<16x1xf32> to vector<16x16xf32>
    %827 = vector.broadcast %825 : vector<1x16xf32> to vector<16x16xf32>
    %828 = arith.mulf %826, %827 : vector<16x16xf32>
    %829 = vector.broadcast %705 : vector<1x16xf32> to vector<16x16xf32>
    %830 = arith.addf %829, %828 : vector<16x16xf32>
    %831 = vector.extract_strided_slice %719 {offsets = [0, 3], sizes = [16, 1], strides = [1, 1]} : vector<16x5xf32> to vector<16x1xf32>
    %c1_308 = arith.constant 1 : index
    %c1_309 = arith.constant 1 : index
    %c0_310 = arith.constant 0 : index
    %c0_311 = arith.constant 0 : index
    %832 = vector.load %arg10[%c1_308, %c1_309, %c0_310, %c0_311] : memref<2x3x1x16xf32, #tpu.memory_space<vmem>>, vector<1x1x1x16xf32>
    %833 = vector.shape_cast %832 : vector<1x1x1x16xf32> to vector<1x16xf32>
    %834 = vector.broadcast %831 : vector<16x1xf32> to vector<16x16xf32>
    %835 = vector.broadcast %833 : vector<1x16xf32> to vector<16x16xf32>
    %836 = arith.mulf %834, %835 : vector<16x16xf32>
    %837 = arith.addf %830, %836 : vector<16x16xf32>
    %838 = vector.extract_strided_slice %720 {offsets = [0, 3], sizes = [16, 1], strides = [1, 1]} : vector<16x5xf32> to vector<16x1xf32>
    %c1_312 = arith.constant 1 : index
    %c2_313 = arith.constant 2 : index
    %c0_314 = arith.constant 0 : index
    %c0_315 = arith.constant 0 : index
    %839 = vector.load %arg10[%c1_312, %c2_313, %c0_314, %c0_315] : memref<2x3x1x16xf32, #tpu.memory_space<vmem>>, vector<1x1x1x16xf32>
    %840 = vector.shape_cast %839 : vector<1x1x1x16xf32> to vector<1x16xf32>
    %841 = vector.broadcast %838 : vector<16x1xf32> to vector<16x16xf32>
    %842 = vector.broadcast %840 : vector<1x16xf32> to vector<16x16xf32>
    %843 = arith.mulf %841, %842 : vector<16x16xf32>
    %844 = arith.addf %837, %843 : vector<16x16xf32>
    %845 = vector.broadcast %817 : vector<16x1xf32> to vector<16x32xf32>
    %846 = vector.broadcast %711 : vector<1x32xf32> to vector<16x32xf32>
    %847 = arith.mulf %845, %846 : vector<16x32xf32>
    %848 = arith.addf %847, %718 : vector<16x32xf32>
    %849 = vector.extract_strided_slice %695 {offsets = [0, 4], sizes = [16, 1], strides = [1, 1]} : vector<16x5xf32> to vector<16x1xf32>
    %850 = vector.broadcast %849 : vector<16x1xf32> to vector<16x48xf32>
    %851 = vector.broadcast %699 : vector<1x48xf32> to vector<16x48xf32>
    %852 = arith.mulf %850, %851 : vector<16x48xf32>
    %853 = vector.broadcast %701 : vector<1x48xf32> to vector<16x48xf32>
    %854 = arith.addf %852, %853 : vector<16x48xf32>
    %855 = vector.extract_strided_slice %695 {offsets = [0, 4], sizes = [16, 1], strides = [1, 1]} : vector<16x5xf32> to vector<16x1xf32>
    %c1_316 = arith.constant 1 : index
    %c0_317 = arith.constant 0 : index
    %c0_318 = arith.constant 0 : index
    %c0_319 = arith.constant 0 : index
    %856 = vector.load %arg10[%c1_316, %c0_317, %c0_318, %c0_319] : memref<2x3x1x16xf32, #tpu.memory_space<vmem>>, vector<1x1x1x16xf32>
    %857 = vector.shape_cast %856 : vector<1x1x1x16xf32> to vector<1x16xf32>
    %858 = vector.broadcast %855 : vector<16x1xf32> to vector<16x16xf32>
    %859 = vector.broadcast %857 : vector<1x16xf32> to vector<16x16xf32>
    %860 = arith.mulf %858, %859 : vector<16x16xf32>
    %861 = vector.broadcast %705 : vector<1x16xf32> to vector<16x16xf32>
    %862 = arith.addf %861, %860 : vector<16x16xf32>
    %863 = vector.extract_strided_slice %719 {offsets = [0, 4], sizes = [16, 1], strides = [1, 1]} : vector<16x5xf32> to vector<16x1xf32>
    %c1_320 = arith.constant 1 : index
    %c1_321 = arith.constant 1 : index
    %c0_322 = arith.constant 0 : index
    %c0_323 = arith.constant 0 : index
    %864 = vector.load %arg10[%c1_320, %c1_321, %c0_322, %c0_323] : memref<2x3x1x16xf32, #tpu.memory_space<vmem>>, vector<1x1x1x16xf32>
    %865 = vector.shape_cast %864 : vector<1x1x1x16xf32> to vector<1x16xf32>
    %866 = vector.broadcast %863 : vector<16x1xf32> to vector<16x16xf32>
    %867 = vector.broadcast %865 : vector<1x16xf32> to vector<16x16xf32>
    %868 = arith.mulf %866, %867 : vector<16x16xf32>
    %869 = arith.addf %862, %868 : vector<16x16xf32>
    %870 = vector.extract_strided_slice %720 {offsets = [0, 4], sizes = [16, 1], strides = [1, 1]} : vector<16x5xf32> to vector<16x1xf32>
    %c1_324 = arith.constant 1 : index
    %c2_325 = arith.constant 2 : index
    %c0_326 = arith.constant 0 : index
    %c0_327 = arith.constant 0 : index
    %871 = vector.load %arg10[%c1_324, %c2_325, %c0_326, %c0_327] : memref<2x3x1x16xf32, #tpu.memory_space<vmem>>, vector<1x1x1x16xf32>
    %872 = vector.shape_cast %871 : vector<1x1x1x16xf32> to vector<1x16xf32>
    %873 = vector.broadcast %870 : vector<16x1xf32> to vector<16x16xf32>
    %874 = vector.broadcast %872 : vector<1x16xf32> to vector<16x16xf32>
    %875 = arith.mulf %873, %874 : vector<16x16xf32>
    %876 = arith.addf %869, %875 : vector<16x16xf32>
    %877 = vector.broadcast %849 : vector<16x1xf32> to vector<16x32xf32>
    %878 = vector.broadcast %711 : vector<1x32xf32> to vector<16x32xf32>
    %879 = arith.mulf %877, %878 : vector<16x32xf32>
    %880 = arith.addf %879, %718 : vector<16x32xf32>
    %cst_328 = arith.constant 0.000000e+00 : f32
    %881 = vector.broadcast %cst_328 : f32 to vector<16x16xf32>
    %cst_329 = arith.constant 0.000000e+00 : f32
    %882 = vector.broadcast %cst_329 : f32 to vector<16x16xf32>
    %cst_330 = arith.constant 0.000000e+00 : f32
    %883 = vector.broadcast %cst_330 : f32 to vector<16x16xf32>
    %884 = vector.broadcast %691 : f32 to vector<16x16xf32>
    %885 = arith.mulf %884, %881 : vector<16x16xf32>
    %886 = vector.broadcast %692 : f32 to vector<16x16xf32>
    %887 = arith.mulf %886, %882 : vector<16x16xf32>
    %888 = arith.addf %885, %887 : vector<16x16xf32>
    %889 = vector.broadcast %693 : f32 to vector<16x16xf32>
    %890 = arith.mulf %889, %883 : vector<16x16xf32>
    %891 = arith.addf %888, %890 : vector<16x16xf32>
    %cst_331 = arith.constant dense<0.000000e+00> : vector<16x48xf32>
    %892 = tpu.matmul %891, %697, %cst_331 {dimension_numbers = #tpu.dot_dimension_numbers<[1], [0], [0], [1], [0, 0, 1, 1], [], []>} : vector<16x16xf32>, vector<16x48xf32>, vector<16x48xf32> -> vector<16x48xf32>
    %893 = arith.addf %726, %892 : vector<16x48xf32>
    %894 = vector.extract_strided_slice %893 {offsets = [0, 0], sizes = [16, 16], strides = [1, 1]} : vector<16x48xf32> to vector<16x16xf32>
    %895 = arith.negf %894 : vector<16x16xf32>
    %896 = math.exp %895 : vector<16x16xf32>
    %cst_332 = arith.constant 1.000000e+00 : f32
    %897 = vector.broadcast %cst_332 : f32 to vector<16x16xf32>
    %898 = arith.addf %897, %896 : vector<16x16xf32>
    %899 = arith.divf %897, %898 : vector<16x16xf32>
    %900 = vector.extract_strided_slice %893 {offsets = [0, 16], sizes = [16, 16], strides = [1, 1]} : vector<16x48xf32> to vector<16x16xf32>
    %901 = arith.negf %900 : vector<16x16xf32>
    %902 = math.exp %901 : vector<16x16xf32>
    %cst_333 = arith.constant 1.000000e+00 : f32
    %903 = vector.broadcast %cst_333 : f32 to vector<16x16xf32>
    %904 = arith.addf %903, %902 : vector<16x16xf32>
    %905 = arith.divf %903, %904 : vector<16x16xf32>
    %906 = vector.extract_strided_slice %726 {offsets = [0, 32], sizes = [16, 16], strides = [1, 1]} : vector<16x48xf32> to vector<16x16xf32>
    %907 = vector.extract_strided_slice %892 {offsets = [0, 32], sizes = [16, 16], strides = [1, 1]} : vector<16x48xf32> to vector<16x16xf32>
    %908 = vector.broadcast %703 : vector<1x16xf32> to vector<16x16xf32>
    %909 = arith.addf %907, %908 : vector<16x16xf32>
    %910 = arith.mulf %899, %909 : vector<16x16xf32>
    %911 = arith.addf %906, %910 : vector<16x16xf32>
    %912 = math.tanh %911 : vector<16x16xf32>
    %cst_334 = arith.constant 1.000000e+00 : f32
    %913 = vector.broadcast %cst_334 : f32 to vector<16x16xf32>
    %914 = arith.subf %913, %905 : vector<16x16xf32>
    %915 = arith.mulf %914, %912 : vector<16x16xf32>
    %916 = arith.mulf %905, %891 : vector<16x16xf32>
    %917 = arith.addf %915, %916 : vector<16x16xf32>
    %cst_335 = arith.constant dense<0.000000e+00> : vector<16x16xf32>
    %918 = tpu.matmul %1, %917, %cst_335 {dimension_numbers = #tpu.dot_dimension_numbers<[1], [0], [0], [1], [0, 0, 1, 1], [], []>} : vector<16x16xf32>, vector<16x16xf32>, vector<16x16xf32> -> vector<16x16xf32>
    %cst_336 = arith.constant dense<0.000000e+00> : vector<16x16xf32>
    %919 = tpu.matmul %1, %918, %cst_336 {dimension_numbers = #tpu.dot_dimension_numbers<[1], [0], [0], [1], [0, 0, 1, 1], [], []>} : vector<16x16xf32>, vector<16x16xf32>, vector<16x16xf32> -> vector<16x16xf32>
    %920 = tpu.concatenate %917, %918, %919 in 1 : vector<16x16xf32>, vector<16x16xf32>, vector<16x16xf32> -> vector<16x48xf32>
    %cst_337 = arith.constant dense<0.000000e+00> : vector<16x16xf32>
    %921 = tpu.matmul %920, %707, %cst_337 {dimension_numbers = #tpu.dot_dimension_numbers<[1], [0], [0], [1], [0, 0, 1, 1], [], []>} : vector<16x48xf32>, vector<48x16xf32>, vector<16x16xf32> -> vector<16x16xf32>
    %922 = arith.addf %748, %921 : vector<16x16xf32>
    %923 = math.tanh %922 : vector<16x16xf32>
    %cst_338 = arith.constant dense<0.000000e+00> : vector<16x32xf32>
    %924 = tpu.matmul %917, %709, %cst_338 {dimension_numbers = #tpu.dot_dimension_numbers<[1], [0], [0], [1], [0, 0, 1, 1], [], []>} : vector<16x16xf32>, vector<16x32xf32>, vector<16x32xf32> -> vector<16x32xf32>
    %925 = arith.addf %752, %924 : vector<16x32xf32>
    %926 = vector.broadcast %713 : vector<1x32xf32> to vector<16x32xf32>
    %927 = arith.mulf %925, %926 : vector<16x32xf32>
    %cst_339 = arith.constant 0.000000e+00 : f32
    %928 = vector.broadcast %cst_339 : f32 to vector<16x16xf32>
    %929 = vector.extract_strided_slice %925 {offsets = [0, 0], sizes = [16, 16], strides = [1, 1]} : vector<16x32xf32> to vector<16x16xf32>
    %930 = vector.extract_strided_slice %927 {offsets = [0, 0], sizes = [16, 16], strides = [1, 1]} : vector<16x32xf32> to vector<16x16xf32>
    %cst_340 = arith.constant dense<0.000000e+00> : vector<16xf32>
    %931 = vector.multi_reduction <add>, %930, %cst_340 [1] : vector<16x16xf32> to vector<16xf32>
    %932 = vector.shape_cast %931 : vector<16xf32> to vector<16x1xf32>
    %933 = vector.extract_strided_slice %715 {offsets = [0, 0], sizes = [1, 16], strides = [1, 1]} : vector<1x32xf32> to vector<1x16xf32>
    %cst_341 = arith.constant dense<0.000000e+00> : vector<1x16xf32>
    %934 = tpu.matmul %933, %929, %cst_341 {dimension_numbers = #tpu.dot_dimension_numbers<[1], [1], [0], [0], [0, 0, 1, 0], [], []>} : vector<1x16xf32>, vector<16x16xf32>, vector<1x16xf32> -> vector<1x16xf32>
    %935 = vector.broadcast %932 : vector<16x1xf32> to vector<16x16xf32>
    %936 = vector.broadcast %934 : vector<1x16xf32> to vector<16x16xf32>
    %937 = arith.addf %935, %936 : vector<16x16xf32>
    %cst_342 = arith.constant 2.000000e-01 : f32
    %938 = vector.broadcast %cst_342 : f32 to vector<16x16xf32>
    %939 = arith.mulf %938, %937 : vector<16x16xf32>
    %940 = arith.maximumf %937, %939 : vector<16x16xf32>
    %941 = arith.addf %940, %7 : vector<16x16xf32>
    %cst_343 = arith.constant dense<0xFF800000> : vector<16xf32>
    %942 = vector.multi_reduction <maximumf>, %941, %cst_343 [1] : vector<16x16xf32> to vector<16xf32>
    %943 = vector.shape_cast %942 : vector<16xf32> to vector<16x1xf32>
    %944 = vector.broadcast %943 : vector<16x1xf32> to vector<16x16xf32>
    %945 = arith.subf %941, %944 : vector<16x16xf32>
    %946 = math.exp %945 : vector<16x16xf32>
    %cst_344 = arith.constant dense<0.000000e+00> : vector<16xf32>
    %947 = vector.multi_reduction <add>, %946, %cst_344 [1] : vector<16x16xf32> to vector<16xf32>
    %948 = vector.shape_cast %947 : vector<16xf32> to vector<16x1xf32>
    %949 = tpu.reciprocal %948 {approx = true} : vector<16x1xf32> -> vector<16x1xf32>
    %950 = vector.broadcast %949 : vector<16x1xf32> to vector<16x16xf32>
    %951 = arith.mulf %946, %950 : vector<16x16xf32>
    %cst_345 = arith.constant dense<0.000000e+00> : vector<16x16xf32>
    %952 = tpu.matmul %951, %929, %cst_345 {dimension_numbers = #tpu.dot_dimension_numbers<[1], [0], [0], [1], [0, 0, 1, 1], [], []>} : vector<16x16xf32>, vector<16x16xf32>, vector<16x16xf32> -> vector<16x16xf32>
    %953 = arith.addf %928, %952 : vector<16x16xf32>
    %954 = vector.extract_strided_slice %925 {offsets = [0, 16], sizes = [16, 16], strides = [1, 1]} : vector<16x32xf32> to vector<16x16xf32>
    %955 = vector.extract_strided_slice %927 {offsets = [0, 16], sizes = [16, 16], strides = [1, 1]} : vector<16x32xf32> to vector<16x16xf32>
    %cst_346 = arith.constant dense<0.000000e+00> : vector<16xf32>
    %956 = vector.multi_reduction <add>, %955, %cst_346 [1] : vector<16x16xf32> to vector<16xf32>
    %957 = vector.shape_cast %956 : vector<16xf32> to vector<16x1xf32>
    %958 = vector.extract_strided_slice %715 {offsets = [0, 16], sizes = [1, 16], strides = [1, 1]} : vector<1x32xf32> to vector<1x16xf32>
    %cst_347 = arith.constant dense<0.000000e+00> : vector<1x16xf32>
    %959 = tpu.matmul %958, %954, %cst_347 {dimension_numbers = #tpu.dot_dimension_numbers<[1], [1], [0], [0], [0, 0, 1, 0], [], []>} : vector<1x16xf32>, vector<16x16xf32>, vector<1x16xf32> -> vector<1x16xf32>
    %960 = vector.broadcast %957 : vector<16x1xf32> to vector<16x16xf32>
    %961 = vector.broadcast %959 : vector<1x16xf32> to vector<16x16xf32>
    %962 = arith.addf %960, %961 : vector<16x16xf32>
    %cst_348 = arith.constant 2.000000e-01 : f32
    %963 = vector.broadcast %cst_348 : f32 to vector<16x16xf32>
    %964 = arith.mulf %963, %962 : vector<16x16xf32>
    %965 = arith.maximumf %962, %964 : vector<16x16xf32>
    %966 = arith.addf %965, %7 : vector<16x16xf32>
    %cst_349 = arith.constant dense<0xFF800000> : vector<16xf32>
    %967 = vector.multi_reduction <maximumf>, %966, %cst_349 [1] : vector<16x16xf32> to vector<16xf32>
    %968 = vector.shape_cast %967 : vector<16xf32> to vector<16x1xf32>
    %969 = vector.broadcast %968 : vector<16x1xf32> to vector<16x16xf32>
    %970 = arith.subf %966, %969 : vector<16x16xf32>
    %971 = math.exp %970 : vector<16x16xf32>
    %cst_350 = arith.constant dense<0.000000e+00> : vector<16xf32>
    %972 = vector.multi_reduction <add>, %971, %cst_350 [1] : vector<16x16xf32> to vector<16xf32>
    %973 = vector.shape_cast %972 : vector<16xf32> to vector<16x1xf32>
    %974 = tpu.reciprocal %973 {approx = true} : vector<16x1xf32> -> vector<16x1xf32>
    %975 = vector.broadcast %974 : vector<16x1xf32> to vector<16x16xf32>
    %976 = arith.mulf %971, %975 : vector<16x16xf32>
    %cst_351 = arith.constant dense<0.000000e+00> : vector<16x16xf32>
    %977 = tpu.matmul %976, %954, %cst_351 {dimension_numbers = #tpu.dot_dimension_numbers<[1], [0], [0], [1], [0, 0, 1, 1], [], []>} : vector<16x16xf32>, vector<16x16xf32>, vector<16x16xf32> -> vector<16x16xf32>
    %978 = arith.addf %953, %977 : vector<16x16xf32>
    %cst_352 = arith.constant 5.000000e-01 : f32
    %979 = vector.broadcast %cst_352 : f32 to vector<16x16xf32>
    %980 = arith.mulf %978, %979 : vector<16x16xf32>
    %981 = math.tanh %980 : vector<16x16xf32>
    %982 = vector.broadcast %691 : f32 to vector<16x16xf32>
    %983 = arith.mulf %982, %917 : vector<16x16xf32>
    %984 = vector.broadcast %692 : f32 to vector<16x16xf32>
    %985 = arith.mulf %984, %923 : vector<16x16xf32>
    %986 = arith.addf %983, %985 : vector<16x16xf32>
    %987 = vector.broadcast %693 : f32 to vector<16x16xf32>
    %988 = arith.mulf %987, %981 : vector<16x16xf32>
    %989 = arith.addf %986, %988 : vector<16x16xf32>
    %cst_353 = arith.constant dense<0.000000e+00> : vector<16x48xf32>
    %990 = tpu.matmul %989, %697, %cst_353 {dimension_numbers = #tpu.dot_dimension_numbers<[1], [0], [0], [1], [0, 0, 1, 1], [], []>} : vector<16x16xf32>, vector<16x48xf32>, vector<16x48xf32> -> vector<16x48xf32>
    %991 = arith.addf %758, %990 : vector<16x48xf32>
    %992 = vector.extract_strided_slice %991 {offsets = [0, 0], sizes = [16, 16], strides = [1, 1]} : vector<16x48xf32> to vector<16x16xf32>
    %993 = arith.negf %992 : vector<16x16xf32>
    %994 = math.exp %993 : vector<16x16xf32>
    %cst_354 = arith.constant 1.000000e+00 : f32
    %995 = vector.broadcast %cst_354 : f32 to vector<16x16xf32>
    %996 = arith.addf %995, %994 : vector<16x16xf32>
    %997 = arith.divf %995, %996 : vector<16x16xf32>
    %998 = vector.extract_strided_slice %991 {offsets = [0, 16], sizes = [16, 16], strides = [1, 1]} : vector<16x48xf32> to vector<16x16xf32>
    %999 = arith.negf %998 : vector<16x16xf32>
    %1000 = math.exp %999 : vector<16x16xf32>
    %cst_355 = arith.constant 1.000000e+00 : f32
    %1001 = vector.broadcast %cst_355 : f32 to vector<16x16xf32>
    %1002 = arith.addf %1001, %1000 : vector<16x16xf32>
    %1003 = arith.divf %1001, %1002 : vector<16x16xf32>
    %1004 = vector.extract_strided_slice %758 {offsets = [0, 32], sizes = [16, 16], strides = [1, 1]} : vector<16x48xf32> to vector<16x16xf32>
    %1005 = vector.extract_strided_slice %990 {offsets = [0, 32], sizes = [16, 16], strides = [1, 1]} : vector<16x48xf32> to vector<16x16xf32>
    %1006 = vector.broadcast %703 : vector<1x16xf32> to vector<16x16xf32>
    %1007 = arith.addf %1005, %1006 : vector<16x16xf32>
    %1008 = arith.mulf %997, %1007 : vector<16x16xf32>
    %1009 = arith.addf %1004, %1008 : vector<16x16xf32>
    %1010 = math.tanh %1009 : vector<16x16xf32>
    %cst_356 = arith.constant 1.000000e+00 : f32
    %1011 = vector.broadcast %cst_356 : f32 to vector<16x16xf32>
    %1012 = arith.subf %1011, %1003 : vector<16x16xf32>
    %1013 = arith.mulf %1012, %1010 : vector<16x16xf32>
    %1014 = arith.mulf %1003, %989 : vector<16x16xf32>
    %1015 = arith.addf %1013, %1014 : vector<16x16xf32>
    %cst_357 = arith.constant dense<0.000000e+00> : vector<16x16xf32>
    %1016 = tpu.matmul %1, %1015, %cst_357 {dimension_numbers = #tpu.dot_dimension_numbers<[1], [0], [0], [1], [0, 0, 1, 1], [], []>} : vector<16x16xf32>, vector<16x16xf32>, vector<16x16xf32> -> vector<16x16xf32>
    %cst_358 = arith.constant dense<0.000000e+00> : vector<16x16xf32>
    %1017 = tpu.matmul %1, %1016, %cst_358 {dimension_numbers = #tpu.dot_dimension_numbers<[1], [0], [0], [1], [0, 0, 1, 1], [], []>} : vector<16x16xf32>, vector<16x16xf32>, vector<16x16xf32> -> vector<16x16xf32>
    %1018 = tpu.concatenate %1015, %1016, %1017 in 1 : vector<16x16xf32>, vector<16x16xf32>, vector<16x16xf32> -> vector<16x48xf32>
    %cst_359 = arith.constant dense<0.000000e+00> : vector<16x16xf32>
    %1019 = tpu.matmul %1018, %707, %cst_359 {dimension_numbers = #tpu.dot_dimension_numbers<[1], [0], [0], [1], [0, 0, 1, 1], [], []>} : vector<16x48xf32>, vector<48x16xf32>, vector<16x16xf32> -> vector<16x16xf32>
    %1020 = arith.addf %780, %1019 : vector<16x16xf32>
    %1021 = math.tanh %1020 : vector<16x16xf32>
    %cst_360 = arith.constant dense<0.000000e+00> : vector<16x32xf32>
    %1022 = tpu.matmul %1015, %709, %cst_360 {dimension_numbers = #tpu.dot_dimension_numbers<[1], [0], [0], [1], [0, 0, 1, 1], [], []>} : vector<16x16xf32>, vector<16x32xf32>, vector<16x32xf32> -> vector<16x32xf32>
    %1023 = arith.addf %784, %1022 : vector<16x32xf32>
    %1024 = vector.broadcast %713 : vector<1x32xf32> to vector<16x32xf32>
    %1025 = arith.mulf %1023, %1024 : vector<16x32xf32>
    %cst_361 = arith.constant 0.000000e+00 : f32
    %1026 = vector.broadcast %cst_361 : f32 to vector<16x16xf32>
    %1027 = vector.extract_strided_slice %1023 {offsets = [0, 0], sizes = [16, 16], strides = [1, 1]} : vector<16x32xf32> to vector<16x16xf32>
    %1028 = vector.extract_strided_slice %1025 {offsets = [0, 0], sizes = [16, 16], strides = [1, 1]} : vector<16x32xf32> to vector<16x16xf32>
    %cst_362 = arith.constant dense<0.000000e+00> : vector<16xf32>
    %1029 = vector.multi_reduction <add>, %1028, %cst_362 [1] : vector<16x16xf32> to vector<16xf32>
    %1030 = vector.shape_cast %1029 : vector<16xf32> to vector<16x1xf32>
    %1031 = vector.extract_strided_slice %715 {offsets = [0, 0], sizes = [1, 16], strides = [1, 1]} : vector<1x32xf32> to vector<1x16xf32>
    %cst_363 = arith.constant dense<0.000000e+00> : vector<1x16xf32>
    %1032 = tpu.matmul %1031, %1027, %cst_363 {dimension_numbers = #tpu.dot_dimension_numbers<[1], [1], [0], [0], [0, 0, 1, 0], [], []>} : vector<1x16xf32>, vector<16x16xf32>, vector<1x16xf32> -> vector<1x16xf32>
    %1033 = vector.broadcast %1030 : vector<16x1xf32> to vector<16x16xf32>
    %1034 = vector.broadcast %1032 : vector<1x16xf32> to vector<16x16xf32>
    %1035 = arith.addf %1033, %1034 : vector<16x16xf32>
    %cst_364 = arith.constant 2.000000e-01 : f32
    %1036 = vector.broadcast %cst_364 : f32 to vector<16x16xf32>
    %1037 = arith.mulf %1036, %1035 : vector<16x16xf32>
    %1038 = arith.maximumf %1035, %1037 : vector<16x16xf32>
    %1039 = arith.addf %1038, %7 : vector<16x16xf32>
    %cst_365 = arith.constant dense<0xFF800000> : vector<16xf32>
    %1040 = vector.multi_reduction <maximumf>, %1039, %cst_365 [1] : vector<16x16xf32> to vector<16xf32>
    %1041 = vector.shape_cast %1040 : vector<16xf32> to vector<16x1xf32>
    %1042 = vector.broadcast %1041 : vector<16x1xf32> to vector<16x16xf32>
    %1043 = arith.subf %1039, %1042 : vector<16x16xf32>
    %1044 = math.exp %1043 : vector<16x16xf32>
    %cst_366 = arith.constant dense<0.000000e+00> : vector<16xf32>
    %1045 = vector.multi_reduction <add>, %1044, %cst_366 [1] : vector<16x16xf32> to vector<16xf32>
    %1046 = vector.shape_cast %1045 : vector<16xf32> to vector<16x1xf32>
    %1047 = tpu.reciprocal %1046 {approx = true} : vector<16x1xf32> -> vector<16x1xf32>
    %1048 = vector.broadcast %1047 : vector<16x1xf32> to vector<16x16xf32>
    %1049 = arith.mulf %1044, %1048 : vector<16x16xf32>
    %cst_367 = arith.constant dense<0.000000e+00> : vector<16x16xf32>
    %1050 = tpu.matmul %1049, %1027, %cst_367 {dimension_numbers = #tpu.dot_dimension_numbers<[1], [0], [0], [1], [0, 0, 1, 1], [], []>} : vector<16x16xf32>, vector<16x16xf32>, vector<16x16xf32> -> vector<16x16xf32>
    %1051 = arith.addf %1026, %1050 : vector<16x16xf32>
    %1052 = vector.extract_strided_slice %1023 {offsets = [0, 16], sizes = [16, 16], strides = [1, 1]} : vector<16x32xf32> to vector<16x16xf32>
    %1053 = vector.extract_strided_slice %1025 {offsets = [0, 16], sizes = [16, 16], strides = [1, 1]} : vector<16x32xf32> to vector<16x16xf32>
    %cst_368 = arith.constant dense<0.000000e+00> : vector<16xf32>
    %1054 = vector.multi_reduction <add>, %1053, %cst_368 [1] : vector<16x16xf32> to vector<16xf32>
    %1055 = vector.shape_cast %1054 : vector<16xf32> to vector<16x1xf32>
    %1056 = vector.extract_strided_slice %715 {offsets = [0, 16], sizes = [1, 16], strides = [1, 1]} : vector<1x32xf32> to vector<1x16xf32>
    %cst_369 = arith.constant dense<0.000000e+00> : vector<1x16xf32>
    %1057 = tpu.matmul %1056, %1052, %cst_369 {dimension_numbers = #tpu.dot_dimension_numbers<[1], [1], [0], [0], [0, 0, 1, 0], [], []>} : vector<1x16xf32>, vector<16x16xf32>, vector<1x16xf32> -> vector<1x16xf32>
    %1058 = vector.broadcast %1055 : vector<16x1xf32> to vector<16x16xf32>
    %1059 = vector.broadcast %1057 : vector<1x16xf32> to vector<16x16xf32>
    %1060 = arith.addf %1058, %1059 : vector<16x16xf32>
    %cst_370 = arith.constant 2.000000e-01 : f32
    %1061 = vector.broadcast %cst_370 : f32 to vector<16x16xf32>
    %1062 = arith.mulf %1061, %1060 : vector<16x16xf32>
    %1063 = arith.maximumf %1060, %1062 : vector<16x16xf32>
    %1064 = arith.addf %1063, %7 : vector<16x16xf32>
    %cst_371 = arith.constant dense<0xFF800000> : vector<16xf32>
    %1065 = vector.multi_reduction <maximumf>, %1064, %cst_371 [1] : vector<16x16xf32> to vector<16xf32>
    %1066 = vector.shape_cast %1065 : vector<16xf32> to vector<16x1xf32>
    %1067 = vector.broadcast %1066 : vector<16x1xf32> to vector<16x16xf32>
    %1068 = arith.subf %1064, %1067 : vector<16x16xf32>
    %1069 = math.exp %1068 : vector<16x16xf32>
    %cst_372 = arith.constant dense<0.000000e+00> : vector<16xf32>
    %1070 = vector.multi_reduction <add>, %1069, %cst_372 [1] : vector<16x16xf32> to vector<16xf32>
    %1071 = vector.shape_cast %1070 : vector<16xf32> to vector<16x1xf32>
    %1072 = tpu.reciprocal %1071 {approx = true} : vector<16x1xf32> -> vector<16x1xf32>
    %1073 = vector.broadcast %1072 : vector<16x1xf32> to vector<16x16xf32>
    %1074 = arith.mulf %1069, %1073 : vector<16x16xf32>
    %cst_373 = arith.constant dense<0.000000e+00> : vector<16x16xf32>
    %1075 = tpu.matmul %1074, %1052, %cst_373 {dimension_numbers = #tpu.dot_dimension_numbers<[1], [0], [0], [1], [0, 0, 1, 1], [], []>} : vector<16x16xf32>, vector<16x16xf32>, vector<16x16xf32> -> vector<16x16xf32>
    %1076 = arith.addf %1051, %1075 : vector<16x16xf32>
    %cst_374 = arith.constant 5.000000e-01 : f32
    %1077 = vector.broadcast %cst_374 : f32 to vector<16x16xf32>
    %1078 = arith.mulf %1076, %1077 : vector<16x16xf32>
    %1079 = math.tanh %1078 : vector<16x16xf32>
    %1080 = vector.broadcast %691 : f32 to vector<16x16xf32>
    %1081 = arith.mulf %1080, %1015 : vector<16x16xf32>
    %1082 = vector.broadcast %692 : f32 to vector<16x16xf32>
    %1083 = arith.mulf %1082, %1021 : vector<16x16xf32>
    %1084 = arith.addf %1081, %1083 : vector<16x16xf32>
    %1085 = vector.broadcast %693 : f32 to vector<16x16xf32>
    %1086 = arith.mulf %1085, %1079 : vector<16x16xf32>
    %1087 = arith.addf %1084, %1086 : vector<16x16xf32>
    %cst_375 = arith.constant dense<0.000000e+00> : vector<16x48xf32>
    %1088 = tpu.matmul %1087, %697, %cst_375 {dimension_numbers = #tpu.dot_dimension_numbers<[1], [0], [0], [1], [0, 0, 1, 1], [], []>} : vector<16x16xf32>, vector<16x48xf32>, vector<16x48xf32> -> vector<16x48xf32>
    %1089 = arith.addf %790, %1088 : vector<16x48xf32>
    %1090 = vector.extract_strided_slice %1089 {offsets = [0, 0], sizes = [16, 16], strides = [1, 1]} : vector<16x48xf32> to vector<16x16xf32>
    %1091 = arith.negf %1090 : vector<16x16xf32>
    %1092 = math.exp %1091 : vector<16x16xf32>
    %cst_376 = arith.constant 1.000000e+00 : f32
    %1093 = vector.broadcast %cst_376 : f32 to vector<16x16xf32>
    %1094 = arith.addf %1093, %1092 : vector<16x16xf32>
    %1095 = arith.divf %1093, %1094 : vector<16x16xf32>
    %1096 = vector.extract_strided_slice %1089 {offsets = [0, 16], sizes = [16, 16], strides = [1, 1]} : vector<16x48xf32> to vector<16x16xf32>
    %1097 = arith.negf %1096 : vector<16x16xf32>
    %1098 = math.exp %1097 : vector<16x16xf32>
    %cst_377 = arith.constant 1.000000e+00 : f32
    %1099 = vector.broadcast %cst_377 : f32 to vector<16x16xf32>
    %1100 = arith.addf %1099, %1098 : vector<16x16xf32>
    %1101 = arith.divf %1099, %1100 : vector<16x16xf32>
    %1102 = vector.extract_strided_slice %790 {offsets = [0, 32], sizes = [16, 16], strides = [1, 1]} : vector<16x48xf32> to vector<16x16xf32>
    %1103 = vector.extract_strided_slice %1088 {offsets = [0, 32], sizes = [16, 16], strides = [1, 1]} : vector<16x48xf32> to vector<16x16xf32>
    %1104 = vector.broadcast %703 : vector<1x16xf32> to vector<16x16xf32>
    %1105 = arith.addf %1103, %1104 : vector<16x16xf32>
    %1106 = arith.mulf %1095, %1105 : vector<16x16xf32>
    %1107 = arith.addf %1102, %1106 : vector<16x16xf32>
    %1108 = math.tanh %1107 : vector<16x16xf32>
    %cst_378 = arith.constant 1.000000e+00 : f32
    %1109 = vector.broadcast %cst_378 : f32 to vector<16x16xf32>
    %1110 = arith.subf %1109, %1101 : vector<16x16xf32>
    %1111 = arith.mulf %1110, %1108 : vector<16x16xf32>
    %1112 = arith.mulf %1101, %1087 : vector<16x16xf32>
    %1113 = arith.addf %1111, %1112 : vector<16x16xf32>
    %cst_379 = arith.constant dense<0.000000e+00> : vector<16x16xf32>
    %1114 = tpu.matmul %1, %1113, %cst_379 {dimension_numbers = #tpu.dot_dimension_numbers<[1], [0], [0], [1], [0, 0, 1, 1], [], []>} : vector<16x16xf32>, vector<16x16xf32>, vector<16x16xf32> -> vector<16x16xf32>
    %cst_380 = arith.constant dense<0.000000e+00> : vector<16x16xf32>
    %1115 = tpu.matmul %1, %1114, %cst_380 {dimension_numbers = #tpu.dot_dimension_numbers<[1], [0], [0], [1], [0, 0, 1, 1], [], []>} : vector<16x16xf32>, vector<16x16xf32>, vector<16x16xf32> -> vector<16x16xf32>
    %1116 = tpu.concatenate %1113, %1114, %1115 in 1 : vector<16x16xf32>, vector<16x16xf32>, vector<16x16xf32> -> vector<16x48xf32>
    %cst_381 = arith.constant dense<0.000000e+00> : vector<16x16xf32>
    %1117 = tpu.matmul %1116, %707, %cst_381 {dimension_numbers = #tpu.dot_dimension_numbers<[1], [0], [0], [1], [0, 0, 1, 1], [], []>} : vector<16x48xf32>, vector<48x16xf32>, vector<16x16xf32> -> vector<16x16xf32>
    %1118 = arith.addf %812, %1117 : vector<16x16xf32>
    %1119 = math.tanh %1118 : vector<16x16xf32>
    %cst_382 = arith.constant dense<0.000000e+00> : vector<16x32xf32>
    %1120 = tpu.matmul %1113, %709, %cst_382 {dimension_numbers = #tpu.dot_dimension_numbers<[1], [0], [0], [1], [0, 0, 1, 1], [], []>} : vector<16x16xf32>, vector<16x32xf32>, vector<16x32xf32> -> vector<16x32xf32>
    %1121 = arith.addf %816, %1120 : vector<16x32xf32>
    %1122 = vector.broadcast %713 : vector<1x32xf32> to vector<16x32xf32>
    %1123 = arith.mulf %1121, %1122 : vector<16x32xf32>
    %cst_383 = arith.constant 0.000000e+00 : f32
    %1124 = vector.broadcast %cst_383 : f32 to vector<16x16xf32>
    %1125 = vector.extract_strided_slice %1121 {offsets = [0, 0], sizes = [16, 16], strides = [1, 1]} : vector<16x32xf32> to vector<16x16xf32>
    %1126 = vector.extract_strided_slice %1123 {offsets = [0, 0], sizes = [16, 16], strides = [1, 1]} : vector<16x32xf32> to vector<16x16xf32>
    %cst_384 = arith.constant dense<0.000000e+00> : vector<16xf32>
    %1127 = vector.multi_reduction <add>, %1126, %cst_384 [1] : vector<16x16xf32> to vector<16xf32>
    %1128 = vector.shape_cast %1127 : vector<16xf32> to vector<16x1xf32>
    %1129 = vector.extract_strided_slice %715 {offsets = [0, 0], sizes = [1, 16], strides = [1, 1]} : vector<1x32xf32> to vector<1x16xf32>
    %cst_385 = arith.constant dense<0.000000e+00> : vector<1x16xf32>
    %1130 = tpu.matmul %1129, %1125, %cst_385 {dimension_numbers = #tpu.dot_dimension_numbers<[1], [1], [0], [0], [0, 0, 1, 0], [], []>} : vector<1x16xf32>, vector<16x16xf32>, vector<1x16xf32> -> vector<1x16xf32>
    %1131 = vector.broadcast %1128 : vector<16x1xf32> to vector<16x16xf32>
    %1132 = vector.broadcast %1130 : vector<1x16xf32> to vector<16x16xf32>
    %1133 = arith.addf %1131, %1132 : vector<16x16xf32>
    %cst_386 = arith.constant 2.000000e-01 : f32
    %1134 = vector.broadcast %cst_386 : f32 to vector<16x16xf32>
    %1135 = arith.mulf %1134, %1133 : vector<16x16xf32>
    %1136 = arith.maximumf %1133, %1135 : vector<16x16xf32>
    %1137 = arith.addf %1136, %7 : vector<16x16xf32>
    %cst_387 = arith.constant dense<0xFF800000> : vector<16xf32>
    %1138 = vector.multi_reduction <maximumf>, %1137, %cst_387 [1] : vector<16x16xf32> to vector<16xf32>
    %1139 = vector.shape_cast %1138 : vector<16xf32> to vector<16x1xf32>
    %1140 = vector.broadcast %1139 : vector<16x1xf32> to vector<16x16xf32>
    %1141 = arith.subf %1137, %1140 : vector<16x16xf32>
    %1142 = math.exp %1141 : vector<16x16xf32>
    %cst_388 = arith.constant dense<0.000000e+00> : vector<16xf32>
    %1143 = vector.multi_reduction <add>, %1142, %cst_388 [1] : vector<16x16xf32> to vector<16xf32>
    %1144 = vector.shape_cast %1143 : vector<16xf32> to vector<16x1xf32>
    %1145 = tpu.reciprocal %1144 {approx = true} : vector<16x1xf32> -> vector<16x1xf32>
    %1146 = vector.broadcast %1145 : vector<16x1xf32> to vector<16x16xf32>
    %1147 = arith.mulf %1142, %1146 : vector<16x16xf32>
    %cst_389 = arith.constant dense<0.000000e+00> : vector<16x16xf32>
    %1148 = tpu.matmul %1147, %1125, %cst_389 {dimension_numbers = #tpu.dot_dimension_numbers<[1], [0], [0], [1], [0, 0, 1, 1], [], []>} : vector<16x16xf32>, vector<16x16xf32>, vector<16x16xf32> -> vector<16x16xf32>
    %1149 = arith.addf %1124, %1148 : vector<16x16xf32>
    %1150 = vector.extract_strided_slice %1121 {offsets = [0, 16], sizes = [16, 16], strides = [1, 1]} : vector<16x32xf32> to vector<16x16xf32>
    %1151 = vector.extract_strided_slice %1123 {offsets = [0, 16], sizes = [16, 16], strides = [1, 1]} : vector<16x32xf32> to vector<16x16xf32>
    %cst_390 = arith.constant dense<0.000000e+00> : vector<16xf32>
    %1152 = vector.multi_reduction <add>, %1151, %cst_390 [1] : vector<16x16xf32> to vector<16xf32>
    %1153 = vector.shape_cast %1152 : vector<16xf32> to vector<16x1xf32>
    %1154 = vector.extract_strided_slice %715 {offsets = [0, 16], sizes = [1, 16], strides = [1, 1]} : vector<1x32xf32> to vector<1x16xf32>
    %cst_391 = arith.constant dense<0.000000e+00> : vector<1x16xf32>
    %1155 = tpu.matmul %1154, %1150, %cst_391 {dimension_numbers = #tpu.dot_dimension_numbers<[1], [1], [0], [0], [0, 0, 1, 0], [], []>} : vector<1x16xf32>, vector<16x16xf32>, vector<1x16xf32> -> vector<1x16xf32>
    %1156 = vector.broadcast %1153 : vector<16x1xf32> to vector<16x16xf32>
    %1157 = vector.broadcast %1155 : vector<1x16xf32> to vector<16x16xf32>
    %1158 = arith.addf %1156, %1157 : vector<16x16xf32>
    %cst_392 = arith.constant 2.000000e-01 : f32
    %1159 = vector.broadcast %cst_392 : f32 to vector<16x16xf32>
    %1160 = arith.mulf %1159, %1158 : vector<16x16xf32>
    %1161 = arith.maximumf %1158, %1160 : vector<16x16xf32>
    %1162 = arith.addf %1161, %7 : vector<16x16xf32>
    %cst_393 = arith.constant dense<0xFF800000> : vector<16xf32>
    %1163 = vector.multi_reduction <maximumf>, %1162, %cst_393 [1] : vector<16x16xf32> to vector<16xf32>
    %1164 = vector.shape_cast %1163 : vector<16xf32> to vector<16x1xf32>
    %1165 = vector.broadcast %1164 : vector<16x1xf32> to vector<16x16xf32>
    %1166 = arith.subf %1162, %1165 : vector<16x16xf32>
    %1167 = math.exp %1166 : vector<16x16xf32>
    %cst_394 = arith.constant dense<0.000000e+00> : vector<16xf32>
    %1168 = vector.multi_reduction <add>, %1167, %cst_394 [1] : vector<16x16xf32> to vector<16xf32>
    %1169 = vector.shape_cast %1168 : vector<16xf32> to vector<16x1xf32>
    %1170 = tpu.reciprocal %1169 {approx = true} : vector<16x1xf32> -> vector<16x1xf32>
    %1171 = vector.broadcast %1170 : vector<16x1xf32> to vector<16x16xf32>
    %1172 = arith.mulf %1167, %1171 : vector<16x16xf32>
    %cst_395 = arith.constant dense<0.000000e+00> : vector<16x16xf32>
    %1173 = tpu.matmul %1172, %1150, %cst_395 {dimension_numbers = #tpu.dot_dimension_numbers<[1], [0], [0], [1], [0, 0, 1, 1], [], []>} : vector<16x16xf32>, vector<16x16xf32>, vector<16x16xf32> -> vector<16x16xf32>
    %1174 = arith.addf %1149, %1173 : vector<16x16xf32>
    %cst_396 = arith.constant 5.000000e-01 : f32
    %1175 = vector.broadcast %cst_396 : f32 to vector<16x16xf32>
    %1176 = arith.mulf %1174, %1175 : vector<16x16xf32>
    %1177 = math.tanh %1176 : vector<16x16xf32>
    %1178 = vector.broadcast %691 : f32 to vector<16x16xf32>
    %1179 = arith.mulf %1178, %1113 : vector<16x16xf32>
    %1180 = vector.broadcast %692 : f32 to vector<16x16xf32>
    %1181 = arith.mulf %1180, %1119 : vector<16x16xf32>
    %1182 = arith.addf %1179, %1181 : vector<16x16xf32>
    %1183 = vector.broadcast %693 : f32 to vector<16x16xf32>
    %1184 = arith.mulf %1183, %1177 : vector<16x16xf32>
    %1185 = arith.addf %1182, %1184 : vector<16x16xf32>
    %cst_397 = arith.constant dense<0.000000e+00> : vector<16x48xf32>
    %1186 = tpu.matmul %1185, %697, %cst_397 {dimension_numbers = #tpu.dot_dimension_numbers<[1], [0], [0], [1], [0, 0, 1, 1], [], []>} : vector<16x16xf32>, vector<16x48xf32>, vector<16x48xf32> -> vector<16x48xf32>
    %1187 = arith.addf %822, %1186 : vector<16x48xf32>
    %1188 = vector.extract_strided_slice %1187 {offsets = [0, 0], sizes = [16, 16], strides = [1, 1]} : vector<16x48xf32> to vector<16x16xf32>
    %1189 = arith.negf %1188 : vector<16x16xf32>
    %1190 = math.exp %1189 : vector<16x16xf32>
    %cst_398 = arith.constant 1.000000e+00 : f32
    %1191 = vector.broadcast %cst_398 : f32 to vector<16x16xf32>
    %1192 = arith.addf %1191, %1190 : vector<16x16xf32>
    %1193 = arith.divf %1191, %1192 : vector<16x16xf32>
    %1194 = vector.extract_strided_slice %1187 {offsets = [0, 16], sizes = [16, 16], strides = [1, 1]} : vector<16x48xf32> to vector<16x16xf32>
    %1195 = arith.negf %1194 : vector<16x16xf32>
    %1196 = math.exp %1195 : vector<16x16xf32>
    %cst_399 = arith.constant 1.000000e+00 : f32
    %1197 = vector.broadcast %cst_399 : f32 to vector<16x16xf32>
    %1198 = arith.addf %1197, %1196 : vector<16x16xf32>
    %1199 = arith.divf %1197, %1198 : vector<16x16xf32>
    %1200 = vector.extract_strided_slice %822 {offsets = [0, 32], sizes = [16, 16], strides = [1, 1]} : vector<16x48xf32> to vector<16x16xf32>
    %1201 = vector.extract_strided_slice %1186 {offsets = [0, 32], sizes = [16, 16], strides = [1, 1]} : vector<16x48xf32> to vector<16x16xf32>
    %1202 = vector.broadcast %703 : vector<1x16xf32> to vector<16x16xf32>
    %1203 = arith.addf %1201, %1202 : vector<16x16xf32>
    %1204 = arith.mulf %1193, %1203 : vector<16x16xf32>
    %1205 = arith.addf %1200, %1204 : vector<16x16xf32>
    %1206 = math.tanh %1205 : vector<16x16xf32>
    %cst_400 = arith.constant 1.000000e+00 : f32
    %1207 = vector.broadcast %cst_400 : f32 to vector<16x16xf32>
    %1208 = arith.subf %1207, %1199 : vector<16x16xf32>
    %1209 = arith.mulf %1208, %1206 : vector<16x16xf32>
    %1210 = arith.mulf %1199, %1185 : vector<16x16xf32>
    %1211 = arith.addf %1209, %1210 : vector<16x16xf32>
    %cst_401 = arith.constant dense<0.000000e+00> : vector<16x16xf32>
    %1212 = tpu.matmul %1, %1211, %cst_401 {dimension_numbers = #tpu.dot_dimension_numbers<[1], [0], [0], [1], [0, 0, 1, 1], [], []>} : vector<16x16xf32>, vector<16x16xf32>, vector<16x16xf32> -> vector<16x16xf32>
    %cst_402 = arith.constant dense<0.000000e+00> : vector<16x16xf32>
    %1213 = tpu.matmul %1, %1212, %cst_402 {dimension_numbers = #tpu.dot_dimension_numbers<[1], [0], [0], [1], [0, 0, 1, 1], [], []>} : vector<16x16xf32>, vector<16x16xf32>, vector<16x16xf32> -> vector<16x16xf32>
    %1214 = tpu.concatenate %1211, %1212, %1213 in 1 : vector<16x16xf32>, vector<16x16xf32>, vector<16x16xf32> -> vector<16x48xf32>
    %cst_403 = arith.constant dense<0.000000e+00> : vector<16x16xf32>
    %1215 = tpu.matmul %1214, %707, %cst_403 {dimension_numbers = #tpu.dot_dimension_numbers<[1], [0], [0], [1], [0, 0, 1, 1], [], []>} : vector<16x48xf32>, vector<48x16xf32>, vector<16x16xf32> -> vector<16x16xf32>
    %1216 = arith.addf %844, %1215 : vector<16x16xf32>
    %1217 = math.tanh %1216 : vector<16x16xf32>
    %cst_404 = arith.constant dense<0.000000e+00> : vector<16x32xf32>
    %1218 = tpu.matmul %1211, %709, %cst_404 {dimension_numbers = #tpu.dot_dimension_numbers<[1], [0], [0], [1], [0, 0, 1, 1], [], []>} : vector<16x16xf32>, vector<16x32xf32>, vector<16x32xf32> -> vector<16x32xf32>
    %1219 = arith.addf %848, %1218 : vector<16x32xf32>
    %1220 = vector.broadcast %713 : vector<1x32xf32> to vector<16x32xf32>
    %1221 = arith.mulf %1219, %1220 : vector<16x32xf32>
    %cst_405 = arith.constant 0.000000e+00 : f32
    %1222 = vector.broadcast %cst_405 : f32 to vector<16x16xf32>
    %1223 = vector.extract_strided_slice %1219 {offsets = [0, 0], sizes = [16, 16], strides = [1, 1]} : vector<16x32xf32> to vector<16x16xf32>
    %1224 = vector.extract_strided_slice %1221 {offsets = [0, 0], sizes = [16, 16], strides = [1, 1]} : vector<16x32xf32> to vector<16x16xf32>
    %cst_406 = arith.constant dense<0.000000e+00> : vector<16xf32>
    %1225 = vector.multi_reduction <add>, %1224, %cst_406 [1] : vector<16x16xf32> to vector<16xf32>
    %1226 = vector.shape_cast %1225 : vector<16xf32> to vector<16x1xf32>
    %1227 = vector.extract_strided_slice %715 {offsets = [0, 0], sizes = [1, 16], strides = [1, 1]} : vector<1x32xf32> to vector<1x16xf32>
    %cst_407 = arith.constant dense<0.000000e+00> : vector<1x16xf32>
    %1228 = tpu.matmul %1227, %1223, %cst_407 {dimension_numbers = #tpu.dot_dimension_numbers<[1], [1], [0], [0], [0, 0, 1, 0], [], []>} : vector<1x16xf32>, vector<16x16xf32>, vector<1x16xf32> -> vector<1x16xf32>
    %1229 = vector.broadcast %1226 : vector<16x1xf32> to vector<16x16xf32>
    %1230 = vector.broadcast %1228 : vector<1x16xf32> to vector<16x16xf32>
    %1231 = arith.addf %1229, %1230 : vector<16x16xf32>
    %cst_408 = arith.constant 2.000000e-01 : f32
    %1232 = vector.broadcast %cst_408 : f32 to vector<16x16xf32>
    %1233 = arith.mulf %1232, %1231 : vector<16x16xf32>
    %1234 = arith.maximumf %1231, %1233 : vector<16x16xf32>
    %1235 = arith.addf %1234, %7 : vector<16x16xf32>
    %cst_409 = arith.constant dense<0xFF800000> : vector<16xf32>
    %1236 = vector.multi_reduction <maximumf>, %1235, %cst_409 [1] : vector<16x16xf32> to vector<16xf32>
    %1237 = vector.shape_cast %1236 : vector<16xf32> to vector<16x1xf32>
    %1238 = vector.broadcast %1237 : vector<16x1xf32> to vector<16x16xf32>
    %1239 = arith.subf %1235, %1238 : vector<16x16xf32>
    %1240 = math.exp %1239 : vector<16x16xf32>
    %cst_410 = arith.constant dense<0.000000e+00> : vector<16xf32>
    %1241 = vector.multi_reduction <add>, %1240, %cst_410 [1] : vector<16x16xf32> to vector<16xf32>
    %1242 = vector.shape_cast %1241 : vector<16xf32> to vector<16x1xf32>
    %1243 = tpu.reciprocal %1242 {approx = true} : vector<16x1xf32> -> vector<16x1xf32>
    %1244 = vector.broadcast %1243 : vector<16x1xf32> to vector<16x16xf32>
    %1245 = arith.mulf %1240, %1244 : vector<16x16xf32>
    %cst_411 = arith.constant dense<0.000000e+00> : vector<16x16xf32>
    %1246 = tpu.matmul %1245, %1223, %cst_411 {dimension_numbers = #tpu.dot_dimension_numbers<[1], [0], [0], [1], [0, 0, 1, 1], [], []>} : vector<16x16xf32>, vector<16x16xf32>, vector<16x16xf32> -> vector<16x16xf32>
    %1247 = arith.addf %1222, %1246 : vector<16x16xf32>
    %1248 = vector.extract_strided_slice %1219 {offsets = [0, 16], sizes = [16, 16], strides = [1, 1]} : vector<16x32xf32> to vector<16x16xf32>
    %1249 = vector.extract_strided_slice %1221 {offsets = [0, 16], sizes = [16, 16], strides = [1, 1]} : vector<16x32xf32> to vector<16x16xf32>
    %cst_412 = arith.constant dense<0.000000e+00> : vector<16xf32>
    %1250 = vector.multi_reduction <add>, %1249, %cst_412 [1] : vector<16x16xf32> to vector<16xf32>
    %1251 = vector.shape_cast %1250 : vector<16xf32> to vector<16x1xf32>
    %1252 = vector.extract_strided_slice %715 {offsets = [0, 16], sizes = [1, 16], strides = [1, 1]} : vector<1x32xf32> to vector<1x16xf32>
    %cst_413 = arith.constant dense<0.000000e+00> : vector<1x16xf32>
    %1253 = tpu.matmul %1252, %1248, %cst_413 {dimension_numbers = #tpu.dot_dimension_numbers<[1], [1], [0], [0], [0, 0, 1, 0], [], []>} : vector<1x16xf32>, vector<16x16xf32>, vector<1x16xf32> -> vector<1x16xf32>
    %1254 = vector.broadcast %1251 : vector<16x1xf32> to vector<16x16xf32>
    %1255 = vector.broadcast %1253 : vector<1x16xf32> to vector<16x16xf32>
    %1256 = arith.addf %1254, %1255 : vector<16x16xf32>
    %cst_414 = arith.constant 2.000000e-01 : f32
    %1257 = vector.broadcast %cst_414 : f32 to vector<16x16xf32>
    %1258 = arith.mulf %1257, %1256 : vector<16x16xf32>
    %1259 = arith.maximumf %1256, %1258 : vector<16x16xf32>
    %1260 = arith.addf %1259, %7 : vector<16x16xf32>
    %cst_415 = arith.constant dense<0xFF800000> : vector<16xf32>
    %1261 = vector.multi_reduction <maximumf>, %1260, %cst_415 [1] : vector<16x16xf32> to vector<16xf32>
    %1262 = vector.shape_cast %1261 : vector<16xf32> to vector<16x1xf32>
    %1263 = vector.broadcast %1262 : vector<16x1xf32> to vector<16x16xf32>
    %1264 = arith.subf %1260, %1263 : vector<16x16xf32>
    %1265 = math.exp %1264 : vector<16x16xf32>
    %cst_416 = arith.constant dense<0.000000e+00> : vector<16xf32>
    %1266 = vector.multi_reduction <add>, %1265, %cst_416 [1] : vector<16x16xf32> to vector<16xf32>
    %1267 = vector.shape_cast %1266 : vector<16xf32> to vector<16x1xf32>
    %1268 = tpu.reciprocal %1267 {approx = true} : vector<16x1xf32> -> vector<16x1xf32>
    %1269 = vector.broadcast %1268 : vector<16x1xf32> to vector<16x16xf32>
    %1270 = arith.mulf %1265, %1269 : vector<16x16xf32>
    %cst_417 = arith.constant dense<0.000000e+00> : vector<16x16xf32>
    %1271 = tpu.matmul %1270, %1248, %cst_417 {dimension_numbers = #tpu.dot_dimension_numbers<[1], [0], [0], [1], [0, 0, 1, 1], [], []>} : vector<16x16xf32>, vector<16x16xf32>, vector<16x16xf32> -> vector<16x16xf32>
    %1272 = arith.addf %1247, %1271 : vector<16x16xf32>
    %cst_418 = arith.constant 5.000000e-01 : f32
    %1273 = vector.broadcast %cst_418 : f32 to vector<16x16xf32>
    %1274 = arith.mulf %1272, %1273 : vector<16x16xf32>
    %1275 = math.tanh %1274 : vector<16x16xf32>
    %1276 = vector.broadcast %691 : f32 to vector<16x16xf32>
    %1277 = arith.mulf %1276, %1211 : vector<16x16xf32>
    %1278 = vector.broadcast %692 : f32 to vector<16x16xf32>
    %1279 = arith.mulf %1278, %1217 : vector<16x16xf32>
    %1280 = arith.addf %1277, %1279 : vector<16x16xf32>
    %1281 = vector.broadcast %693 : f32 to vector<16x16xf32>
    %1282 = arith.mulf %1281, %1275 : vector<16x16xf32>
    %1283 = arith.addf %1280, %1282 : vector<16x16xf32>
    %cst_419 = arith.constant dense<0.000000e+00> : vector<16x48xf32>
    %1284 = tpu.matmul %1283, %697, %cst_419 {dimension_numbers = #tpu.dot_dimension_numbers<[1], [0], [0], [1], [0, 0, 1, 1], [], []>} : vector<16x16xf32>, vector<16x48xf32>, vector<16x48xf32> -> vector<16x48xf32>
    %1285 = arith.addf %854, %1284 : vector<16x48xf32>
    %1286 = vector.extract_strided_slice %1285 {offsets = [0, 0], sizes = [16, 16], strides = [1, 1]} : vector<16x48xf32> to vector<16x16xf32>
    %1287 = arith.negf %1286 : vector<16x16xf32>
    %1288 = math.exp %1287 : vector<16x16xf32>
    %cst_420 = arith.constant 1.000000e+00 : f32
    %1289 = vector.broadcast %cst_420 : f32 to vector<16x16xf32>
    %1290 = arith.addf %1289, %1288 : vector<16x16xf32>
    %1291 = arith.divf %1289, %1290 : vector<16x16xf32>
    %1292 = vector.extract_strided_slice %1285 {offsets = [0, 16], sizes = [16, 16], strides = [1, 1]} : vector<16x48xf32> to vector<16x16xf32>
    %1293 = arith.negf %1292 : vector<16x16xf32>
    %1294 = math.exp %1293 : vector<16x16xf32>
    %cst_421 = arith.constant 1.000000e+00 : f32
    %1295 = vector.broadcast %cst_421 : f32 to vector<16x16xf32>
    %1296 = arith.addf %1295, %1294 : vector<16x16xf32>
    %1297 = arith.divf %1295, %1296 : vector<16x16xf32>
    %1298 = vector.extract_strided_slice %854 {offsets = [0, 32], sizes = [16, 16], strides = [1, 1]} : vector<16x48xf32> to vector<16x16xf32>
    %1299 = vector.extract_strided_slice %1284 {offsets = [0, 32], sizes = [16, 16], strides = [1, 1]} : vector<16x48xf32> to vector<16x16xf32>
    %1300 = vector.broadcast %703 : vector<1x16xf32> to vector<16x16xf32>
    %1301 = arith.addf %1299, %1300 : vector<16x16xf32>
    %1302 = arith.mulf %1291, %1301 : vector<16x16xf32>
    %1303 = arith.addf %1298, %1302 : vector<16x16xf32>
    %1304 = math.tanh %1303 : vector<16x16xf32>
    %cst_422 = arith.constant 1.000000e+00 : f32
    %1305 = vector.broadcast %cst_422 : f32 to vector<16x16xf32>
    %1306 = arith.subf %1305, %1297 : vector<16x16xf32>
    %1307 = arith.mulf %1306, %1304 : vector<16x16xf32>
    %1308 = arith.mulf %1297, %1283 : vector<16x16xf32>
    %1309 = arith.addf %1307, %1308 : vector<16x16xf32>
    %cst_423 = arith.constant dense<0.000000e+00> : vector<16x16xf32>
    %1310 = tpu.matmul %1, %1309, %cst_423 {dimension_numbers = #tpu.dot_dimension_numbers<[1], [0], [0], [1], [0, 0, 1, 1], [], []>} : vector<16x16xf32>, vector<16x16xf32>, vector<16x16xf32> -> vector<16x16xf32>
    %cst_424 = arith.constant dense<0.000000e+00> : vector<16x16xf32>
    %1311 = tpu.matmul %1, %1310, %cst_424 {dimension_numbers = #tpu.dot_dimension_numbers<[1], [0], [0], [1], [0, 0, 1, 1], [], []>} : vector<16x16xf32>, vector<16x16xf32>, vector<16x16xf32> -> vector<16x16xf32>
    %1312 = tpu.concatenate %1309, %1310, %1311 in 1 : vector<16x16xf32>, vector<16x16xf32>, vector<16x16xf32> -> vector<16x48xf32>
    %cst_425 = arith.constant dense<0.000000e+00> : vector<16x16xf32>
    %1313 = tpu.matmul %1312, %707, %cst_425 {dimension_numbers = #tpu.dot_dimension_numbers<[1], [0], [0], [1], [0, 0, 1, 1], [], []>} : vector<16x48xf32>, vector<48x16xf32>, vector<16x16xf32> -> vector<16x16xf32>
    %1314 = arith.addf %876, %1313 : vector<16x16xf32>
    %1315 = math.tanh %1314 : vector<16x16xf32>
    %cst_426 = arith.constant dense<0.000000e+00> : vector<16x32xf32>
    %1316 = tpu.matmul %1309, %709, %cst_426 {dimension_numbers = #tpu.dot_dimension_numbers<[1], [0], [0], [1], [0, 0, 1, 1], [], []>} : vector<16x16xf32>, vector<16x32xf32>, vector<16x32xf32> -> vector<16x32xf32>
    %1317 = arith.addf %880, %1316 : vector<16x32xf32>
    %1318 = vector.broadcast %713 : vector<1x32xf32> to vector<16x32xf32>
    %1319 = arith.mulf %1317, %1318 : vector<16x32xf32>
    %cst_427 = arith.constant 0.000000e+00 : f32
    %1320 = vector.broadcast %cst_427 : f32 to vector<16x16xf32>
    %1321 = vector.extract_strided_slice %1317 {offsets = [0, 0], sizes = [16, 16], strides = [1, 1]} : vector<16x32xf32> to vector<16x16xf32>
    %1322 = vector.extract_strided_slice %1319 {offsets = [0, 0], sizes = [16, 16], strides = [1, 1]} : vector<16x32xf32> to vector<16x16xf32>
    %cst_428 = arith.constant dense<0.000000e+00> : vector<16xf32>
    %1323 = vector.multi_reduction <add>, %1322, %cst_428 [1] : vector<16x16xf32> to vector<16xf32>
    %1324 = vector.shape_cast %1323 : vector<16xf32> to vector<16x1xf32>
    %1325 = vector.extract_strided_slice %715 {offsets = [0, 0], sizes = [1, 16], strides = [1, 1]} : vector<1x32xf32> to vector<1x16xf32>
    %cst_429 = arith.constant dense<0.000000e+00> : vector<1x16xf32>
    %1326 = tpu.matmul %1325, %1321, %cst_429 {dimension_numbers = #tpu.dot_dimension_numbers<[1], [1], [0], [0], [0, 0, 1, 0], [], []>} : vector<1x16xf32>, vector<16x16xf32>, vector<1x16xf32> -> vector<1x16xf32>
    %1327 = vector.broadcast %1324 : vector<16x1xf32> to vector<16x16xf32>
    %1328 = vector.broadcast %1326 : vector<1x16xf32> to vector<16x16xf32>
    %1329 = arith.addf %1327, %1328 : vector<16x16xf32>
    %cst_430 = arith.constant 2.000000e-01 : f32
    %1330 = vector.broadcast %cst_430 : f32 to vector<16x16xf32>
    %1331 = arith.mulf %1330, %1329 : vector<16x16xf32>
    %1332 = arith.maximumf %1329, %1331 : vector<16x16xf32>
    %1333 = arith.addf %1332, %7 : vector<16x16xf32>
    %cst_431 = arith.constant dense<0xFF800000> : vector<16xf32>
    %1334 = vector.multi_reduction <maximumf>, %1333, %cst_431 [1] : vector<16x16xf32> to vector<16xf32>
    %1335 = vector.shape_cast %1334 : vector<16xf32> to vector<16x1xf32>
    %1336 = vector.broadcast %1335 : vector<16x1xf32> to vector<16x16xf32>
    %1337 = arith.subf %1333, %1336 : vector<16x16xf32>
    %1338 = math.exp %1337 : vector<16x16xf32>
    %cst_432 = arith.constant dense<0.000000e+00> : vector<16xf32>
    %1339 = vector.multi_reduction <add>, %1338, %cst_432 [1] : vector<16x16xf32> to vector<16xf32>
    %1340 = vector.shape_cast %1339 : vector<16xf32> to vector<16x1xf32>
    %1341 = tpu.reciprocal %1340 {approx = true} : vector<16x1xf32> -> vector<16x1xf32>
    %1342 = vector.broadcast %1341 : vector<16x1xf32> to vector<16x16xf32>
    %1343 = arith.mulf %1338, %1342 : vector<16x16xf32>
    %cst_433 = arith.constant dense<0.000000e+00> : vector<16x16xf32>
    %1344 = tpu.matmul %1343, %1321, %cst_433 {dimension_numbers = #tpu.dot_dimension_numbers<[1], [0], [0], [1], [0, 0, 1, 1], [], []>} : vector<16x16xf32>, vector<16x16xf32>, vector<16x16xf32> -> vector<16x16xf32>
    %1345 = arith.addf %1320, %1344 : vector<16x16xf32>
    %1346 = vector.extract_strided_slice %1317 {offsets = [0, 16], sizes = [16, 16], strides = [1, 1]} : vector<16x32xf32> to vector<16x16xf32>
    %1347 = vector.extract_strided_slice %1319 {offsets = [0, 16], sizes = [16, 16], strides = [1, 1]} : vector<16x32xf32> to vector<16x16xf32>
    %cst_434 = arith.constant dense<0.000000e+00> : vector<16xf32>
    %1348 = vector.multi_reduction <add>, %1347, %cst_434 [1] : vector<16x16xf32> to vector<16xf32>
    %1349 = vector.shape_cast %1348 : vector<16xf32> to vector<16x1xf32>
    %1350 = vector.extract_strided_slice %715 {offsets = [0, 16], sizes = [1, 16], strides = [1, 1]} : vector<1x32xf32> to vector<1x16xf32>
    %cst_435 = arith.constant dense<0.000000e+00> : vector<1x16xf32>
    %1351 = tpu.matmul %1350, %1346, %cst_435 {dimension_numbers = #tpu.dot_dimension_numbers<[1], [1], [0], [0], [0, 0, 1, 0], [], []>} : vector<1x16xf32>, vector<16x16xf32>, vector<1x16xf32> -> vector<1x16xf32>
    %1352 = vector.broadcast %1349 : vector<16x1xf32> to vector<16x16xf32>
    %1353 = vector.broadcast %1351 : vector<1x16xf32> to vector<16x16xf32>
    %1354 = arith.addf %1352, %1353 : vector<16x16xf32>
    %cst_436 = arith.constant 2.000000e-01 : f32
    %1355 = vector.broadcast %cst_436 : f32 to vector<16x16xf32>
    %1356 = arith.mulf %1355, %1354 : vector<16x16xf32>
    %1357 = arith.maximumf %1354, %1356 : vector<16x16xf32>
    %1358 = arith.addf %1357, %7 : vector<16x16xf32>
    %cst_437 = arith.constant dense<0xFF800000> : vector<16xf32>
    %1359 = vector.multi_reduction <maximumf>, %1358, %cst_437 [1] : vector<16x16xf32> to vector<16xf32>
    %1360 = vector.shape_cast %1359 : vector<16xf32> to vector<16x1xf32>
    %1361 = vector.broadcast %1360 : vector<16x1xf32> to vector<16x16xf32>
    %1362 = arith.subf %1358, %1361 : vector<16x16xf32>
    %1363 = math.exp %1362 : vector<16x16xf32>
    %cst_438 = arith.constant dense<0.000000e+00> : vector<16xf32>
    %1364 = vector.multi_reduction <add>, %1363, %cst_438 [1] : vector<16x16xf32> to vector<16xf32>
    %1365 = vector.shape_cast %1364 : vector<16xf32> to vector<16x1xf32>
    %1366 = tpu.reciprocal %1365 {approx = true} : vector<16x1xf32> -> vector<16x1xf32>
    %1367 = vector.broadcast %1366 : vector<16x1xf32> to vector<16x16xf32>
    %1368 = arith.mulf %1363, %1367 : vector<16x16xf32>
    %cst_439 = arith.constant dense<0.000000e+00> : vector<16x16xf32>
    %1369 = tpu.matmul %1368, %1346, %cst_439 {dimension_numbers = #tpu.dot_dimension_numbers<[1], [0], [0], [1], [0, 0, 1, 1], [], []>} : vector<16x16xf32>, vector<16x16xf32>, vector<16x16xf32> -> vector<16x16xf32>
    %1370 = arith.addf %1345, %1369 : vector<16x16xf32>
    %cst_440 = arith.constant 5.000000e-01 : f32
    %1371 = vector.broadcast %cst_440 : f32 to vector<16x16xf32>
    %1372 = arith.mulf %1370, %1371 : vector<16x16xf32>
    %1373 = math.tanh %1372 : vector<16x16xf32>
    %c0_441 = arith.constant 0 : index
    %c0_442 = arith.constant 0 : index
    %c0_443 = arith.constant 0 : index
    %1374 = vector.load %arg18[%c0_441, %c0_442, %c0_443] : memref<3x1x32xf32, #tpu.memory_space<vmem>>, vector<1x1x32xf32>
    %1375 = vector.shape_cast %1374 : vector<1x1x32xf32> to vector<1x32xf32>
    %c0_444 = arith.constant 0 : index
    %c0_445 = arith.constant 0 : index
    %c0_446 = arith.constant 0 : index
    %1376 = vector.load %arg19[%c0_444, %c0_445, %c0_446] : memref<3x1x1xf32, #tpu.memory_space<vmem>>, vector<1x1x1xf32>
    %1377 = vector.shape_cast %1376 : vector<1x1x1xf32> to vector<1x1xf32>
    %1378 = vector.extract_strided_slice %1375 {offsets = [0, 0], sizes = [1, 16], strides = [1, 1]} : vector<1x32xf32> to vector<1x16xf32>
    %1379 = vector.broadcast %1378 : vector<1x16xf32> to vector<16x16xf32>
    %1380 = arith.mulf %626, %1379 : vector<16x16xf32>
    %1381 = vector.extract_strided_slice %1375 {offsets = [0, 16], sizes = [1, 16], strides = [1, 1]} : vector<1x32xf32> to vector<1x16xf32>
    %1382 = vector.broadcast %1381 : vector<1x16xf32> to vector<16x16xf32>
    %1383 = arith.mulf %1309, %1382 : vector<16x16xf32>
    %1384 = arith.addf %1380, %1383 : vector<16x16xf32>
    %cst_447 = arith.constant dense<0.000000e+00> : vector<16xf32>
    %1385 = vector.multi_reduction <add>, %1384, %cst_447 [1] : vector<16x16xf32> to vector<16xf32>
    %1386 = vector.shape_cast %1385 : vector<16xf32> to vector<16x1xf32>
    %1387 = vector.broadcast %1377 : vector<1x1xf32> to vector<16x1xf32>
    %1388 = arith.addf %1386, %1387 : vector<16x1xf32>
    %c1_448 = arith.constant 1 : index
    %c0_449 = arith.constant 0 : index
    %c0_450 = arith.constant 0 : index
    %1389 = vector.load %arg18[%c1_448, %c0_449, %c0_450] : memref<3x1x32xf32, #tpu.memory_space<vmem>>, vector<1x1x32xf32>
    %1390 = vector.shape_cast %1389 : vector<1x1x32xf32> to vector<1x32xf32>
    %c1_451 = arith.constant 1 : index
    %c0_452 = arith.constant 0 : index
    %c0_453 = arith.constant 0 : index
    %1391 = vector.load %arg19[%c1_451, %c0_452, %c0_453] : memref<3x1x1xf32, #tpu.memory_space<vmem>>, vector<1x1x1xf32>
    %1392 = vector.shape_cast %1391 : vector<1x1x1xf32> to vector<1x1xf32>
    %1393 = vector.extract_strided_slice %1390 {offsets = [0, 0], sizes = [1, 16], strides = [1, 1]} : vector<1x32xf32> to vector<1x16xf32>
    %1394 = vector.broadcast %1393 : vector<1x16xf32> to vector<16x16xf32>
    %1395 = arith.mulf %632, %1394 : vector<16x16xf32>
    %1396 = vector.extract_strided_slice %1390 {offsets = [0, 16], sizes = [1, 16], strides = [1, 1]} : vector<1x32xf32> to vector<1x16xf32>
    %1397 = vector.broadcast %1396 : vector<1x16xf32> to vector<16x16xf32>
    %1398 = arith.mulf %1315, %1397 : vector<16x16xf32>
    %1399 = arith.addf %1395, %1398 : vector<16x16xf32>
    %cst_454 = arith.constant dense<0.000000e+00> : vector<16xf32>
    %1400 = vector.multi_reduction <add>, %1399, %cst_454 [1] : vector<16x16xf32> to vector<16xf32>
    %1401 = vector.shape_cast %1400 : vector<16xf32> to vector<16x1xf32>
    %1402 = vector.broadcast %1392 : vector<1x1xf32> to vector<16x1xf32>
    %1403 = arith.addf %1401, %1402 : vector<16x1xf32>
    %c2_455 = arith.constant 2 : index
    %c0_456 = arith.constant 0 : index
    %c0_457 = arith.constant 0 : index
    %1404 = vector.load %arg18[%c2_455, %c0_456, %c0_457] : memref<3x1x32xf32, #tpu.memory_space<vmem>>, vector<1x1x32xf32>
    %1405 = vector.shape_cast %1404 : vector<1x1x32xf32> to vector<1x32xf32>
    %c2_458 = arith.constant 2 : index
    %c0_459 = arith.constant 0 : index
    %c0_460 = arith.constant 0 : index
    %1406 = vector.load %arg19[%c2_458, %c0_459, %c0_460] : memref<3x1x1xf32, #tpu.memory_space<vmem>>, vector<1x1x1xf32>
    %1407 = vector.shape_cast %1406 : vector<1x1x1xf32> to vector<1x1xf32>
    %1408 = vector.extract_strided_slice %1405 {offsets = [0, 0], sizes = [1, 16], strides = [1, 1]} : vector<1x32xf32> to vector<1x16xf32>
    %1409 = vector.broadcast %1408 : vector<1x16xf32> to vector<16x16xf32>
    %1410 = arith.mulf %690, %1409 : vector<16x16xf32>
    %1411 = vector.extract_strided_slice %1405 {offsets = [0, 16], sizes = [1, 16], strides = [1, 1]} : vector<1x32xf32> to vector<1x16xf32>
    %1412 = vector.broadcast %1411 : vector<1x16xf32> to vector<16x16xf32>
    %1413 = arith.mulf %1373, %1412 : vector<16x16xf32>
    %1414 = arith.addf %1410, %1413 : vector<16x16xf32>
    %cst_461 = arith.constant dense<0.000000e+00> : vector<16xf32>
    %1415 = vector.multi_reduction <add>, %1414, %cst_461 [1] : vector<16x16xf32> to vector<16xf32>
    %1416 = vector.shape_cast %1415 : vector<16xf32> to vector<16x1xf32>
    %1417 = vector.broadcast %1407 : vector<1x1xf32> to vector<16x1xf32>
    %1418 = arith.addf %1416, %1417 : vector<16x1xf32>
    %c0_462 = arith.constant 0 : index
    %c0_463 = arith.constant 0 : index
    %1419 = memref.load %arg1[%c0_462, %c0_463] : memref<1x3xf32, #tpu.memory_space<smem>>
    %1420 = vector.broadcast %1419 : f32 to vector<16x1xf32>
    %1421 = arith.mulf %1420, %1388 : vector<16x1xf32>
    %c0_464 = arith.constant 0 : index
    %c1_465 = arith.constant 1 : index
    %1422 = memref.load %arg1[%c0_464, %c1_465] : memref<1x3xf32, #tpu.memory_space<smem>>
    %1423 = vector.broadcast %1422 : f32 to vector<16x1xf32>
    %1424 = arith.mulf %1423, %1403 : vector<16x1xf32>
    %1425 = arith.addf %1421, %1424 : vector<16x1xf32>
    %c0_466 = arith.constant 0 : index
    %c2_467 = arith.constant 2 : index
    %1426 = memref.load %arg1[%c0_466, %c2_467] : memref<1x3xf32, #tpu.memory_space<smem>>
    %1427 = vector.broadcast %1426 : f32 to vector<16x1xf32>
    %1428 = arith.mulf %1427, %1418 : vector<16x1xf32>
    %1429 = arith.addf %1425, %1428 : vector<16x1xf32>
    %c0_468 = arith.constant 0 : index
    %c0_469 = arith.constant 0 : index
    %c0_470 = arith.constant 0 : index
    %1430 = vector.load %arg20[%c0_468, %c0_469, %c0_470] : memref<4x16x1xf32, #tpu.memory_space<vmem>>, vector<1x16x1xf32>
    %1431 = vector.shape_cast %1430 : vector<1x16x1xf32> to vector<16x1xf32>
    %1432 = vector.shape_cast %1429 : vector<16x1xf32> to vector<1x16x1xf32>
    tpu.vector_store %arg20[%c0_468, %c0_469, %c0_470], %1432 {strides = array<i32>} : memref<4x16x1xf32, #tpu.memory_space<vmem>>, vector<1x16x1xf32>,
    %c1_471 = arith.constant 1 : index
    %c0_472 = arith.constant 0 : index
    %c0_473 = arith.constant 0 : index
    %1433 = vector.load %arg20[%c1_471, %c0_472, %c0_473] : memref<4x16x1xf32, #tpu.memory_space<vmem>>, vector<1x16x1xf32>
    %1434 = vector.shape_cast %1433 : vector<1x16x1xf32> to vector<16x1xf32>
    %1435 = vector.shape_cast %1388 : vector<16x1xf32> to vector<1x16x1xf32>
    tpu.vector_store %arg20[%c1_471, %c0_472, %c0_473], %1435 {strides = array<i32>} : memref<4x16x1xf32, #tpu.memory_space<vmem>>, vector<1x16x1xf32>,
    %c2_474 = arith.constant 2 : index
    %c0_475 = arith.constant 0 : index
    %c0_476 = arith.constant 0 : index
    %1436 = vector.load %arg20[%c2_474, %c0_475, %c0_476] : memref<4x16x1xf32, #tpu.memory_space<vmem>>, vector<1x16x1xf32>
    %1437 = vector.shape_cast %1436 : vector<1x16x1xf32> to vector<16x1xf32>
    %1438 = vector.shape_cast %1403 : vector<16x1xf32> to vector<1x16x1xf32>
    tpu.vector_store %arg20[%c2_474, %c0_475, %c0_476], %1438 {strides = array<i32>} : memref<4x16x1xf32, #tpu.memory_space<vmem>>, vector<1x16x1xf32>,
    %c3 = arith.constant 3 : index
    %c0_477 = arith.constant 0 : index
    %c0_478 = arith.constant 0 : index
    %1439 = vector.load %arg20[%c3, %c0_477, %c0_478] : memref<4x16x1xf32, #tpu.memory_space<vmem>>, vector<1x16x1xf32>
    %1440 = vector.shape_cast %1439 : vector<1x16x1xf32> to vector<16x1xf32>
    %1441 = vector.shape_cast %1418 : vector<16x1xf32> to vector<1x16x1xf32>
    tpu.vector_store %arg20[%c3, %c0_477, %c0_478], %1441 {strides = array<i32>} : memref<4x16x1xf32, #tpu.memory_space<vmem>>, vector<1x16x1xf32>,
    return
  }
}

</mosaic_0001>

<bundles_post_ra>
// kernel: squeeze.7
= control target key start
LH: loop header
LB: loop body
LE: loop exit
PB: predicated region body
PF: predicated region fallthrough
CT: control target
= control target key end

     0   :  { %s85_s0 = inlined_call_operand.vmem [shape: f32[16], index: 0, kind: input, shape index: {}]   ;;  %s86_s1 = inlined_call_operand.hbm [shape: f32[2,8], index: 1, kind: output, shape index: {}]  }
   0x1   :  { %v5_v0 = vld [vmem:[%s85_s0] sm:$0x1] }
   0x2   :  { %2 = vsyncpa [#allocation1], 0  ;;  %6 = vst [vmem:[#allocation3] sm:$0x1] %v5_v0  ;;  %vm8_vm0 = vcmask 64512   ;;  %s58_s0 = smov 120  }
   0x3   :  { %s59_s8 = smov [#allocation0]  }
   0x4   :  { %s26_s9 = sshll.u32 %s59_s8, 4  ;;  %s27_s9 = int_to_ptr.vmem [resolvable:$true] %s26_s9 }
   0x5   :  { %s34_s10 = scalar_lea.vmem %s27_s9, 32  ;;  %p39_p1 = scmp.lt.s32.totalorder %s27_s9, %s27_s9 }
   0x6   :  { %p35_p0 = scmp.ne.s32.totalorder %s27_s9, %s34_s10  ;;  %p40_p2 = scmp.lt.s32.totalorder %s34_s10, %s34_s10 }
   0x8   :  { %p41_p3 = por %p40_p2, %p39_p1 }
   0x9   :  { %v10_v1 = vld [vmem:[#allocation3] sm:$0x1]  }
   0xa   :  { %v7_v2 = vld [vmem:[#allocation3] sm:$0x1]   ;;  %11 = vrot.lane.b32.xlu0 %v10_v1, %s58_s0  ;;  %p42_p4 = pnand %p41_p3, %p35_p0 }
   0xb   :  { %9 = vst.msk [vmem:[#allocation2] sm:$0x1] %vm8_vm0, %v7_v2  }
  0x7c   :  { %v12_v3 = vpop.permute.xlu0 %11  }
  0x7d   :  { %15 = vst.msk [vmem:[#allocation2 + $0x1] sm:$0x1] %vm8_vm0, %v12_v3  }
  0x84   :  { %v19_v4 = vld [vmem:[#allocation2] sm:$0x3] }
  0x85   :  { %21 = vst [vmem:[#allocation0] sm:$0x3] %v19_v4 }
  0x86   :  { %45 = shalt.err (!%p42_p4)
}
  0x87   :  { %s46_s13 = scalar_lea.hbm %s86_s1, 32 }
  0x88   :  { %p47_p5 = scmp.ne.s32.totalorder %s86_s1, %s46_s13  ;;  %p50_p6 = scmp.lt.u32.totalorder %s46_s13, %s86_s1 }
  0x8a   :  { %p52_p7 = pnand %p50_p6, %p47_p5 }
  0x8c   :  { %55 = shalt.err (!%p52_p7)
}
  0x8d   :  { %29 = dma.vmem_to_hbm [thread:$0]  %s27_s9, 32, %s86_s1, [#allocation1]  }
  0x8e   :  { %56 = dma.done.wait [#allocation1], 32  }
  0x8f   :  { %57 = vsyncadd [#allocation1], 4294967264 }
  0x90   :  { %31 = vsyncpa [#allocation1], 1 }

// kernel: mvcvtn2_forward.1
= control target key start
LH: loop header
LB: loop body
LE: loop exit
PB: predicated region body
PF: predicated region fallthrough
CT: control target
= control target key end

     0   :  { %s15199_s0 = inlined_call_operand.vmem [shape: f32[2,3], index: 0, kind: input, shape index: {}]   ;;  %s15200_s1 = inlined_call_operand.vmem [shape: f32[1,3], index: 1, kind: input, shape index: {}]   ;;  %s15201_s2 = inlined_call_operand.vmem [shape: f32[2,16,5], index: 2, kind: input, shape index: {}]   ;;  %s15202_s3 = inlined_call_operand.vmem [shape: f32[16,8], index: 3, kind: input, shape index: {}]   ;;  %s15203_s4 = inlined_call_operand.vmem [shape: f32[16,16], index: 4, kind: input, shape index: {}]   ;;  %s15204_s5 = inlined_call_operand.vmem [shape: f32[16,16], index: 5, kind: input, shape index: {}]   ;;  %s15205_s6 = inlined_call_operand.vmem [shape: f32[2,16,48], index: 6, kind: input, shape index: {}]   ;;  %s15206_s7 = inlined_call_operand.vmem [shape: f32[2,1,48], index: 7, kind: input, shape index: {}]   ;;  %s15207_s8 = inlined_call_operand.vmem [shape: f32[2,1,48], index: 8, kind: input, shape index: {}]   ;;  %s15208_s9 = inlined_call_operand.vmem [shape: f32[2,1,16], index: 9, kind: input, shape index: {}]   ;;  %s15209_s10 = inlined_call_operand.vmem [shape: f32[2,3,1,16], index: 10, kind: input, shape index: {}]   ;;  %s15210_s11 = inlined_call_operand.vmem [shape: f32[2,1,16], index: 11, kind: input, shape index: {}]   ;;  %s15211_s12 = inlined_call_operand.vmem [shape: f32[2,48,16], index: 12, kind: input, shape index: {}]   ;;  %s15212_s13 = inlined_call_operand.vmem [shape: f32[2,16,32], index: 13, kind: input, shape index: {}]   ;;  %s15213_s14 = inlined_call_operand.vmem [shape: f32[2,1,32], index: 14, kind: input, shape index: {}]   ;;  %s15214_s15 = inlined_call_operand.vmem [shape: f32[2,8,32], index: 15, kind: input, shape index: {}]   ;;  %s15215_s16 = inlined_call_operand.vmem [shape: f32[2,1,32], index: 16, kind: input, shape index: {}]   ;;  %s15216_s17 = inlined_call_operand.vmem [shape: f32[2,1,32], index: 17, kind: input, shape index: {}]   ;;  %s15217_s18 = inlined_call_operand.vmem [shape: f32[3,1,32], index: 18, kind: input, shape index: {}]   ;;  %s15218_s19 = inlined_call_operand.vmem [shape: f32[3,1,1], index: 19, kind: input, shape index: {}]   ;;  %s15219_s20 = inlined_call_operand.vmem [shape: f32[4,16,1], index: 20, kind: output, shape index: {}]  }
   0x1   :  { %15237 = sst [smem:[#allocation14_spill]] %s15199_s0 }
   0x2   :  { %15238 = sst [smem:[#allocation15_spill]] %s15200_s1 }
   0x3   :  { %15239 = sst [smem:[#allocation16_spill]] %s15201_s2 }
   0x4   :  { %15240 = sst [smem:[#allocation17_spill]] %s15202_s3 }
   0x5   :  { %15241 = sst [smem:[#allocation18_spill]] %s15203_s4 }
   0x6   :  { %25 = vsyncpa [#allocation3], 0  ;;  %s15242_s23 = sld [smem:[#allocation14_spill]] }
   0xc   :  { %s33_s24 = sshll.u32 %s15242_s23, 4  ;;  %s34_s24 = int_to_ptr.vmem [resolvable:$true] %s33_s24 }
   0xd   :  { %26 = vsyncpa [#allocation5], 0  ;;  %s15243_s3 = sld [smem:[#allocation15_spill]]  ;;  %s12943_s27 = scalar_lea.vmem %s34_s24, 32 }
   0xe   :  { %p12944_p0 = scmp.ne.s32.totalorder %s34_s24, %s12943_s27  ;;  %p12948_p1 = scmp.lt.s32.totalorder %s34_s24, %s34_s24 }
   0xf   :  { %p12949_p2 = scmp.lt.s32.totalorder %s12943_s27, %s12943_s27 }
  0x11   :  { %p12950_p3 = por %p12949_p2, %p12948_p1 }
  0x13   :  { %s43_s26 = sshll.u32 %s15243_s3, 4  ;;  %p12951_p4 = pnand %p12950_p3, %p12944_p0  ;;  %s44_s26 = int_to_ptr.vmem [resolvable:$true] %s43_s26 }
  0x15   :  { %12954 = shalt.err (!%p12951_p4)
}
  0x16   :  { %s12971_s28 = smov [#allocation2]   ;;  %s12955_s4 = scalar_lea.vmem %s44_s26, 16 }
  0x17   :  { %36 = dma.vmem_to_smem %s34_s24, 32, %s12971_s28, [#allocation3]  }
  0x18   :  { %p12956_p5 = scmp.ne.s32.totalorder %s44_s26, %s12955_s4  ;;  %p12960_p6 = scmp.lt.s32.totalorder %s44_s26, %s44_s26 }
  0x19   :  { %p12961_p7 = scmp.lt.s32.totalorder %s12955_s4, %s12955_s4 }
  0x1b   :  { %p12962_p8 = por %p12961_p7, %p12960_p6 }
  0x1d   :  { %p12963_p9 = pnand %p12962_p8, %p12956_p5 }
  0x1f   :  { %12966 = shalt.err (!%p12963_p9)
}
  0x20   :  { %s12972_s29 = smov [#allocation4]  }
  0x21   :  { %46 = dma.vmem_to_smem %s44_s26, 16, %s12972_s29, [#allocation5]  }
  0x22   :  { %12967 = dma.done.wait [#allocation3], 32  }
  0x23   :  { %12968 = vsyncadd [#allocation3], 4294967264 }
  0x24   :  { %12969 = dma.done.wait [#allocation5], 16  }
  0x25   :  { %12970 = vsyncadd [#allocation5], 4294967280 }
  0x26   :  { %89 = sfence }
  0x27   :  { %s15244_s21 = sld [smem:[#allocation16_spill]]  ;;  %s15245_s2 = sld [smem:[#allocation18_spill]]  ;;  %vm205_vm0 = vcmask 130048   ;;  %v105_v4 = vld [vmem:[%s15205_s6] sm:$0xff]  ;;  %v106_v5 = vld [vmem:[%s15205_s6 + $0x8] sm:$0xff]  ;;  %v12974_v10 = vmov 0  }
  0x28   :  { %s100_s25 = sld [smem:[#allocation2]]  ;;  %s10520_s4 = sld [smem:[#allocation2 + $0x1]]  ;;  %v13122_v6 = vpack.c.bf16 %v106_v5, %v105_v4  ;;  %v10541_v7 = vld [vmem:[%s15208_s9] ss:$0 sm:$0xff]  ;;  %12460 = vset.pattern.permute.xlu1 %v12974_v10  ;;  %12459 = vset.pattern.permute.xlu0 %v12974_v10  ;;  %vm123_vm1 = vcmask 64512   ;;  %vm12979_vm2 = vmmov 0   ;;  %vm13311_vm3 = vmpackc.low %vm205_vm0, %vm205_vm0 }
  0x29   :  { %s10521_s29 = sld [smem:[#allocation2 + $0x2]]  ;;  %s12973_s1 = smov 32   ;;  %v122_v8 = vld [vmem:[%s15214_s15] sm:$0xff]  ;;  %vm959_vm4 = vcmask 261120   ;;  %vm962_vm5 = vcmask 392192   ;;  %vm10502_vm8 = vcmask 7168  }
  0x2a   :  { %740 = vrot.lane.b32.xlu0 %v10541_v7, %s12973_s1  ;;  %11220 = vmatprep.subr.mxu0 %v122_v8  ;;  %s15246_s28 = sld [smem:[#allocation17_spill]]  ;;  %v13196_v32 = vld [vmem:[%s15206_s7] ss:$0 sm:$0xff]  ;;  %s12976_s24 = smov 112  }
  0x2b   :  { %11221 = vmatpush3.msra.mxu0 %v122_v8  ;;  %v13205_v35 = vld [vmem:[%s15207_s8] ss:$0 sm:$0xff]  ;;  %s10810_s30 = sld [smem:[#allocation4 + $0x1]]  ;;  %s10811_s23 = sld [smem:[#allocation4 + $0x2]] }
  0x2d   :  { %v13100_v0 = vld [vmem:[%s15244_s21] sm:$0xff]  ;;  %v13105_v1 = vld [vmem:[%s15244_s21 + $0x8] sm:$0xff] }
  0x2e   :  { %v13110_v2 = vld [vmem:[%s15245_s2] sm:$0xff]  ;;  %v11968_v3 = vpack.c.bf16 %v13105_v1, %v13100_v0  ;;  %v13134_v9 = vld [vmem:[%s15245_s2 + $0x8] sm:$0xff]  ;;  %v13139_v11 = vstv %s100_s25  ;;  %369 = vperm.xlu1 %12460, %v13105_v1   ;;  %v13148_v14 = vstv %s10520_s4  ;;  %364 = vperm.xlu0 %12459, %v13100_v0   ;;  %s12975_s4 = smov 96   ;;  %s12977_s25 = smov 16  }
  0x2f   :  { %11229 = vmatprep.mubr.msk.f32.mxu1 %vm205_vm0, %v13110_v2  ;;  %v636_v13 = vmul.f32 0.0, %v13139_v11  ;;  %v638_v16 = vmul.f32 0.0, %v13148_v14  ;;  %v13156_v17 = vstv %s10521_s29 }
  0x30   :  { %11969 = vmatprep.subr.bf16.mxu1 %v11968_v3  ;;  %v90_v12 = vld [vmem:[%s15246_s28] sm:$0xff]  ;;  %v91_v15 = vld [vmem:[%s15246_s28 + $0x8] sm:$0xff]  ;;  %v641_v18 = vmul.f32 0.0, %v13156_v17 }
  0x31   :  { %11971 = vmatpush3.bf16.msra.mxu1 %v11968_v3  ;;  %11222 = vmatprep.mubr.msk.f32.mxu0 %vm123_vm1, %v90_v12  ;;  %v639_v19 = vadd.f32 %v638_v16, %v636_v13 }
  0x32   :  { %11977 = vmatprep.subr.bf16.mxu1 %v13122_v6  ;;  %11223 = vmatmul.mubr.msk.f32.vlgmr.msra.gmra.mrb[0].mxu0 %vm123_vm1, %v91_v15 }
  0x33   :  { %11236 = vmatprep.mubr.msk.f32.mxu0 %vm205_vm0, %v13110_v2  ;;  %v13163_v20 = vadd.f32 %v641_v18, %v639_v19  ;;  %v117_v19 = vld [vmem:[%s15212_s13] sm:$0xff] }
  0x34   :  { %11230 = vmatmul.mubr.msk.f32.vlgmr.msra.gmra.mrb[0].mxu1 %vm205_vm0, %v13134_v9 }
  0x35   :  { %11979 = vmatpush3.bf16.msra.mxu1 %v13122_v6  ;;  %11243 = vmatprep.mubr.msk.f32.mxu1 %vm205_vm0, %v13163_v20 }
  0x38   :  { %11244 = vmatmul.mubr.msk.f32.vlgmr.msra.gmra.mrb[2].mxu1 %vm205_vm0, %v13163_v20 }
  0x39   :  { %11257 = vmatprep.mubr.msk.f32.mxu1 %vm205_vm0, %v13110_v2 }
  0x9c   :  { %v13183_v27 = vpop.permute.xlu0 %740 }
  0xad   :  { %v13191_v31 = vpop.permute.xlu0 %364  ;;  %v13200_v34 = vpop.permute.xlu1 %369 }
  0xae   :  { %v378_v33 = vmul.f32 %v13196_v32, %v13191_v31  ;;  %v379_v36 = vmul.f32 %v13196_v32, %v13200_v34 }
  0xb0   :  { %v386_v37 = vadd.f32 %v13205_v35, %v378_v33  ;;  %v387_v38 = vadd.f32 %v13205_v35, %v379_v36  ;;  %v111_v33 = vld [vmem:[%s15211_s12] sm:$0xff]  ;;  %v112_v36 = vld [vmem:[%s15211_s12 + $0x8] sm:$0xff] }
 0x105   :  { %v13177_v24 = vpop.f32.mrb[0].mxu0 }
 0x106   :  { %v13179_v25 = vpop.f32.mrb[1].mxu0 }
 0x107   :  { %v13171_v21 = vpop.f32.mrb[0].mxu1 }
 0x108   :  { %v13173_v22 = vpop.f32.mrb[1].mxu1 }
 0x109   :  { %v11972_v23 = vpack.c.bf16 %v13171_v21, %v13173_v22 }
 0x10b   :  { %11973 = vmatprep.subr.bf16.mxu0 %v11972_v23  ;;  %v11245_v26 = vpop.f32.mrb[2].mxu1 }
 0x10c   :  { %11975 = vmatpush3.bf16.msra.mxu0 %v11972_v23  ;;  %v712_v28 = vpop.f32.mrb[3].mxu1  ;;  %v744_v30 = vadd.f32 %v11245_v26, %v13183_v27  ;;  %v722_v40 = vadd.f32 %v11245_v26, %v387_v38 }
 0x10d   :  { %v743_v29 = vadd.f32 %v13183_v27, %v712_v28  ;;  %v721_v39 = vadd.f32 %v712_v28, %v386_v37 }
 0x10e   :  { %v10540_v42 = vmul.f32 -1.442695, %v722_v40  ;;  %v114_v40 = vld [vmem:[%s15211_s12 + $0x18] sm:$0xff] }
 0x10f   :  { %11237 = vmatmul.mubr.msk.f32.vlgmr.msra.gmra.mrb[2].mxu0 %vm205_vm0, %v13134_v9  ;;  %747 = vrot.lane.b32.xlu1 %v743_v29, %s12975_s4  ;;  %v10539_v41 = vmul.f32 -1.442695, %v721_v39  ;;  %v13267_v39 = vpack.c.bf16 %v112_v36, %v111_v33 }
 0x110   :  { %11250 = vmatprep.mubr.msk.f32.mxu0 %vm205_vm0, %v13110_v2 }
 0x111   :  { %12529 = vpow2.f32 %v10539_v41 }
 0x112   :  { %12531 = vpow2.f32 %v10540_v42  ;;  %v115_v42 = vld [vmem:[%s15211_s12 + $0x20] sm:$0xff] }
 0x113   :  { %749 = vrot.lane.b32.xlu1 %v744_v30, %s12975_s4  ;;  %v15231_v30 = vmov 0.0|0.0  }
 0x11b   :  { %v12530_v43 = vpop.eup %12529 }
 0x11c   :  { %v729_v44 = vadd.f32 1.0, %v12530_v43  ;;  %v12532_v45 = vpop.eup %12531  ;;  %v116_v43 = vld [vmem:[%s15211_s12 + $0x28] sm:$0xff] }
 0x11d   :  { %v730_v46 = vadd.f32 1.0, %v12532_v45  ;;  %v13292_v45 = vld [vmem:[%s15213_s14] ss:$0 sm:$0xff] }
 0x11e   :  { %12533 = vrcp.f32 %v729_v44  ;;  %v13284_v44 = vpack.c.bf16 %v116_v43, %v115_v42 }
 0x11f   :  { %12535 = vrcp.f32 %v730_v46  ;;  %v1222_v46 = vlaneseq }
 0x128   :  { %v12534_v47 = vpop.eup %12533 }
 0x129   :  { %v12536_v50 = vpop.eup %12535  ;;  %v767_v59 = vsub.f32 1.0, %v12534_v47  ;;  %v779_v61 = vmul.f32 %v12534_v47, %v13163_v20 }
 0x12a   :  { %v768_v4 = vsub.f32 1.0, %v12536_v50  ;;  %v780_v8 = vmul.f32 %v12536_v50, %v13163_v20  ;;  %v118_v20 = vld [vmem:[%s15212_s13 + $0x8] sm:$0xff] }
 0x12b   :  { %v13245_v29 = vpack.c.bf16 %v118_v20, %v117_v19 }
 0x181   :  { %v748_v48 = vpop.permute.xlu1 %747 }
 0x182   :  { %v753_v49 = vmul.f32 %v12534_v47, %v748_v48  ;;  %v456_v47 = vmul.f32 %v13292_v45, %v13200_v34 }
 0x184   :  { %757 = vrot.lane.b32.xlu0 %v753_v49, %s12973_s1  ;;  %v455_v49 = vmul.f32 %v13292_v45, %v13191_v31 }
 0x185   :  { %v750_v51 = vpop.permute.xlu1 %749 }
 0x186   :  { %v754_v52 = vmul.f32 %v12536_v50, %v750_v51  ;;  %v1223_v51 = vshrl.u32 %v1222_v46, 7 }
 0x188   :  { %759 = vrot.lane.b32.xlu1 %v754_v52, %s12973_s1  ;;  %v458_v52 = vadd.f32 %v13177_v24, %v456_v47 }
 0x1e2   :  { %v13216_v63 = vpop.f32.mrb[2].mxu0 }
 0x1e3   :  { %v13220_v5 = vpop.f32.mrb[3].mxu0 }
 0x1f6   :  { %v758_v53 = vpop.permute.xlu0 %757 }
 0x1f7   :  { %v763_v54 = vadd.f32 %v758_v53, %v386_v37  ;;  %v113_v37 = vld [vmem:[%s15211_s12 + $0x10] sm:$0xff] }
 0x1f8   :  { %v13272_v41 = vpack.c.bf16 %v114_v40, %v113_v37 }
 0x1f9   :  { %12537 = vtanh.f32 %v763_v54  ;;  %v457_v54 = vadd.f32 %v455_v49, %v13179_v25 }
 0x1fa   :  { %v760_v55 = vpop.permute.xlu1 %759 }
 0x1fb   :  { %v764_v56 = vadd.f32 %v760_v55, %v387_v38  ;;  %v15229_v38 = vmov 0.0  }
 0x1fd   :  { %12539 = vtanh.f32 %v764_v56 }
 0x203   :  { %v12538_v57 = vpop.eup %12537 }
 0x204   :  { %771 = vrot.lane.b32.xlu0 %v12538_v57, %s12976_s24  ;;  %v13304_v57 = vld [vmem:[%s15215_s16] ss:$0 sm:$0xff] }
 0x207   :  { %v12540_v58 = vpop.eup %12539 }
 0x208   :  { %773 = vrot.lane.b32.xlu1 %v12540_v58, %s12976_s24 }
 0x276   :  { %v772_v60 = vpop.permute.xlu0 %771 }
 0x277   :  { %v777_v62 = vmul.f32 %v772_v60, %v767_v59  ;;  %v13307_v59 = vsub.s32 0, %v1223_v51 }
 0x279   :  { %v13218_v3 = vadd.f32 %v779_v61, %v777_v62  ;;  %v13318_v61 = vld [vmem:[%s15216_s17] sm:$0x1] }
 0x27a   :  { %v774_v7 = vpop.permute.xlu1 %773 }
 0x27b   :  { %v778_v12 = vmul.f32 %v774_v7, %v768_v4  ;;  %785 = vrot.lane.b32.xlu0 %v13218_v3, %s12976_s24 }
 0x27d   :  { %v13225_v13 = vadd.f32 %v780_v8, %v778_v12  ;;  %v1273_v8 = vrot.slane %v13318_v61, %v13307_v59 }
 0x27f   :  { %787 = vrot.lane.b32.xlu1 %v13225_v13, %s12976_s24 }
 0x2ed   :  { %v13229_v15 = vpop.permute.xlu0 %785 }
 0x2f1   :  { %v13231_v16 = vpop.permute.xlu1 %787 }
 0x2f2   :  { %v11980_v18 = vpack.c.bf16 %v13231_v16, %v13229_v15 }
 0x2f4   :  { %11981 = vmatprep.subr.bf16.mxu0 %v11980_v18 }
 0x2f5   :  { %11983 = vmatpush3.bf16.msra.mxu0 %v11980_v18 }
 0x2f6   :  { %11989 = vmatprep.subr.bf16.mxu0 %v13267_v39 }
 0x2f8   :  { %11251 = vmatmul.mubr.msk.f32.vlgmr.msra.gmra.mrb[4].mxu0 %vm205_vm0, %v13134_v9 }
 0x2f9   :  { %11991 = vmatpush3.bf16.msra.mxu0 %v13267_v39 }
 0x2fa   :  { %11993 = vmatprep.subr.bf16.mxu0 %v13272_v41 }
 0x2fd   :  { %11995 = vmatpush3.bf16.msra.mxu0 %v13272_v41 }
 0x2fe   :  { %11997 = vmatprep.subr.bf16.mxu0 %v13284_v44 }
 0x301   :  { %11999 = vmatpush3.bf16.msra.mxu0 %v13284_v44 }
 0x302   :  { %12008 = vmatprep.subr.bf16.mxu0 %v15231_v30 }
 0x3cb   :  { %v11252_v23 = vpop.f32.mrb[4].mxu0 }
 0x3cc   :  { %945 = vrot.lane.b32.xlu1 %v11252_v23, %s12977_s25  ;;  %v857_v26 = vpop.f32.mrb[5].mxu0 }
 0x3cd   :  { %v11984_v28 = vpack.c.bf16 %v11252_v23, %v857_v26  ;;  %943 = vrot.lane.b32.xlu0 %v857_v26, %s12977_s25 }
 0x3cf   :  { %11985 = vmatprep.subr.bf16.mxu1 %v11984_v28 }
 0x3d0   :  { %11987 = vmatpush3.bf16.msra.mxu1 %v11984_v28 }
 0x3d1   :  { %12001 = vmatprep.subr.bf16.mxu1 %v13245_v29 }
 0x3d3   :  { %11258 = vmatmul.mubr.msk.f32.vlgmr.msra.gmra.mrb[4].mxu1 %vm205_vm0, %v13134_v9 }
 0x3d4   :  { %12003 = vmatpush3.bf16.msra.mxu1 %v13245_v29  ;;  %11279 = vmatprep.mubr.msk.f32.mxu1 %vm205_vm0, %v13229_v15 }
 0x3d5   :  { %12004 = vmatprep.subr.bf16.mxu1 %v15231_v30 }
 0x3d7   :  { %11280 = vmatmul.mubr.msk.f32.vlgmr.msra.gmra.mrb[6].mxu1 %vm205_vm0, %v13231_v16 }
 0x3d8   :  { %11286 = vmatprep.mubr.msk.f32.mxu1 %vm12979_vm2, %v15229_v38 }
 0x43e   :  { %v946_v23 = vpop.permute.xlu1 %945 }
 0x43f   :  { %v944_v18 = vpop.permute.xlu0 %943  ;;  %v958_v28 = vsel %vm205_vm0, %v13231_v16, %v946_v23  ;;  %v94_v23 = vld [vmem:[%s15204_s5] sm:$0xff] }
 0x440   :  { %v957_v19 = vsel %vm205_vm0, %v13229_v15, %v944_v18  ;;  %vm96_vm6 = vcmp.gt.f32.partialorder %v94_v23, 0.0 }
 0x4a6   :  { %v11259_v48 = vpop.f32.mrb[4].mxu1 }
 0x4a7   :  { %v932_v50 = vpop.f32.mrb[5].mxu1 }
 0x4a8   :  { %951 = vrot.lane.b32.xlu0 %v932_v50, %s12973_s1 }
 0x4aa   :  { %v11281_v53 = vpop.f32.mrb[6].mxu1 }
 0x4ab   :  { %v1128_v55 = vadd.f32 %v11281_v53, %v458_v52  ;;  %v1118_v56 = vpop.f32.mrb[7].mxu1 }
 0x4ac   :  { %v1127_v58 = vadd.f32 %v1118_v56, %v457_v54  ;;  %953 = vrot.lane.b32.xlu0 %v11259_v48, %s12973_s1 }
 0x4ad   :  { %v1136_v12 = vmul.f32 %v13304_v57, %v1128_v55 }
 0x4ae   :  { %v13320_v62 = vpack.c.bf16 %v1128_v55, %v1127_v58  ;;  %v12461_v4 = vpack.i.bf16 %v1128_v55, %v1127_v58  ;;  %v1135_v7 = vmul.f32 %v13304_v57, %v1127_v58 }
 0x4af   :  { %v1140_v50 = vsel %vm205_vm0, %v1136_v12, 0.0 }
 0x4b0   :  { %12462 = vrot.lane.b32.xlu1 %v12461_v4, %s12976_s24  ;;  %12007 = vmatpush3.bf16.xpose.msk.msra.mxu1 %vm13311_vm3, %v13320_v62  ;;  %v1137_v16 = vsel %vm205_vm0, %v1135_v7, 0.0 }
 0x4b1   :  { %1258 = vrot.lane.b32.xlu0 %v1135_v7, %s12976_s24 }
 0x4b4   :  { %1274 = vrot.lane.b32.xlu1 %v1273_v8, %s12976_s24 }
 0x4b7   :  { %11287 = vmatmul.mubr.msk.f32.vlgmr.msra.gmra.mrb[8].mxu1 %vm205_vm0, %v13318_v61 }
 0x4b8   :  { %1260 = vrot.lane.b32.xlu1 %v1136_v12, %s12976_s24 }
 0x51a   :  { %v952_v20 = vpop.permute.xlu0 %951 }
 0x51b   :  { %v960_v26 = vsel %vm959_vm4, %v957_v19, %v952_v20 }
 0x51c   :  { %11272 = vmatprep.mubr.msk.f32.mxu0 %vm962_vm5, %v960_v26  ;;  %v95_v26 = vld [vmem:[%s15204_s5 + $0x8] sm:$0xff] }
 0x51d   :  { %vm97_vm7 = vcmp.gt.f32.partialorder %v95_v26, 0.0 }
 0x51e   :  { %v954_v33 = vpop.permute.xlu0 %953 }
 0x51f   :  { %v961_v36 = vsel %vm959_vm4, %v958_v28, %v954_v33 }
 0x520   :  { %11273 = vmatmul.mubr.msk.f32.vlgmr.msra.gmra.mrb[6].mxu0 %vm962_vm5, %v961_v36 }
 0x521   :  { %11293 = vmatprep.mubr.msk.f32.mxu0 %vm12979_vm2, %v15229_v38 }
 0x522   :  { %v12463_v37 = vpop.permute.xlu1 %12462 }
 0x523   :  { %v12465_v40 = vunpack.i.h.bf16 %v12463_v37  ;;  %v12464_v15 = vunpack.i.l.bf16 %v12463_v37  ;;  %v1259_v42 = vpop.permute.xlu0 %1258 }
 0x524   :  { %v1264_v43 = vsel %vm205_vm0, %v1259_v42, 0.0 }
 0x525   :  { %v12009_v46 = vpack.c.bf16 %v12465_v40, %v12464_v15  ;;  %1265 = vadd.xlane.f32.xlu0 %v1264_v43 }
 0x526   :  { %v13346_v47 = vpop.permute.xlu1 %1274 }
 0x527   :  { %12011 = vmatpush3.bf16.xpose.msk.msra.mxu0 %vm13311_vm3, %v12009_v46  ;;  %12013 = vmatprep.subr.bf16.mxu1 %v12009_v46 }
 0x528   :  { %12015 = vmatpush3.bf16.msra.mxu1 %v12009_v46  ;;  %12021 = vmatprep.subr.bf16.mxu0 %v13122_v6 }
 0x529   :  { %1138 = vadd.xlane.f32.xlu0 %v1137_v16  ;;  %12017 = vmatprep.subr.bf16.mxu1 %v13320_v62 }
 0x52a   :  { %v1261_v48 = vpop.permute.xlu1 %1260 }
 0x52b   :  { %v1267_v49 = vsel %vm205_vm0, %v1261_v48, 0.0  ;;  %v12981_v48 = vmov -1e+09  }
 0x52c   :  { %1268 = vadd.xlane.f32.xlu1 %v1267_v49  ;;  %v13370_v49 = vsel %vm96_vm6, 0.0, %v12981_v48 }
 0x52d   :  { %1141 = vadd.xlane.f32.xlu0 %v1140_v50  ;;  %v13372_v50 = vsel %vm97_vm7, 0.0, %v12981_v48 }
 0x52e   :  { %11294 = vmatmul.mubr.msk.f32.vlgmr.msra.gmra.mrb[8].mxu0 %vm205_vm0, %v13346_v47 }
 0x52f   :  { %12023 = vmatpush3.bf16.msra.mxu0 %v13122_v6 }
 0x58a   :  { %v1218_v51 = vpop.f32.mrb[8].mxu1 }
 0x58b   :  { %v11288_v52 = vpop.f32.mrb[9].mxu1  ;;  %v1225_v58 = vrot.slane %v1218_v51, %v13307_v59 }
 0x5b2   :  { %v1266_v53 = vpop.xlane.xlu0 %1265 }
 0x5b6   :  { %v1139_v56 = vpop.xlane.xlu0 %1138 }
 0x5b7   :  { %v1226_v7 = vadd.f32 %v1225_v58, %v1139_v56 }
 0x5b9   :  { %v1269_v20 = vpop.xlane.xlu1 %1268  ;;  %v1228_v28 = vmul.f32 0.2, %v1226_v7 }
 0x5ba   :  { %v1142_v4 = vpop.xlane.xlu0 %1141 }
 0x5bb   :  { %v1227_v8 = vadd.f32 %v1225_v58, %v1142_v4  ;;  %v1230_v42 = vmax.f32 %v1226_v7, %v1228_v28 }
 0x5bd   :  { %v1229_v33 = vmul.f32 0.2, %v1227_v8  ;;  %v1232_v58 = vadd.f32 %v1230_v42, %v13370_v49 }
 0x5bf   :  { %v1231_v43 = vmax.f32 %v1227_v8, %v1229_v33  ;;  %v1234_v7 = vsel %vm205_vm0, %v1232_v58, -inf }
 0x5c1   :  { %v1233_v4 = vadd.f32 %v1231_v43, %v13372_v50 }
 0x5c3   :  { %v1237_v8 = vsel %vm205_vm0, %v1233_v4, -inf }
 0x5f3   :  { %v13358_v54 = vpop.f32.mrb[6].mxu0 }
 0x5f4   :  { %v13360_v55 = vpop.f32.mrb[7].mxu0 }
 0x601   :  { %v1352_v12 = vpop.f32.mrb[8].mxu0 }
 0x602   :  { %v1359_v18 = vrot.slane %v1352_v12, %v13307_v59  ;;  %v11295_v19 = vpop.f32.mrb[9].mxu0 }
 0x604   :  { %v1360_v36 = vadd.f32 %v1359_v18, %v1266_v53  ;;  %v1361_v37 = vadd.f32 %v1359_v18, %v1269_v20 }
 0x606   :  { %v1362_v40 = vmul.f32 0.2, %v1360_v36  ;;  %v1363_v15 = vmul.f32 0.2, %v1361_v37 }
 0x608   :  { %v1364_v46 = vmax.f32 %v1360_v36, %v1362_v40  ;;  %v1365_v16 = vmax.f32 %v1361_v37, %v1363_v15 }
 0x60a   :  { %v1366_v51 = vadd.f32 %v1364_v46, %v13370_v49  ;;  %v1367_v52 = vadd.f32 %v1365_v16, %v13372_v50 }
 0x60c   :  { %v1368_v53 = vsel %vm205_vm0, %v1366_v51, -inf  ;;  %v1371_v56 = vsel %vm205_vm0, %v1367_v52, -inf }
 0x60d   :  { %1369 = vmax.xlane.f32.xlu1 %v1368_v53  ;;  %1372 = vmax.xlane.f32.xlu0 %v1371_v56 }
 0x611   :  { %1235 = vmax.xlane.f32.xlu1 %v1234_v7  ;;  %1238 = vmax.xlane.f32.xlu0 %v1237_v8 }
 0x69a   :  { %v1370_v12 = vpop.xlane.xlu1 %1369  ;;  %v1373_v18 = vpop.xlane.xlu0 %1372 }
 0x69b   :  { %v1374_v19 = vsub.f32 %v1366_v51, %v1370_v12  ;;  %v1375_v20 = vsub.f32 %v1367_v52, %v1373_v18  ;;  %v13398_v12 = vld [vmem:[%s15209_s10 + $0x1] ss:$0 sm:$0xff] }
 0x69d   :  { %v1376_v23 = vmul.f32 1.442695, %v1374_v19  ;;  %v1378_v26 = vmul.f32 1.442695, %v1375_v20  ;;  %v13405_v19 = vld [vmem:[%s15210_s11] ss:$0 sm:$0xff] }
 0x69e   :  { %v1236_v28 = vpop.xlane.xlu1 %1235  ;;  %v1239_v33 = vpop.xlane.xlu0 %1238 }
 0x69f   :  { %12541 = vpow2.f32 %v1376_v23  ;;  %v1240_v36 = vsub.f32 %v1232_v58, %v1236_v28  ;;  %v1241_v37 = vsub.f32 %v1233_v4, %v1239_v33  ;;  %v13393_v4 = vld [vmem:[%s15209_s10] ss:$0 sm:$0xff] }
 0x6a0   :  { %12543 = vpow2.f32 %v1378_v26  ;;  %v395_v18 = vmul.f32 %v13393_v4, %v13191_v31  ;;  %v13411_v26 = vld [vmem:[%s15209_s10 + $0x2] ss:$0 sm:$0xff]  ;;  %v396_v33 = vmul.f32 %v13393_v4, %v13200_v34 }
 0x6a1   :  { %v1242_v40 = vmul.f32 1.442695, %v1240_v36  ;;  %v1244_v15 = vmul.f32 1.442695, %v1241_v37 }
 0x6a2   :  { %v403_v31 = vadd.f32 %v13405_v19, %v395_v18 }
 0x6a3   :  { %12545 = vpow2.f32 %v1242_v40 }
 0x6a4   :  { %12547 = vpow2.f32 %v1244_v15 }
 0x6a9   :  { %v12542_v42 = vpop.eup %12541 }
 0x6aa   :  { %v12544_v43 = vpop.eup %12543  ;;  %v1380_v46 = vsel %vm205_vm0, %v12542_v42, 0.0 }
 0x6ab   :  { %1381 = vadd.xlane.f32.xlu1 %v1380_v46  ;;  %v1383_v16 = vsel %vm205_vm0, %v12544_v43, 0.0 }
 0x6ac   :  { %1384 = vadd.xlane.f32.xlu0 %v1383_v16 }
 0x6ad   :  { %v12546_v48 = vpop.eup %12545 }
 0x6ae   :  { %v12548_v51 = vpop.eup %12547  ;;  %v1246_v52 = vsel %vm205_vm0, %v12546_v48, 0.0 }
 0x6af   :  { %1247 = vadd.xlane.f32.xlu1 %v1246_v52  ;;  %v1249_v53 = vsel %vm205_vm0, %v12548_v51, 0.0 }
 0x6b0   :  { %1250 = vadd.xlane.f32.xlu0 %v1249_v53 }
 0x6c0   :  { %409 = vperm.xlu1 %12460, %v13173_v22  }
 0x6c4   :  { %431 = vperm.xlu1 %12460, %v13220_v5  }
 0x6c6   :  { %414 = vperm.xlu0 %12459, %v13171_v21  }
 0x6c8   :  { %436 = vperm.xlu1 %12460, %v13216_v63  }
 0x738   :  { %v1382_v56 = vpop.xlane.xlu1 %1381 }
 0x739   :  { %12549 = vrcp.f32 %v1382_v56  ;;  %v1385_v58 = vpop.xlane.xlu0 %1384 }
 0x73a   :  { %12551 = vrcp.f32 %v1385_v58 }
 0x73c   :  { %v1248_v7 = vpop.xlane.xlu1 %1247 }
 0x73d   :  { %12553 = vrcp.f32 %v1248_v7  ;;  %v1251_v8 = vpop.xlane.xlu0 %1250  ;;  %v404_v7 = vadd.f32 %v13405_v19, %v396_v33 }
 0x73e   :  { %12555 = vrcp.f32 %v1251_v8 }
 0x740   :  { %v410_v20 = vpop.permute.xlu1 %409 }
 0x741   :  { %v423_v23 = vmul.f32 %v13398_v12, %v410_v20 }
 0x743   :  { %v12550_v28 = vpop.eup %12549  ;;  %v425_v15 = vadd.f32 %v423_v23, %v403_v31 }
 0x744   :  { %v12552_v36 = vpop.eup %12551  ;;  %v432_v37 = vpop.permute.xlu1 %431  ;;  %v1388_v40 = vmul.f32 %v12550_v28, %v12542_v42 }
 0x745   :  { %v445_v46 = vmul.f32 %v13411_v26, %v432_v37  ;;  %v415_v16 = vpop.permute.xlu0 %414  ;;  %v1389_v52 = vmul.f32 %v12552_v36, %v12544_v43 }
 0x746   :  { %v424_v53 = vmul.f32 %v13398_v12, %v415_v16  ;;  %11300 = vmatprep.mubr.msk.f32.mxu1 %vm205_vm0, %v1388_v40  ;;  %v15233_v40 = vmov 1  }
 0x747   :  { %v12554_v56 = vpop.eup %12553  ;;  %v447_v58 = vadd.f32 %v445_v46, %v425_v15  ;;  %11301 = vmatmul.mubr.msk.f32.vlgmr.msra.gmra.mrb[10].mxu1 %vm205_vm0, %v1389_v52  ;;  %12467 = vset.pattern.permute.xlu1 %v15233_v40 }
 0x748   :  { %12019 = vmatpush3.bf16.msra.mxu1 %v13320_v62  ;;  %v437_v34 = vpop.permute.xlu1 %436  ;;  %v1254_v8 = vmul.f32 %v12554_v56, %v12546_v48  ;;  %v426_v18 = vadd.f32 %v424_v53, %v404_v7  ;;  %v12556_v43 = vpop.eup %12555  ;;  %12466 = vset.pattern.permute.xlu0 %v15233_v40  ;;  %v1558_v7 = vmul.f32 %v13218_v3, %v13139_v11 }
 0x749   :  { %v1044_v42 = vadd.f32 %v13360_v55, %v447_v58  ;;  %v446_v20 = vmul.f32 %v13411_v26, %v437_v34  ;;  %v1255_v31 = vmul.f32 %v12556_v43, %v12548_v51  ;;  %v1559_v58 = vmul.f32 %v13225_v13, %v13139_v11 }
 0x74a   :  { %11307 = vmatprep.mubr.msk.f32.mxu1 %vm205_vm0, %v1254_v8 }
 0x74b   :  { %12557 = vtanh.f32 %v1044_v42  ;;  %v448_v23 = vadd.f32 %v446_v20, %v426_v18 }
 0x74d   :  { %v1045_v28 = vadd.f32 %v13358_v54, %v448_v23 }
 0x74f   :  { %12559 = vtanh.f32 %v1045_v28  ;;  %11308 = vmatmul.mubr.msk.f32.vlgmr.msra.gmra.mrb[10].mxu1 %vm205_vm0, %v1255_v31 }
 0x750   :  { %11321 = vmatprep.mubr.msk.f32.mxu1 %vm205_vm0, %v13110_v2 }
 0x755   :  { %v12558_v62 = vpop.eup %12557 }
 0x756   :  { %v1560_v55 = vmul.f32 %v12558_v62, %v13148_v14 }
 0x758   :  { %1564 = vrot.lane.b32.xlu0 %v1560_v55, %s12977_s25 }
 0x759   :  { %v12560_v48 = vpop.eup %12559 }
 0x75a   :  { %v1561_v33 = vmul.f32 %v12560_v48, %v13148_v14 }
 0x75c   :  { %1566 = vrot.lane.b32.xlu1 %v1561_v33, %s12977_s25 }
 0x7ca   :  { %v1565_v56 = vpop.permute.xlu0 %1564 }
 0x7cb   :  { %v1570_v8 = vadd.f32 %v1565_v56, %v1558_v7 }
 0x7ce   :  { %v1567_v53 = vpop.permute.xlu1 %1566 }
 0x7cf   :  { %v1571_v34 = vadd.f32 %v1567_v53, %v1559_v58 }
 0x822   :  { %v11309_v36 = vpop.f32.mrb[10].mxu1 }
 0x823   :  { %v1555_v37 = vmul.f32 0.5, %v11309_v36  ;;  %v1545_v54 = vpop.f32.mrb[11].mxu1 }
 0x824   :  { %v1554_v51 = vmul.f32 0.5, %v1545_v54 }
 0x825   :  { %12561 = vtanh.f32 %v1555_v37 }
 0x826   :  { %12563 = vtanh.f32 %v1554_v51 }
 0x82f   :  { %v12562_v15 = vpop.eup %12561 }
 0x830   :  { %v12564_v46 = vpop.eup %12563  ;;  %v1573_v16 = vmul.f32 %v12562_v15, %v13156_v17 }
 0x831   :  { %v1572_v52 = vmul.f32 %v12564_v46, %v13156_v17 }
 0x832   :  { %1578 = vrot.lane.b32.xlu1 %v1573_v16, %s12977_s25 }
 0x833   :  { %1576 = vrot.lane.b32.xlu0 %v1572_v52, %s12977_s25 }
 0x8a4   :  { %v1579_v42 = vpop.permute.xlu1 %1578 }
 0x8a5   :  { %v1583_v18 = vadd.f32 %v1579_v42, %v1571_v34  ;;  %v1577_v20 = vpop.permute.xlu0 %1576 }
 0x8a6   :  { %v1582_v43 = vadd.f32 %v1577_v20, %v1570_v8 }
 0x8a7   :  { %1588 = vrot.lane.b32.xlu1 %v1583_v18, %s12976_s24 }
 0x8a8   :  { %1586 = vrot.lane.b32.xlu0 %v1582_v43, %s12976_s24 }
 0x8ab   :  { %464 = vperm.xlu1 %12467, %v13105_v1  }
 0x8ac   :  { %460 = vperm.xlu0 %12466, %v13100_v0  }
 0x919   :  { %v1589_v28 = vpop.permute.xlu1 %1588 }
 0x91a   :  { %v1587_v23 = vpop.permute.xlu0 %1586 }
 0x91b   :  { %11314 = vmatprep.mubr.msk.f32.mxu0 %vm205_vm0, %v1587_v23 }
 0x91c   :  { %11315 = vmatmul.mubr.msk.f32.vlgmr.msra.gmra.mrb[10].mxu0 %vm205_vm0, %v1589_v28 }
 0x91d   :  { %11328 = vmatprep.mubr.msk.f32.mxu0 %vm205_vm0, %v13110_v2 }
 0x92a   :  { %v13455_v0 = vpop.permute.xlu1 %464 }
 0x92b   :  { %v13457_v1 = vpop.permute.xlu0 %460  ;;  %v468_v55 = vmul.f32 %v13196_v32, %v13455_v0 }
 0x92c   :  { %v467_v2 = vmul.f32 %v13196_v32, %v13457_v1 }
 0x92d   :  { %v470_v48 = vadd.f32 %v13205_v35, %v468_v55 }
 0x92e   :  { %v469_v33 = vadd.f32 %v13205_v35, %v467_v2 }
 0x9ef   :  { %v11316_v3 = vpop.f32.mrb[10].mxu0 }
 0x9f0   :  { %v1684_v13 = vadd.f32 %v11316_v3, %v13183_v27  ;;  %v1660_v31 = vpop.f32.mrb[11].mxu0  ;;  %v1670_v36 = vadd.f32 %v11316_v3, %v470_v48 }
 0x9f1   :  { %v1683_v62 = vadd.f32 %v1660_v31, %v13183_v27  ;;  %v1669_v37 = vadd.f32 %v1660_v31, %v469_v33 }
 0x9f2   :  { %1689 = vrot.lane.b32.xlu0 %v1684_v13, %s12975_s4  ;;  %v10564_v54 = vmul.f32 -1.442695, %v1670_v36 }
 0x9f3   :  { %1687 = vrot.lane.b32.xlu1 %v1683_v62, %s12975_s4  ;;  %v10563_v51 = vmul.f32 -1.442695, %v1669_v37 }
 0x9f4   :  { %12565 = vpow2.f32 %v10564_v54 }
 0x9f5   :  { %12567 = vpow2.f32 %v10563_v51 }
 0x9fe   :  { %v12566_v15 = vpop.eup %12565 }
 0x9ff   :  { %v12568_v46 = vpop.eup %12567  ;;  %v1678_v16 = vadd.f32 1.0, %v12566_v15 }
 0xa00   :  { %v1677_v52 = vadd.f32 1.0, %v12568_v46 }
 0xa01   :  { %12569 = vrcp.f32 %v1678_v16  ;;  %v500_v16 = vmul.f32 %v13292_v45, %v13455_v0 }
 0xa02   :  { %12571 = vrcp.f32 %v1677_v52 }
 0xa0b   :  { %v12570_v53 = vpop.eup %12569 }
 0xa0c   :  { %v12572_v58 = vpop.eup %12571  ;;  %v1708_v3 = vsub.f32 1.0, %v12570_v53  ;;  %v1720_v62 = vmul.f32 %v12570_v53, %v1583_v18 }
 0xa0d   :  { %v1707_v31 = vsub.f32 1.0, %v12572_v58  ;;  %v1719_v36 = vmul.f32 %v12572_v58, %v1582_v43 }
 0xa64   :  { %v1690_v56 = vpop.permute.xlu0 %1689 }
 0xa65   :  { %v1694_v32 = vmul.f32 %v12570_v53, %v1690_v56  ;;  %v1688_v7 = vpop.permute.xlu1 %1687  ;;  %v499_v53 = vmul.f32 %v13292_v45, %v13457_v1 }
 0xa66   :  { %v1693_v34 = vmul.f32 %v12572_v58, %v1688_v7 }
 0xa67   :  { %1699 = vrot.lane.b32.xlu0 %v1694_v32, %s12973_s1  ;;  %v501_v32 = vadd.f32 %v499_v53, %v13179_v25 }
 0xa68   :  { %1697 = vrot.lane.b32.xlu1 %v1693_v34, %s12973_s1 }
 0xad9   :  { %v1700_v35 = vpop.permute.xlu0 %1699 }
 0xada   :  { %v1704_v8 = vadd.f32 %v1700_v35, %v470_v48  ;;  %v1698_v42 = vpop.permute.xlu1 %1697 }
 0xadb   :  { %v1703_v20 = vadd.f32 %v1698_v42, %v469_v33 }
 0xadc   :  { %12573 = vtanh.f32 %v1704_v8 }
 0xadd   :  { %12575 = vtanh.f32 %v1703_v20 }
 0xae6   :  { %v12574_v23 = vpop.eup %12573 }
 0xae7   :  { %v12576_v28 = vpop.eup %12575  ;;  %1713 = vrot.lane.b32.xlu0 %v12574_v23, %s12976_s24 }
 0xae8   :  { %1711 = vrot.lane.b32.xlu1 %v12576_v28, %s12976_s24 }
 0xb59   :  { %v1714_v13 = vpop.permute.xlu0 %1713 }
 0xb5a   :  { %v1718_v55 = vmul.f32 %v1714_v13, %v1708_v3  ;;  %v1712_v2 = vpop.permute.xlu1 %1711 }
 0xb5b   :  { %v1717_v37 = vmul.f32 %v1712_v2, %v1707_v31 }
 0xb5c   :  { %v13469_v54 = vadd.f32 %v1720_v62, %v1718_v55 }
 0xb5d   :  { %v13471_v48 = vadd.f32 %v1719_v36, %v1717_v37 }
 0xb5e   :  { %1727 = vrot.lane.b32.xlu0 %v13469_v54, %s12976_s24 }
 0xb5f   :  { %1725 = vrot.lane.b32.xlu1 %v13471_v48, %s12976_s24 }
 0xbd0   :  { %v1728_v33 = vpop.permute.xlu0 %1727 }
 0xbd1   :  { %v1726_v51 = vpop.permute.xlu1 %1725 }
 0xbd2   :  { %v12024_v15 = vpack.c.bf16 %v1728_v33, %v1726_v51 }
 0xbd4   :  { %12025 = vmatprep.subr.bf16.mxu1 %v12024_v15 }
 0xbd5   :  { %12027 = vmatpush3.bf16.msra.mxu1 %v12024_v15 }
 0xbd6   :  { %12033 = vmatprep.subr.bf16.mxu1 %v13267_v39 }
 0xbd8   :  { %11322 = vmatmul.mubr.msk.f32.vlgmr.msra.gmra.mrb[12].mxu1 %vm205_vm0, %v13134_v9 }
 0xbd9   :  { %12035 = vmatpush3.bf16.msra.mxu1 %v13267_v39 }
 0xbda   :  { %12037 = vmatprep.subr.bf16.mxu1 %v13272_v41 }
 0xbdd   :  { %12039 = vmatpush3.bf16.msra.mxu1 %v13272_v41 }
 0xbde   :  { %12041 = vmatprep.subr.bf16.mxu1 %v13284_v44 }
 0xbe1   :  { %12043 = vmatpush3.bf16.msra.mxu1 %v13284_v44 }
 0xbe2   :  { %12052 = vmatprep.subr.bf16.mxu1 %v15231_v30 }
 0xcab   :  { %v11323_v18 = vpop.f32.mrb[12].mxu1 }
 0xcac   :  { %1885 = vrot.lane.b32.xlu0 %v11323_v18, %s12977_s25  ;;  %v1797_v43 = vpop.f32.mrb[13].mxu1 }
 0xcad   :  { %v12028_v46 = vpack.c.bf16 %v11323_v18, %v1797_v43  ;;  %1883 = vrot.lane.b32.xlu1 %v1797_v43, %s12977_s25 }
 0xcaf   :  { %12029 = vmatprep.subr.bf16.mxu0 %v12028_v46 }
 0xcb0   :  { %12031 = vmatpush3.bf16.msra.mxu0 %v12028_v46 }
 0xcb1   :  { %12045 = vmatprep.subr.bf16.mxu0 %v13245_v29 }
 0xcb3   :  { %11329 = vmatmul.mubr.msk.f32.vlgmr.msra.gmra.mrb[12].mxu0 %vm205_vm0, %v13134_v9  ;;  %v502_v9 = vadd.f32 %v13177_v24, %v500_v16 }
 0xcb4   :  { %12047 = vmatpush3.bf16.msra.mxu0 %v13245_v29  ;;  %11350 = vmatprep.mubr.msk.f32.mxu0 %vm205_vm0, %v1726_v51 }
 0xcb5   :  { %12048 = vmatprep.subr.bf16.mxu0 %v15231_v30 }
 0xcb7   :  { %11351 = vmatmul.mubr.msk.f32.vlgmr.msra.gmra.mrb[14].mxu0 %vm205_vm0, %v1728_v33 }
 0xcb8   :  { %11357 = vmatprep.mubr.msk.f32.mxu0 %vm12979_vm2, %v15229_v38 }
 0xd1e   :  { %v1886_v13 = vpop.permute.xlu0 %1885 }
 0xd1f   :  { %v1884_v23 = vpop.permute.xlu1 %1883  ;;  %v1898_v62 = vsel %vm205_vm0, %v1728_v33, %v1886_v13 }
 0xd20   :  { %v1897_v28 = vsel %vm205_vm0, %v1726_v51, %v1884_v23 }
 0xd86   :  { %v11330_v52 = vpop.f32.mrb[12].mxu0 }
 0xd87   :  { %v1872_v56 = vpop.f32.mrb[13].mxu0 }
 0xd88   :  { %1891 = vrot.lane.b32.xlu1 %v1872_v56, %s12973_s1 }
 0xd8a   :  { %v11352_v58 = vpop.f32.mrb[14].mxu0 }
 0xd8b   :  { %v2066_v7 = vadd.f32 %v11352_v58, %v502_v9  ;;  %v2056_v34 = vpop.f32.mrb[15].mxu0 }
 0xd8c   :  { %v2065_v35 = vadd.f32 %v2056_v34, %v501_v32  ;;  %1893 = vrot.lane.b32.xlu1 %v11330_v52, %s12973_s1 }
 0xd8d   :  { %v2068_v8 = vmul.f32 %v13304_v57, %v2066_v7 }
 0xd8e   :  { %v13506_v42 = vpack.c.bf16 %v2066_v7, %v2065_v35  ;;  %v12468_v20 = vpack.i.bf16 %v2066_v7, %v2065_v35  ;;  %v2067_v45 = vmul.f32 %v13304_v57, %v2065_v35 }
 0xd8f   :  { %v2072_v46 = vsel %vm205_vm0, %v2068_v8, 0.0 }
 0xd90   :  { %2189 = vrot.lane.b32.xlu1 %v2068_v8, %s12976_s24  ;;  %12469 = vrot.lane.b32.xlu0 %v12468_v20, %s12976_s24  ;;  %v2069_v43 = vsel %vm205_vm0, %v2067_v45, 0.0 }
 0xd91   :  { %12051 = vmatpush3.bf16.xpose.msk.msra.mxu0 %vm13311_vm3, %v13506_v42 }
 0xd94   :  { %2187 = vrot.lane.b32.xlu0 %v2067_v45, %s12976_s24 }
 0xd98   :  { %11358 = vmatmul.mubr.msk.f32.vlgmr.msra.gmra.mrb[16].mxu0 %vm205_vm0, %v13318_v61 }
 0xdfa   :  { %v1892_v3 = vpop.permute.xlu1 %1891 }
 0xdfb   :  { %v1899_v31 = vsel %vm959_vm4, %v1897_v28, %v1892_v3 }
 0xdfc   :  { %11343 = vmatprep.mubr.msk.f32.mxu1 %vm962_vm5, %v1899_v31 }
 0xdfe   :  { %v1894_v55 = vpop.permute.xlu1 %1893 }
 0xdff   :  { %v1900_v2 = vsel %vm959_vm4, %v1898_v62, %v1894_v55 }
 0xe00   :  { %11344 = vmatmul.mubr.msk.f32.vlgmr.msra.gmra.mrb[14].mxu1 %vm962_vm5, %v1900_v2 }
 0xe01   :  { %11364 = vmatprep.mubr.msk.f32.mxu1 %vm12979_vm2, %v15229_v38 }
 0xe02   :  { %v2190_v57 = vpop.permute.xlu1 %2189  ;;  %v12470_v61 = vpop.permute.xlu0 %12469 }
 0xe03   :  { %v12472_v36 = vunpack.i.h.bf16 %v12470_v61  ;;  %v12471_v37 = vunpack.i.l.bf16 %v12470_v61  ;;  %v2196_v51 = vsel %vm205_vm0, %v2190_v57, 0.0 }
 0xe04   :  { %2197 = vadd.xlane.f32.xlu1 %v2196_v51 }
 0xe05   :  { %v12053_v15 = vpack.c.bf16 %v12472_v36, %v12471_v37 }
 0xe06   :  { %v2188_v18 = vpop.permute.xlu0 %2187 }
 0xe07   :  { %12055 = vmatpush3.bf16.xpose.msk.msra.mxu1 %vm13311_vm3, %v12053_v15  ;;  %12057 = vmatprep.subr.bf16.mxu0 %v12053_v15  ;;  %v2193_v33 = vsel %vm205_vm0, %v2188_v18, 0.0 }
 0xe08   :  { %12059 = vmatpush3.bf16.msra.mxu0 %v12053_v15  ;;  %2194 = vadd.xlane.f32.xlu0 %v2193_v33 }
 0xe09   :  { %12061 = vmatprep.subr.bf16.mxu0 %v13506_v42  ;;  %12065 = vmatprep.subr.bf16.mxu1 %v13122_v6 }
 0xe0c   :  { %2070 = vadd.xlane.f32.xlu0 %v2069_v43 }
 0xe0e   :  { %11365 = vmatmul.mubr.msk.f32.vlgmr.msra.gmra.mrb[16].mxu1 %vm205_vm0, %v13346_v47 }
 0xe0f   :  { %12067 = vmatpush3.bf16.msra.mxu1 %v13122_v6 }
 0xe10   :  { %2073 = vadd.xlane.f32.xlu0 %v2072_v46 }
 0xe6b   :  { %v2147_v16 = vpop.f32.mrb[16].mxu0 }
 0xe6c   :  { %v11359_v52 = vpop.f32.mrb[17].mxu0  ;;  %v2154_v32 = vrot.slane %v2147_v16, %v13307_v59 }
 0xe91   :  { %v2198_v23 = vpop.xlane.xlu1 %2197 }
 0xe95   :  { %v2195_v53 = vpop.xlane.xlu0 %2194 }
 0xe99   :  { %v2071_v58 = vpop.xlane.xlu0 %2070 }
 0xe9a   :  { %v2155_v34 = vadd.f32 %v2154_v32, %v2071_v58 }
 0xe9c   :  { %v2157_v28 = vmul.f32 0.2, %v2155_v34 }
 0xe9d   :  { %v2074_v7 = vpop.xlane.xlu0 %2073 }
 0xe9e   :  { %v2156_v35 = vadd.f32 %v2154_v32, %v2074_v7  ;;  %v2159_v2 = vmax.f32 %v2155_v34, %v2157_v28 }
 0xea0   :  { %v2158_v3 = vmul.f32 0.2, %v2156_v35  ;;  %v2161_v33 = vadd.f32 %v2159_v2, %v13370_v49 }
 0xea2   :  { %v2160_v57 = vmax.f32 %v2156_v35, %v2158_v3  ;;  %v2163_v46 = vsel %vm205_vm0, %v2161_v33, -inf }
 0xea4   :  { %v2162_v43 = vadd.f32 %v2160_v57, %v13372_v50 }
 0xea6   :  { %v2166_v16 = vsel %vm205_vm0, %v2162_v43, -inf }
 0xed3   :  { %v13536_v56 = vpop.f32.mrb[14].mxu1 }
 0xed4   :  { %v13538_v9 = vpop.f32.mrb[15].mxu1 }
 0xee1   :  { %v2273_v20 = vpop.f32.mrb[16].mxu1 }
 0xee2   :  { %v2280_v45 = vrot.slane %v2273_v20, %v13307_v59  ;;  %v11366_v8 = vpop.f32.mrb[17].mxu1 }
 0xee4   :  { %v2281_v13 = vadd.f32 %v2280_v45, %v2195_v53  ;;  %v2282_v31 = vadd.f32 %v2280_v45, %v2198_v23 }
 0xee6   :  { %v2283_v62 = vmul.f32 0.2, %v2281_v13  ;;  %v2284_v55 = vmul.f32 0.2, %v2282_v31 }
 0xee8   :  { %v2285_v61 = vmax.f32 %v2281_v13, %v2283_v62  ;;  %v2286_v36 = vmax.f32 %v2282_v31, %v2284_v55 }
 0xeea   :  { %v2287_v37 = vadd.f32 %v2285_v61, %v13370_v49  ;;  %v2288_v51 = vadd.f32 %v2286_v36, %v13372_v50 }
 0xeec   :  { %v2289_v15 = vsel %vm205_vm0, %v2287_v37, -inf  ;;  %v2292_v18 = vsel %vm205_vm0, %v2288_v51, -inf }
 0xeed   :  { %2290 = vmax.xlane.f32.xlu1 %v2289_v15  ;;  %2293 = vmax.xlane.f32.xlu0 %v2292_v18  ;;  %v471_v18 = vmul.f32 %v13393_v4, %v13457_v1 }
 0xef1   :  { %2164 = vmax.xlane.f32.xlu1 %v2163_v46  ;;  %2167 = vmax.xlane.f32.xlu0 %v2166_v16  ;;  %v472_v16 = vmul.f32 %v13393_v4, %v13455_v0 }
 0xf7a   :  { %v2291_v52 = vpop.xlane.xlu1 %2290  ;;  %v2294_v53 = vpop.xlane.xlu0 %2293 }
 0xf7b   :  { %v2295_v58 = vsub.f32 %v2287_v37, %v2291_v52  ;;  %v2296_v32 = vsub.f32 %v2288_v51, %v2294_v53  ;;  %v473_v52 = vadd.f32 %v13405_v19, %v471_v18 }
 0xf7d   :  { %v2297_v7 = vmul.f32 1.442695, %v2295_v58  ;;  %v2299_v34 = vmul.f32 1.442695, %v2296_v32 }
 0xf7e   :  { %v2165_v35 = vpop.xlane.xlu1 %2164  ;;  %v2168_v20 = vpop.xlane.xlu0 %2167 }
 0xf7f   :  { %12577 = vpow2.f32 %v2297_v7  ;;  %v2169_v45 = vsub.f32 %v2161_v33, %v2165_v35  ;;  %v2170_v8 = vsub.f32 %v2162_v43, %v2168_v20 }
 0xf80   :  { %12579 = vpow2.f32 %v2299_v34 }
 0xf81   :  { %v2171_v23 = vmul.f32 1.442695, %v2169_v45  ;;  %v2173_v28 = vmul.f32 1.442695, %v2170_v8 }
 0xf83   :  { %12581 = vpow2.f32 %v2171_v23  ;;  %v474_v23 = vadd.f32 %v13405_v19, %v472_v16  ;;  %v13578_v19 = vld [vmem:[%s15245_s2] sm:$0xff]  ;;  %v2480_v16 = vmul.f32 %v13469_v54, %v13139_v11 }
 0xf84   :  { %12583 = vpow2.f32 %v2173_v28  ;;  %v13607_v54 = vld [vmem:[%s15244_s21] sm:$0xff] }
 0xf89   :  { %v12578_v3 = vpop.eup %12577 }
 0xf8a   :  { %v12580_v13 = vpop.eup %12579  ;;  %v2301_v31 = vsel %vm205_vm0, %v12578_v3, 0.0 }
 0xf8b   :  { %2302 = vadd.xlane.f32.xlu1 %v2301_v31  ;;  %v2304_v62 = vsel %vm205_vm0, %v12580_v13, 0.0 }
 0xf8c   :  { %2305 = vadd.xlane.f32.xlu0 %v2304_v62 }
 0xf8d   :  { %v12582_v55 = vpop.eup %12581 }
 0xf8e   :  { %v12584_v2 = vpop.eup %12583  ;;  %v2175_v57 = vsel %vm205_vm0, %v12582_v55, 0.0 }
 0xf8f   :  { %2176 = vadd.xlane.f32.xlu1 %v2175_v57  ;;  %v2178_v61 = vsel %vm205_vm0, %v12584_v2, 0.0 }
 0xf90   :  { %2179 = vadd.xlane.f32.xlu0 %v2178_v61 }
 0xfa0   :  { %476 = vperm.xlu1 %12467, %v13173_v22  }
 0xfa4   :  { %488 = vperm.xlu1 %12467, %v13220_v5  }
 0xfa6   :  { %480 = vperm.xlu0 %12466, %v13171_v21  }
 0xfa8   :  { %492 = vperm.xlu1 %12467, %v13216_v63  }
0x1018   :  { %v2303_v36 = vpop.xlane.xlu1 %2302 }
0x1019   :  { %12585 = vrcp.f32 %v2303_v36  ;;  %v2306_v37 = vpop.xlane.xlu0 %2305 }
0x101a   :  { %12587 = vrcp.f32 %v2306_v37  ;;  %v15227_v37 = vmov 2  }
0x101b   :  { %12474 = vset.pattern.permute.xlu1 %v15227_v37  ;;  %12473 = vset.pattern.permute.xlu0 %v15227_v37 }
0x101c   :  { %v2177_v51 = vpop.xlane.xlu1 %2176 }
0x101d   :  { %12589 = vrcp.f32 %v2177_v51  ;;  %v2180_v15 = vpop.xlane.xlu0 %2179 }
0x101e   :  { %12591 = vrcp.f32 %v2180_v15 }
0x1020   :  { %v477_v33 = vpop.permute.xlu1 %476 }
0x1021   :  { %v483_v43 = vmul.f32 %v13398_v12, %v477_v33 }
0x1023   :  { %v12586_v46 = vpop.eup %12585  ;;  %v485_v7 = vadd.f32 %v483_v43, %v473_v52  ;;  %v2479_v52 = vmul.f32 %v13471_v48, %v13139_v11 }
0x1024   :  { %v12588_v53 = vpop.eup %12587  ;;  %v489_v58 = vpop.permute.xlu1 %488  ;;  %v2309_v32 = vmul.f32 %v12586_v46, %v12578_v3 }
0x1025   :  { %v495_v34 = vmul.f32 %v13411_v26, %v489_v58  ;;  %v481_v35 = vpop.permute.xlu0 %480  ;;  %v2310_v20 = vmul.f32 %v12588_v53, %v12580_v13 }
0x1026   :  { %v484_v1 = vmul.f32 %v13398_v12, %v481_v35  ;;  %11371 = vmatprep.mubr.msk.f32.mxu0 %vm205_vm0, %v2309_v32 }
0x1027   :  { %v12590_v45 = vpop.eup %12589  ;;  %v497_v8 = vadd.f32 %v495_v34, %v485_v7  ;;  %11372 = vmatmul.mubr.msk.f32.vlgmr.msra.gmra.mrb[18].mxu0 %vm205_vm0, %v2310_v20  ;;  %v13601_v20 = vld [vmem:[%s15244_s21 + $0x8] sm:$0xff] }
0x1028   :  { %12063 = vmatpush3.bf16.msra.mxu0 %v13506_v42  ;;  %v493_v4 = vpop.permute.xlu1 %492  ;;  %v2183_v0 = vmul.f32 %v12590_v45, %v12582_v55  ;;  %v486_v3 = vadd.f32 %v484_v1, %v474_v23  ;;  %v12592_v13 = vpop.eup %12591 }
0x1029   :  { %v1982_v28 = vadd.f32 %v13538_v9, %v497_v8  ;;  %v496_v31 = vmul.f32 %v13411_v26, %v493_v4  ;;  %v2184_v57 = vmul.f32 %v12592_v13, %v12584_v2 }
0x102a   :  { %11378 = vmatprep.mubr.msk.f32.mxu0 %vm205_vm0, %v2183_v0 }
0x102b   :  { %12593 = vtanh.f32 %v1982_v28  ;;  %v498_v12 = vadd.f32 %v496_v31, %v486_v3  ;;  %v13625_v3 = vld [vmem:[%s15206_s7] ss:$0 sm:$0xff] }
0x102d   :  { %v1983_v62 = vadd.f32 %v13536_v56, %v498_v12  ;;  %v13634_v12 = vld [vmem:[%s15207_s8] ss:$0 sm:$0xff] }
0x102f   :  { %12595 = vtanh.f32 %v1983_v62  ;;  %11379 = vmatmul.mubr.msk.f32.vlgmr.msra.gmra.mrb[18].mxu0 %vm205_vm0, %v2184_v57 }
0x1030   :  { %11392 = vmatprep.mubr.msk.f32.mxu0 %vm205_vm0, %v13578_v19 }
0x1035   :  { %v12594_v26 = vpop.eup %12593 }
0x1036   :  { %v2481_v42 = vmul.f32 %v12594_v26, %v13148_v14 }
0x1038   :  { %2485 = vrot.lane.b32.xlu0 %v2481_v42, %s12977_s25 }
0x1039   :  { %v12596_v9 = vpop.eup %12595 }
0x103a   :  { %v2482_v56 = vmul.f32 %v12596_v9, %v13148_v14 }
0x103c   :  { %2487 = vrot.lane.b32.xlu1 %v2482_v56, %s12977_s25 }
0x10aa   :  { %v2486_v46 = vpop.permute.xlu0 %2485 }
0x10ab   :  { %v2491_v58 = vadd.f32 %v2486_v46, %v2479_v52 }
0x10ae   :  { %v2488_v43 = vpop.permute.xlu1 %2487 }
0x10af   :  { %v2492_v53 = vadd.f32 %v2488_v43, %v2480_v16 }
0x1102   :  { %v11380_v55 = vpop.f32.mrb[18].mxu0 }
0x1103   :  { %v2476_v2 = vmul.f32 0.5, %v11380_v55  ;;  %v2466_v61 = vpop.f32.mrb[19].mxu0 }
0x1104   :  { %v2475_v36 = vmul.f32 0.5, %v2466_v61 }
0x1105   :  { %12597 = vtanh.f32 %v2476_v2 }
0x1106   :  { %12599 = vtanh.f32 %v2475_v36 }
0x110f   :  { %v12598_v51 = vpop.eup %12597 }
0x1110   :  { %v12600_v15 = vpop.eup %12599  ;;  %v2494_v18 = vmul.f32 %v12598_v51, %v13156_v17 }
0x1111   :  { %v2493_v33 = vmul.f32 %v12600_v15, %v13156_v17 }
0x1112   :  { %2499 = vrot.lane.b32.xlu1 %v2494_v18, %s12977_s25 }
0x1113   :  { %2497 = vrot.lane.b32.xlu0 %v2493_v33, %s12977_s25 }
0x1184   :  { %v2500_v32 = vpop.permute.xlu1 %2499 }
0x1185   :  { %v2504_v7 = vadd.f32 %v2500_v32, %v2492_v53  ;;  %v2498_v34 = vpop.permute.xlu0 %2497 }
0x1186   :  { %v2503_v35 = vadd.f32 %v2498_v34, %v2491_v58 }
0x1187   :  { %2509 = vrot.lane.b32.xlu1 %v2504_v7, %s12976_s24 }
0x1188   :  { %2507 = vrot.lane.b32.xlu0 %v2503_v35, %s12976_s24 }
0x118b   :  { %508 = vperm.xlu1 %12474, %v13601_v20  }
0x118c   :  { %504 = vperm.xlu0 %12473, %v13607_v54  }
0x11f9   :  { %v2510_v1 = vpop.permute.xlu1 %2509 }
0x11fa   :  { %v2508_v48 = vpop.permute.xlu0 %2507 }
0x11fb   :  { %11385 = vmatprep.mubr.msk.f32.mxu1 %vm205_vm0, %v2508_v48 }
0x11fc   :  { %11386 = vmatmul.mubr.msk.f32.vlgmr.msra.gmra.mrb[18].mxu1 %vm205_vm0, %v2510_v1 }
0x11fd   :  { %11399 = vmatprep.mubr.msk.f32.mxu1 %vm205_vm0, %v13578_v19 }
0x120a   :  { %v13618_v0 = vpop.permute.xlu1 %508 }
0x120b   :  { %v13620_v28 = vpop.permute.xlu0 %504  ;;  %v512_v31 = vmul.f32 %v13625_v3, %v13618_v0 }
0x120c   :  { %v511_v13 = vmul.f32 %v13625_v3, %v13620_v28 }
0x120d   :  { %v514_v62 = vadd.f32 %v13634_v12, %v512_v31 }
0x120e   :  { %v513_v57 = vadd.f32 %v13634_v12, %v511_v13 }
0x12cf   :  { %v11387_v45 = vpop.f32.mrb[18].mxu1 }
0x12d0   :  { %v2605_v8 = vadd.f32 %v11387_v45, %v13183_v27  ;;  %v2581_v23 = vpop.f32.mrb[19].mxu1  ;;  %v2591_v26 = vadd.f32 %v11387_v45, %v514_v62 }
0x12d1   :  { %v2604_v4 = vadd.f32 %v2581_v23, %v13183_v27  ;;  %v2590_v42 = vadd.f32 %v2581_v23, %v513_v57 }
0x12d2   :  { %2610 = vrot.lane.b32.xlu0 %v2605_v8, %s12975_s4  ;;  %v10586_v9 = vmul.f32 -1.442695, %v2591_v26 }
0x12d3   :  { %2608 = vrot.lane.b32.xlu1 %v2604_v4, %s12975_s4  ;;  %v10585_v56 = vmul.f32 -1.442695, %v2590_v42 }
0x12d4   :  { %12601 = vpow2.f32 %v10586_v9 }
0x12d5   :  { %12603 = vpow2.f32 %v10585_v56 }
0x12de   :  { %v12602_v55 = vpop.eup %12601 }
0x12df   :  { %v12604_v2 = vpop.eup %12603  ;;  %v2599_v61 = vadd.f32 1.0, %v12602_v55 }
0x12e0   :  { %v2598_v36 = vadd.f32 1.0, %v12604_v2  ;;  %v13678_v2 = vld [vmem:[%s15213_s14] ss:$0 sm:$0xff] }
0x12e1   :  { %12605 = vrcp.f32 %v2599_v61  ;;  %v544_v61 = vmul.f32 %v13678_v2, %v13618_v0 }
0x12e2   :  { %12607 = vrcp.f32 %v2598_v36 }
0x12eb   :  { %v12606_v51 = vpop.eup %12605 }
0x12ec   :  { %v12608_v18 = vpop.eup %12607  ;;  %v2629_v48 = vsub.f32 1.0, %v12606_v51  ;;  %v2641_v8 = vmul.f32 %v12606_v51, %v2504_v7  ;;  %v13654_v7 = vld [vmem:[%s15245_s2 + $0x8] sm:$0xff] }
0x12ed   :  { %v2628_v45 = vsub.f32 1.0, %v12608_v18  ;;  %v2640_v31 = vmul.f32 %v12608_v18, %v2503_v35 }
0x1344   :  { %v2611_v15 = vpop.permute.xlu0 %2610 }
0x1345   :  { %v2615_v33 = vmul.f32 %v12606_v51, %v2611_v15  ;;  %v2609_v43 = vpop.permute.xlu1 %2608  ;;  %v543_v51 = vmul.f32 %v13678_v2, %v13620_v28 }
0x1346   :  { %v2614_v46 = vmul.f32 %v12608_v18, %v2609_v43  ;;  %v546_v18 = vadd.f32 %v13177_v24, %v544_v61 }
0x1347   :  { %2620 = vrot.lane.b32.xlu0 %v2615_v33, %s12973_s1  ;;  %v545_v43 = vadd.f32 %v543_v51, %v13179_v25 }
0x1348   :  { %2618 = vrot.lane.b32.xlu1 %v2614_v46, %s12973_s1 }
0x13b9   :  { %v2621_v16 = vpop.permute.xlu0 %2620 }
0x13ba   :  { %v2625_v52 = vadd.f32 %v2621_v16, %v514_v62  ;;  %v2619_v53 = vpop.permute.xlu1 %2618 }
0x13bb   :  { %v2624_v58 = vadd.f32 %v2619_v53, %v513_v57  ;;  %v13691_v53 = vld [vmem:[%s15215_s16] ss:$0 sm:$0xff] }
0x13bc   :  { %12609 = vtanh.f32 %v2625_v52 }
0x13bd   :  { %12611 = vtanh.f32 %v2624_v58 }
0x13c6   :  { %v12610_v32 = vpop.eup %12609 }
0x13c7   :  { %v12612_v34 = vpop.eup %12611  ;;  %2634 = vrot.lane.b32.xlu0 %v12610_v32, %s12976_s24 }
0x13c8   :  { %2632 = vrot.lane.b32.xlu1 %v12612_v34, %s12976_s24 }
0x1439   :  { %v2635_v1 = vpop.permute.xlu0 %2634 }
0x143a   :  { %v2639_v23 = vmul.f32 %v2635_v1, %v2629_v48  ;;  %v2633_v4 = vpop.permute.xlu1 %2632  ;;  %v13706_v1 = vld [vmem:[%s15216_s17] sm:$0x1] }
0x143b   :  { %v2638_v13 = vmul.f32 %v2633_v4, %v2628_v45 }
0x143c   :  { %v13642_v26 = vadd.f32 %v2641_v8, %v2639_v23 }
0x143d   :  { %v13644_v62 = vadd.f32 %v2640_v31, %v2638_v13 }
0x143e   :  { %2648 = vrot.lane.b32.xlu0 %v13642_v26, %s12976_s24 }
0x143f   :  { %2646 = vrot.lane.b32.xlu1 %v13644_v62, %s12976_s24 }
0x14b0   :  { %v2649_v57 = vpop.permute.xlu0 %2648 }
0x14b1   :  { %v2647_v42 = vpop.permute.xlu1 %2646 }
0x14b2   :  { %v12068_v9 = vpack.c.bf16 %v2649_v57, %v2647_v42 }
0x14b4   :  { %12069 = vmatprep.subr.bf16.mxu0 %v12068_v9 }
0x14b5   :  { %12071 = vmatpush3.bf16.msra.mxu0 %v12068_v9 }
0x14b6   :  { %12077 = vmatprep.subr.bf16.mxu0 %v13267_v39 }
0x14b8   :  { %11393 = vmatmul.mubr.msk.f32.vlgmr.msra.gmra.mrb[20].mxu0 %vm205_vm0, %v13654_v7 }
0x14b9   :  { %12079 = vmatpush3.bf16.msra.mxu0 %v13267_v39 }
0x14ba   :  { %12081 = vmatprep.subr.bf16.mxu0 %v13272_v41 }
0x14bd   :  { %12083 = vmatpush3.bf16.msra.mxu0 %v13272_v41 }
0x14be   :  { %12085 = vmatprep.subr.bf16.mxu0 %v13284_v44 }
0x14c1   :  { %12087 = vmatpush3.bf16.msra.mxu0 %v13284_v44 }
0x14c2   :  { %12096 = vmatprep.subr.bf16.mxu0 %v15231_v30 }
0x158b   :  { %v11394_v35 = vpop.f32.mrb[20].mxu0 }
0x158c   :  { %2806 = vrot.lane.b32.xlu0 %v11394_v35, %s12977_s25  ;;  %v2718_v56 = vpop.f32.mrb[21].mxu0 }
0x158d   :  { %v12072_v55 = vpack.c.bf16 %v11394_v35, %v2718_v56  ;;  %2804 = vrot.lane.b32.xlu1 %v2718_v56, %s12977_s25 }
0x158f   :  { %12073 = vmatprep.subr.bf16.mxu1 %v12072_v55 }
0x1590   :  { %12075 = vmatpush3.bf16.msra.mxu1 %v12072_v55 }
0x1591   :  { %12089 = vmatprep.subr.bf16.mxu1 %v13245_v29 }
0x1593   :  { %11400 = vmatmul.mubr.msk.f32.vlgmr.msra.gmra.mrb[20].mxu1 %vm205_vm0, %v13654_v7 }
0x1594   :  { %12091 = vmatpush3.bf16.msra.mxu1 %v13245_v29  ;;  %11421 = vmatprep.mubr.msk.f32.mxu1 %vm205_vm0, %v2647_v42 }
0x1595   :  { %12092 = vmatprep.subr.bf16.mxu1 %v15231_v30 }
0x1597   :  { %11422 = vmatmul.mubr.msk.f32.vlgmr.msra.gmra.mrb[22].mxu1 %vm205_vm0, %v2649_v57 }
0x1598   :  { %11428 = vmatprep.mubr.msk.f32.mxu1 %vm12979_vm2, %v15229_v38 }
0x15fe   :  { %v2807_v4 = vpop.permute.xlu0 %2806 }
0x15ff   :  { %v2805_v45 = vpop.permute.xlu1 %2804  ;;  %v2819_v13 = vsel %vm205_vm0, %v2649_v57, %v2807_v4 }
0x1600   :  { %v2818_v8 = vsel %vm205_vm0, %v2647_v42, %v2805_v45 }
0x1666   :  { %v11401_v36 = vpop.f32.mrb[20].mxu1 }
0x1667   :  { %v2793_v15 = vpop.f32.mrb[21].mxu1 }
0x1668   :  { %2812 = vrot.lane.b32.xlu1 %v2793_v15, %s12973_s1 }
0x166a   :  { %v11423_v33 = vpop.f32.mrb[22].mxu1 }
0x166b   :  { %v2987_v46 = vadd.f32 %v11423_v33, %v546_v18  ;;  %v2977_v16 = vpop.f32.mrb[23].mxu1 }
0x166c   :  { %v2986_v52 = vadd.f32 %v2977_v16, %v545_v43  ;;  %2814 = vrot.lane.b32.xlu1 %v11401_v36, %s12973_s1 }
0x166d   :  { %v2989_v58 = vmul.f32 %v13691_v53, %v2987_v46 }
0x166e   :  { %v13694_v32 = vpack.c.bf16 %v2987_v46, %v2986_v52  ;;  %v12475_v34 = vpack.i.bf16 %v2987_v46, %v2986_v52  ;;  %v2988_v48 = vmul.f32 %v13691_v53, %v2986_v52 }
0x166f   :  { %v2993_v33 = vsel %vm205_vm0, %v2989_v58, 0.0 }
0x1670   :  { %3110 = vrot.lane.b32.xlu1 %v2989_v58, %s12976_s24  ;;  %12476 = vrot.lane.b32.xlu0 %v12475_v34, %s12976_s24  ;;  %v2990_v18 = vsel %vm205_vm0, %v2988_v48, 0.0 }
0x1671   :  { %12095 = vmatpush3.bf16.xpose.msk.msra.mxu1 %vm13311_vm3, %v13694_v32 }
0x1674   :  { %3108 = vrot.lane.b32.xlu0 %v2988_v48, %s12976_s24 }
0x1678   :  { %11429 = vmatmul.mubr.msk.f32.vlgmr.msra.gmra.mrb[24].mxu1 %vm205_vm0, %v13706_v1 }
0x16da   :  { %v2813_v23 = vpop.permute.xlu1 %2812 }
0x16db   :  { %v2820_v31 = vsel %vm959_vm4, %v2818_v8, %v2813_v23 }
0x16dc   :  { %11414 = vmatprep.mubr.msk.f32.mxu0 %vm962_vm5, %v2820_v31 }
0x16de   :  { %v2815_v9 = vpop.permute.xlu1 %2814 }
0x16df   :  { %v2821_v35 = vsel %vm959_vm4, %v2819_v13, %v2815_v9 }
0x16e0   :  { %11415 = vmatmul.mubr.msk.f32.vlgmr.msra.gmra.mrb[22].mxu0 %vm962_vm5, %v2821_v35 }
0x16e1   :  { %11435 = vmatprep.mubr.msk.f32.mxu0 %vm12979_vm2, %v15229_v38 }
0x16e2   :  { %v3111_v56 = vpop.permute.xlu1 %3110  ;;  %v12477_v55 = vpop.permute.xlu0 %12476 }
0x16e3   :  { %v12479_v61 = vunpack.i.h.bf16 %v12477_v55  ;;  %v12478_v42 = vunpack.i.l.bf16 %v12477_v55  ;;  %v3117_v36 = vsel %vm205_vm0, %v3111_v56, 0.0 }
0x16e4   :  { %3118 = vadd.xlane.f32.xlu1 %v3117_v36 }
0x16e5   :  { %v12097_v51 = vpack.c.bf16 %v12479_v61, %v12478_v42 }
0x16e6   :  { %v3109_v15 = vpop.permute.xlu0 %3108 }
0x16e7   :  { %12099 = vmatpush3.bf16.xpose.msk.msra.mxu0 %vm13311_vm3, %v12097_v51  ;;  %12101 = vmatprep.subr.bf16.mxu1 %v12097_v51  ;;  %v3114_v57 = vsel %vm205_vm0, %v3109_v15, 0.0 }
0x16e8   :  { %12103 = vmatpush3.bf16.msra.mxu1 %v12097_v51  ;;  %3115 = vadd.xlane.f32.xlu0 %v3114_v57 }
0x16e9   :  { %12105 = vmatprep.subr.bf16.mxu1 %v13694_v32  ;;  %12109 = vmatprep.subr.bf16.mxu0 %v13122_v6 }
0x16ec   :  { %2991 = vadd.xlane.f32.xlu0 %v2990_v18 }
0x16ee   :  { %11436 = vmatmul.mubr.msk.f32.vlgmr.msra.gmra.mrb[24].mxu0 %vm205_vm0, %v13346_v47 }
0x16ef   :  { %12111 = vmatpush3.bf16.msra.mxu0 %v13122_v6 }
0x16f0   :  { %2994 = vadd.xlane.f32.xlu0 %v2993_v33 }
0x174b   :  { %v3068_v43 = vpop.f32.mrb[24].mxu1 }
0x174c   :  { %v11430_v46 = vpop.f32.mrb[25].mxu1  ;;  %v3075_v8 = vrot.slane %v3068_v43, %v13307_v59 }
0x1771   :  { %v3119_v9 = vpop.xlane.xlu1 %3118 }
0x1775   :  { %v3116_v16 = vpop.xlane.xlu0 %3115 }
0x1779   :  { %v2992_v45 = vpop.xlane.xlu0 %2991 }
0x177a   :  { %v3076_v23 = vadd.f32 %v3075_v8, %v2992_v45 }
0x177c   :  { %v3078_v35 = vmul.f32 0.2, %v3076_v23 }
0x177d   :  { %v2995_v48 = vpop.xlane.xlu0 %2994 }
0x177e   :  { %v3077_v4 = vadd.f32 %v3075_v8, %v2995_v48  ;;  %v3080_v51 = vmax.f32 %v3076_v23, %v3078_v35 }
0x1780   :  { %v3079_v56 = vmul.f32 0.2, %v3077_v4  ;;  %v3082_v8 = vadd.f32 %v3080_v51, %v13370_v49 }
0x1782   :  { %v3081_v15 = vmax.f32 %v3077_v4, %v3079_v56 }
0x1784   :  { %v3083_v48 = vadd.f32 %v3081_v15, %v13372_v50 }
0x1786   :  { %v3087_v23 = vsel %vm205_vm0, %v3083_v48, -inf }
0x17b3   :  { %v13729_v52 = vpop.f32.mrb[22].mxu0 }
0x17b4   :  { %v13731_v34 = vpop.f32.mrb[23].mxu0 }
0x17c1   :  { %v3194_v31 = vpop.f32.mrb[24].mxu0 }
0x17c2   :  { %v3201_v13 = vrot.slane %v3194_v31, %v13307_v59  ;;  %v11437_v58 = vpop.f32.mrb[25].mxu0 }
0x17c4   :  { %v3202_v55 = vadd.f32 %v3201_v13, %v3116_v16  ;;  %v3203_v61 = vadd.f32 %v3201_v13, %v3119_v9  ;;  %v3084_v16 = vsel %vm205_vm0, %v3082_v8, -inf }
0x17c6   :  { %v3204_v42 = vmul.f32 0.2, %v3202_v55  ;;  %v3205_v36 = vmul.f32 0.2, %v3203_v61 }
0x17c8   :  { %v3206_v57 = vmax.f32 %v3202_v55, %v3204_v42  ;;  %v3207_v18 = vmax.f32 %v3203_v61, %v3205_v36 }
0x17ca   :  { %v3208_v33 = vadd.f32 %v3206_v57, %v13370_v49  ;;  %v3209_v43 = vadd.f32 %v3207_v18, %v13372_v50 }
0x17cc   :  { %v3210_v46 = vsel %vm205_vm0, %v3208_v33, -inf  ;;  %v3213_v45 = vsel %vm205_vm0, %v3209_v43, -inf }
0x17cd   :  { %3211 = vmax.xlane.f32.xlu1 %v3210_v46  ;;  %3214 = vmax.xlane.f32.xlu0 %v3213_v45 }
0x17d1   :  { %3085 = vmax.xlane.f32.xlu1 %v3084_v16  ;;  %3088 = vmax.xlane.f32.xlu0 %v3087_v23 }
0x185a   :  { %v3212_v4 = vpop.xlane.xlu1 %3211  ;;  %v3215_v31 = vpop.xlane.xlu0 %3214 }
0x185b   :  { %v3216_v13 = vsub.f32 %v3208_v33, %v3212_v4  ;;  %v3217_v58 = vsub.f32 %v3209_v43, %v3215_v31  ;;  %v13754_v31 = vld [vmem:[%s15209_s10] ss:$0 sm:$0xff] }
0x185d   :  { %v3218_v9 = vmul.f32 1.442695, %v3216_v13  ;;  %v3220_v35 = vmul.f32 1.442695, %v3217_v58  ;;  %v515_v13 = vmul.f32 %v13754_v31, %v13620_v28 }
0x185e   :  { %v3086_v56 = vpop.xlane.xlu1 %3085  ;;  %v3089_v55 = vpop.xlane.xlu0 %3088 }
0x185f   :  { %12613 = vpow2.f32 %v3218_v9  ;;  %v3090_v61 = vsub.f32 %v3082_v8, %v3086_v56  ;;  %v3091_v42 = vsub.f32 %v3083_v48, %v3089_v55  ;;  %v13761_v9 = vld [vmem:[%s15209_s10 + $0x1] ss:$0 sm:$0xff]  ;;  %v516_v55 = vmul.f32 %v13754_v31, %v13618_v0 }
0x1860   :  { %12615 = vpow2.f32 %v3220_v35 }
0x1861   :  { %v3092_v36 = vmul.f32 1.442695, %v3090_v61  ;;  %v3094_v51 = vmul.f32 1.442695, %v3091_v42  ;;  %v13769_v61 = vld [vmem:[%s15210_s11] ss:$0 sm:$0xff] }
0x1862   :  { %v517_v28 = vadd.f32 %v13769_v61, %v515_v13 }
0x1863   :  { %12617 = vpow2.f32 %v3092_v36 }
0x1864   :  { %12619 = vpow2.f32 %v3094_v51 }
0x1869   :  { %v12614_v15 = vpop.eup %12613 }
0x186a   :  { %v12616_v57 = vpop.eup %12615  ;;  %v3222_v18 = vsel %vm205_vm0, %v12614_v15, 0.0 }
0x186b   :  { %3223 = vadd.xlane.f32.xlu1 %v3222_v18  ;;  %v3225_v33 = vsel %vm205_vm0, %v12616_v57, 0.0 }
0x186c   :  { %3226 = vadd.xlane.f32.xlu0 %v3225_v33  ;;  %v13775_v33 = vld [vmem:[%s15209_s10 + $0x2] ss:$0 sm:$0xff] }
0x186d   :  { %v12618_v43 = vpop.eup %12617 }
0x186e   :  { %v12620_v46 = vpop.eup %12619  ;;  %v3096_v45 = vsel %vm205_vm0, %v12618_v43, 0.0 }
0x186f   :  { %3097 = vadd.xlane.f32.xlu1 %v3096_v45  ;;  %v3099_v8 = vsel %vm205_vm0, %v12620_v46, 0.0 }
0x1870   :  { %3100 = vadd.xlane.f32.xlu0 %v3099_v8 }
0x1880   :  { %520 = vperm.xlu1 %12474, %v13173_v22  }
0x1884   :  { %532 = vperm.xlu1 %12474, %v13220_v5  }
0x1886   :  { %524 = vperm.xlu0 %12473, %v13171_v21  }
0x1888   :  { %536 = vperm.xlu1 %12474, %v13216_v63  }
0x18f8   :  { %v3224_v48 = vpop.xlane.xlu1 %3223 }
0x18f9   :  { %12621 = vrcp.f32 %v3224_v48  ;;  %v3227_v16 = vpop.xlane.xlu0 %3226 }
0x18fa   :  { %12623 = vrcp.f32 %v3227_v16 }
0x18fc   :  { %v3098_v23 = vpop.xlane.xlu1 %3097 }
0x18fd   :  { %12625 = vrcp.f32 %v3098_v23  ;;  %v3101_v4 = vpop.xlane.xlu0 %3100 }
0x18fe   :  { %12627 = vrcp.f32 %v3101_v4  ;;  %v518_v4 = vadd.f32 %v13769_v61, %v516_v55 }
0x1900   :  { %v521_v58 = vpop.permute.xlu1 %520 }
0x1901   :  { %v527_v35 = vmul.f32 %v13761_v9, %v521_v58 }
0x1903   :  { %v12622_v56 = vpop.eup %12621  ;;  %v529_v18 = vadd.f32 %v527_v35, %v517_v28 }
0x1904   :  { %v12624_v42 = vpop.eup %12623  ;;  %v533_v36 = vpop.permute.xlu1 %532  ;;  %v3230_v51 = vmul.f32 %v12622_v56, %v12614_v15 }
0x1905   :  { %v539_v45 = vmul.f32 %v13775_v33, %v533_v36  ;;  %v525_v8 = vpop.permute.xlu0 %524  ;;  %v3231_v0 = vmul.f32 %v12624_v42, %v12616_v57 }
0x1906   :  { %v528_v48 = vmul.f32 %v13761_v9, %v525_v8  ;;  %11442 = vmatprep.mubr.msk.f32.mxu1 %vm205_vm0, %v3230_v51 }
0x1907   :  { %v12626_v16 = vpop.eup %12625  ;;  %v541_v23 = vadd.f32 %v539_v45, %v529_v18  ;;  %11443 = vmatmul.mubr.msk.f32.vlgmr.msra.gmra.mrb[26].mxu1 %vm205_vm0, %v3231_v0  ;;  %v15225_v45 = vmov 3  }
0x1908   :  { %12107 = vmatpush3.bf16.msra.mxu1 %v13694_v32  ;;  %v537_v15 = vpop.permute.xlu1 %536  ;;  %v3104_v13 = vmul.f32 %v12626_v16, %v12618_v43  ;;  %v530_v35 = vadd.f32 %v528_v48, %v518_v4  ;;  %v12628_v57 = vpop.eup %12627  ;;  %12481 = vset.pattern.permute.xlu1 %v15225_v45 }
0x1909   :  { %v2903_v58 = vadd.f32 %v13731_v34, %v541_v23  ;;  %v540_v56 = vmul.f32 %v13775_v33, %v537_v15  ;;  %v3105_v36 = vmul.f32 %v12628_v57, %v12620_v46  ;;  %12480 = vset.pattern.permute.xlu0 %v15225_v45  ;;  %v3401_v15 = vmul.f32 %v13642_v26, %v13139_v11 }
0x190a   :  { %11449 = vmatprep.mubr.msk.f32.mxu1 %vm205_vm0, %v3104_v13  ;;  %v3400_v13 = vmul.f32 %v13644_v62, %v13139_v11 }
0x190b   :  { %12629 = vtanh.f32 %v2903_v58  ;;  %v542_v28 = vadd.f32 %v540_v56, %v530_v35 }
0x190d   :  { %v2904_v42 = vadd.f32 %v13729_v52, %v542_v28 }
0x190f   :  { %12631 = vtanh.f32 %v2904_v42  ;;  %11450 = vmatmul.mubr.msk.f32.vlgmr.msra.gmra.mrb[26].mxu1 %vm205_vm0, %v3105_v36 }
0x1910   :  { %11463 = vmatprep.mubr.msk.f32.mxu1 %vm205_vm0, %v13578_v19 }
0x1915   :  { %v12630_v32 = vpop.eup %12629 }
0x1916   :  { %v3402_v34 = vmul.f32 %v12630_v32, %v13148_v14 }
0x1918   :  { %3406 = vrot.lane.b32.xlu0 %v3402_v34, %s12977_s25 }
0x1919   :  { %v12632_v43 = vpop.eup %12631 }
0x191a   :  { %v3403_v55 = vmul.f32 %v12632_v43, %v13148_v14 }
0x191c   :  { %3408 = vrot.lane.b32.xlu1 %v3403_v55, %s12977_s25 }
0x198a   :  { %v3407_v4 = vpop.permute.xlu0 %3406 }
0x198b   :  { %v3412_v35 = vadd.f32 %v3407_v4, %v3400_v13 }
0x198e   :  { %v3409_v23 = vpop.permute.xlu1 %3408 }
0x198f   :  { %v3413_v58 = vadd.f32 %v3409_v23, %v3401_v15 }
0x19e2   :  { %v11451_v51 = vpop.f32.mrb[26].mxu1 }
0x19e3   :  { %v3397_v18 = vmul.f32 0.5, %v11451_v51  ;;  %v3387_v52 = vpop.f32.mrb[27].mxu1 }
0x19e4   :  { %v3396_v46 = vmul.f32 0.5, %v3387_v52 }
0x19e5   :  { %12633 = vtanh.f32 %v3397_v18 }
0x19e6   :  { %12635 = vtanh.f32 %v3396_v46 }
0x19ef   :  { %v12634_v8 = vpop.eup %12633 }
0x19f0   :  { %v12636_v0 = vpop.eup %12635  ;;  %v3415_v48 = vmul.f32 %v12634_v8, %v13156_v17 }
0x19f1   :  { %v3414_v16 = vmul.f32 %v12636_v0, %v13156_v17 }
0x19f2   :  { %3420 = vrot.lane.b32.xlu1 %v3415_v48, %s12977_s25 }
0x19f3   :  { %3418 = vrot.lane.b32.xlu0 %v3414_v16, %s12977_s25 }
0x1a64   :  { %v3421_v56 = vpop.permute.xlu1 %3420 }
0x1a65   :  { %v3425_v57 = vadd.f32 %v3421_v56, %v3413_v58  ;;  %v3419_v28 = vpop.permute.xlu0 %3418 }
0x1a66   :  { %v3424_v42 = vadd.f32 %v3419_v28, %v3412_v35 }
0x1a67   :  { %3430 = vrot.lane.b32.xlu1 %v3425_v57, %s12976_s24 }
0x1a68   :  { %3428 = vrot.lane.b32.xlu0 %v3424_v42, %s12976_s24 }
0x1a6b   :  { %552 = vperm.xlu1 %12481, %v13601_v20  }
0x1a6c   :  { %548 = vperm.xlu0 %12480, %v13607_v54  }
0x1ad9   :  { %v3431_v32 = vpop.permute.xlu1 %3430 }
0x1ada   :  { %v3429_v36 = vpop.permute.xlu0 %3428 }
0x1adb   :  { %11456 = vmatprep.mubr.msk.f32.mxu0 %vm205_vm0, %v3429_v36 }
0x1adc   :  { %11457 = vmatmul.mubr.msk.f32.vlgmr.msra.gmra.mrb[26].mxu0 %vm205_vm0, %v3431_v32 }
0x1add   :  { %11470 = vmatprep.mubr.msk.f32.mxu0 %vm205_vm0, %v13578_v19 }
0x1aea   :  { %v13816_v20 = vpop.permute.xlu1 %552 }
0x1aeb   :  { %v13818_v54 = vpop.permute.xlu0 %548  ;;  %v556_v55 = vmul.f32 %v13625_v3, %v13816_v20 }
0x1aec   :  { %v555_v19 = vmul.f32 %v13625_v3, %v13818_v54 }
0x1aed   :  { %v558_v51 = vadd.f32 %v13634_v12, %v556_v55 }
0x1aee   :  { %v557_v18 = vadd.f32 %v13634_v12, %v555_v19 }
0x1baf   :  { %v11458_v26 = vpop.f32.mrb[26].mxu0 }
0x1bb0   :  { %v3526_v62 = vadd.f32 %v11458_v26, %v13183_v27  ;;  %v3502_v34 = vpop.f32.mrb[27].mxu0  ;;  %v3512_v52 = vadd.f32 %v11458_v26, %v558_v51 }
0x1bb1   :  { %v3525_v43 = vadd.f32 %v3502_v34, %v13183_v27  ;;  %v3511_v46 = vadd.f32 %v3502_v34, %v557_v18 }
0x1bb2   :  { %3531 = vrot.lane.b32.xlu0 %v3526_v62, %s12975_s4  ;;  %v10608_v8 = vmul.f32 -1.442695, %v3512_v52 }
0x1bb3   :  { %3529 = vrot.lane.b32.xlu1 %v3525_v43, %s12975_s4  ;;  %v10607_v0 = vmul.f32 -1.442695, %v3511_v46 }
0x1bb4   :  { %12637 = vpow2.f32 %v10608_v8 }
0x1bb5   :  { %12639 = vpow2.f32 %v10607_v0 }
0x1bbe   :  { %v12638_v48 = vpop.eup %12637 }
0x1bbf   :  { %v12640_v16 = vpop.eup %12639  ;;  %v3520_v23 = vadd.f32 1.0, %v12638_v48 }
0x1bc0   :  { %v3519_v4 = vadd.f32 1.0, %v12640_v16 }
0x1bc1   :  { %12641 = vrcp.f32 %v3520_v23 }
0x1bc2   :  { %12643 = vrcp.f32 %v3519_v4 }
0x1bcb   :  { %v12642_v15 = vpop.eup %12641 }
0x1bcc   :  { %v12644_v58 = vpop.eup %12643  ;;  %v3550_v34 = vsub.f32 1.0, %v12642_v15  ;;  %v3562_v19 = vmul.f32 %v12642_v15, %v3425_v57 }
0x1bcd   :  { %v3549_v55 = vsub.f32 1.0, %v12644_v58  ;;  %v3561_v8 = vmul.f32 %v12644_v58, %v3424_v42 }
0x1c24   :  { %v3532_v13 = vpop.permute.xlu0 %3531 }
0x1c25   :  { %v3536_v3 = vmul.f32 %v12642_v15, %v3532_v13  ;;  %v3530_v35 = vpop.permute.xlu1 %3529  ;;  %v588_v15 = vmul.f32 %v13678_v2, %v13816_v20 }
0x1c26   :  { %v3535_v56 = vmul.f32 %v12644_v58, %v3530_v35  ;;  %v587_v58 = vmul.f32 %v13678_v2, %v13818_v54 }
0x1c27   :  { %3541 = vrot.lane.b32.xlu0 %v3536_v3, %s12973_s1 }
0x1c28   :  { %3539 = vrot.lane.b32.xlu1 %v3535_v56, %s12973_s1  ;;  %v589_v56 = vadd.f32 %v587_v58, %v13179_v25 }
0x1c99   :  { %v3542_v12 = vpop.permute.xlu0 %3541 }
0x1c9a   :  { %v3546_v28 = vadd.f32 %v3542_v12, %v558_v51  ;;  %v3540_v36 = vpop.permute.xlu1 %3539 }
0x1c9b   :  { %v3545_v32 = vadd.f32 %v3540_v36, %v557_v18 }
0x1c9c   :  { %12645 = vtanh.f32 %v3546_v28 }
0x1c9d   :  { %12647 = vtanh.f32 %v3545_v32 }
0x1ca6   :  { %v12646_v26 = vpop.eup %12645 }
0x1ca7   :  { %v12648_v62 = vpop.eup %12647  ;;  %3555 = vrot.lane.b32.xlu0 %v12646_v26, %s12976_s24 }
0x1ca8   :  { %3553 = vrot.lane.b32.xlu1 %v12648_v62, %s12976_s24 }
0x1d19   :  { %v3556_v43 = vpop.permute.xlu0 %3555 }
0x1d1a   :  { %v3560_v52 = vmul.f32 %v3556_v43, %v3550_v34  ;;  %v3554_v46 = vpop.permute.xlu1 %3553 }
0x1d1b   :  { %v3559_v0 = vmul.f32 %v3554_v46, %v3549_v55 }
0x1d1c   :  { %v13830_v48 = vadd.f32 %v3562_v19, %v3560_v52 }
0x1d1d   :  { %v13832_v51 = vadd.f32 %v3561_v8, %v3559_v0 }
0x1d1e   :  { %3569 = vrot.lane.b32.xlu0 %v13830_v48, %s12976_s24 }
0x1d1f   :  { %3567 = vrot.lane.b32.xlu1 %v13832_v51, %s12976_s24 }
0x1d90   :  { %v3570_v18 = vpop.permute.xlu0 %3569 }
0x1d91   :  { %v3568_v16 = vpop.permute.xlu1 %3567 }
0x1d92   :  { %v12112_v23 = vpack.c.bf16 %v3570_v18, %v3568_v16 }
0x1d94   :  { %12113 = vmatprep.subr.bf16.mxu1 %v12112_v23 }
0x1d95   :  { %12115 = vmatpush3.bf16.msra.mxu1 %v12112_v23 }
0x1d96   :  { %12121 = vmatprep.subr.bf16.mxu1 %v13267_v39 }
0x1d98   :  { %11464 = vmatmul.mubr.msk.f32.vlgmr.msra.gmra.mrb[28].mxu1 %vm205_vm0, %v13654_v7 }
0x1d99   :  { %12123 = vmatpush3.bf16.msra.mxu1 %v13267_v39 }
0x1d9a   :  { %12125 = vmatprep.subr.bf16.mxu1 %v13272_v41 }
0x1d9d   :  { %12127 = vmatpush3.bf16.msra.mxu1 %v13272_v41 }
0x1d9e   :  { %12129 = vmatprep.subr.bf16.mxu1 %v13284_v44 }
0x1da1   :  { %12131 = vmatpush3.bf16.msra.mxu1 %v13284_v44 }
0x1da2   :  { %12140 = vmatprep.subr.bf16.mxu1 %v15231_v30 }
0x1e6b   :  { %v11465_v57 = vpop.f32.mrb[28].mxu1 }
0x1e6c   :  { %3727 = vrot.lane.b32.xlu0 %v11465_v57, %s12977_s25  ;;  %v3639_v42 = vpop.f32.mrb[29].mxu1 }
0x1e6d   :  { %v12116_v4 = vpack.c.bf16 %v11465_v57, %v3639_v42  ;;  %3725 = vrot.lane.b32.xlu1 %v3639_v42, %s12977_s25 }
0x1e6f   :  { %12117 = vmatprep.subr.bf16.mxu0 %v12116_v4 }
0x1e70   :  { %12119 = vmatpush3.bf16.msra.mxu0 %v12116_v4 }
0x1e71   :  { %12133 = vmatprep.subr.bf16.mxu0 %v13245_v29 }
0x1e73   :  { %11471 = vmatmul.mubr.msk.f32.vlgmr.msra.gmra.mrb[28].mxu0 %vm205_vm0, %v13654_v7  ;;  %v590_v7 = vadd.f32 %v13177_v24, %v588_v15 }
0x1e74   :  { %12135 = vmatpush3.bf16.msra.mxu0 %v13245_v29  ;;  %11492 = vmatprep.mubr.msk.f32.mxu0 %vm205_vm0, %v3568_v16 }
0x1e75   :  { %12136 = vmatprep.subr.bf16.mxu0 %v15231_v30 }
0x1e77   :  { %11493 = vmatmul.mubr.msk.f32.vlgmr.msra.gmra.mrb[30].mxu0 %vm205_vm0, %v3570_v18 }
0x1e78   :  { %11499 = vmatprep.mubr.msk.f32.mxu0 %vm12979_vm2, %v15229_v38 }
0x1ede   :  { %v3728_v19 = vpop.permute.xlu0 %3727 }
0x1edf   :  { %v3726_v34 = vpop.permute.xlu1 %3725  ;;  %v3740_v46 = vsel %vm205_vm0, %v3570_v18, %v3728_v19 }
0x1ee0   :  { %v3739_v43 = vsel %vm205_vm0, %v3568_v16, %v3726_v34 }
0x1f46   :  { %v11472_v13 = vpop.f32.mrb[28].mxu0 }
0x1f47   :  { %v3714_v3 = vpop.f32.mrb[29].mxu0 }
0x1f48   :  { %3733 = vrot.lane.b32.xlu1 %v3714_v3, %s12973_s1 }
0x1f4a   :  { %v11494_v35 = vpop.f32.mrb[30].mxu0 }
0x1f4b   :  { %v3908_v12 = vadd.f32 %v11494_v35, %v590_v7  ;;  %v3898_v28 = vpop.f32.mrb[31].mxu0 }
0x1f4c   :  { %v3907_v36 = vadd.f32 %v3898_v28, %v589_v56  ;;  %3735 = vrot.lane.b32.xlu1 %v11472_v13, %s12973_s1 }
0x1f4d   :  { %v3910_v32 = vmul.f32 %v13691_v53, %v3908_v12 }
0x1f4e   :  { %v12482_v26 = vpack.i.bf16 %v3908_v12, %v3907_v36  ;;  %v13867_v62 = vpack.c.bf16 %v3908_v12, %v3907_v36  ;;  %v3909_v2 = vmul.f32 %v13691_v53, %v3907_v36 }
0x1f4f   :  { %v3914_v13 = vsel %vm205_vm0, %v3910_v32, 0.0 }
0x1f50   :  { %4031 = vrot.lane.b32.xlu1 %v3910_v32, %s12976_s24  ;;  %12483 = vrot.lane.b32.xlu0 %v12482_v26, %s12976_s24  ;;  %v3911_v15 = vsel %vm205_vm0, %v3909_v2, 0.0 }
0x1f51   :  { %12139 = vmatpush3.bf16.xpose.msk.msra.mxu0 %vm13311_vm3, %v13867_v62 }
0x1f54   :  { %4029 = vrot.lane.b32.xlu0 %v3909_v2, %s12976_s24 }
0x1f58   :  { %11500 = vmatmul.mubr.msk.f32.vlgmr.msra.gmra.mrb[32].mxu0 %vm205_vm0, %v13706_v1 }
0x1fba   :  { %v3734_v55 = vpop.permute.xlu1 %3733 }
0x1fbb   :  { %v3741_v52 = vsel %vm959_vm4, %v3739_v43, %v3734_v55 }
0x1fbc   :  { %11485 = vmatprep.mubr.msk.f32.mxu1 %vm962_vm5, %v3741_v52 }
0x1fbe   :  { %v3736_v8 = vpop.permute.xlu1 %3735 }
0x1fbf   :  { %v3742_v0 = vsel %vm959_vm4, %v3740_v46, %v3736_v8 }
0x1fc0   :  { %11486 = vmatmul.mubr.msk.f32.vlgmr.msra.gmra.mrb[30].mxu1 %vm962_vm5, %v3742_v0 }
0x1fc1   :  { %11506 = vmatprep.mubr.msk.f32.mxu1 %vm12979_vm2, %v15229_v38 }
0x1fc2   :  { %v4032_v53 = vpop.permute.xlu1 %4031  ;;  %v12484_v1 = vpop.permute.xlu0 %12483 }
0x1fc3   :  { %v12486_v23 = vunpack.i.h.bf16 %v12484_v1  ;;  %v12485_v16 = vunpack.i.l.bf16 %v12484_v1  ;;  %v4038_v57 = vsel %vm205_vm0, %v4032_v53, 0.0 }
0x1fc4   :  { %4039 = vadd.xlane.f32.xlu1 %v4038_v57 }
0x1fc5   :  { %v12141_v42 = vpack.c.bf16 %v12486_v23, %v12485_v16 }
0x1fc6   :  { %v4030_v4 = vpop.permute.xlu0 %4029 }
0x1fc7   :  { %12143 = vmatpush3.bf16.xpose.msk.msra.mxu1 %vm13311_vm3, %v12141_v42  ;;  %12145 = vmatprep.subr.bf16.mxu0 %v12141_v42  ;;  %v4035_v18 = vsel %vm205_vm0, %v4030_v4, 0.0 }
0x1fc8   :  { %12147 = vmatpush3.bf16.msra.mxu0 %v12141_v42  ;;  %4036 = vadd.xlane.f32.xlu0 %v4035_v18 }
0x1fc9   :  { %12149 = vmatprep.subr.bf16.mxu0 %v13867_v62  ;;  %12153 = vmatprep.subr.bf16.mxu1 %v13122_v6 }
0x1fcc   :  { %3912 = vadd.xlane.f32.xlu0 %v3911_v15 }
0x1fce   :  { %11507 = vmatmul.mubr.msk.f32.vlgmr.msra.gmra.mrb[32].mxu1 %vm205_vm0, %v13346_v47 }
0x1fcf   :  { %12155 = vmatpush3.bf16.msra.mxu1 %v13122_v6 }
0x1fd0   :  { %3915 = vadd.xlane.f32.xlu0 %v3914_v13 }
0x202b   :  { %v3989_v58 = vpop.f32.mrb[32].mxu0 }
0x202c   :  { %v11501_v3 = vpop.f32.mrb[33].mxu0  ;;  %v3996_v28 = vrot.slane %v3989_v58, %v13307_v59 }
0x2051   :  { %v4040_v55 = vpop.xlane.xlu1 %4039 }
0x2055   :  { %v4037_v7 = vpop.xlane.xlu0 %4036 }
0x2059   :  { %v3913_v12 = vpop.xlane.xlu0 %3912 }
0x205a   :  { %v3997_v26 = vadd.f32 %v3996_v28, %v3913_v12 }
0x205c   :  { %v3999_v6 = vmul.f32 0.2, %v3997_v26 }
0x205d   :  { %v3916_v36 = vpop.xlane.xlu0 %3915 }
0x205e   :  { %v3998_v2 = vadd.f32 %v3996_v28, %v3916_v36  ;;  %v4001_v53 = vmax.f32 %v3997_v26, %v3999_v6 }
0x2060   :  { %v4000_v19 = vmul.f32 0.2, %v3998_v2  ;;  %v4003_v15 = vadd.f32 %v4001_v53, %v13370_v49 }
0x2062   :  { %v4002_v1 = vmax.f32 %v3998_v2, %v4000_v19  ;;  %v4005_v58 = vsel %vm205_vm0, %v4003_v15, -inf }
0x2064   :  { %v4004_v13 = vadd.f32 %v4002_v1, %v13372_v50 }
0x2066   :  { %v4008_v3 = vsel %vm205_vm0, %v4004_v13, -inf }
0x2093   :  { %v13897_v35 = vpop.f32.mrb[30].mxu1 }
0x2094   :  { %v13899_v56 = vpop.f32.mrb[31].mxu1 }
0x20a1   :  { %v4115_v34 = vpop.f32.mrb[32].mxu1 }
0x20a2   :  { %v4122_v43 = vrot.slane %v4115_v34, %v13307_v59  ;;  %v11508_v32 = vpop.f32.mrb[33].mxu1 }
0x20a4   :  { %v4123_v52 = vadd.f32 %v4122_v43, %v4037_v7  ;;  %v4124_v46 = vadd.f32 %v4122_v43, %v4040_v55 }
0x20a6   :  { %v4125_v8 = vmul.f32 0.2, %v4123_v52  ;;  %v4126_v0 = vmul.f32 0.2, %v4124_v46 }
0x20a8   :  { %v4127_v23 = vmax.f32 %v4123_v52, %v4125_v8  ;;  %v4128_v16 = vmax.f32 %v4124_v46, %v4126_v0 }
0x20aa   :  { %v4129_v57 = vadd.f32 %v4127_v23, %v13370_v49  ;;  %v4130_v42 = vadd.f32 %v4128_v16, %v13372_v50 }
0x20ac   :  { %v4131_v4 = vsel %vm205_vm0, %v4129_v57, -inf  ;;  %v4134_v18 = vsel %vm205_vm0, %v4130_v42, -inf }
0x20ad   :  { %4132 = vmax.xlane.f32.xlu1 %v4131_v4  ;;  %4135 = vmax.xlane.f32.xlu0 %v4134_v18 }
0x20b1   :  { %4006 = vmax.xlane.f32.xlu1 %v4005_v58  ;;  %4009 = vmax.xlane.f32.xlu0 %v4008_v3 }
0x213a   :  { %v4133_v7 = vpop.xlane.xlu1 %4132  ;;  %v4136_v12 = vpop.xlane.xlu0 %4135 }
0x213b   :  { %v4137_v28 = vsub.f32 %v4129_v57, %v4133_v7  ;;  %v4138_v36 = vsub.f32 %v4130_v42, %v4136_v12  ;;  %v560_v7 = vmul.f32 %v13754_v31, %v13816_v20 }
0x213d   :  { %v4139_v26 = vmul.f32 1.442695, %v4137_v28  ;;  %v4141_v2 = vmul.f32 1.442695, %v4138_v36 }
0x213e   :  { %v4007_v34 = vpop.xlane.xlu1 %4006  ;;  %v4010_v43 = vpop.xlane.xlu0 %4009 }
0x213f   :  { %12649 = vpow2.f32 %v4139_v26  ;;  %v4011_v32 = vsub.f32 %v4003_v15, %v4007_v34  ;;  %v4012_v55 = vsub.f32 %v4004_v13, %v4010_v43  ;;  %v559_v15 = vmul.f32 %v13754_v31, %v13818_v54 }
0x2140   :  { %12651 = vpow2.f32 %v4141_v2 }
0x2141   :  { %v4013_v6 = vmul.f32 1.442695, %v4011_v32  ;;  %v4015_v19 = vmul.f32 1.442695, %v4012_v55  ;;  %v561_v12 = vadd.f32 %v13769_v61, %v559_v15 }
0x2143   :  { %12653 = vpow2.f32 %v4013_v6 }
0x2144   :  { %12655 = vpow2.f32 %v4015_v19  ;;  %v562_v19 = vadd.f32 %v13769_v61, %v560_v7  ;;  %v13939_v61 = vld [vmem:[%s15245_s2] sm:$0xff]  ;;  %v4322_v7 = vmul.f32 %v13830_v48, %v13139_v11 }
0x2149   :  { %v12650_v52 = vpop.eup %12649 }
0x214a   :  { %v12652_v46 = vpop.eup %12651  ;;  %v4143_v8 = vsel %vm205_vm0, %v12650_v52, 0.0 }
0x214b   :  { %4144 = vadd.xlane.f32.xlu1 %v4143_v8  ;;  %v4146_v0 = vsel %vm205_vm0, %v12652_v46, 0.0 }
0x214c   :  { %4147 = vadd.xlane.f32.xlu0 %v4146_v0 }
0x214d   :  { %v12654_v53 = vpop.eup %12653 }
0x214e   :  { %v12656_v1 = vpop.eup %12655  ;;  %v4017_v23 = vsel %vm205_vm0, %v12654_v53, 0.0 }
0x214f   :  { %4018 = vadd.xlane.f32.xlu1 %v4017_v23  ;;  %v4020_v16 = vsel %vm205_vm0, %v12656_v1, 0.0 }
0x2150   :  { %4021 = vadd.xlane.f32.xlu0 %v4020_v16 }
0x2160   :  { %564 = vperm.xlu1 %12481, %v13173_v22  }
0x2164   :  { %576 = vperm.xlu1 %12481, %v13220_v5  }
0x2166   :  { %568 = vperm.xlu0 %12480, %v13171_v21  }
0x2168   :  { %580 = vperm.xlu1 %12481, %v13216_v63  }
0x21d8   :  { %v4145_v57 = vpop.xlane.xlu1 %4144 }
0x21d9   :  { %12657 = vrcp.f32 %v4145_v57  ;;  %v4148_v42 = vpop.xlane.xlu0 %4147 }
0x21da   :  { %12659 = vrcp.f32 %v4148_v42 }
0x21dc   :  { %v4019_v4 = vpop.xlane.xlu1 %4018 }
0x21dd   :  { %12661 = vrcp.f32 %v4019_v4  ;;  %v4022_v18 = vpop.xlane.xlu0 %4021  ;;  %v15223_v4 = vmov 4  }
0x21de   :  { %12663 = vrcp.f32 %v4022_v18  ;;  %12488 = vset.pattern.permute.xlu1 %v15223_v4  ;;  %12487 = vset.pattern.permute.xlu0 %v15223_v4 }
0x21e0   :  { %v565_v13 = vpop.permute.xlu1 %564 }
0x21e1   :  { %v571_v58 = vmul.f32 %v13761_v9, %v565_v13 }
0x21e3   :  { %v12658_v3 = vpop.eup %12657  ;;  %v573_v2 = vadd.f32 %v571_v58, %v561_v12  ;;  %v4321_v12 = vmul.f32 %v13832_v51, %v13139_v11  ;;  %v12904_v11 = vld [vmem:[%s15244_s21] sm:$0xff] }
0x21e4   :  { %v12660_v28 = vpop.eup %12659  ;;  %v577_v36 = vpop.permute.xlu1 %576  ;;  %v4151_v26 = vmul.f32 %v12658_v3, %v12650_v52 }
0x21e5   :  { %v583_v34 = vmul.f32 %v13775_v33, %v577_v36  ;;  %v569_v43 = vpop.permute.xlu0 %568  ;;  %v4152_v32 = vmul.f32 %v12660_v28, %v12652_v46 }
0x21e6   :  { %v572_v54 = vmul.f32 %v13761_v9, %v569_v43  ;;  %11513 = vmatprep.mubr.msk.f32.mxu0 %vm205_vm0, %v4151_v26 }
0x21e7   :  { %v12662_v55 = vpop.eup %12661  ;;  %v585_v6 = vadd.f32 %v583_v34, %v573_v2  ;;  %11514 = vmatmul.mubr.msk.f32.vlgmr.msra.gmra.mrb[34].mxu0 %vm205_vm0, %v4152_v32 }
0x21e8   :  { %12151 = vmatpush3.bf16.msra.mxu0 %v13867_v62  ;;  %v581_v31 = vpop.permute.xlu1 %580  ;;  %v4025_v20 = vmul.f32 %v12662_v55, %v12654_v53  ;;  %v574_v8 = vadd.f32 %v572_v54, %v562_v19  ;;  %v12664_v46 = vpop.eup %12663 }
0x21e9   :  { %v3824_v52 = vadd.f32 %v13899_v56, %v585_v6  ;;  %v584_v0 = vmul.f32 %v13775_v33, %v581_v31  ;;  %v4026_v16 = vmul.f32 %v12664_v46, %v12656_v1  ;;  %v12905_v31 = vld [vmem:[%s15206_s7] ss:$0 sm:$0xff] }
0x21ea   :  { %11520 = vmatprep.mubr.msk.f32.mxu0 %vm205_vm0, %v4025_v20 }
0x21eb   :  { %12665 = vtanh.f32 %v3824_v52  ;;  %v586_v9 = vadd.f32 %v584_v0, %v574_v8 }
0x21ed   :  { %v3825_v23 = vadd.f32 %v13897_v35, %v586_v9 }
0x21ef   :  { %12667 = vtanh.f32 %v3825_v23  ;;  %11521 = vmatmul.mubr.msk.f32.vlgmr.msra.gmra.mrb[34].mxu0 %vm205_vm0, %v4026_v16 }
0x21f0   :  { %11534 = vmatprep.mubr.msk.f32.mxu0 %vm205_vm0, %v13939_v61 }
0x21f5   :  { %v12666_v33 = vpop.eup %12665 }
0x21f6   :  { %v4323_v62 = vmul.f32 %v12666_v33, %v13148_v14 }
0x21f8   :  { %4327 = vrot.lane.b32.xlu0 %v4323_v62, %s12977_s25 }
0x21f9   :  { %v12668_v56 = vpop.eup %12667 }
0x21fa   :  { %v4324_v35 = vmul.f32 %v12668_v56, %v13148_v14 }
0x21fc   :  { %4329 = vrot.lane.b32.xlu1 %v4324_v35, %s12977_s25 }
0x226a   :  { %v4328_v3 = vpop.permute.xlu0 %4327 }
0x226b   :  { %v4333_v36 = vadd.f32 %v4328_v3, %v4321_v12 }
0x226e   :  { %v4330_v14 = vpop.permute.xlu1 %4329 }
0x226f   :  { %v4334_v28 = vadd.f32 %v4330_v14, %v4322_v7 }
0x22c2   :  { %v11522_v53 = vpop.f32.mrb[34].mxu0 }
0x22c3   :  { %v4318_v1 = vmul.f32 0.5, %v11522_v53  ;;  %v4308_v57 = vpop.f32.mrb[35].mxu0 }
0x22c4   :  { %v4317_v42 = vmul.f32 0.5, %v4308_v57 }
0x22c5   :  { %12669 = vtanh.f32 %v4318_v1 }
0x22c6   :  { %12671 = vtanh.f32 %v4317_v42 }
0x22cf   :  { %v12670_v18 = vpop.eup %12669 }
0x22d0   :  { %v12672_v15 = vpop.eup %12671  ;;  %v4336_v13 = vmul.f32 %v12670_v18, %v13156_v17 }
0x22d1   :  { %v4335_v58 = vmul.f32 %v12672_v15, %v13156_v17  ;;  %v12903_v17 = vld [vmem:[%s15244_s21 + $0x8] sm:$0xff] }
0x22d2   :  { %4341 = vrot.lane.b32.xlu1 %v4336_v13, %s12977_s25 }
0x22d3   :  { %4339 = vrot.lane.b32.xlu0 %v4335_v58, %s12977_s25 }
0x2344   :  { %v4342_v26 = vpop.permute.xlu1 %4341 }
0x2345   :  { %v13957_v2 = vadd.f32 %v4342_v26, %v4334_v28  ;;  %v4340_v34 = vpop.permute.xlu0 %4339 }
0x2346   :  { %v13959_v43 = vadd.f32 %v4340_v34, %v4333_v36 }
0x2347   :  { %4351 = vrot.lane.b32.xlu1 %v13957_v2, %s12976_s24 }
0x2348   :  { %4349 = vrot.lane.b32.xlu0 %v13959_v43, %s12976_s24 }
0x234b   :  { %596 = vperm.xlu1 %12488, %v12903_v17  }
0x234c   :  { %592 = vperm.xlu0 %12487, %v12904_v11  }
0x234f   :  { %12495 = vset.pattern.permute.xlu1 %v12974_v10 }
0x2350   :  { %12494 = vset.pattern.permute.xlu0 %v12974_v10 }
0x23b9   :  { %v4352_v51 = vpop.permute.xlu1 %4351 }
0x23ba   :  { %v4350_v48 = vpop.permute.xlu0 %4349 }
0x23bb   :  { %11527 = vmatprep.mubr.msk.f32.mxu1 %vm205_vm0, %v4350_v48 }
0x23bc   :  { %11528 = vmatmul.mubr.msk.f32.vlgmr.msra.gmra.mrb[34].mxu1 %vm205_vm0, %v4352_v51 }
0x23bd   :  { %11541 = vmatprep.mubr.msk.f32.mxu1 %vm205_vm0, %v13939_v61 }
0x23ca   :  { %v13981_v10 = vpop.permute.xlu1 %596 }
0x23cb   :  { %v13983_v19 = vpop.permute.xlu0 %592  ;;  %v600_v20 = vmul.f32 %v12905_v31, %v13981_v10 }
0x23cc   :  { %v599_v52 = vmul.f32 %v12905_v31, %v13983_v19 }
0x248f   :  { %v11529_v32 = vpop.f32.mrb[34].mxu1 }
0x2490   :  { %v4447_v54 = vadd.f32 %v11529_v32, %v13183_v27  ;;  %v4423_v55 = vpop.f32.mrb[35].mxu1 }
0x2491   :  { %v4446_v6 = vadd.f32 %v4423_v55, %v13183_v27  ;;  %v12906_v27 = vld [vmem:[%s15207_s8] ss:$0 sm:$0xff] }
0x2492   :  { %4452 = vrot.lane.b32.xlu0 %v4447_v54, %s12975_s4  ;;  %v602_v8 = vadd.f32 %v12906_v27, %v600_v20  ;;  %v601_v0 = vadd.f32 %v12906_v27, %v599_v52 }
0x2493   :  { %4450 = vrot.lane.b32.xlu1 %v4446_v6, %s12975_s4 }
0x2494   :  { %v4433_v46 = vadd.f32 %v11529_v32, %v602_v8  ;;  %v4432_v9 = vadd.f32 %v4423_v55, %v601_v0 }
0x2496   :  { %v10630_v23 = vmul.f32 -1.442695, %v4433_v46  ;;  %v10629_v16 = vmul.f32 -1.442695, %v4432_v9 }
0x2498   :  { %12673 = vpow2.f32 %v10630_v23 }
0x2499   :  { %12675 = vpow2.f32 %v10629_v16 }
0x24a2   :  { %v12674_v33 = vpop.eup %12673 }
0x24a3   :  { %v12676_v62 = vpop.eup %12675  ;;  %v4441_v56 = vadd.f32 1.0, %v12674_v33  ;;  %v12909_v33 = vld [vmem:[%s15215_s16] ss:$0 sm:$0xff] }
0x24a4   :  { %v4440_v35 = vadd.f32 1.0, %v12676_v62 }
0x24a5   :  { %12677 = vrcp.f32 %v4441_v56 }
0x24a6   :  { %12679 = vrcp.f32 %v4440_v35 }
0x24af   :  { %v12678_v53 = vpop.eup %12677 }
0x24b0   :  { %v12680_v57 = vpop.eup %12679  ;;  %v4471_v28 = vsub.f32 1.0, %v12678_v53  ;;  %v4483_v34 = vmul.f32 %v12678_v53, %v13957_v2  ;;  %v14011_v2 = vld [vmem:[%s15245_s2 + $0x8] sm:$0xff] }
0x24b1   :  { %v4470_v26 = vsub.f32 1.0, %v12680_v57  ;;  %v4482_v48 = vmul.f32 %v12680_v57, %v13959_v43 }
0x2504   :  { %v4453_v1 = vpop.permute.xlu0 %4452 }
0x2505   :  { %v4457_v42 = vmul.f32 %v12678_v53, %v4453_v1  ;;  %v4451_v18 = vpop.permute.xlu1 %4450 }
0x2506   :  { %v4456_v15 = vmul.f32 %v12680_v57, %v4451_v18 }
0x2507   :  { %4462 = vrot.lane.b32.xlu0 %v4457_v42, %s12973_s1 }
0x2508   :  { %4460 = vrot.lane.b32.xlu1 %v4456_v15, %s12973_s1 }
0x2579   :  { %v4463_v13 = vpop.permute.xlu0 %4462 }
0x257a   :  { %v4467_v58 = vadd.f32 %v4463_v13, %v602_v8  ;;  %v4461_v14 = vpop.permute.xlu1 %4460 }
0x257b   :  { %v4466_v3 = vadd.f32 %v4461_v14, %v601_v0 }
0x257c   :  { %12681 = vtanh.f32 %v4467_v58 }
0x257d   :  { %12683 = vtanh.f32 %v4466_v3 }
0x2586   :  { %v12682_v7 = vpop.eup %12681 }
0x2587   :  { %v12684_v12 = vpop.eup %12683  ;;  %4476 = vrot.lane.b32.xlu0 %v12682_v7, %s12976_s24 }
0x2588   :  { %4474 = vrot.lane.b32.xlu1 %v12684_v12, %s12976_s24 }
0x25f9   :  { %v4477_v36 = vpop.permute.xlu0 %4476 }
0x25fa   :  { %v4481_v17 = vmul.f32 %v4477_v36, %v4471_v28  ;;  %v4475_v11 = vpop.permute.xlu1 %4474 }
0x25fb   :  { %v4480_v51 = vmul.f32 %v4475_v11, %v4470_v26 }
0x25fc   :  { %v13999_v32 = vadd.f32 %v4483_v34, %v4481_v17 }
0x25fd   :  { %v14001_v54 = vadd.f32 %v4482_v48, %v4480_v51  ;;  %v12911_v48 = vld [vmem:[%s15246_s28] sm:$0xff] }
0x25fe   :  { %15249 = vst [vmem:[#allocation8_spill] sm:$0xff] %v13999_v32  ;;  %4490 = vrot.lane.b32.xlu0 %v13999_v32, %s12976_s24 }
0x25ff   :  { %15250 = vst [vmem:[#allocation9_spill] sm:$0xff] %v14001_v54  ;;  %4488 = vrot.lane.b32.xlu1 %v14001_v54, %s12976_s24 }
0x2670   :  { %v4491_v55 = vpop.permute.xlu0 %4490 }
0x2671   :  { %v4489_v6 = vpop.permute.xlu1 %4488 }
0x2672   :  { %v12156_v31 = vpack.c.bf16 %v4491_v55, %v4489_v6 }
0x2674   :  { %12157 = vmatprep.subr.bf16.mxu0 %v12156_v31 }
0x2675   :  { %12159 = vmatpush3.bf16.msra.mxu0 %v12156_v31 }
0x2676   :  { %12165 = vmatprep.subr.bf16.mxu0 %v13267_v39 }
0x2678   :  { %11535 = vmatmul.mubr.msk.f32.vlgmr.msra.gmra.mrb[36].mxu0 %vm205_vm0, %v14011_v2 }
0x2679   :  { %12167 = vmatpush3.bf16.msra.mxu0 %v13267_v39  ;;  %v12908_v39 = vld [vmem:[%s15213_s14] ss:$0 sm:$0xff] }
0x267a   :  { %12169 = vmatprep.subr.bf16.mxu0 %v13272_v41  ;;  %v631_v27 = vmul.f32 %v12908_v39, %v13983_v19 }
0x267c   :  { %v633_v46 = vadd.f32 %v631_v27, %v13179_v25  ;;  %v12910_v25 = vld [vmem:[%s15216_s17] sm:$0x1] }
0x267d   :  { %12171 = vmatpush3.bf16.msra.mxu0 %v13272_v41  ;;  %v632_v41 = vmul.f32 %v12908_v39, %v13981_v10 }
0x267e   :  { %12173 = vmatprep.subr.bf16.mxu0 %v13284_v44 }
0x2681   :  { %12175 = vmatpush3.bf16.msra.mxu0 %v13284_v44 }
0x2682   :  { %12184 = vmatprep.subr.bf16.mxu0 %v15231_v30 }
0x274b   :  { %v11536_v43 = vpop.f32.mrb[36].mxu0 }
0x274c   :  { %4648 = vrot.lane.b32.xlu0 %v11536_v43, %s12977_s25  ;;  %v4560_v20 = vpop.f32.mrb[37].mxu0 }
0x274d   :  { %v12160_v52 = vpack.c.bf16 %v11536_v43, %v4560_v20  ;;  %4646 = vrot.lane.b32.xlu1 %v4560_v20, %s12977_s25 }
0x274f   :  { %12161 = vmatprep.subr.bf16.mxu1 %v12160_v52 }
0x2750   :  { %12163 = vmatpush3.bf16.msra.mxu1 %v12160_v52 }
0x2751   :  { %12177 = vmatprep.subr.bf16.mxu1 %v13245_v29 }
0x2753   :  { %11542 = vmatmul.mubr.msk.f32.vlgmr.msra.gmra.mrb[36].mxu1 %vm205_vm0, %v14011_v2 }
0x2754   :  { %12179 = vmatpush3.bf16.msra.mxu1 %v13245_v29  ;;  %11563 = vmatprep.mubr.msk.f32.mxu1 %vm205_vm0, %v4489_v6  ;;  %v634_v29 = vadd.f32 %v13177_v24, %v632_v41 }
0x2755   :  { %12180 = vmatprep.subr.bf16.mxu1 %v15231_v30 }
0x2757   :  { %11564 = vmatmul.mubr.msk.f32.vlgmr.msra.gmra.mrb[38].mxu1 %vm205_vm0, %v4491_v55 }
0x2758   :  { %11570 = vmatprep.mubr.msk.f32.mxu1 %vm12979_vm2, %v15229_v38 }
0x27be   :  { %v4649_v42 = vpop.permute.xlu0 %4648 }
0x27bf   :  { %v4647_v53 = vpop.permute.xlu1 %4646  ;;  %v4661_v15 = vsel %vm205_vm0, %v4491_v55, %v4649_v42 }
0x27c0   :  { %v4660_v1 = vsel %vm205_vm0, %v4489_v6, %v4647_v53 }
0x2826   :  { %v11543_v44 = vpop.f32.mrb[36].mxu1 }
0x2827   :  { %v4635_v8 = vpop.f32.mrb[37].mxu1 }
0x2828   :  { %4654 = vrot.lane.b32.xlu1 %v4635_v8, %s12973_s1 }
0x282a   :  { %v11565_v0 = vpop.f32.mrb[38].mxu1 }
0x282b   :  { %v4829_v9 = vadd.f32 %v11565_v0, %v634_v29  ;;  %v4819_v23 = vpop.f32.mrb[39].mxu1 }
0x282c   :  { %v4828_v16 = vadd.f32 %v4819_v23, %v633_v46  ;;  %4656 = vrot.lane.b32.xlu1 %v11543_v44, %s12973_s1 }
0x282d   :  { %v4831_v62 = vmul.f32 %v12909_v33, %v4829_v9 }
0x282e   :  { %v12489_v56 = vpack.i.bf16 %v4829_v9, %v4828_v16  ;;  %v14044_v35 = vpack.c.bf16 %v4829_v9, %v4828_v16  ;;  %v4830_v24 = vmul.f32 %v12909_v33, %v4828_v16 }
0x282f   :  { %v4835_v11 = vsel %vm205_vm0, %v4831_v62, 0.0 }
0x2830   :  { %4952 = vrot.lane.b32.xlu1 %v4831_v62, %s12976_s24  ;;  %12490 = vrot.lane.b32.xlu0 %v12489_v56, %s12976_s24  ;;  %v4832_v17 = vsel %vm205_vm0, %v4830_v24, 0.0 }
0x2831   :  { %12183 = vmatpush3.bf16.xpose.msk.msra.mxu1 %vm13311_vm3, %v14044_v35 }
0x2834   :  { %4950 = vrot.lane.b32.xlu0 %v4830_v24, %s12976_s24 }
0x2838   :  { %11571 = vmatmul.mubr.msk.f32.vlgmr.msra.gmra.mrb[40].mxu1 %vm205_vm0, %v12910_v25 }
0x289a   :  { %v4655_v57 = vpop.permute.xlu1 %4654 }
0x289b   :  { %v4662_v18 = vsel %vm959_vm4, %v4660_v1, %v4655_v57 }
0x289c   :  { %11556 = vmatprep.mubr.msk.f32.mxu0 %vm962_vm5, %v4662_v18 }
0x289e   :  { %v4657_v13 = vpop.permute.xlu1 %4656 }
0x289f   :  { %v4663_v58 = vsel %vm959_vm4, %v4661_v15, %v4657_v13 }
0x28a0   :  { %11557 = vmatmul.mubr.msk.f32.vlgmr.msra.gmra.mrb[38].mxu0 %vm962_vm5, %v4663_v58 }
0x28a1   :  { %11577 = vmatprep.mubr.msk.f32.mxu0 %vm12979_vm2, %v15229_v38 }
0x28a2   :  { %v4953_v14 = vpop.permute.xlu1 %4952  ;;  %v12491_v3 = vpop.permute.xlu0 %12490 }
0x28a3   :  { %v12493_v7 = vunpack.i.h.bf16 %v12491_v3  ;;  %v12492_v12 = vunpack.i.l.bf16 %v12491_v3  ;;  %v4959_v28 = vsel %vm205_vm0, %v4953_v14, 0.0 }
0x28a4   :  { %4960 = vadd.xlane.f32.xlu1 %v4959_v28 }
0x28a5   :  { %v12185_v36 = vpack.c.bf16 %v12493_v7, %v12492_v12 }
0x28a6   :  { %v4951_v26 = vpop.permute.xlu0 %4950 }
0x28a7   :  { %12187 = vmatpush3.bf16.xpose.msk.msra.mxu0 %vm13311_vm3, %v12185_v36  ;;  %12189 = vmatprep.subr.bf16.mxu1 %v12185_v36  ;;  %v4956_v34 = vsel %vm205_vm0, %v4951_v26, 0.0 }
0x28a8   :  { %12191 = vmatpush3.bf16.msra.mxu1 %v12185_v36  ;;  %4957 = vadd.xlane.f32.xlu0 %v4956_v34 }
0x28a9   :  { %12193 = vmatprep.subr.bf16.mxu1 %v14044_v35 }
0x28ac   :  { %4833 = vadd.xlane.f32.xlu0 %v4832_v17 }
0x28ae   :  { %11578 = vmatmul.mubr.msk.f32.vlgmr.msra.gmra.mrb[40].mxu0 %vm205_vm0, %v13346_v47 }
0x28af   :  { %11596 = vmatprep.mubr.msk.f32.mxu0 %vm123_vm1, %v12911_v48 }
0x28b0   :  { %4836 = vadd.xlane.f32.xlu0 %v4835_v11 }
0x290b   :  { %v4910_v51 = vpop.f32.mrb[40].mxu1 }
0x290c   :  { %v11572_v55 = vpop.f32.mrb[41].mxu1  ;;  %v4917_v52 = vrot.slane %v4910_v51, %v13307_v59 }
0x2931   :  { %v4961_v29 = vpop.xlane.xlu1 %4960 }
0x2935   :  { %v4958_v6 = vpop.xlane.xlu0 %4957 }
0x2939   :  { %v4834_v20 = vpop.xlane.xlu0 %4833 }
0x293a   :  { %v4918_v39 = vadd.f32 %v4917_v52, %v4834_v20 }
0x293c   :  { %v4920_v0 = vmul.f32 0.2, %v4918_v39 }
0x293d   :  { %v4837_v47 = vpop.xlane.xlu0 %4836 }
0x293e   :  { %v4919_v41 = vadd.f32 %v4917_v52, %v4837_v47  ;;  %v4922_v62 = vmax.f32 %v4918_v39, %v4920_v0  ;;  %v12912_v0 = vld [vmem:[%s15246_s28 + $0x8] sm:$0xff]  ;;  %s10651_s28 = sld [smem:[#allocation2 + $0x82]] }
0x2940   :  { %v4921_v46 = vmul.f32 0.2, %v4919_v41  ;;  %v4924_v18 = vadd.f32 %v4922_v62, %v13370_v49 }
0x2942   :  { %v4923_v56 = vmax.f32 %v4919_v41, %v4921_v46  ;;  %v4926_v13 = vsel %vm205_vm0, %v4924_v18, -inf  ;;  %v14115_v46 = vld [vmem:[%s15244_s21 + $0x18] sm:$0xff] }
0x2944   :  { %v4925_v15 = vadd.f32 %v4923_v56, %v13372_v50 }
0x2946   :  { %v4929_v58 = vsel %vm205_vm0, %v4925_v15, -inf }
0x2973   :  { %v14077_v31 = vpop.f32.mrb[38].mxu0 }
0x2974   :  { %15251 = vst [vmem:[#allocation10_spill] sm:$0xff] %v14077_v31  ;;  %v14079_v43 = vpop.f32.mrb[39].mxu0 }
0x2975   :  { %15252 = vst [vmem:[#allocation11_spill] sm:$0xff] %v14079_v43 }
0x2981   :  { %v5036_v44 = vpop.f32.mrb[40].mxu0 }
0x2982   :  { %v5043_v27 = vrot.slane %v5036_v44, %v13307_v59  ;;  %v11579_v8 = vpop.f32.mrb[41].mxu0 }
0x2983   :  { %v10692_v8 = vld [vmem:[%s15208_s9 + $0x1] ss:$0 sm:$0xff]  ;;  %s10649_s9 = sld [smem:[#allocation2 + $0x80]] }
0x2984   :  { %v5044_v9 = vadd.f32 %v5043_v27, %v4958_v6  ;;  %v5045_v23 = vadd.f32 %v5043_v27, %v4961_v29  ;;  %v14098_v27 = vld [vmem:[%s15244_s21 + $0x10] sm:$0xff]  ;;  %v10671_v29 = vld [vmem:[%s15214_s15 + $0x8] sm:$0xff]  ;;  %s10650_s15 = sld [smem:[#allocation2 + $0x81]] }
0x2985   :  { %11594 = vmatprep.subr.mxu0 %v10671_v29 }
0x2986   :  { %v5046_v16 = vmul.f32 0.2, %v5044_v9  ;;  %v5047_v33 = vmul.f32 0.2, %v5045_v23  ;;  %11595 = vmatpush3.msra.mxu0 %v10671_v29 }
0x2987   :  { %11597 = vmatmul.mubr.msk.f32.vlgmr.msra.gmra.mrb[42].mxu0 %vm123_vm1, %v12912_v0 }
0x2988   :  { %v5048_v24 = vmax.f32 %v5044_v9, %v5046_v16  ;;  %v5049_v25 = vmax.f32 %v5045_v23, %v5047_v33  ;;  %11610 = vmatprep.mubr.msk.f32.mxu0 %vm205_vm0, %v13939_v61 }
0x298a   :  { %v5050_v53 = vadd.f32 %v5048_v24, %v13370_v49  ;;  %v5051_v1 = vadd.f32 %v5049_v25, %v13372_v50 }
0x298c   :  { %v5052_v57 = vsel %vm205_vm0, %v5050_v53, -inf  ;;  %v5055_v42 = vsel %vm205_vm0, %v5051_v1, -inf }
0x298d   :  { %5053 = vmax.xlane.f32.xlu1 %v5052_v57  ;;  %5056 = vmax.xlane.f32.xlu0 %v5055_v42  ;;  %v14124_v57 = vstv %s10650_s15 }
0x2991   :  { %4927 = vmax.xlane.f32.xlu1 %v4926_v13  ;;  %4930 = vmax.xlane.f32.xlu0 %v4929_v58  ;;  %v5779_v13 = vmul.f32 0.0, %v14124_v57  ;;  %v14131_v58 = vstv %s10651_s28 }
0x2a1a   :  { %v5054_v14 = vpop.xlane.xlu1 %5053  ;;  %v5057_v3 = vpop.xlane.xlu0 %5056 }
0x2a1b   :  { %v5058_v7 = vsub.f32 %v5050_v53, %v5054_v14  ;;  %v5059_v12 = vsub.f32 %v5051_v1, %v5057_v3  ;;  %v12196_v53 = vpack.c.bf16 %v14115_v46, %v14098_v27  ;;  %v14122_v1 = vstv %s10649_s9  ;;  %v10654_v3 = vld [vmem:[%s15205_s6 + $0x10] sm:$0xff] }
0x2a1d   :  { %v5060_v28 = vmul.f32 1.442695, %v5058_v7  ;;  %v5062_v36 = vmul.f32 1.442695, %v5059_v12  ;;  %v10655_v7 = vld [vmem:[%s15205_s6 + $0x18] sm:$0xff]  ;;  %v5782_v12 = vmul.f32 0.0, %v14131_v58 }
0x2a1e   :  { %v4928_v26 = vpop.xlane.xlu1 %4927  ;;  %v4931_v34 = vpop.xlane.xlu0 %4930 }
0x2a1f   :  { %12685 = vpow2.f32 %v5060_v28  ;;  %v4932_v17 = vsub.f32 %v4924_v18, %v4928_v26  ;;  %v4933_v11 = vsub.f32 %v4925_v15, %v4931_v34  ;;  %v5777_v15 = vmul.f32 0.0, %v14122_v1 }
0x2a20   :  { %12687 = vpow2.f32 %v5062_v36  ;;  %v14141_v36 = vpack.c.bf16 %v10655_v7, %v10654_v3 }
0x2a21   :  { %v4934_v48 = vmul.f32 1.442695, %v4932_v17  ;;  %v4936_v51 = vmul.f32 1.442695, %v4933_v11 }
0x2a23   :  { %12689 = vpow2.f32 %v4934_v48 }
0x2a24   :  { %12691 = vpow2.f32 %v4936_v51 }
0x2a29   :  { %v12686_v55 = vpop.eup %12685 }
0x2a2a   :  { %v12688_v6 = vpop.eup %12687  ;;  %v5064_v20 = vsel %vm205_vm0, %v12686_v55, 0.0 }
0x2a2b   :  { %5065 = vadd.xlane.f32.xlu1 %v5064_v20  ;;  %v5067_v52 = vsel %vm205_vm0, %v12688_v6, 0.0 }
0x2a2c   :  { %5068 = vadd.xlane.f32.xlu0 %v5067_v52 }
0x2a2d   :  { %v12690_v47 = vpop.eup %12689 }
0x2a2e   :  { %v12692_v39 = vpop.eup %12691  ;;  %v4938_v41 = vsel %vm205_vm0, %v12690_v47, 0.0 }
0x2a2f   :  { %4939 = vadd.xlane.f32.xlu1 %v4938_v41  ;;  %v4941_v44 = vsel %vm205_vm0, %v12692_v39, 0.0 }
0x2a30   :  { %4942 = vadd.xlane.f32.xlu0 %v4941_v44 }
0x2a40   :  { %5881 = vrot.lane.b32.xlu1 %v10692_v8, %s12973_s1  ;;  %v14187_v8 = vld [vmem:[%s15206_s7 + $0x1] ss:$0 sm:$0xff] }
0x2a44   :  { %5509 = vperm.xlu1 %12495, %v14115_v46  }
0x2a46   :  { %5504 = vperm.xlu0 %12494, %v14098_v27  }
0x2a5a   :  { %v14158_v34 = vpop.f32.mrb[42].mxu0 }
0x2a5b   :  { %v14160_v17 = vpop.f32.mrb[43].mxu0 }
0x2ab8   :  { %v5066_v9 = vpop.xlane.xlu1 %5065 }
0x2ab9   :  { %12693 = vrcp.f32 %v5066_v9  ;;  %v5069_v23 = vpop.xlane.xlu0 %5068 }
0x2aba   :  { %12695 = vrcp.f32 %v5069_v23 }
0x2abc   :  { %v4940_v16 = vpop.xlane.xlu1 %4939 }
0x2abd   :  { %12697 = vrcp.f32 %v4940_v16  ;;  %v4943_v33 = vpop.xlane.xlu0 %4942 }
0x2abe   :  { %12699 = vrcp.f32 %v4943_v33 }
0x2ac0   :  { %v14172_v52 = vpop.permute.xlu1 %5881 }
0x2ac3   :  { %v12694_v62 = vpop.eup %12693 }
0x2ac4   :  { %v12696_v56 = vpop.eup %12695  ;;  %v5072_v24 = vmul.f32 %v12694_v62, %v12686_v55  ;;  %v14191_v0 = vpop.permute.xlu1 %5509 }
0x2ac5   :  { %v5073_v25 = vmul.f32 %v12696_v56, %v12688_v6  ;;  %v14182_v44 = vpop.permute.xlu0 %5504  ;;  %v5519_v9 = vmul.f32 %v14187_v8, %v14191_v0 }
0x2ac6   :  { %11584 = vmatprep.mubr.msk.f32.mxu1 %vm205_vm0, %v5072_v24  ;;  %v5518_v29 = vmul.f32 %v14187_v8, %v14182_v44 }
0x2ac7   :  { %v12698_v42 = vpop.eup %12697  ;;  %11585 = vmatmul.mubr.msk.f32.vlgmr.msra.gmra.mrb[42].mxu1 %vm205_vm0, %v5073_v25 }
0x2ac8   :  { %12195 = vmatpush3.bf16.msra.mxu1 %v14044_v35  ;;  %v4946_v18 = vmul.f32 %v12698_v42, %v12690_v47  ;;  %v12700_v14 = vpop.eup %12699  ;;  %v5780_v35 = vadd.f32 %v5779_v13, %v5777_v15 }
0x2ac9   :  { %12197 = vmatprep.subr.bf16.mxu1 %v12196_v53  ;;  %v4947_v28 = vmul.f32 %v12700_v14, %v12692_v39 }
0x2aca   :  { %11591 = vmatprep.mubr.msk.f32.mxu1 %vm205_vm0, %v4946_v18  ;;  %v14146_v26 = vadd.f32 %v5782_v12, %v5780_v35 }
0x2acf   :  { %11592 = vmatmul.mubr.msk.f32.vlgmr.msra.gmra.mrb[42].mxu1 %vm205_vm0, %v4947_v28 }
0x2ad0   :  { %12199 = vmatpush3.bf16.msra.mxu1 %v12196_v53  ;;  %11603 = vmatprep.mubr.msk.f32.mxu1 %vm205_vm0, %v13939_v61 }
0x2ad1   :  { %12205 = vmatprep.subr.bf16.mxu1 %v14141_v36 }
0x2ad3   :  { %11604 = vmatmul.mubr.msk.f32.vlgmr.msra.gmra.mrb[44].mxu1 %vm205_vm0, %v14011_v2 }
0x2ad4   :  { %12207 = vmatpush3.bf16.msra.mxu1 %v14141_v36  ;;  %11617 = vmatprep.mubr.msk.f32.mxu1 %vm205_vm0, %v14146_v26 }
0x2ad7   :  { %11618 = vmatmul.mubr.msk.f32.vlgmr.msra.gmra.mrb[46].mxu1 %vm205_vm0, %v14146_v26 }
0x2ad8   :  { %11631 = vmatprep.mubr.msk.f32.mxu1 %vm205_vm0, %v13939_v61 }
0x2ba2   :  { %v14162_v11 = vpop.f32.mrb[42].mxu1 }
0x2ba3   :  { %15253 = vst [vmem:[#allocation12_spill] sm:$0xff] %v14162_v11  ;;  %v14164_v48 = vpop.f32.mrb[43].mxu1 }
0x2ba4   :  { %15254 = vst [vmem:[#allocation13_spill] sm:$0xff] %v14164_v48 }
0x2ba6   :  { %v14166_v51 = vpop.f32.mrb[44].mxu1 }
0x2ba7   :  { %v14168_v55 = vpop.f32.mrb[45].mxu1 }
0x2ba8   :  { %v12200_v6 = vpack.c.bf16 %v14166_v51, %v14168_v55 }
0x2baa   :  { %12201 = vmatprep.subr.bf16.mxu0 %v12200_v6  ;;  %v11619_v20 = vpop.f32.mrb[46].mxu1 }
0x2bab   :  { %12203 = vmatpush3.bf16.msra.mxu0 %v12200_v6  ;;  %v5853_v47 = vpop.f32.mrb[47].mxu1  ;;  %v5885_v41 = vadd.f32 %v11619_v20, %v14172_v52 }
0x2bac   :  { %v5884_v39 = vadd.f32 %v14172_v52, %v5853_v47 }
0x2bae   :  { %5888 = vrot.lane.b32.xlu1 %v5884_v39, %s12975_s4  ;;  %11611 = vmatmul.mubr.msk.f32.vlgmr.msra.gmra.mrb[44].mxu0 %vm205_vm0, %v14011_v2 }
0x2baf   :  { %11624 = vmatprep.mubr.msk.f32.mxu0 %vm205_vm0, %v13939_v61  ;;  %v14196_v61 = vld [vmem:[%s15207_s8 + $0x1] ss:$0 sm:$0xff] }
0x2bb0   :  { %v5526_v23 = vadd.f32 %v14196_v61, %v5518_v29  ;;  %v5527_v16 = vadd.f32 %v14196_v61, %v5519_v9 }
0x2bb2   :  { %5890 = vrot.lane.b32.xlu1 %v5885_v41, %s12975_s4  ;;  %v5862_v33 = vadd.f32 %v5853_v47, %v5526_v23  ;;  %v5863_v62 = vadd.f32 %v11619_v20, %v5527_v16 }
0x2bb4   :  { %v10690_v56 = vmul.f32 -1.442695, %v5862_v33  ;;  %v10691_v24 = vmul.f32 -1.442695, %v5863_v62 }
0x2bb6   :  { %12701 = vpow2.f32 %v10690_v56 }
0x2bb7   :  { %12703 = vpow2.f32 %v10691_v24 }
0x2bc0   :  { %v12702_v25 = vpop.eup %12701 }
0x2bc1   :  { %v5870_v53 = vadd.f32 1.0, %v12702_v25  ;;  %v12704_v42 = vpop.eup %12703 }
0x2bc2   :  { %v5871_v18 = vadd.f32 1.0, %v12704_v42 }
0x2bc3   :  { %12705 = vrcp.f32 %v5870_v53 }
0x2bc4   :  { %12707 = vrcp.f32 %v5871_v18 }
0x2bcd   :  { %v12706_v15 = vpop.eup %12705 }
0x2bce   :  { %v12708_v3 = vpop.eup %12707  ;;  %v5908_v41 = vsub.f32 1.0, %v12706_v15  ;;  %v5920_v9 = vmul.f32 %v12706_v15, %v14146_v26 }
0x2bcf   :  { %v5921_v25 = vmul.f32 %v12708_v3, %v14146_v26  ;;  %v10666_v26 = vld [vmem:[%s15212_s13 + $0x10] sm:$0xff] }
0x2c20   :  { %v5889_v13 = vpop.permute.xlu1 %5888 }
0x2c21   :  { %v5894_v14 = vmul.f32 %v12706_v15, %v5889_v13 }
0x2c23   :  { %5898 = vrot.lane.b32.xlu1 %v5894_v14, %s12973_s1  ;;  %v10667_v14 = vld [vmem:[%s15212_s13 + $0x18] sm:$0xff] }
0x2c24   :  { %v5891_v7 = vpop.permute.xlu1 %5890 }
0x2c25   :  { %v5895_v35 = vmul.f32 %v12708_v3, %v5891_v7 }
0x2c27   :  { %5900 = vrot.lane.b32.xlu1 %v5895_v35, %s12973_s1 }
0x2c81   :  { %v14207_v62 = vpop.f32.mrb[44].mxu0 }
0x2c82   :  { %v14211_v24 = vpop.f32.mrb[45].mxu0 }
0x2c95   :  { %v5899_v12 = vpop.permute.xlu1 %5898 }
0x2c96   :  { %v5904_v28 = vadd.f32 %v5899_v12, %v5526_v23  ;;  %v5909_v23 = vsub.f32 1.0, %v12708_v3  ;;  %v14236_v12 = vpack.c.bf16 %v10667_v14, %v10666_v26 }
0x2c98   :  { %12709 = vtanh.f32 %v5904_v28  ;;  %v10660_v28 = vld [vmem:[%s15211_s12 + $0x30] sm:$0xff] }
0x2c99   :  { %v5901_v6 = vpop.permute.xlu1 %5900 }
0x2c9a   :  { %v5905_v20 = vadd.f32 %v5901_v6, %v5527_v16  ;;  %v10662_v6 = vld [vmem:[%s15211_s12 + $0x40] sm:$0xff] }
0x2c9c   :  { %12711 = vtanh.f32 %v5905_v20 }
0x2ca2   :  { %v12710_v47 = vpop.eup %12709 }
0x2ca3   :  { %5912 = vrot.lane.b32.xlu1 %v12710_v47, %s12976_s24  ;;  %v10663_v47 = vld [vmem:[%s15211_s12 + $0x48] sm:$0xff] }
0x2ca6   :  { %v12712_v39 = vpop.eup %12711 }
0x2ca7   :  { %5914 = vrot.lane.b32.xlu1 %v12712_v39, %s12976_s24  ;;  %v14263_v39 = vpack.c.bf16 %v10663_v47, %v10662_v6 }
0x2d15   :  { %v5913_v29 = vpop.permute.xlu1 %5912 }
0x2d16   :  { %v5918_v33 = vmul.f32 %v5913_v29, %v5908_v41  ;;  %v10664_v41 = vld [vmem:[%s15211_s12 + $0x50] sm:$0xff]  ;;  %v10665_v29 = vld [vmem:[%s15211_s12 + $0x58] sm:$0xff] }
0x2d18   :  { %v14209_v56 = vadd.f32 %v5920_v9, %v5918_v33  ;;  %v14275_v9 = vpack.c.bf16 %v10665_v29, %v10664_v41  ;;  %v14283_v33 = vld [vmem:[%s15213_s14 + $0x1] ss:$0 sm:$0xff] }
0x2d19   :  { %v5915_v16 = vpop.permute.xlu1 %5914 }
0x2d1a   :  { %v5919_v53 = vmul.f32 %v5915_v16, %v5909_v23  ;;  %5926 = vrot.lane.b32.xlu1 %v14209_v56, %s12976_s24  ;;  %v5597_v23 = vmul.f32 %v14283_v33, %v14191_v0 }
0x2d1c   :  { %v14216_v42 = vadd.f32 %v5921_v25, %v5919_v53  ;;  %v5596_v25 = vmul.f32 %v14283_v33, %v14182_v44 }
0x2d1e   :  { %5928 = vrot.lane.b32.xlu0 %v14216_v42, %s12976_s24  ;;  %v5598_v14 = vadd.f32 %v5596_v25, %v14160_v17 }
0x2d8c   :  { %v14220_v18 = vpop.permute.xlu1 %5926 }
0x2d90   :  { %v14222_v15 = vpop.permute.xlu0 %5928 }
0x2d91   :  { %v12208_v13 = vpack.c.bf16 %v14222_v15, %v14220_v18 }
0x2d93   :  { %12209 = vmatprep.subr.bf16.mxu0 %v12208_v13 }
0x2d94   :  { %12211 = vmatpush3.bf16.msra.mxu0 %v12208_v13  ;;  %v5599_v13 = vadd.f32 %v14158_v34, %v5597_v23 }
0x2d97   :  { %11625 = vmatmul.mubr.msk.f32.vlgmr.msra.gmra.mrb[46].mxu0 %vm205_vm0, %v14011_v2 }
0x2e6a   :  { %v11626_v3 = vpop.f32.mrb[46].mxu0 }
0x2e6b   :  { %6086 = vrot.lane.b32.xlu0 %v11626_v3, %s12977_s25  ;;  %v5998_v7 = vpop.f32.mrb[47].mxu0 }
0x2e6c   :  { %v12212_v35 = vpack.c.bf16 %v11626_v3, %v5998_v7  ;;  %6084 = vrot.lane.b32.xlu1 %v5998_v7, %s12977_s25  ;;  %v14295_v3 = vld [vmem:[%s15215_s16 + $0x1] ss:$0 sm:$0xff] }
0x2e6e   :  { %12213 = vmatprep.subr.bf16.mxu1 %v12212_v35 }
0x2e6f   :  { %12215 = vmatpush3.bf16.msra.mxu1 %v12212_v35 }
0x2e70   :  { %12229 = vmatprep.subr.bf16.mxu1 %v14236_v12 }
0x2e72   :  { %11632 = vmatmul.mubr.msk.f32.vlgmr.msra.gmra.mrb[48].mxu1 %vm205_vm0, %v14011_v2  ;;  %v10661_v2 = vld [vmem:[%s15211_s12 + $0x38] sm:$0xff] }
0x2e73   :  { %12231 = vmatpush3.bf16.msra.mxu1 %v14236_v12  ;;  %11653 = vmatprep.mubr.msk.f32.mxu1 %vm205_vm0, %v14220_v18  ;;  %v14258_v20 = vpack.c.bf16 %v10661_v2, %v10660_v28  ;;  %v14301_v2 = vld [vmem:[%s15216_s17 + $0x1] sm:$0x1] }
0x2e74   :  { %12232 = vmatprep.subr.bf16.mxu1 %v15231_v30  ;;  %v6412_v29 = vrot.slane %v14301_v2, %v13307_v59 }
0x2e75   :  { %12217 = vmatprep.subr.bf16.mxu0 %v14258_v20 }
0x2e76   :  { %11654 = vmatmul.mubr.msk.f32.vlgmr.msra.gmra.mrb[50].mxu1 %vm205_vm0, %v14222_v15  ;;  %12219 = vmatpush3.bf16.msra.mxu0 %v14258_v20 }
0x2e77   :  { %11660 = vmatprep.mubr.msk.f32.mxu1 %vm12979_vm2, %v15229_v38  ;;  %12221 = vmatprep.subr.bf16.mxu0 %v14263_v39 }
0x2e7a   :  { %12223 = vmatpush3.bf16.msra.mxu0 %v14263_v39 }
0x2e7b   :  { %12225 = vmatprep.subr.bf16.mxu0 %v14275_v9 }
0x2e7e   :  { %12227 = vmatpush3.bf16.msra.mxu0 %v14275_v9 }
0x2e7f   :  { %12236 = vmatprep.subr.bf16.mxu0 %v15231_v30 }
0x2f45   :  { %v11633_v16 = vpop.f32.mrb[48].mxu1 }
0x2f46   :  { %v6073_v53 = vpop.f32.mrb[49].mxu1 }
0x2f47   :  { %6092 = vrot.lane.b32.xlu1 %v6073_v53, %s12973_s1 }
0x2f49   :  { %v11655_v26 = vpop.f32.mrb[50].mxu1 }
0x2f4a   :  { %v6267_v7 = vadd.f32 %v11655_v26, %v5599_v13  ;;  %v6257_v35 = vpop.f32.mrb[51].mxu1  ;;  %v6087_v13 = vpop.permute.xlu0 %6086 }
0x2f4b   :  { %v6266_v28 = vadd.f32 %v6257_v35, %v5598_v14  ;;  %6094 = vrot.lane.b32.xlu1 %v11633_v16, %s12973_s1  ;;  %v6085_v16 = vpop.permute.xlu1 %6084  ;;  %v6099_v14 = vsel %vm205_vm0, %v14222_v15, %v6087_v13 }
0x2f4c   :  { %v6275_v23 = vmul.f32 %v14295_v3, %v6267_v7  ;;  %v6098_v25 = vsel %vm205_vm0, %v14220_v18, %v6085_v16 }
0x2f4d   :  { %v12496_v6 = vpack.i.bf16 %v6267_v7, %v6266_v28  ;;  %v6274_v47 = vmul.f32 %v14295_v3, %v6266_v28  ;;  %v14304_v41 = vpack.c.bf16 %v6267_v7, %v6266_v28 }
0x2f4e   :  { %v6279_v15 = vsel %vm205_vm0, %v6275_v23, 0.0 }
0x2f4f   :  { %12497 = vrot.lane.b32.xlu0 %v12496_v6, %s12976_s24  ;;  %12235 = vmatpush3.bf16.xpose.msk.msra.mxu1 %vm13311_vm3, %v14304_v41 }
0x2f50   :  { %6397 = vrot.lane.b32.xlu1 %v6274_v47, %s12976_s24 }
0x2f53   :  { %6413 = vrot.lane.b32.xlu0 %v6412_v29, %s12976_s24 }
0x2f56   :  { %11661 = vmatmul.mubr.msk.f32.vlgmr.msra.gmra.mrb[52].mxu1 %vm205_vm0, %v14301_v2 }
0x2f57   :  { %6399 = vrot.lane.b32.xlu0 %v6275_v23, %s12976_s24 }
0x2fb9   :  { %v6093_v53 = vpop.permute.xlu1 %6092 }
0x2fba   :  { %v6100_v26 = vsel %vm959_vm4, %v6098_v25, %v6093_v53 }
0x2fbb   :  { %11646 = vmatprep.mubr.msk.f32.mxu0 %vm962_vm5, %v6100_v26 }
0x2fbd   :  { %v6095_v35 = vpop.permute.xlu1 %6094 }
0x2fbe   :  { %v6101_v7 = vsel %vm959_vm4, %v6099_v14, %v6095_v35  ;;  %v6276_v14 = vsel %vm205_vm0, %v6274_v47, 0.0 }
0x2fbf   :  { %11647 = vmatmul.mubr.msk.f32.vlgmr.msra.gmra.mrb[48].mxu0 %vm962_vm5, %v6101_v7 }
0x2fc0   :  { %11667 = vmatprep.mubr.msk.f32.mxu0 %vm12979_vm2, %v15229_v38 }
0x2fc1   :  { %v12498_v28 = vpop.permute.xlu0 %12497 }
0x2fc2   :  { %v12500_v6 = vunpack.i.h.bf16 %v12498_v28  ;;  %v12499_v18 = vunpack.i.l.bf16 %v12498_v28  ;;  %v6398_v29 = vpop.permute.xlu1 %6397 }
0x2fc3   :  { %v6403_v16 = vsel %vm205_vm0, %v6398_v29, 0.0 }
0x2fc4   :  { %v12237_v25 = vpack.c.bf16 %v12500_v6, %v12499_v18  ;;  %6404 = vadd.xlane.f32.xlu1 %v6403_v16 }
0x2fc5   :  { %v14329_v53 = vpop.permute.xlu0 %6413 }
0x2fc6   :  { %12239 = vmatpush3.bf16.xpose.msk.msra.mxu0 %vm13311_vm3, %v12237_v25  ;;  %12241 = vmatprep.subr.bf16.mxu1 %v12237_v25 }
0x2fc7   :  { %12243 = vmatpush3.bf16.msra.mxu1 %v12237_v25  ;;  %12249 = vmatprep.subr.bf16.mxu0 %v14141_v36 }
0x2fc8   :  { %6280 = vadd.xlane.f32.xlu1 %v6279_v15  ;;  %12245 = vmatprep.subr.bf16.mxu1 %v14304_v41 }
0x2fc9   :  { %v6400_v13 = vpop.permute.xlu0 %6399 }
0x2fca   :  { %v6406_v26 = vsel %vm205_vm0, %v6400_v13, 0.0 }
0x2fcb   :  { %6407 = vadd.xlane.f32.xlu0 %v6406_v26 }
0x2fcd   :  { %11668 = vmatmul.mubr.msk.f32.vlgmr.msra.gmra.mrb[50].mxu0 %vm205_vm0, %v14329_v53 }
0x2fce   :  { %12251 = vmatpush3.bf16.msra.mxu0 %v14141_v36 }
0x2fcf   :  { %6277 = vadd.xlane.f32.xlu0 %v6276_v14 }
0x3029   :  { %v6357_v35 = vpop.f32.mrb[52].mxu1 }
0x302a   :  { %v11662_v7 = vpop.f32.mrb[53].mxu1  ;;  %v6364_v29 = vrot.slane %v6357_v35, %v13307_v59 }
0x3051   :  { %v6405_v6 = vpop.xlane.xlu1 %6404 }
0x3055   :  { %v6281_v16 = vpop.xlane.xlu1 %6280 }
0x3056   :  { %v6366_v15 = vadd.f32 %v6364_v29, %v6281_v16 }
0x3058   :  { %v6408_v18 = vpop.xlane.xlu0 %6407  ;;  %v6368_v45 = vmul.f32 0.2, %v6366_v15 }
0x305a   :  { %v6370_v40 = vmax.f32 %v6366_v15, %v6368_v45 }
0x305c   :  { %v6278_v25 = vpop.xlane.xlu0 %6277 }
0x305d   :  { %v6365_v13 = vadd.f32 %v6364_v29, %v6278_v25 }
0x305f   :  { %v6367_v14 = vmul.f32 0.2, %v6365_v13 }
0x3061   :  { %v6369_v48 = vmax.f32 %v6365_v13, %v6367_v14 }
0x3063   :  { %v6371_v25 = vadd.f32 %v6369_v48, %v13370_v49 }
0x3065   :  { %v6373_v45 = vsel %vm205_vm0, %v6371_v25, -inf }
0x3092   :  { %v14341_v23 = vpop.f32.mrb[48].mxu0 }
0x3093   :  { %v14343_v28 = vpop.f32.mrb[49].mxu0 }
0x30a0   :  { %v6491_v26 = vpop.f32.mrb[50].mxu0 }
0x30a1   :  { %v6498_v47 = vrot.slane %v6491_v26, %v13307_v59  ;;  %v11669_v4 = vpop.f32.mrb[51].mxu0 }
0x30a2   :  { %v6372_v4 = vadd.f32 %v6370_v40, %v13372_v50 }
0x30a3   :  { %v6499_v37 = vadd.f32 %v6498_v47, %v6405_v6  ;;  %v6500_v7 = vadd.f32 %v6498_v47, %v6408_v18 }
0x30a4   :  { %v6376_v6 = vsel %vm205_vm0, %v6372_v4, -inf }
0x30a5   :  { %v6501_v38 = vmul.f32 0.2, %v6499_v37  ;;  %v6502_v30 = vmul.f32 0.2, %v6500_v7 }
0x30a7   :  { %v6503_v11 = vmax.f32 %v6499_v37, %v6501_v38  ;;  %v6504_v32 = vmax.f32 %v6500_v7, %v6502_v30 }
0x30a9   :  { %v6506_v35 = vadd.f32 %v6504_v32, %v13372_v50  ;;  %v6505_v54 = vadd.f32 %v6503_v11, %v13370_v49 }
0x30ab   :  { %v6510_v29 = vsel %vm205_vm0, %v6506_v35, -inf  ;;  %v6507_v16 = vsel %vm205_vm0, %v6505_v54, -inf }
0x30ac   :  { %6511 = vmax.xlane.f32.xlu1 %v6510_v29  ;;  %6508 = vmax.xlane.f32.xlu0 %v6507_v16 }
0x30b0   :  { %6377 = vmax.xlane.f32.xlu1 %v6376_v6  ;;  %6374 = vmax.xlane.f32.xlu0 %v6373_v45 }
0x3139   :  { %v6512_v30 = vpop.xlane.xlu1 %6511  ;;  %v6509_v38 = vpop.xlane.xlu0 %6508 }
0x313a   :  { %v6514_v37 = vsub.f32 %v6506_v35, %v6512_v30  ;;  %v6513_v32 = vsub.f32 %v6505_v54, %v6509_v38 }
0x313c   :  { %v6517_v11 = vmul.f32 1.442695, %v6514_v37  ;;  %v6515_v18 = vmul.f32 1.442695, %v6513_v32  ;;  %v14368_v32 = vld [vmem:[%s15209_s10 + $0x3] ss:$0 sm:$0xff] }
0x313d   :  { %v6378_v15 = vpop.xlane.xlu1 %6377  ;;  %v6375_v13 = vpop.xlane.xlu0 %6374 }
0x313e   :  { %12713 = vpow2.f32 %v6517_v11  ;;  %v6380_v40 = vsub.f32 %v6372_v4, %v6378_v15  ;;  %v6379_v26 = vsub.f32 %v6371_v25, %v6375_v13  ;;  %v15255_v25 = vmov 1   ;;  %v14375_v13 = vld [vmem:[%s15210_s11 + $0x1] ss:$0 sm:$0xff] }
0x313f   :  { %12715 = vpow2.f32 %v6515_v18  ;;  %v5536_v18 = vmul.f32 %v14368_v32, %v14182_v44  ;;  %v14387_v44 = vld [vmem:[%s15209_s10 + $0x5] ss:$0 sm:$0xff] }
0x3140   :  { %v6383_v48 = vmul.f32 1.442695, %v6380_v40  ;;  %v6381_v47 = vmul.f32 1.442695, %v6379_v26  ;;  %v14380_v40 = vld [vmem:[%s15209_s10 + $0x4] ss:$0 sm:$0xff] }
0x3142   :  { %12717 = vpow2.f32 %v6383_v48  ;;  %v5537_v48 = vmul.f32 %v14368_v32, %v14191_v0 }
0x3143   :  { %12719 = vpow2.f32 %v6381_v47 }
0x3144   :  { %v5545_v0 = vadd.f32 %v14375_v13, %v5537_v48 }
0x3148   :  { %v12714_v14 = vpop.eup %12713 }
0x3149   :  { %v12716_v7 = vpop.eup %12715  ;;  %v6522_v29 = vsel %vm205_vm0, %v12714_v14, 0.0 }
0x314a   :  { %6523 = vadd.xlane.f32.xlu1 %v6522_v29  ;;  %v6519_v35 = vsel %vm205_vm0, %v12716_v7, 0.0 }
0x314b   :  { %6520 = vadd.xlane.f32.xlu0 %v6519_v35 }
0x314c   :  { %v12718_v54 = vpop.eup %12717 }
0x314d   :  { %v12720_v16 = vpop.eup %12719  ;;  %v6388_v6 = vsel %vm205_vm0, %v12718_v54, 0.0 }
0x314e   :  { %6389 = vadd.xlane.f32.xlu1 %v6388_v6  ;;  %v6385_v4 = vsel %vm205_vm0, %v12720_v16, 0.0 }
0x314f   :  { %6386 = vadd.xlane.f32.xlu0 %v6385_v4 }
0x315f   :  { %5555 = vperm.xlu1 %12495, %v14166_v51  }
0x3163   :  { %5572 = vperm.xlu1 %12495, %v14211_v24  }
0x3165   :  { %5550 = vperm.xlu0 %12494, %v14168_v55  }
0x3167   :  { %12501 = vset.pattern.permute.xlu1 %v15255_v25 }
0x3169   :  { %5577 = vperm.xlu0 %12494, %v14207_v62  }
0x316d   :  { %12502 = vset.pattern.permute.xlu0 %v15255_v25  ;;  %v5544_v25 = vadd.f32 %v14375_v13, %v5536_v18 }
0x31d7   :  { %v6524_v45 = vpop.xlane.xlu1 %6523 }
0x31d8   :  { %12721 = vrcp.f32 %v6524_v45  ;;  %v6521_v30 = vpop.xlane.xlu0 %6520 }
0x31d9   :  { %12723 = vrcp.f32 %v6521_v30 }
0x31db   :  { %v6390_v38 = vpop.xlane.xlu1 %6389 }
0x31dc   :  { %v6387_v37 = vpop.xlane.xlu0 %6386 }
0x31dd   :  { %12725 = vrcp.f32 %v6387_v37 }
0x31de   :  { %12727 = vrcp.f32 %v6390_v38 }
0x31df   :  { %v5556_v11 = vpop.permute.xlu1 %5555 }
0x31e0   :  { %v5565_v4 = vmul.f32 %v14380_v40, %v5556_v11 }
0x31e2   :  { %v12722_v15 = vpop.eup %12721 }
0x31e3   :  { %v12724_v26 = vpop.eup %12723  ;;  %v6528_v47 = vmul.f32 %v12722_v15, %v12714_v14  ;;  %v5573_v29 = vpop.permute.xlu1 %5572  ;;  %v5567_v15 = vadd.f32 %v5565_v4, %v5545_v0 }
0x31e4   :  { %v5551_v35 = vpop.permute.xlu0 %5550  ;;  %v6527_v6 = vmul.f32 %v12724_v26, %v12716_v7  ;;  %v5586_v14 = vmul.f32 %v14387_v44, %v5573_v29 }
0x31e5   :  { %v5564_v45 = vmul.f32 %v14380_v40, %v5551_v35 }
0x31e6   :  { %11674 = vmatprep.mubr.msk.f32.mxu1 %vm205_vm0, %v6527_v6 }
0x31e7   :  { %v12726_v30 = vpop.eup %12725  ;;  %v5566_v38 = vadd.f32 %v5564_v45, %v5544_v25  ;;  %11675 = vmatmul.mubr.msk.f32.vlgmr.msra.gmra.mrb[54].mxu1 %vm205_vm0, %v6528_v47 }
0x31e8   :  { %12247 = vmatpush3.bf16.msra.mxu1 %v14304_v41  ;;  %v5578_v37 = vpop.permute.xlu0 %5577  ;;  %v6393_v7 = vmul.f32 %v12726_v30, %v12720_v16  ;;  %v12728_v26 = vpop.eup %12727  ;;  %v14405_v41 = vld [vmem:[%s15245_s2] sm:$0xff] }
0x31e9   :  { %v5588_v11 = vadd.f32 %v5586_v14, %v5566_v38  ;;  %v5587_v18 = vmul.f32 %v14387_v44, %v5578_v37  ;;  %v6394_v29 = vmul.f32 %v12728_v26, %v12718_v54 }
0x31ea   :  { %11681 = vmatprep.mubr.msk.f32.mxu1 %vm205_vm0, %v6393_v7 }
0x31eb   :  { %v6183_v35 = vadd.f32 %v14343_v28, %v5588_v11  ;;  %v5589_v6 = vadd.f32 %v5587_v18, %v5567_v15  ;;  %v6698_v15 = vmul.f32 %v14216_v42, %v14122_v1  ;;  %v6697_v11 = vmul.f32 %v14209_v56, %v14122_v1 }
0x31ed   :  { %12729 = vtanh.f32 %v6183_v35  ;;  %v6184_v48 = vadd.f32 %v14341_v23, %v5589_v6 }
0x31ef   :  { %12731 = vtanh.f32 %v6184_v48  ;;  %11682 = vmatmul.mubr.msk.f32.vlgmr.msra.gmra.mrb[54].mxu1 %vm205_vm0, %v6394_v29 }
0x31f0   :  { %11695 = vmatprep.mubr.msk.f32.mxu1 %vm205_vm0, %v14405_v41 }
0x31f7   :  { %v12730_v16 = vpop.eup %12729 }
0x31f8   :  { %v6699_v47 = vmul.f32 %v12730_v16, %v14124_v57 }
0x31f9   :  { %v12732_v28 = vpop.eup %12731 }
0x31fa   :  { %6703 = vrot.lane.b32.xlu1 %v6699_v47, %s12977_s25  ;;  %v6700_v23 = vmul.f32 %v12732_v28, %v14124_v57 }
0x31fc   :  { %6705 = vrot.lane.b32.xlu0 %v6700_v23, %s12977_s25 }
0x326c   :  { %v6704_v7 = vpop.permute.xlu1 %6703 }
0x326d   :  { %v6709_v26 = vadd.f32 %v6704_v7, %v6697_v11 }
0x326e   :  { %v6706_v37 = vpop.permute.xlu0 %6705 }
0x326f   :  { %v6710_v18 = vadd.f32 %v6706_v37, %v6698_v15 }
0x32c2   :  { %v11683_v54 = vpop.f32.mrb[54].mxu1 }
0x32c3   :  { %v6694_v4 = vmul.f32 0.5, %v11683_v54  ;;  %v6684_v25 = vpop.f32.mrb[55].mxu1 }
0x32c4   :  { %v6693_v45 = vmul.f32 0.5, %v6684_v25 }
0x32c5   :  { %12733 = vtanh.f32 %v6694_v4 }
0x32c6   :  { %12735 = vtanh.f32 %v6693_v45 }
0x32cf   :  { %v12734_v30 = vpop.eup %12733 }
0x32d0   :  { %v12736_v0 = vpop.eup %12735  ;;  %v6712_v14 = vmul.f32 %v12734_v30, %v14131_v58 }
0x32d1   :  { %v6711_v38 = vmul.f32 %v12736_v0, %v14131_v58 }
0x32d2   :  { %6717 = vrot.lane.b32.xlu0 %v6712_v14, %s12977_s25 }
0x32d3   :  { %6715 = vrot.lane.b32.xlu1 %v6711_v38, %s12977_s25 }
0x3344   :  { %v6718_v35 = vpop.permute.xlu0 %6717 }
0x3345   :  { %v6722_v6 = vadd.f32 %v6718_v35, %v6710_v18  ;;  %v6716_v48 = vpop.permute.xlu1 %6715 }
0x3346   :  { %v6721_v29 = vadd.f32 %v6716_v48, %v6709_v26 }
0x3347   :  { %6727 = vrot.lane.b32.xlu0 %v6722_v6, %s12976_s24 }
0x3348   :  { %6725 = vrot.lane.b32.xlu1 %v6721_v29, %s12976_s24 }
0x334b   :  { %5605 = vperm.xlu0 %12502, %v14115_v46  }
0x334c   :  { %5601 = vperm.xlu1 %12501, %v14098_v27  }
0x33b9   :  { %v6728_v47 = vpop.permute.xlu0 %6727 }
0x33ba   :  { %v6726_v16 = vpop.permute.xlu1 %6725 }
0x33bb   :  { %11688 = vmatprep.mubr.msk.f32.mxu0 %vm205_vm0, %v6726_v16 }
0x33bc   :  { %11689 = vmatmul.mubr.msk.f32.vlgmr.msra.gmra.mrb[52].mxu0 %vm205_vm0, %v6728_v47 }
0x33bd   :  { %11702 = vmatprep.mubr.msk.f32.mxu0 %vm205_vm0, %v14405_v41 }
0x33ca   :  { %v14437_v54 = vpop.permute.xlu0 %5605 }
0x33cb   :  { %v14433_v27 = vpop.permute.xlu1 %5601  ;;  %v5609_v4 = vmul.f32 %v14187_v8, %v14437_v54 }
0x33cc   :  { %v5608_v46 = vmul.f32 %v14187_v8, %v14433_v27 }
0x33cd   :  { %v5611_v45 = vadd.f32 %v14196_v61, %v5609_v4 }
0x33ce   :  { %v5610_v25 = vadd.f32 %v14196_v61, %v5608_v46 }
0x348f   :  { %v11690_v56 = vpop.f32.mrb[52].mxu0 }
0x3490   :  { %v6799_v42 = vpop.f32.mrb[53].mxu0  ;;  %v6823_v23 = vadd.f32 %v11690_v56, %v14172_v52  ;;  %v6809_v0 = vadd.f32 %v11690_v56, %v5611_v45 }
0x3491   :  { %v6822_v28 = vadd.f32 %v6799_v42, %v14172_v52  ;;  %v6808_v30 = vadd.f32 %v6799_v42, %v5610_v25 }
0x3492   :  { %v10715_v38 = vmul.f32 -1.442695, %v6809_v0 }
0x3493   :  { %6826 = vrot.lane.b32.xlu1 %v6822_v28, %s12975_s4  ;;  %v10714_v14 = vmul.f32 -1.442695, %v6808_v30 }
0x3495   :  { %12737 = vpow2.f32 %v10714_v14 }
0x3496   :  { %12739 = vpow2.f32 %v10715_v38 }
0x3497   :  { %6828 = vrot.lane.b32.xlu1 %v6823_v23, %s12975_s4 }
0x349f   :  { %v12738_v37 = vpop.eup %12737 }
0x34a0   :  { %v6816_v7 = vadd.f32 1.0, %v12738_v37  ;;  %v12740_v15 = vpop.eup %12739 }
0x34a1   :  { %v6817_v11 = vadd.f32 1.0, %v12740_v15 }
0x34a2   :  { %12741 = vrcp.f32 %v6816_v7 }
0x34a3   :  { %12743 = vrcp.f32 %v6817_v11 }
0x34ac   :  { %v12742_v18 = vpop.eup %12741 }
0x34ad   :  { %v12744_v8 = vpop.eup %12743  ;;  %v6846_v46 = vsub.f32 1.0, %v12742_v18  ;;  %v6858_v30 = vmul.f32 %v12742_v18, %v6721_v29  ;;  %v15256_v29 = vmov 0.0|0.0  }
0x34ae   :  { %v6847_v38 = vsub.f32 1.0, %v12744_v8  ;;  %v6859_v7 = vmul.f32 %v12744_v8, %v6722_v6  ;;  %v14459_v6 = vld [vmem:[%s15245_s2 + $0x8] sm:$0xff] }
0x3505   :  { %v6827_v26 = vpop.permute.xlu1 %6826 }
0x3506   :  { %v6832_v35 = vmul.f32 %v12742_v18, %v6827_v26 }
0x3508   :  { %6836 = vrot.lane.b32.xlu0 %v6832_v35, %s12973_s1 }
0x3509   :  { %v6829_v48 = vpop.permute.xlu1 %6828 }
0x350a   :  { %v6833_v61 = vmul.f32 %v12744_v8, %v6829_v48  ;;  %v15257_v48 = vmov 0.0  }
0x350c   :  { %6838 = vrot.lane.b32.xlu1 %v6833_v61, %s12973_s1  ;;  %v5641_v61 = vmul.f32 %v14283_v33, %v14437_v54 }
0x357a   :  { %v6837_v16 = vpop.permute.xlu0 %6836 }
0x357b   :  { %v6842_v47 = vadd.f32 %v6837_v16, %v5610_v25 }
0x357d   :  { %12745 = vtanh.f32 %v6842_v47  ;;  %v5640_v47 = vmul.f32 %v14283_v33, %v14433_v27 }
0x357e   :  { %v6839_v56 = vpop.permute.xlu1 %6838 }
0x357f   :  { %v6843_v42 = vadd.f32 %v6839_v56, %v5611_v45 }
0x3581   :  { %12747 = vtanh.f32 %v6843_v42  ;;  %v5643_v42 = vadd.f32 %v14158_v34, %v5641_v61 }
0x3587   :  { %v12746_v28 = vpop.eup %12745 }
0x3588   :  { %6850 = vrot.lane.b32.xlu0 %v12746_v28, %s12976_s24 }
0x358b   :  { %v12748_v23 = vpop.eup %12747 }
0x358c   :  { %6852 = vrot.lane.b32.xlu1 %v12748_v23, %s12976_s24  ;;  %v5642_v23 = vadd.f32 %v5640_v47, %v14160_v17 }
0x35fa   :  { %v6851_v4 = vpop.permute.xlu0 %6850 }
0x35fb   :  { %v6856_v0 = vmul.f32 %v6851_v4, %v6846_v46 }
0x35fd   :  { %v14447_v14 = vadd.f32 %v6858_v30, %v6856_v0 }
0x35fe   :  { %v6853_v37 = vpop.permute.xlu1 %6852 }
0x35ff   :  { %v6857_v25 = vmul.f32 %v6853_v37, %v6847_v38  ;;  %6864 = vrot.lane.b32.xlu0 %v14447_v14, %s12976_s24 }
0x3601   :  { %v14451_v45 = vadd.f32 %v6859_v7, %v6857_v25 }
0x3603   :  { %6866 = vrot.lane.b32.xlu1 %v14451_v45, %s12976_s24 }
0x3671   :  { %v6865_v15 = vpop.permute.xlu0 %6864 }
0x3675   :  { %v6867_v11 = vpop.permute.xlu1 %6866 }
0x3676   :  { %v12252_v26 = vpack.c.bf16 %v6867_v11, %v6865_v15 }
0x3678   :  { %12253 = vmatprep.subr.bf16.mxu1 %v12252_v26 }
0x3679   :  { %12255 = vmatpush3.bf16.msra.mxu1 %v12252_v26 }
0x367a   :  { %12261 = vmatprep.subr.bf16.mxu1 %v14258_v20 }
0x367c   :  { %11696 = vmatmul.mubr.msk.f32.vlgmr.msra.gmra.mrb[56].mxu1 %vm205_vm0, %v14459_v6 }
0x367d   :  { %12263 = vmatpush3.bf16.msra.mxu1 %v14258_v20 }
0x367e   :  { %12265 = vmatprep.subr.bf16.mxu1 %v14263_v39 }
0x3681   :  { %12267 = vmatpush3.bf16.msra.mxu1 %v14263_v39 }
0x3682   :  { %12269 = vmatprep.subr.bf16.mxu1 %v14275_v9 }
0x3685   :  { %12271 = vmatpush3.bf16.msra.mxu1 %v14275_v9 }
0x3686   :  { %12280 = vmatprep.subr.bf16.mxu1 %v15256_v29 }
0x374f   :  { %v11697_v18 = vpop.f32.mrb[56].mxu1 }
0x3750   :  { %7024 = vrot.lane.b32.xlu1 %v11697_v18, %s12977_s25  ;;  %v6936_v35 = vpop.f32.mrb[57].mxu1 }
0x3751   :  { %v12256_v8 = vpack.c.bf16 %v11697_v18, %v6936_v35  ;;  %7022 = vrot.lane.b32.xlu0 %v6936_v35, %s12977_s25 }
0x3753   :  { %12257 = vmatprep.subr.bf16.mxu0 %v12256_v8 }
0x3754   :  { %12259 = vmatpush3.bf16.msra.mxu0 %v12256_v8 }
0x3755   :  { %12273 = vmatprep.subr.bf16.mxu0 %v14236_v12 }
0x3757   :  { %11703 = vmatmul.mubr.msk.f32.vlgmr.msra.gmra.mrb[54].mxu0 %vm205_vm0, %v14459_v6 }
0x3758   :  { %12275 = vmatpush3.bf16.msra.mxu0 %v14236_v12  ;;  %11724 = vmatprep.mubr.msk.f32.mxu0 %vm205_vm0, %v6865_v15 }
0x3759   :  { %12276 = vmatprep.subr.bf16.mxu0 %v15256_v29 }
0x375b   :  { %11725 = vmatmul.mubr.msk.f32.vlgmr.msra.gmra.mrb[56].mxu0 %vm205_vm0, %v6867_v11 }
0x375c   :  { %11731 = vmatprep.mubr.msk.f32.mxu0 %vm12979_vm2, %v15257_v48 }
0x37c2   :  { %v7025_v18 = vpop.permute.xlu1 %7024 }
0x37c3   :  { %v7023_v7 = vpop.permute.xlu0 %7022  ;;  %v7037_v8 = vsel %vm205_vm0, %v6867_v11, %v7025_v18 }
0x37c4   :  { %v7036_v25 = vsel %vm205_vm0, %v6865_v15, %v7023_v7 }
0x382a   :  { %v11704_v16 = vpop.f32.mrb[54].mxu0 }
0x382b   :  { %v7011_v56 = vpop.f32.mrb[55].mxu0 }
0x382c   :  { %7030 = vrot.lane.b32.xlu0 %v7011_v56, %s12973_s1 }
0x382e   :  { %v11726_v28 = vpop.f32.mrb[56].mxu0 }
0x382f   :  { %v7205_v46 = vadd.f32 %v11726_v28, %v5643_v42  ;;  %v7195_v4 = vpop.f32.mrb[57].mxu0 }
0x3830   :  { %v7204_v30 = vadd.f32 %v7195_v4, %v5642_v23  ;;  %7032 = vrot.lane.b32.xlu0 %v11704_v16, %s12973_s1 }
0x3831   :  { %v7207_v0 = vmul.f32 %v14295_v3, %v7205_v46 }
0x3832   :  { %v12503_v38 = vpack.i.bf16 %v7205_v46, %v7204_v30  ;;  %v14489_v37 = vpack.c.bf16 %v7205_v46, %v7204_v30  ;;  %v7206_v33 = vmul.f32 %v14295_v3, %v7204_v30 }
0x3833   :  { %v7211_v46 = vsel %vm205_vm0, %v7207_v0, 0.0 }
0x3834   :  { %7328 = vrot.lane.b32.xlu0 %v7207_v0, %s12976_s24  ;;  %12504 = vrot.lane.b32.xlu1 %v12503_v38, %s12976_s24  ;;  %v7208_v23 = vsel %vm205_vm0, %v7206_v33, 0.0 }
0x3835   :  { %12279 = vmatpush3.bf16.xpose.msk.msra.mxu0 %vm13311_vm3, %v14489_v37 }
0x3838   :  { %7326 = vrot.lane.b32.xlu1 %v7206_v33, %s12976_s24 }
0x383c   :  { %11732 = vmatmul.mubr.msk.f32.vlgmr.msra.gmra.mrb[58].mxu0 %vm205_vm0, %v14301_v2 }
0x389e   :  { %v7031_v26 = vpop.permute.xlu0 %7030 }
0x389f   :  { %v7038_v35 = vsel %vm959_vm4, %v7036_v25, %v7031_v26 }
0x38a0   :  { %11717 = vmatprep.mubr.msk.f32.mxu1 %vm962_vm5, %v7038_v35 }
0x38a2   :  { %v7033_v61 = vpop.permute.xlu0 %7032 }
0x38a3   :  { %v7039_v16 = vsel %vm959_vm4, %v7037_v8, %v7033_v61 }
0x38a4   :  { %11718 = vmatmul.mubr.msk.f32.vlgmr.msra.gmra.mrb[58].mxu1 %vm962_vm5, %v7039_v16 }
0x38a5   :  { %11738 = vmatprep.mubr.msk.f32.mxu1 %vm12979_vm2, %v15257_v48 }
0x38a6   :  { %v7329_v3 = vpop.permute.xlu0 %7328  ;;  %v12505_v2 = vpop.permute.xlu1 %12504 }
0x38a7   :  { %v12507_v47 = vunpack.i.h.bf16 %v12505_v2  ;;  %v12506_v15 = vunpack.i.l.bf16 %v12505_v2  ;;  %v7335_v56 = vsel %vm205_vm0, %v7329_v3, 0.0 }
0x38a8   :  { %7336 = vadd.xlane.f32.xlu0 %v7335_v56 }
0x38a9   :  { %v12281_v42 = vpack.c.bf16 %v12507_v47, %v12506_v15 }
0x38aa   :  { %v7327_v28 = vpop.permute.xlu1 %7326 }
0x38ab   :  { %12283 = vmatpush3.bf16.xpose.msk.msra.mxu1 %vm13311_vm3, %v12281_v42  ;;  %12285 = vmatprep.subr.bf16.mxu0 %v12281_v42  ;;  %v7332_v11 = vsel %vm205_vm0, %v7327_v28, 0.0 }
0x38ac   :  { %12287 = vmatpush3.bf16.msra.mxu0 %v12281_v42  ;;  %7333 = vadd.xlane.f32.xlu1 %v7332_v11 }
0x38ad   :  { %7209 = vadd.xlane.f32.xlu0 %v7208_v23  ;;  %12289 = vmatprep.subr.bf16.mxu0 %v14489_v37 }
0x38ae   :  { %12293 = vmatprep.subr.bf16.mxu1 %v14141_v36 }
0x38b0   :  { %7212 = vadd.xlane.f32.xlu1 %v7211_v46 }
0x38b2   :  { %11739 = vmatmul.mubr.msk.f32.vlgmr.msra.gmra.mrb[60].mxu1 %vm205_vm0, %v14329_v53 }
0x38b3   :  { %12295 = vmatpush3.bf16.msra.mxu1 %v14141_v36 }
0x390f   :  { %v7286_v4 = vpop.f32.mrb[58].mxu0 }
0x3910   :  { %v11733_v30 = vpop.f32.mrb[59].mxu0  ;;  %v7293_v26 = vrot.slane %v7286_v4, %v13307_v59 }
0x3935   :  { %v7337_v33 = vpop.xlane.xlu0 %7336 }
0x3939   :  { %v7334_v25 = vpop.xlane.xlu1 %7333 }
0x393a   :  { %v7210_v18 = vpop.xlane.xlu0 %7209 }
0x393b   :  { %v7294_v8 = vadd.f32 %v7293_v26, %v7210_v18 }
0x393d   :  { %v7213_v35 = vpop.xlane.xlu1 %7212  ;;  %v7296_v2 = vmul.f32 0.2, %v7294_v8 }
0x393e   :  { %v7295_v0 = vadd.f32 %v7293_v26, %v7213_v35 }
0x393f   :  { %v7298_v11 = vmax.f32 %v7294_v8, %v7296_v2 }
0x3940   :  { %v7297_v47 = vmul.f32 0.2, %v7295_v0 }
0x3942   :  { %v7299_v23 = vmax.f32 %v7295_v0, %v7297_v47 }
0x3944   :  { %v7301_v35 = vadd.f32 %v7299_v23, %v13372_v50 }
0x3977   :  { %v14519_v38 = vpop.f32.mrb[58].mxu1 }
0x3978   :  { %v14521_v7 = vpop.f32.mrb[59].mxu1 }
0x3985   :  { %v7412_v61 = vpop.f32.mrb[60].mxu1 }
0x3986   :  { %v7419_v16 = vrot.slane %v7412_v61, %v13307_v59  ;;  %v11740_v3 = vpop.f32.mrb[61].mxu1  ;;  %v7300_v61 = vadd.f32 %v7298_v11, %v13370_v49 }
0x3988   :  { %v7420_v15 = vadd.f32 %v7419_v16, %v7334_v25  ;;  %v7421_v56 = vadd.f32 %v7419_v16, %v7337_v33  ;;  %v7305_v33 = vsel %vm205_vm0, %v7301_v35, -inf  ;;  %v7302_v25 = vsel %vm205_vm0, %v7300_v61, -inf }
0x398a   :  { %v7422_v42 = vmul.f32 0.2, %v7420_v15  ;;  %v7423_v28 = vmul.f32 0.2, %v7421_v56 }
0x398c   :  { %v7424_v46 = vmax.f32 %v7420_v15, %v7422_v42  ;;  %v7425_v30 = vmax.f32 %v7421_v56, %v7423_v28 }
0x398e   :  { %v7427_v4 = vadd.f32 %v7425_v30, %v13372_v50  ;;  %v7426_v43 = vadd.f32 %v7424_v46, %v13370_v49 }
0x3990   :  { %v7431_v26 = vsel %vm205_vm0, %v7427_v4, -inf  ;;  %v7428_v18 = vsel %vm205_vm0, %v7426_v43, -inf }
0x3991   :  { %7432 = vmax.xlane.f32.xlu1 %v7431_v26  ;;  %7429 = vmax.xlane.f32.xlu0 %v7428_v18 }
0x3995   :  { %7306 = vmax.xlane.f32.xlu1 %v7305_v33  ;;  %7303 = vmax.xlane.f32.xlu0 %v7302_v25 }
0x3a1e   :  { %v7433_v8 = vpop.xlane.xlu1 %7432  ;;  %v7430_v0 = vpop.xlane.xlu0 %7429 }
0x3a1f   :  { %v7435_v16 = vsub.f32 %v7427_v4, %v7433_v8  ;;  %v7434_v3 = vsub.f32 %v7426_v43, %v7430_v0 }
0x3a21   :  { %v7438_v2 = vmul.f32 1.442695, %v7435_v16  ;;  %v7436_v47 = vmul.f32 1.442695, %v7434_v3 }
0x3a22   :  { %v7307_v15 = vpop.xlane.xlu1 %7306  ;;  %v7304_v56 = vpop.xlane.xlu0 %7303 }
0x3a23   :  { %12749 = vpow2.f32 %v7438_v2  ;;  %v7309_v42 = vsub.f32 %v7301_v35, %v7307_v15  ;;  %v7308_v28 = vsub.f32 %v7300_v61, %v7304_v56  ;;  %v15258_v61 = vmov 2  }
0x3a24   :  { %12751 = vpow2.f32 %v7436_v47  ;;  %v5612_v2 = vmul.f32 %v14368_v32, %v14433_v27  ;;  %v5613_v56 = vmul.f32 %v14368_v32, %v14437_v54 }
0x3a25   :  { %v7312_v11 = vmul.f32 1.442695, %v7309_v42  ;;  %v7310_v23 = vmul.f32 1.442695, %v7308_v28 }
0x3a26   :  { %v5615_v27 = vadd.f32 %v14375_v13, %v5613_v56 }
0x3a27   :  { %12753 = vpow2.f32 %v7312_v11 }
0x3a28   :  { %12755 = vpow2.f32 %v7310_v23 }
0x3a2d   :  { %v12750_v46 = vpop.eup %12749 }
0x3a2e   :  { %v12752_v30 = vpop.eup %12751  ;;  %v7443_v26 = vsel %vm205_vm0, %v12750_v46, 0.0 }
0x3a2f   :  { %7444 = vadd.xlane.f32.xlu1 %v7443_v26  ;;  %v7440_v4 = vsel %vm205_vm0, %v12752_v30, 0.0 }
0x3a30   :  { %7441 = vadd.xlane.f32.xlu0 %v7440_v4  ;;  %v5614_v4 = vadd.f32 %v14375_v13, %v5612_v2 }
0x3a31   :  { %v12754_v43 = vpop.eup %12753 }
0x3a32   :  { %v12756_v18 = vpop.eup %12755  ;;  %v7317_v33 = vsel %vm205_vm0, %v12754_v43, 0.0 }
0x3a33   :  { %7318 = vadd.xlane.f32.xlu1 %v7317_v33  ;;  %v7314_v35 = vsel %vm205_vm0, %v12756_v18, 0.0 }
0x3a34   :  { %7315 = vadd.xlane.f32.xlu0 %v7314_v35 }
0x3a44   :  { %5621 = vperm.xlu1 %12501, %v14166_v51  }
0x3a48   :  { %5629 = vperm.xlu1 %12501, %v14211_v24  }
0x3a4a   :  { %5617 = vperm.xlu0 %12502, %v14168_v55  }
0x3a4c   :  { %12508 = vset.pattern.permute.xlu1 %v15258_v61 }
0x3a4e   :  { %5633 = vperm.xlu0 %12502, %v14207_v62  }
0x3a52   :  { %12509 = vset.pattern.permute.xlu0 %v15258_v61 }
0x3abc   :  { %v7445_v25 = vpop.xlane.xlu1 %7444 }
0x3abd   :  { %12757 = vrcp.f32 %v7445_v25  ;;  %v7442_v8 = vpop.xlane.xlu0 %7441 }
0x3abe   :  { %12759 = vrcp.f32 %v7442_v8 }
0x3ac0   :  { %v7319_v0 = vpop.xlane.xlu1 %7318 }
0x3ac1   :  { %v7316_v16 = vpop.xlane.xlu0 %7315 }
0x3ac2   :  { %12761 = vrcp.f32 %v7316_v16 }
0x3ac3   :  { %12763 = vrcp.f32 %v7319_v0 }
0x3ac4   :  { %v5622_v3 = vpop.permute.xlu1 %5621 }
0x3ac5   :  { %v5625_v26 = vmul.f32 %v14380_v40, %v5622_v3 }
0x3ac7   :  { %v12758_v47 = vpop.eup %12757 }
0x3ac8   :  { %v12760_v15 = vpop.eup %12759  ;;  %v7449_v42 = vmul.f32 %v12758_v47, %v12750_v46  ;;  %v5630_v28 = vpop.permute.xlu1 %5629  ;;  %v5627_v46 = vadd.f32 %v5625_v26, %v5615_v27  ;;  %v7619_v26 = vmul.f32 %v14451_v45, %v14122_v1 }
0x3ac9   :  { %v5618_v11 = vpop.permute.xlu0 %5617  ;;  %v7448_v23 = vmul.f32 %v12760_v15, %v12752_v30  ;;  %v5636_v61 = vmul.f32 %v14387_v44, %v5630_v28 }
0x3aca   :  { %v5624_v33 = vmul.f32 %v14380_v40, %v5618_v11 }
0x3acb   :  { %11745 = vmatprep.mubr.msk.f32.mxu0 %vm205_vm0, %v7448_v23 }
0x3acc   :  { %v12762_v35 = vpop.eup %12761  ;;  %v5626_v25 = vadd.f32 %v5624_v33, %v5614_v4  ;;  %11746 = vmatmul.mubr.msk.f32.vlgmr.msra.gmra.mrb[60].mxu0 %vm205_vm0, %v7449_v42  ;;  %v7618_v4 = vmul.f32 %v14447_v14, %v14122_v1  ;;  %v14588_v14 = vld [vmem:[%s15244_s21 + $0x10] sm:$0xff] }
0x3acd   :  { %12291 = vmatpush3.bf16.msra.mxu0 %v14489_v37  ;;  %v5634_v32 = vpop.permute.xlu0 %5633  ;;  %v7322_v54 = vmul.f32 %v12762_v35, %v12756_v18  ;;  %v12764_v0 = vpop.eup %12763 }
0x3ace   :  { %v5638_v30 = vadd.f32 %v5636_v61, %v5626_v25  ;;  %v5637_v8 = vmul.f32 %v14387_v44, %v5634_v32  ;;  %v7323_v3 = vmul.f32 %v12764_v0, %v12754_v43 }
0x3acf   :  { %11752 = vmatprep.mubr.msk.f32.mxu0 %vm205_vm0, %v7322_v54  ;;  %v14582_v54 = vld [vmem:[%s15244_s21 + $0x18] sm:$0xff] }
0x3ad0   :  { %v7121_v40 = vadd.f32 %v14521_v7, %v5638_v30  ;;  %v5639_v16 = vadd.f32 %v5637_v8, %v5627_v46 }
0x3ad2   :  { %12765 = vtanh.f32 %v7121_v40  ;;  %v7122_v13 = vadd.f32 %v14519_v38, %v5639_v16 }
0x3ad4   :  { %12767 = vtanh.f32 %v7122_v13  ;;  %11753 = vmatmul.mubr.msk.f32.vlgmr.msra.gmra.mrb[60].mxu0 %vm205_vm0, %v7323_v3  ;;  %v14604_v13 = vld [vmem:[%s15206_s7 + $0x1] ss:$0 sm:$0xff] }
0x3ad5   :  { %11766 = vmatprep.mubr.msk.f32.mxu0 %vm205_vm0, %v14405_v41 }
0x3adc   :  { %v12766_v37 = vpop.eup %12765 }
0x3add   :  { %v7620_v18 = vmul.f32 %v12766_v37, %v14124_v57 }
0x3ade   :  { %v12768_v44 = vpop.eup %12767 }
0x3adf   :  { %7624 = vrot.lane.b32.xlu1 %v7620_v18, %s12977_s25  ;;  %v7621_v2 = vmul.f32 %v12768_v44, %v14124_v57  ;;  %v14615_v18 = vld [vmem:[%s15207_s8 + $0x1] ss:$0 sm:$0xff] }
0x3ae1   :  { %7626 = vrot.lane.b32.xlu0 %v7621_v2, %s12977_s25 }
0x3b51   :  { %v7625_v23 = vpop.permute.xlu1 %7624 }
0x3b52   :  { %v7630_v35 = vadd.f32 %v7625_v23, %v7618_v4 }
0x3b53   :  { %v7627_v11 = vpop.permute.xlu0 %7626 }
0x3b54   :  { %v7631_v33 = vadd.f32 %v7627_v11, %v7619_v26 }
0x3ba7   :  { %v11754_v7 = vpop.f32.mrb[60].mxu0 }
0x3ba8   :  { %v7615_v47 = vmul.f32 0.5, %v11754_v7  ;;  %v7605_v38 = vpop.f32.mrb[61].mxu0 }
0x3ba9   :  { %v7614_v43 = vmul.f32 0.5, %v7605_v38 }
0x3baa   :  { %12769 = vtanh.f32 %v7615_v47 }
0x3bab   :  { %12771 = vtanh.f32 %v7614_v43 }
0x3bb4   :  { %v12770_v15 = vpop.eup %12769 }
0x3bb5   :  { %v12772_v56 = vpop.eup %12771  ;;  %v7633_v42 = vmul.f32 %v12770_v15, %v14131_v58 }
0x3bb6   :  { %v7632_v28 = vmul.f32 %v12772_v56, %v14131_v58 }
0x3bb7   :  { %7638 = vrot.lane.b32.xlu0 %v7633_v42, %s12977_s25 }
0x3bb8   :  { %7636 = vrot.lane.b32.xlu1 %v7632_v28, %s12977_s25 }
0x3c29   :  { %v7639_v27 = vpop.permute.xlu0 %7638 }
0x3c2a   :  { %v14574_v61 = vadd.f32 %v7639_v27, %v7631_v33  ;;  %v7637_v25 = vpop.permute.xlu1 %7636 }
0x3c2b   :  { %v7642_v32 = vadd.f32 %v7637_v25, %v7630_v35 }
0x3c2c   :  { %7648 = vrot.lane.b32.xlu0 %v14574_v61, %s12976_s24 }
0x3c2d   :  { %7646 = vrot.lane.b32.xlu1 %v7642_v32, %s12976_s24 }
0x3c30   :  { %5649 = vperm.xlu0 %12509, %v14582_v54  }
0x3c31   :  { %5645 = vperm.xlu1 %12508, %v14588_v14  }
0x3c9e   :  { %v7649_v46 = vpop.permute.xlu0 %7648 }
0x3c9f   :  { %v7647_v45 = vpop.permute.xlu1 %7646 }
0x3ca0   :  { %11759 = vmatprep.mubr.msk.f32.mxu1 %vm205_vm0, %v7647_v45 }
0x3ca1   :  { %11760 = vmatmul.mubr.msk.f32.vlgmr.msra.gmra.mrb[62].mxu1 %vm205_vm0, %v7649_v46 }
0x3ca2   :  { %11773 = vmatprep.mubr.msk.f32.mxu1 %vm205_vm0, %v14405_v41 }
0x3caf   :  { %v14608_v3 = vpop.permute.xlu0 %5649 }
0x3cb0   :  { %v14599_v16 = vpop.permute.xlu1 %5645  ;;  %v5653_v37 = vmul.f32 %v14604_v13, %v14608_v3 }
0x3cb1   :  { %v5652_v41 = vmul.f32 %v14604_v13, %v14599_v16 }
0x3cb2   :  { %v5655_v2 = vadd.f32 %v14615_v18, %v5653_v37 }
0x3cb3   :  { %v5654_v44 = vadd.f32 %v14615_v18, %v5652_v41 }
0x3d74   :  { %v11761_v30 = vpop.f32.mrb[62].mxu1 }
0x3d75   :  { %v7720_v8 = vpop.f32.mrb[63].mxu1  ;;  %v7744_v40 = vadd.f32 %v11761_v30, %v14172_v52  ;;  %v7730_v47 = vadd.f32 %v11761_v30, %v5655_v2 }
0x3d76   :  { %v7743_v0 = vadd.f32 %v7720_v8, %v14172_v52  ;;  %v7729_v7 = vadd.f32 %v7720_v8, %v5654_v44 }
0x3d77   :  { %v10737_v43 = vmul.f32 -1.442695, %v7730_v47 }
0x3d78   :  { %7747 = vrot.lane.b32.xlu1 %v7743_v0, %s12975_s4  ;;  %v10736_v38 = vmul.f32 -1.442695, %v7729_v7 }
0x3d7a   :  { %12773 = vpow2.f32 %v10736_v38 }
0x3d7b   :  { %12775 = vpow2.f32 %v10737_v43 }
0x3d7c   :  { %7749 = vrot.lane.b32.xlu1 %v7744_v40, %s12975_s4 }
0x3d84   :  { %v12774_v15 = vpop.eup %12773 }
0x3d85   :  { %v7737_v56 = vadd.f32 1.0, %v12774_v15  ;;  %v12776_v42 = vpop.eup %12775 }
0x3d86   :  { %v7738_v28 = vadd.f32 1.0, %v12776_v42 }
0x3d87   :  { %12777 = vrcp.f32 %v7737_v56 }
0x3d88   :  { %12779 = vrcp.f32 %v7738_v28 }
0x3d91   :  { %v12778_v11 = vpop.eup %12777 }
0x3d92   :  { %v12780_v4 = vpop.eup %12779  ;;  %v7767_v0 = vsub.f32 1.0, %v12778_v11  ;;  %v7779_v41 = vmul.f32 %v12778_v11, %v7642_v32 }
0x3d93   :  { %v7768_v47 = vsub.f32 1.0, %v12780_v4 }
0x3dea   :  { %v7748_v23 = vpop.permute.xlu1 %7747 }
0x3deb   :  { %v7753_v26 = vmul.f32 %v12778_v11, %v7748_v23  ;;  %v14655_v11 = vld [vmem:[%s15213_s14 + $0x1] ss:$0 sm:$0xff] }
0x3dec   :  { %v5685_v23 = vmul.f32 %v14655_v11, %v14608_v3 }
0x3ded   :  { %7757 = vrot.lane.b32.xlu0 %v7753_v26, %s12973_s1  ;;  %v5684_v26 = vmul.f32 %v14655_v11, %v14599_v16 }
0x3dee   :  { %v7750_v33 = vpop.permute.xlu1 %7749 }
0x3def   :  { %v7754_v35 = vmul.f32 %v12780_v4, %v7750_v33  ;;  %v5687_v33 = vadd.f32 %v14158_v34, %v5685_v23 }
0x3df1   :  { %7759 = vrot.lane.b32.xlu1 %v7754_v35, %s12973_s1 }
0x3e5f   :  { %v7758_v27 = vpop.permute.xlu0 %7757 }
0x3e60   :  { %v7763_v25 = vadd.f32 %v7758_v27, %v5654_v44  ;;  %v7780_v44 = vmul.f32 %v12780_v4, %v14574_v61  ;;  %v5686_v27 = vadd.f32 %v5684_v26, %v14160_v17 }
0x3e62   :  { %12781 = vtanh.f32 %v7763_v25 }
0x3e63   :  { %v7760_v45 = vpop.permute.xlu1 %7759 }
0x3e64   :  { %v7764_v46 = vadd.f32 %v7760_v45, %v5655_v2 }
0x3e66   :  { %12783 = vtanh.f32 %v7764_v46 }
0x3e6c   :  { %v12782_v30 = vpop.eup %12781 }
0x3e6d   :  { %7771 = vrot.lane.b32.xlu0 %v12782_v30, %s12976_s24  ;;  %v14668_v30 = vld [vmem:[%s15215_s16 + $0x1] ss:$0 sm:$0xff] }
0x3e70   :  { %v12784_v8 = vpop.eup %12783 }
0x3e71   :  { %7773 = vrot.lane.b32.xlu1 %v12784_v8, %s12976_s24 }
0x3edf   :  { %v7772_v40 = vpop.permute.xlu0 %7771 }
0x3ee0   :  { %v7777_v37 = vmul.f32 %v7772_v40, %v7767_v0 }
0x3ee2   :  { %v14623_v7 = vadd.f32 %v7779_v41, %v7777_v37  ;;  %v14683_v37 = vld [vmem:[%s15216_s17 + $0x1] sm:$0x1] }
0x3ee3   :  { %v7774_v38 = vpop.permute.xlu1 %7773 }
0x3ee4   :  { %v7778_v43 = vmul.f32 %v7774_v38, %v7768_v47  ;;  %7785 = vrot.lane.b32.xlu0 %v14623_v7, %s12976_s24 }
0x3ee6   :  { %v14628_v2 = vadd.f32 %v7780_v44, %v7778_v43 }
0x3ee8   :  { %7787 = vrot.lane.b32.xlu1 %v14628_v2, %s12976_s24 }
0x3f56   :  { %v7786_v15 = vpop.permute.xlu0 %7785 }
0x3f5a   :  { %v7788_v56 = vpop.permute.xlu1 %7787 }
0x3f5b   :  { %v12296_v42 = vpack.c.bf16 %v7788_v56, %v7786_v15 }
0x3f5d   :  { %12297 = vmatprep.subr.bf16.mxu0 %v12296_v42 }
0x3f5e   :  { %12299 = vmatpush3.bf16.msra.mxu0 %v12296_v42 }
0x3f5f   :  { %12305 = vmatprep.subr.bf16.mxu0 %v14258_v20 }
0x3f61   :  { %11767 = vmatmul.mubr.msk.f32.vlgmr.msra.gmra.mrb[62].mxu0 %vm205_vm0, %v14459_v6 }
0x3f62   :  { %12307 = vmatpush3.bf16.msra.mxu0 %v14258_v20 }
0x3f63   :  { %12309 = vmatprep.subr.bf16.mxu0 %v14263_v39 }
0x3f66   :  { %12311 = vmatpush3.bf16.msra.mxu0 %v14263_v39 }
0x3f67   :  { %12313 = vmatprep.subr.bf16.mxu0 %v14275_v9 }
0x3f6a   :  { %12315 = vmatpush3.bf16.msra.mxu0 %v14275_v9 }
0x3f6b   :  { %12324 = vmatprep.subr.bf16.mxu0 %v15256_v29 }
0x4034   :  { %v11768_v61 = vpop.f32.mrb[62].mxu0 }
0x4035   :  { %7945 = vrot.lane.b32.xlu1 %v11768_v61, %s12977_s25  ;;  %v7857_v32 = vpop.f32.mrb[63].mxu0 }
0x4036   :  { %v12300_v28 = vpack.c.bf16 %v11768_v61, %v7857_v32  ;;  %7943 = vrot.lane.b32.xlu0 %v7857_v32, %s12977_s25 }
0x4038   :  { %12301 = vmatprep.subr.bf16.mxu1 %v12300_v28 }
0x4039   :  { %12303 = vmatpush3.bf16.msra.mxu1 %v12300_v28 }
0x403a   :  { %12317 = vmatprep.subr.bf16.mxu1 %v14236_v12 }
0x403c   :  { %11774 = vmatmul.mubr.msk.f32.vlgmr.msra.gmra.mrb[64].mxu1 %vm205_vm0, %v14459_v6 }
0x403d   :  { %12319 = vmatpush3.bf16.msra.mxu1 %v14236_v12  ;;  %11795 = vmatprep.mubr.msk.f32.mxu1 %vm205_vm0, %v7786_v15 }
0x403e   :  { %12320 = vmatprep.subr.bf16.mxu1 %v15256_v29 }
0x4040   :  { %11796 = vmatmul.mubr.msk.f32.vlgmr.msra.gmra.mrb[66].mxu1 %vm205_vm0, %v7788_v56 }
0x4041   :  { %11802 = vmatprep.mubr.msk.f32.mxu1 %vm12979_vm2, %v15257_v48 }
0x40a7   :  { %v7946_v43 = vpop.permute.xlu1 %7945 }
0x40a8   :  { %v7944_v47 = vpop.permute.xlu0 %7943  ;;  %v7958_v61 = vsel %vm205_vm0, %v7788_v56, %v7946_v43 }
0x40a9   :  { %v7957_v38 = vsel %vm205_vm0, %v7786_v15, %v7944_v47 }
0x410f   :  { %v11775_v6 = vpop.f32.mrb[64].mxu1 }
0x4110   :  { %v7932_v4 = vpop.f32.mrb[65].mxu1 }
0x4111   :  { %7951 = vrot.lane.b32.xlu0 %v7932_v4, %s12973_s1 }
0x4113   :  { %v11797_v35 = vpop.f32.mrb[66].mxu1 }
0x4114   :  { %v8126_v25 = vadd.f32 %v11797_v35, %v5687_v33  ;;  %v8116_v45 = vpop.f32.mrb[67].mxu1 }
0x4115   :  { %v8125_v46 = vadd.f32 %v8116_v45, %v5686_v27  ;;  %7953 = vrot.lane.b32.xlu0 %v11775_v6, %s12973_s1 }
0x4116   :  { %v8128_v8 = vmul.f32 %v14668_v30, %v8126_v25 }
0x4117   :  { %v12510_v0 = vpack.i.bf16 %v8126_v25, %v8125_v46  ;;  %v14671_v40 = vpack.c.bf16 %v8126_v25, %v8125_v46  ;;  %v8127_v41 = vmul.f32 %v14668_v30, %v8125_v46 }
0x4118   :  { %v8132_v25 = vsel %vm205_vm0, %v8128_v8, 0.0 }
0x4119   :  { %8249 = vrot.lane.b32.xlu0 %v8128_v8, %s12976_s24  ;;  %12511 = vrot.lane.b32.xlu1 %v12510_v0, %s12976_s24  ;;  %v8129_v27 = vsel %vm205_vm0, %v8127_v41, 0.0 }
0x411a   :  { %12323 = vmatpush3.bf16.xpose.msk.msra.mxu1 %vm13311_vm3, %v14671_v40 }
0x411d   :  { %8247 = vrot.lane.b32.xlu1 %v8127_v41, %s12976_s24 }
0x4121   :  { %11803 = vmatmul.mubr.msk.f32.vlgmr.msra.gmra.mrb[68].mxu1 %vm205_vm0, %v14683_v37 }
0x4183   :  { %v7952_v44 = vpop.permute.xlu0 %7951 }
0x4184   :  { %v7959_v42 = vsel %vm959_vm4, %v7957_v38, %v7952_v44 }
0x4185   :  { %11788 = vmatprep.mubr.msk.f32.mxu0 %vm962_vm5, %v7959_v42 }
0x4187   :  { %v7954_v32 = vpop.permute.xlu0 %7953 }
0x4188   :  { %v7960_v28 = vsel %vm959_vm4, %v7958_v61, %v7954_v32 }
0x4189   :  { %11789 = vmatmul.mubr.msk.f32.vlgmr.msra.gmra.mrb[64].mxu0 %vm962_vm5, %v7960_v28 }
0x418a   :  { %11809 = vmatprep.mubr.msk.f32.mxu0 %vm12979_vm2, %v15257_v48 }
0x418b   :  { %v8250_v23 = vpop.permute.xlu0 %8249  ;;  %v12512_v6 = vpop.permute.xlu1 %12511 }
0x418c   :  { %v12514_v26 = vunpack.i.h.bf16 %v12512_v6  ;;  %v12513_v15 = vunpack.i.l.bf16 %v12512_v6  ;;  %v8256_v4 = vsel %vm205_vm0, %v8250_v23, 0.0 }
0x418d   :  { %8257 = vadd.xlane.f32.xlu0 %v8256_v4 }
0x418e   :  { %v12325_v33 = vpack.c.bf16 %v12514_v26, %v12513_v15 }
0x418f   :  { %v8248_v35 = vpop.permute.xlu1 %8247 }
0x4190   :  { %12327 = vmatpush3.bf16.xpose.msk.msra.mxu0 %vm13311_vm3, %v12325_v33  ;;  %12329 = vmatprep.subr.bf16.mxu1 %v12325_v33  ;;  %v8253_v56 = vsel %vm205_vm0, %v8248_v35, 0.0 }
0x4191   :  { %12331 = vmatpush3.bf16.msra.mxu1 %v12325_v33  ;;  %8254 = vadd.xlane.f32.xlu1 %v8253_v56 }
0x4192   :  { %8130 = vadd.xlane.f32.xlu0 %v8129_v27  ;;  %12333 = vmatprep.subr.bf16.mxu1 %v14671_v40 }
0x4193   :  { %12337 = vmatprep.subr.bf16.mxu0 %v14141_v36 }
0x4195   :  { %8133 = vadd.xlane.f32.xlu1 %v8132_v25 }
0x4197   :  { %11810 = vmatmul.mubr.msk.f32.vlgmr.msra.gmra.mrb[66].mxu0 %vm205_vm0, %v14329_v53 }
0x4198   :  { %12339 = vmatpush3.bf16.msra.mxu0 %v14141_v36 }
0x41f4   :  { %v8207_v45 = vpop.f32.mrb[68].mxu1 }
0x41f5   :  { %v11804_v46 = vpop.f32.mrb[69].mxu1  ;;  %v8214_v44 = vrot.slane %v8207_v45, %v13307_v59 }
0x421a   :  { %v8258_v41 = vpop.xlane.xlu0 %8257 }
0x421e   :  { %v8255_v38 = vpop.xlane.xlu1 %8254 }
0x421f   :  { %v8131_v43 = vpop.xlane.xlu0 %8130 }
0x4220   :  { %v8215_v61 = vadd.f32 %v8214_v44, %v8131_v43 }
0x4222   :  { %v8134_v42 = vpop.xlane.xlu1 %8133  ;;  %v8217_v6 = vmul.f32 0.2, %v8215_v61 }
0x4223   :  { %v8216_v8 = vadd.f32 %v8214_v44, %v8134_v42 }
0x4224   :  { %v8219_v56 = vmax.f32 %v8215_v61, %v8217_v6 }
0x4225   :  { %v8218_v26 = vmul.f32 0.2, %v8216_v8 }
0x4227   :  { %v8220_v27 = vmax.f32 %v8216_v8, %v8218_v26 }
0x4229   :  { %v8222_v42 = vadd.f32 %v8220_v27, %v13372_v50 }
0x425c   :  { %v14706_v0 = vpop.f32.mrb[64].mxu0 }
0x425d   :  { %v14708_v47 = vpop.f32.mrb[65].mxu0 }
0x426a   :  { %v8333_v32 = vpop.f32.mrb[66].mxu0 }
0x426b   :  { %v8340_v28 = vrot.slane %v8333_v32, %v13307_v59  ;;  %v11811_v23 = vpop.f32.mrb[67].mxu0  ;;  %v8221_v32 = vadd.f32 %v8219_v56, %v13370_v49 }
0x426d   :  { %v8341_v15 = vadd.f32 %v8340_v28, %v8255_v38  ;;  %v8342_v4 = vadd.f32 %v8340_v28, %v8258_v41  ;;  %v8226_v41 = vsel %vm205_vm0, %v8222_v42, -inf  ;;  %v8223_v38 = vsel %vm205_vm0, %v8221_v32, -inf }
0x426f   :  { %v8343_v33 = vmul.f32 0.2, %v8341_v15  ;;  %v8344_v35 = vmul.f32 0.2, %v8342_v4 }
0x4271   :  { %v8345_v25 = vmax.f32 %v8341_v15, %v8343_v33  ;;  %v8346_v46 = vmax.f32 %v8342_v4, %v8344_v35 }
0x4273   :  { %v8348_v45 = vadd.f32 %v8346_v46, %v13372_v50  ;;  %v8347_v31 = vadd.f32 %v8345_v25, %v13370_v49 }
0x4275   :  { %v8352_v44 = vsel %vm205_vm0, %v8348_v45, -inf  ;;  %v8349_v43 = vsel %vm205_vm0, %v8347_v31, -inf }
0x4276   :  { %8353 = vmax.xlane.f32.xlu1 %v8352_v44  ;;  %8350 = vmax.xlane.f32.xlu0 %v8349_v43 }
0x427a   :  { %8227 = vmax.xlane.f32.xlu1 %v8226_v41  ;;  %8224 = vmax.xlane.f32.xlu0 %v8223_v38 }
0x4303   :  { %v8354_v61 = vpop.xlane.xlu1 %8353  ;;  %v8351_v8 = vpop.xlane.xlu0 %8350 }
0x4304   :  { %v8356_v28 = vsub.f32 %v8348_v45, %v8354_v61  ;;  %v8355_v23 = vsub.f32 %v8347_v31, %v8351_v8 }
0x4306   :  { %v8359_v6 = vmul.f32 1.442695, %v8356_v28  ;;  %v8357_v26 = vmul.f32 1.442695, %v8355_v23 }
0x4307   :  { %v8228_v15 = vpop.xlane.xlu1 %8227  ;;  %v8225_v4 = vpop.xlane.xlu0 %8224 }
0x4308   :  { %12785 = vpow2.f32 %v8359_v6  ;;  %v8230_v33 = vsub.f32 %v8222_v42, %v8228_v15  ;;  %v8229_v35 = vsub.f32 %v8221_v32, %v8225_v4  ;;  %v15259_v32 = vmov 3   ;;  %v14733_v6 = vld [vmem:[%s15209_s10 + $0x3] ss:$0 sm:$0xff] }
0x4309   :  { %12787 = vpow2.f32 %v8357_v26  ;;  %v5656_v26 = vmul.f32 %v14733_v6, %v14599_v16  ;;  %v14748_v16 = vld [vmem:[%s15210_s11 + $0x1] ss:$0 sm:$0xff] }
0x430a   :  { %v8233_v56 = vmul.f32 1.442695, %v8230_v33  ;;  %v8231_v27 = vmul.f32 1.442695, %v8229_v35  ;;  %v5657_v33 = vmul.f32 %v14733_v6, %v14608_v3 }
0x430c   :  { %12789 = vpow2.f32 %v8233_v56 }
0x430d   :  { %12791 = vpow2.f32 %v8231_v27 }
0x4312   :  { %v12786_v25 = vpop.eup %12785 }
0x4313   :  { %v12788_v46 = vpop.eup %12787  ;;  %v8364_v44 = vsel %vm205_vm0, %v12786_v25, 0.0 }
0x4314   :  { %8365 = vadd.xlane.f32.xlu1 %v8364_v44  ;;  %v8361_v45 = vsel %vm205_vm0, %v12788_v46, 0.0 }
0x4315   :  { %8362 = vadd.xlane.f32.xlu0 %v8361_v45  ;;  %v14742_v45 = vld [vmem:[%s15209_s10 + $0x4] ss:$0 sm:$0xff] }
0x4316   :  { %v12790_v31 = vpop.eup %12789 }
0x4317   :  { %v12792_v43 = vpop.eup %12791  ;;  %v8238_v41 = vsel %vm205_vm0, %v12790_v31, 0.0 }
0x4318   :  { %8239 = vadd.xlane.f32.xlu1 %v8238_v41  ;;  %v8235_v42 = vsel %vm205_vm0, %v12792_v43, 0.0 }
0x4319   :  { %8236 = vadd.xlane.f32.xlu0 %v8235_v42  ;;  %v5658_v42 = vadd.f32 %v14748_v16, %v5656_v26 }
0x4329   :  { %5665 = vperm.xlu1 %12508, %v14166_v51  }
0x432d   :  { %5673 = vperm.xlu1 %12508, %v14211_v24  }
0x432f   :  { %5661 = vperm.xlu0 %12509, %v14168_v55  }
0x4331   :  { %12515 = vset.pattern.permute.xlu1 %v15259_v32 }
0x4333   :  { %5677 = vperm.xlu0 %12509, %v14207_v62  }
0x4337   :  { %12516 = vset.pattern.permute.xlu0 %v15259_v32  ;;  %v14757_v32 = vld [vmem:[%s15209_s10 + $0x5] ss:$0 sm:$0xff] }
0x43a1   :  { %v8366_v38 = vpop.xlane.xlu1 %8365 }
0x43a2   :  { %12793 = vrcp.f32 %v8366_v38  ;;  %v8363_v61 = vpop.xlane.xlu0 %8362 }
0x43a3   :  { %12795 = vrcp.f32 %v8363_v61 }
0x43a5   :  { %v8240_v8 = vpop.xlane.xlu1 %8239 }
0x43a6   :  { %v8237_v28 = vpop.xlane.xlu0 %8236 }
0x43a7   :  { %12797 = vrcp.f32 %v8237_v28 }
0x43a8   :  { %12799 = vrcp.f32 %v8240_v8 }
0x43a9   :  { %v5666_v23 = vpop.permute.xlu1 %5665 }
0x43aa   :  { %v5669_v41 = vmul.f32 %v14742_v45, %v5666_v23 }
0x43ac   :  { %v12794_v15 = vpop.eup %12793 }
0x43ad   :  { %v12796_v4 = vpop.eup %12795  ;;  %v8370_v35 = vmul.f32 %v12794_v15, %v12786_v25  ;;  %v5674_v56 = vpop.permute.xlu1 %5673 }
0x43ae   :  { %v5662_v27 = vpop.permute.xlu0 %5661  ;;  %v8369_v44 = vmul.f32 %v12796_v4, %v12788_v46  ;;  %v5659_v46 = vadd.f32 %v14748_v16, %v5657_v33  ;;  %v5680_v38 = vmul.f32 %v14757_v32, %v5674_v56 }
0x43af   :  { %v5668_v3 = vmul.f32 %v14742_v45, %v5662_v27 }
0x43b0   :  { %11816 = vmatprep.mubr.msk.f32.mxu1 %vm205_vm0, %v8369_v44  ;;  %v5671_v23 = vadd.f32 %v5669_v41, %v5659_v46 }
0x43b1   :  { %v12798_v25 = vpop.eup %12797  ;;  %v5670_v61 = vadd.f32 %v5668_v3, %v5658_v42  ;;  %11817 = vmatmul.mubr.msk.f32.vlgmr.msra.gmra.mrb[70].mxu1 %vm205_vm0, %v8370_v35 }
0x43b2   :  { %12335 = vmatpush3.bf16.msra.mxu1 %v14671_v40  ;;  %v5678_v8 = vpop.permute.xlu0 %5677  ;;  %v8243_v28 = vmul.f32 %v12798_v25, %v12792_v43  ;;  %v12800_v4 = vpop.eup %12799  ;;  %v14770_v40 = vld [vmem:[%s15245_s2] sm:$0xff] }
0x43b3   :  { %v5682_v26 = vadd.f32 %v5680_v38, %v5670_v61  ;;  %v5681_v15 = vmul.f32 %v14757_v32, %v5678_v8  ;;  %v8244_v44 = vmul.f32 %v12800_v4, %v12790_v31 }
0x43b4   :  { %11823 = vmatprep.mubr.msk.f32.mxu1 %vm205_vm0, %v8243_v28 }
0x43b5   :  { %v8042_v33 = vadd.f32 %v14708_v47, %v5682_v26  ;;  %v5683_v27 = vadd.f32 %v5681_v15, %v5671_v23  ;;  %v8540_v23 = vmul.f32 %v14628_v2, %v14122_v1  ;;  %v8539_v26 = vmul.f32 %v14623_v7, %v14122_v1 }
0x43b7   :  { %12801 = vtanh.f32 %v8042_v33  ;;  %v8043_v56 = vadd.f32 %v14706_v0, %v5683_v27 }
0x43b9   :  { %12803 = vtanh.f32 %v8043_v56  ;;  %11824 = vmatmul.mubr.msk.f32.vlgmr.msra.gmra.mrb[70].mxu1 %vm205_vm0, %v8244_v44 }
0x43ba   :  { %11837 = vmatprep.mubr.msk.f32.mxu1 %vm205_vm0, %v14770_v40 }
0x43c1   :  { %v12802_v43 = vpop.eup %12801 }
0x43c2   :  { %v8541_v35 = vmul.f32 %v12802_v43, %v14124_v57 }
0x43c3   :  { %v12804_v47 = vpop.eup %12803 }
0x43c4   :  { %8545 = vrot.lane.b32.xlu1 %v8541_v35, %s12977_s25  ;;  %v8542_v31 = vmul.f32 %v12804_v47, %v14124_v57 }
0x43c6   :  { %8547 = vrot.lane.b32.xlu0 %v8542_v31, %s12977_s25 }
0x4436   :  { %v8546_v28 = vpop.permute.xlu1 %8545 }
0x4437   :  { %v8551_v4 = vadd.f32 %v8546_v28, %v8539_v26 }
0x4438   :  { %v8548_v8 = vpop.permute.xlu0 %8547 }
0x4439   :  { %v8552_v15 = vadd.f32 %v8548_v8, %v8540_v23 }
0x448c   :  { %v11825_v0 = vpop.f32.mrb[70].mxu1 }
0x448d   :  { %v8536_v41 = vmul.f32 0.5, %v11825_v0  ;;  %v8526_v42 = vpop.f32.mrb[71].mxu1 }
0x448e   :  { %v8535_v3 = vmul.f32 0.5, %v8526_v42 }
0x448f   :  { %12805 = vtanh.f32 %v8536_v41 }
0x4490   :  { %12807 = vtanh.f32 %v8535_v3 }
0x4499   :  { %v12806_v25 = vpop.eup %12805 }
0x449a   :  { %v12808_v46 = vpop.eup %12807  ;;  %v8554_v38 = vmul.f32 %v12806_v25, %v14131_v58 }
0x449b   :  { %v8553_v61 = vmul.f32 %v12808_v46, %v14131_v58 }
0x449c   :  { %8559 = vrot.lane.b32.xlu0 %v8554_v38, %s12977_s25 }
0x449d   :  { %8557 = vrot.lane.b32.xlu1 %v8553_v61, %s12977_s25 }
0x450e   :  { %v8560_v33 = vpop.permute.xlu0 %8559 }
0x450f   :  { %v8564_v27 = vadd.f32 %v8560_v33, %v8552_v15  ;;  %v8558_v44 = vpop.permute.xlu1 %8557 }
0x4510   :  { %v8563_v56 = vadd.f32 %v8558_v44, %v8551_v4 }
0x4511   :  { %8569 = vrot.lane.b32.xlu0 %v8564_v27, %s12976_s24 }
0x4512   :  { %8567 = vrot.lane.b32.xlu1 %v8563_v56, %s12976_s24 }
0x4515   :  { %5693 = vperm.xlu0 %12516, %v14582_v54  }
0x4516   :  { %5689 = vperm.xlu1 %12515, %v14588_v14  }
0x4583   :  { %v8570_v35 = vpop.permute.xlu0 %8569 }
0x4584   :  { %v8568_v43 = vpop.permute.xlu1 %8567 }
0x4585   :  { %11830 = vmatprep.mubr.msk.f32.mxu0 %vm205_vm0, %v8568_v43 }
0x4586   :  { %11831 = vmatmul.mubr.msk.f32.vlgmr.msra.gmra.mrb[68].mxu0 %vm205_vm0, %v8570_v35 }
0x4587   :  { %11844 = vmatprep.mubr.msk.f32.mxu0 %vm205_vm0, %v14770_v40 }
0x4594   :  { %v14802_v0 = vpop.permute.xlu0 %5693 }
0x4595   :  { %v14798_v54 = vpop.permute.xlu1 %5689  ;;  %v5697_v41 = vmul.f32 %v14604_v13, %v14802_v0 }
0x4596   :  { %v5696_v14 = vmul.f32 %v14604_v13, %v14798_v54 }
0x4597   :  { %v5699_v3 = vadd.f32 %v14615_v18, %v5697_v41 }
0x4598   :  { %v5698_v42 = vadd.f32 %v14615_v18, %v5696_v14 }
0x4659   :  { %v11832_v7 = vpop.f32.mrb[68].mxu0 }
0x465a   :  { %v8641_v2 = vpop.f32.mrb[69].mxu0  ;;  %v8665_v31 = vadd.f32 %v11832_v7, %v14172_v52  ;;  %v8651_v46 = vadd.f32 %v11832_v7, %v5699_v3 }
0x465b   :  { %v8664_v47 = vadd.f32 %v8641_v2, %v14172_v52  ;;  %v8650_v25 = vadd.f32 %v8641_v2, %v5698_v42 }
0x465c   :  { %v10759_v61 = vmul.f32 -1.442695, %v8651_v46 }
0x465d   :  { %8668 = vrot.lane.b32.xlu1 %v8664_v47, %s12975_s4  ;;  %v10758_v38 = vmul.f32 -1.442695, %v8650_v25 }
0x465f   :  { %12809 = vpow2.f32 %v10758_v38 }
0x4660   :  { %12811 = vpow2.f32 %v10759_v61 }
0x4661   :  { %8670 = vrot.lane.b32.xlu1 %v8665_v31, %s12975_s4 }
0x4669   :  { %v12810_v8 = vpop.eup %12809 }
0x466a   :  { %v8658_v28 = vadd.f32 1.0, %v12810_v8  ;;  %v12812_v23 = vpop.eup %12811 }
0x466b   :  { %v8659_v26 = vadd.f32 1.0, %v12812_v23 }
0x466c   :  { %12813 = vrcp.f32 %v8658_v28 }
0x466d   :  { %12815 = vrcp.f32 %v8659_v26 }
0x4676   :  { %v12814_v15 = vpop.eup %12813 }
0x4677   :  { %v12816_v13 = vpop.eup %12815  ;;  %v8688_v14 = vsub.f32 1.0, %v12814_v15  ;;  %v8700_v25 = vmul.f32 %v12814_v15, %v8563_v56 }
0x4678   :  { %v8689_v61 = vsub.f32 1.0, %v12816_v13  ;;  %v8701_v28 = vmul.f32 %v12816_v13, %v8564_v27  ;;  %v14824_v27 = vld [vmem:[%s15245_s2 + $0x8] sm:$0xff] }
0x46cf   :  { %v8669_v4 = vpop.permute.xlu1 %8668 }
0x46d0   :  { %v8674_v33 = vmul.f32 %v12814_v15, %v8669_v4 }
0x46d2   :  { %8678 = vrot.lane.b32.xlu0 %v8674_v33, %s12973_s1 }
0x46d3   :  { %v8671_v44 = vpop.permute.xlu1 %8670 }
0x46d4   :  { %v8675_v18 = vmul.f32 %v12816_v13, %v8671_v44  ;;  %v5729_v13 = vmul.f32 %v14655_v11, %v14802_v0  ;;  %v5728_v44 = vmul.f32 %v14655_v11, %v14798_v54 }
0x46d6   :  { %8680 = vrot.lane.b32.xlu1 %v8675_v18, %s12973_s1 }
0x4744   :  { %v8679_v43 = vpop.permute.xlu0 %8678 }
0x4745   :  { %v8684_v35 = vadd.f32 %v8679_v43, %v5698_v42 }
0x4747   :  { %12817 = vtanh.f32 %v8684_v35  ;;  %v5731_v35 = vadd.f32 %v14158_v34, %v5729_v13 }
0x4748   :  { %v8681_v7 = vpop.permute.xlu1 %8680 }
0x4749   :  { %v8685_v2 = vadd.f32 %v8681_v7, %v5699_v3 }
0x474b   :  { %12819 = vtanh.f32 %v8685_v2  ;;  %v5730_v2 = vadd.f32 %v5728_v44, %v14160_v17 }
0x4751   :  { %v12818_v47 = vpop.eup %12817 }
0x4752   :  { %8692 = vrot.lane.b32.xlu0 %v12818_v47, %s12976_s24 }
0x4755   :  { %v12820_v31 = vpop.eup %12819 }
0x4756   :  { %8694 = vrot.lane.b32.xlu1 %v12820_v31, %s12976_s24 }
0x47c4   :  { %v8693_v41 = vpop.permute.xlu0 %8692 }
0x47c5   :  { %v8698_v46 = vmul.f32 %v8693_v41, %v8688_v14 }
0x47c7   :  { %v14812_v38 = vadd.f32 %v8700_v25, %v8698_v46 }
0x47c8   :  { %v8695_v8 = vpop.permute.xlu1 %8694 }
0x47c9   :  { %v8699_v42 = vmul.f32 %v8695_v8, %v8689_v61  ;;  %8706 = vrot.lane.b32.xlu0 %v14812_v38, %s12976_s24 }
0x47cb   :  { %v14816_v3 = vadd.f32 %v8701_v28, %v8699_v42 }
0x47cd   :  { %8708 = vrot.lane.b32.xlu1 %v14816_v3, %s12976_s24 }
0x483b   :  { %v8707_v23 = vpop.permute.xlu0 %8706 }
0x483f   :  { %v8709_v26 = vpop.permute.xlu1 %8708 }
0x4840   :  { %v12340_v4 = vpack.c.bf16 %v8709_v26, %v8707_v23 }
0x4842   :  { %12341 = vmatprep.subr.bf16.mxu1 %v12340_v4 }
0x4843   :  { %12343 = vmatpush3.bf16.msra.mxu1 %v12340_v4 }
0x4844   :  { %12349 = vmatprep.subr.bf16.mxu1 %v14258_v20 }
0x4846   :  { %11838 = vmatmul.mubr.msk.f32.vlgmr.msra.gmra.mrb[72].mxu1 %vm205_vm0, %v14824_v27 }
0x4847   :  { %12351 = vmatpush3.bf16.msra.mxu1 %v14258_v20 }
0x4848   :  { %12353 = vmatprep.subr.bf16.mxu1 %v14263_v39 }
0x484b   :  { %12355 = vmatpush3.bf16.msra.mxu1 %v14263_v39 }
0x484c   :  { %12357 = vmatprep.subr.bf16.mxu1 %v14275_v9 }
0x484f   :  { %12359 = vmatpush3.bf16.msra.mxu1 %v14275_v9 }
0x4850   :  { %12368 = vmatprep.subr.bf16.mxu1 %v15256_v29 }
0x4919   :  { %v11839_v56 = vpop.f32.mrb[72].mxu1 }
0x491a   :  { %8866 = vrot.lane.b32.xlu1 %v11839_v56, %s12977_s25  ;;  %v8778_v15 = vpop.f32.mrb[73].mxu1 }
0x491b   :  { %v12344_v33 = vpack.c.bf16 %v11839_v56, %v8778_v15  ;;  %8864 = vrot.lane.b32.xlu0 %v8778_v15, %s12977_s25 }
0x491d   :  { %12345 = vmatprep.subr.bf16.mxu0 %v12344_v33 }
0x491e   :  { %12347 = vmatpush3.bf16.msra.mxu0 %v12344_v33 }
0x491f   :  { %12361 = vmatprep.subr.bf16.mxu0 %v14236_v12 }
0x4921   :  { %11845 = vmatmul.mubr.msk.f32.vlgmr.msra.gmra.mrb[70].mxu0 %vm205_vm0, %v14824_v27 }
0x4922   :  { %12363 = vmatpush3.bf16.msra.mxu0 %v14236_v12  ;;  %11866 = vmatprep.mubr.msk.f32.mxu0 %vm205_vm0, %v8707_v23 }
0x4923   :  { %12364 = vmatprep.subr.bf16.mxu0 %v15256_v29 }
0x4925   :  { %11867 = vmatmul.mubr.msk.f32.vlgmr.msra.gmra.mrb[72].mxu0 %vm205_vm0, %v8709_v26 }
0x4926   :  { %11873 = vmatprep.mubr.msk.f32.mxu0 %vm12979_vm2, %v15257_v48 }
0x498c   :  { %v8867_v42 = vpop.permute.xlu1 %8866 }
0x498d   :  { %v8865_v61 = vpop.permute.xlu0 %8864  ;;  %v8879_v56 = vsel %vm205_vm0, %v8709_v26, %v8867_v42 }
0x498e   :  { %v8878_v8 = vsel %vm205_vm0, %v8707_v23, %v8865_v61 }
0x49f4   :  { %v11846_v18 = vpop.f32.mrb[70].mxu0 }
0x49f5   :  { %v8853_v43 = vpop.f32.mrb[71].mxu0 }
0x49f6   :  { %8872 = vrot.lane.b32.xlu0 %v8853_v43, %s12973_s1 }
0x49f8   :  { %v11868_v7 = vpop.f32.mrb[72].mxu0 }
0x49f9   :  { %v9047_v47 = vadd.f32 %v11868_v7, %v5731_v35  ;;  %v9037_v31 = vpop.f32.mrb[73].mxu0 }
0x49fa   :  { %v9046_v14 = vadd.f32 %v9037_v31, %v5730_v2  ;;  %8874 = vrot.lane.b32.xlu0 %v11846_v18, %s12973_s1 }
0x49fb   :  { %v9049_v41 = vmul.f32 %v14668_v30, %v9047_v47 }
0x49fc   :  { %v12517_v25 = vpack.i.bf16 %v9047_v47, %v9046_v14  ;;  %v14854_v46 = vpack.c.bf16 %v9047_v47, %v9046_v14  ;;  %v9048_v11 = vmul.f32 %v14668_v30, %v9046_v14 }
0x49fd   :  { %v9053_v7 = vsel %vm205_vm0, %v9049_v41, 0.0 }
0x49fe   :  { %9170 = vrot.lane.b32.xlu0 %v9049_v41, %s12976_s24  ;;  %12518 = vrot.lane.b32.xlu1 %v12517_v25, %s12976_s24  ;;  %v9050_v26 = vsel %vm205_vm0, %v9048_v11, 0.0 }
0x49ff   :  { %12367 = vmatpush3.bf16.xpose.msk.msra.mxu0 %vm13311_vm3, %v14854_v46 }
0x4a02   :  { %9168 = vrot.lane.b32.xlu1 %v9048_v11, %s12976_s24 }
0x4a06   :  { %11874 = vmatmul.mubr.msk.f32.vlgmr.msra.gmra.mrb[74].mxu0 %vm205_vm0, %v14683_v37 }
0x4a68   :  { %v8873_v28 = vpop.permute.xlu0 %8872 }
0x4a69   :  { %v8880_v4 = vsel %vm959_vm4, %v8878_v8, %v8873_v28 }
0x4a6a   :  { %11859 = vmatprep.mubr.msk.f32.mxu1 %vm962_vm5, %v8880_v4 }
0x4a6c   :  { %v8875_v15 = vpop.permute.xlu0 %8874 }
0x4a6d   :  { %v8881_v33 = vsel %vm959_vm4, %v8879_v56, %v8875_v15 }
0x4a6e   :  { %11860 = vmatmul.mubr.msk.f32.vlgmr.msra.gmra.mrb[74].mxu1 %vm962_vm5, %v8881_v33 }
0x4a6f   :  { %11880 = vmatprep.mubr.msk.f32.mxu1 %vm12979_vm2, %v15257_v48 }
0x4a70   :  { %v9171_v30 = vpop.permute.xlu0 %9170  ;;  %v12519_v37 = vpop.permute.xlu1 %12518 }
0x4a71   :  { %v9177_v23 = vsel %vm205_vm0, %v9171_v30, 0.0  ;;  %v12521_v13 = vunpack.i.h.bf16 %v12519_v37  ;;  %v12520_v44 = vunpack.i.l.bf16 %v12519_v37 }
0x4a72   :  { %9178 = vadd.xlane.f32.xlu0 %v9177_v23 }
0x4a73   :  { %v12369_v18 = vpack.c.bf16 %v12521_v13, %v12520_v44 }
0x4a74   :  { %v9169_v43 = vpop.permute.xlu1 %9168 }
0x4a75   :  { %v9174_v35 = vsel %vm205_vm0, %v9169_v43, 0.0  ;;  %12371 = vmatpush3.bf16.xpose.msk.msra.mxu1 %vm13311_vm3, %v12369_v18  ;;  %12373 = vmatprep.subr.bf16.mxu0 %v12369_v18 }
0x4a76   :  { %12375 = vmatpush3.bf16.msra.mxu0 %v12369_v18  ;;  %9175 = vadd.xlane.f32.xlu1 %v9174_v35 }
0x4a77   :  { %9051 = vadd.xlane.f32.xlu0 %v9050_v26  ;;  %12377 = vmatprep.subr.bf16.mxu0 %v14854_v46 }
0x4a78   :  { %12381 = vmatprep.subr.bf16.mxu1 %v14141_v36 }
0x4a7a   :  { %9054 = vadd.xlane.f32.xlu1 %v9053_v7 }
0x4a7c   :  { %11881 = vmatmul.mubr.msk.f32.vlgmr.msra.gmra.mrb[76].mxu1 %vm205_vm0, %v14329_v53 }
0x4a7d   :  { %12383 = vmatpush3.bf16.msra.mxu1 %v14141_v36 }
0x4ad9   :  { %v9128_v2 = vpop.f32.mrb[74].mxu0 }
0x4ada   :  { %v11875_v47 = vpop.f32.mrb[75].mxu0  ;;  %v9135_v61 = vrot.slane %v9128_v2, %v13307_v59 }
0x4aff   :  { %v9179_v25 = vpop.xlane.xlu0 %9178 }
0x4b03   :  { %v9176_v11 = vpop.xlane.xlu1 %9175 }
0x4b04   :  { %v9052_v8 = vpop.xlane.xlu0 %9051 }
0x4b05   :  { %v9136_v42 = vadd.f32 %v9135_v61, %v9052_v8 }
0x4b07   :  { %v9055_v28 = vpop.xlane.xlu1 %9054  ;;  %v9138_v33 = vmul.f32 0.2, %v9136_v42 }
0x4b08   :  { %v9137_v41 = vadd.f32 %v9135_v61, %v9055_v28 }
0x4b09   :  { %v9140_v44 = vmax.f32 %v9136_v42, %v9138_v33 }
0x4b0a   :  { %v9139_v36 = vmul.f32 0.2, %v9137_v41 }
0x4b0b   :  { %v9142_v8 = vadd.f32 %v9140_v44, %v13370_v49 }
0x4b0c   :  { %v9141_v18 = vmax.f32 %v9137_v41, %v9139_v36 }
0x4b0e   :  { %v9143_v61 = vadd.f32 %v9141_v18, %v13372_v50 }
0x4b41   :  { %v14884_v31 = vpop.f32.mrb[74].mxu1 }
0x4b42   :  { %v14886_v14 = vpop.f32.mrb[75].mxu1 }
0x4b4f   :  { %v9254_v4 = vpop.f32.mrb[76].mxu1 }
0x4b50   :  { %v9261_v56 = vrot.slane %v9254_v4, %v13307_v59  ;;  %v11882_v15 = vpop.f32.mrb[77].mxu1 }
0x4b52   :  { %v9262_v30 = vadd.f32 %v9261_v56, %v9176_v11  ;;  %v9263_v37 = vadd.f32 %v9261_v56, %v9179_v25  ;;  %v9147_v25 = vsel %vm205_vm0, %v9143_v61, -inf  ;;  %v9144_v11 = vsel %vm205_vm0, %v9142_v8, -inf }
0x4b54   :  { %v9264_v23 = vmul.f32 0.2, %v9262_v30  ;;  %v9265_v13 = vmul.f32 0.2, %v9263_v37 }
0x4b56   :  { %v9266_v43 = vmax.f32 %v9262_v30, %v9264_v23  ;;  %v9267_v35 = vmax.f32 %v9263_v37, %v9265_v13 }
0x4b58   :  { %v9269_v26 = vadd.f32 %v9267_v35, %v13372_v50  ;;  %v9268_v7 = vadd.f32 %v9266_v43, %v13370_v49 }
0x4b5a   :  { %v9273_v2 = vsel %vm205_vm0, %v9269_v26, -inf  ;;  %v9270_v47 = vsel %vm205_vm0, %v9268_v7, -inf }
0x4b5b   :  { %9274 = vmax.xlane.f32.xlu1 %v9273_v2  ;;  %9271 = vmax.xlane.f32.xlu0 %v9270_v47 }
0x4b5f   :  { %9148 = vmax.xlane.f32.xlu1 %v9147_v25  ;;  %9145 = vmax.xlane.f32.xlu0 %v9144_v11 }
0x4be8   :  { %v9275_v28 = vpop.xlane.xlu1 %9274  ;;  %v9272_v42 = vpop.xlane.xlu0 %9271 }
0x4be9   :  { %v9277_v41 = vsub.f32 %v9269_v26, %v9275_v28  ;;  %v9276_v4 = vsub.f32 %v9268_v7, %v9272_v42 }
0x4beb   :  { %v9280_v56 = vmul.f32 1.442695, %v9277_v41  ;;  %v9278_v15 = vmul.f32 1.442695, %v9276_v4  ;;  %v5700_v41 = vmul.f32 %v14733_v6, %v14798_v54 }
0x4bec   :  { %v9149_v33 = vpop.xlane.xlu1 %9148  ;;  %v9146_v36 = vpop.xlane.xlu0 %9145 }
0x4bed   :  { %12821 = vpow2.f32 %v9280_v56  ;;  %v9151_v30 = vsub.f32 %v9143_v61, %v9149_v33  ;;  %v9150_v37 = vsub.f32 %v9142_v8, %v9146_v36  ;;  %v15260_v61 = vmov 4  }
0x4bee   :  { %12823 = vpow2.f32 %v9278_v15  ;;  %v5701_v15 = vmul.f32 %v14733_v6, %v14802_v0 }
0x4bef   :  { %v9154_v23 = vmul.f32 1.442695, %v9151_v30  ;;  %v9152_v13 = vmul.f32 1.442695, %v9150_v37 }
0x4bf0   :  { %v5703_v54 = vadd.f32 %v14748_v16, %v5701_v15 }
0x4bf1   :  { %12825 = vpow2.f32 %v9154_v23 }
0x4bf2   :  { %12827 = vpow2.f32 %v9152_v13  ;;  %v5702_v13 = vadd.f32 %v14748_v16, %v5700_v41 }
0x4bf7   :  { %v12822_v44 = vpop.eup %12821 }
0x4bf8   :  { %v12824_v18 = vpop.eup %12823  ;;  %v9285_v43 = vsel %vm205_vm0, %v12822_v44, 0.0 }
0x4bf9   :  { %9286 = vadd.xlane.f32.xlu1 %v9285_v43  ;;  %v9282_v35 = vsel %vm205_vm0, %v12824_v18, 0.0 }
0x4bfa   :  { %9283 = vadd.xlane.f32.xlu0 %v9282_v35 }
0x4bfb   :  { %v12826_v26 = vpop.eup %12825 }
0x4bfc   :  { %v12828_v7 = vpop.eup %12827  ;;  %v9159_v2 = vsel %vm205_vm0, %v12826_v26, 0.0 }
0x4bfd   :  { %9160 = vadd.xlane.f32.xlu1 %v9159_v2  ;;  %v9156_v47 = vsel %vm205_vm0, %v12828_v7, 0.0 }
0x4bfe   :  { %9157 = vadd.xlane.f32.xlu0 %v9156_v47 }
0x4c0e   :  { %5709 = vperm.xlu1 %12515, %v14166_v51  }
0x4c12   :  { %5717 = vperm.xlu1 %12515, %v14211_v24  }
0x4c14   :  { %5705 = vperm.xlu0 %12516, %v14168_v55  }
0x4c16   :  { %12522 = vset.pattern.permute.xlu1 %v15260_v61 }
0x4c18   :  { %5721 = vperm.xlu0 %12516, %v14207_v62  }
0x4c1c   :  { %12523 = vset.pattern.permute.xlu0 %v15260_v61 }
0x4c86   :  { %v9287_v8 = vpop.xlane.xlu1 %9286 }
0x4c87   :  { %12829 = vrcp.f32 %v9287_v8  ;;  %v9284_v25 = vpop.xlane.xlu0 %9283 }
0x4c88   :  { %12831 = vrcp.f32 %v9284_v25 }
0x4c8a   :  { %v9161_v11 = vpop.xlane.xlu1 %9160 }
0x4c8b   :  { %v9158_v28 = vpop.xlane.xlu0 %9157 }
0x4c8c   :  { %12833 = vrcp.f32 %v9158_v28 }
0x4c8d   :  { %12835 = vrcp.f32 %v9161_v11 }
0x4c8e   :  { %v5710_v42 = vpop.permute.xlu1 %5709 }
0x4c8f   :  { %v5713_v23 = vmul.f32 %v14742_v45, %v5710_v42 }
0x4c91   :  { %v12830_v4 = vpop.eup %12829 }
0x4c92   :  { %v12832_v56 = vpop.eup %12831  ;;  %v9291_v33 = vmul.f32 %v12830_v4, %v12822_v44  ;;  %v5718_v36 = vpop.permute.xlu1 %5717  ;;  %v5715_v44 = vadd.f32 %v5713_v23, %v5703_v54 }
0x4c93   :  { %v5706_v30 = vpop.permute.xlu0 %5705  ;;  %v9290_v37 = vmul.f32 %v12832_v56, %v12824_v18  ;;  %v5724_v2 = vmul.f32 %v14757_v32, %v5718_v36  ;;  %v9461_v36 = vmul.f32 %v14816_v3, %v14122_v1 }
0x4c94   :  { %v5712_v43 = vmul.f32 %v14742_v45, %v5706_v30  ;;  %v9460_v30 = vmul.f32 %v14812_v38, %v14122_v1  ;;  %v12929_v1 = vld [vmem:[%s15244_s21 + $0x10] sm:$0xff] }
0x4c95   :  { %11887 = vmatprep.mubr.msk.f32.mxu0 %vm205_vm0, %v9290_v37 }
0x4c96   :  { %v12834_v35 = vpop.eup %12833  ;;  %v5714_v47 = vadd.f32 %v5712_v43, %v5702_v13  ;;  %11888 = vmatmul.mubr.msk.f32.vlgmr.msra.gmra.mrb[76].mxu0 %vm205_vm0, %v9291_v33 }
0x4c97   :  { %12379 = vmatpush3.bf16.msra.mxu0 %v14854_v46  ;;  %v5722_v6 = vpop.permute.xlu0 %5721  ;;  %v9164_v0 = vmul.f32 %v12834_v35, %v12828_v7  ;;  %v12836_v8 = vpop.eup %12835 }
0x4c98   :  { %v5726_v18 = vadd.f32 %v5724_v2, %v5714_v47  ;;  %v5725_v61 = vmul.f32 %v14757_v32, %v5722_v6  ;;  %v9165_v16 = vmul.f32 %v12836_v8, %v12826_v26 }
0x4c99   :  { %11894 = vmatprep.mubr.msk.f32.mxu0 %vm205_vm0, %v9164_v0 }
0x4c9a   :  { %v8963_v45 = vadd.f32 %v14886_v14, %v5726_v18  ;;  %v5727_v25 = vadd.f32 %v5725_v61, %v5715_v44  ;;  %v12930_v18 = vld [vmem:[%s15206_s7 + $0x1] ss:$0 sm:$0xff] }
0x4c9c   :  { %12837 = vtanh.f32 %v8963_v45  ;;  %v8964_v11 = vadd.f32 %v14884_v31, %v5727_v25  ;;  %v12931_v45 = vld [vmem:[%s15207_s8 + $0x1] ss:$0 sm:$0xff] }
0x4c9e   :  { %12839 = vtanh.f32 %v8964_v11  ;;  %11895 = vmatmul.mubr.msk.f32.vlgmr.msra.gmra.mrb[76].mxu0 %vm205_vm0, %v9165_v16 }
0x4c9f   :  { %11908 = vmatprep.mubr.msk.f32.mxu0 %vm205_vm0, %v14770_v40 }
0x4ca6   :  { %v12838_v46 = vpop.eup %12837 }
0x4ca7   :  { %v9462_v7 = vmul.f32 %v12838_v46, %v14124_v57 }
0x4ca8   :  { %v12840_v32 = vpop.eup %12839 }
0x4ca9   :  { %9466 = vrot.lane.b32.xlu1 %v9462_v7, %s12977_s25  ;;  %v9463_v28 = vmul.f32 %v12840_v32, %v14124_v57 }
0x4cab   :  { %9468 = vrot.lane.b32.xlu0 %v9463_v28, %s12977_s25 }
0x4d1b   :  { %v9467_v57 = vpop.permute.xlu1 %9466 }
0x4d1c   :  { %v9472_v23 = vadd.f32 %v9467_v57, %v9460_v30 }
0x4d1d   :  { %v9469_v33 = vpop.permute.xlu0 %9468 }
0x4d1e   :  { %v9473_v37 = vadd.f32 %v9469_v33, %v9461_v36 }
0x4d71   :  { %v11896_v14 = vpop.f32.mrb[76].mxu0 }
0x4d72   :  { %v9457_v26 = vmul.f32 0.5, %v11896_v14  ;;  %v9447_v42 = vpop.f32.mrb[77].mxu0 }
0x4d73   :  { %v9456_v31 = vmul.f32 0.5, %v9447_v42 }
0x4d74   :  { %12841 = vtanh.f32 %v9457_v26 }
0x4d75   :  { %12843 = vtanh.f32 %v9456_v31 }
0x4d7e   :  { %v12842_v41 = vpop.eup %12841 }
0x4d7f   :  { %v12844_v4 = vpop.eup %12843  ;;  %v9475_v56 = vmul.f32 %v12842_v41, %v14131_v58 }
0x4d80   :  { %v9474_v15 = vmul.f32 %v12844_v4, %v14131_v58  ;;  %v12928_v58 = vld [vmem:[%s15244_s21 + $0x18] sm:$0xff] }
0x4d81   :  { %9480 = vrot.lane.b32.xlu0 %v9475_v56, %s12977_s25 }
0x4d82   :  { %9478 = vrot.lane.b32.xlu1 %v9474_v15, %s12977_s25 }
0x4df3   :  { %v9481_v13 = vpop.permute.xlu0 %9480 }
0x4df4   :  { %v14939_v43 = vadd.f32 %v9481_v13, %v9473_v37  ;;  %v9479_v35 = vpop.permute.xlu1 %9478 }
0x4df5   :  { %v9484_v54 = vadd.f32 %v9479_v35, %v9472_v23 }
0x4df6   :  { %9490 = vrot.lane.b32.xlu0 %v14939_v43, %s12976_s24 }
0x4df7   :  { %9488 = vrot.lane.b32.xlu1 %v9484_v54, %s12976_s24 }
0x4dfa   :  { %5737 = vperm.xlu0 %12523, %v12928_v58  }
0x4dfb   :  { %5733 = vperm.xlu1 %12522, %v12929_v1  }
0x4e68   :  { %v9491_v3 = vpop.permute.xlu0 %9490 }
0x4e69   :  { %v9489_v38 = vpop.permute.xlu1 %9488 }
0x4e6a   :  { %11901 = vmatprep.mubr.msk.f32.mxu1 %vm205_vm0, %v9489_v38 }
0x4e6b   :  { %11902 = vmatmul.mubr.msk.f32.vlgmr.msra.gmra.mrb[78].mxu1 %vm205_vm0, %v9491_v3 }
0x4e6c   :  { %11915 = vmatprep.mubr.msk.f32.mxu1 %vm205_vm0, %v14770_v40 }
0x4e79   :  { %v14964_v8 = vpop.permute.xlu0 %5737 }
0x4e7a   :  { %v14958_v44 = vpop.permute.xlu1 %5733  ;;  %v5741_v40 = vmul.f32 %v12930_v18, %v14964_v8 }
0x4e7b   :  { %v5740_v61 = vmul.f32 %v12930_v18, %v14958_v44 }
0x4e7d   :  { %v5742_v25 = vadd.f32 %v12931_v45, %v5740_v61 }
0x4f3e   :  { %v11903_v2 = vpop.f32.mrb[78].mxu1 }
0x4f3f   :  { %v9562_v47 = vpop.f32.mrb[79].mxu1  ;;  %v9586_v0 = vadd.f32 %v11903_v2, %v14172_v52 }
0x4f40   :  { %v9585_v6 = vadd.f32 %v9562_v47, %v14172_v52  ;;  %v5743_v52 = vadd.f32 %v12931_v45, %v5741_v40  ;;  %v9571_v16 = vadd.f32 %v9562_v47, %v5742_v25 }
0x4f42   :  { %9589 = vrot.lane.b32.xlu1 %v9585_v6, %s12975_s4  ;;  %v9572_v11 = vadd.f32 %v11903_v2, %v5743_v52  ;;  %v10780_v46 = vmul.f32 -1.442695, %v9571_v16 }
0x4f44   :  { %v10781_v7 = vmul.f32 -1.442695, %v9572_v11  ;;  %12845 = vpow2.f32 %v10780_v46 }
0x4f46   :  { %9591 = vrot.lane.b32.xlu1 %v9586_v0, %s12975_s4  ;;  %12847 = vpow2.f32 %v10781_v7  ;;  %v12933_v7 = vld [vmem:[%s15215_s16 + $0x1] ss:$0 sm:$0xff] }
0x4f4e   :  { %v12846_v32 = vpop.eup %12845 }
0x4f4f   :  { %v9579_v28 = vadd.f32 1.0, %v12846_v32 }
0x4f50   :  { %v12848_v14 = vpop.eup %12847 }
0x4f51   :  { %v9580_v26 = vadd.f32 1.0, %v12848_v14  ;;  %12849 = vrcp.f32 %v9579_v28 }
0x4f53   :  { %12851 = vrcp.f32 %v9580_v26 }
0x4f5b   :  { %v12850_v42 = vpop.eup %12849 }
0x4f5c   :  { %v9609_v13 = vsub.f32 1.0, %v12850_v42  ;;  %v9621_v58 = vmul.f32 %v12850_v42, %v9484_v54 }
0x4f5d   :  { %v12852_v4 = vpop.eup %12851 }
0x4f5e   :  { %v9610_v3 = vsub.f32 1.0, %v12852_v4  ;;  %v9622_v47 = vmul.f32 %v12852_v4, %v14939_v43 }
0x4fb4   :  { %v9590_v31 = vpop.permute.xlu1 %9589 }
0x4fb5   :  { %v9595_v41 = vmul.f32 %v12850_v42, %v9590_v31 }
0x4fb7   :  { %9599 = vrot.lane.b32.xlu0 %v9595_v41, %s12973_s1 }
0x4fb8   :  { %v9592_v56 = vpop.permute.xlu1 %9591 }
0x4fb9   :  { %v9596_v15 = vmul.f32 %v12852_v4, %v9592_v56 }
0x4fbb   :  { %9601 = vrot.lane.b32.xlu1 %v9596_v15, %s12973_s1 }
0x5029   :  { %v9600_v33 = vpop.permute.xlu0 %9599 }
0x502a   :  { %v9605_v57 = vadd.f32 %v9600_v33, %v5742_v25 }
0x502c   :  { %12853 = vtanh.f32 %v9605_v57 }
0x502d   :  { %v9602_v36 = vpop.permute.xlu1 %9601 }
0x502e   :  { %v9606_v30 = vadd.f32 %v9602_v36, %v5743_v52 }
0x5030   :  { %12855 = vtanh.f32 %v9606_v30 }
0x5036   :  { %v12854_v37 = vpop.eup %12853 }
0x5037   :  { %9613 = vrot.lane.b32.xlu0 %v12854_v37, %s12976_s24 }
0x503a   :  { %v12856_v23 = vpop.eup %12855 }
0x503b   :  { %9615 = vrot.lane.b32.xlu1 %v12856_v23, %s12976_s24 }
0x50a9   :  { %v9614_v35 = vpop.permute.xlu0 %9613 }
0x50aa   :  { %v9619_v1 = vmul.f32 %v9614_v35, %v9609_v13 }
0x50ac   :  { %v14974_v38 = vadd.f32 %v9621_v58, %v9619_v1 }
0x50ad   :  { %v9616_v2 = vpop.permute.xlu1 %9615 }
0x50ae   :  { %v9620_v6 = vmul.f32 %v9616_v2, %v9610_v3  ;;  %9627 = vrot.lane.b32.xlu0 %v14974_v38, %s12976_s24 }
0x50b0   :  { %v14979_v0 = vadd.f32 %v9622_v47, %v9620_v6 }
0x50b2   :  { %9629 = vrot.lane.b32.xlu1 %v14979_v0, %s12976_s24 }
0x5120   :  { %v9628_v18 = vpop.permute.xlu0 %9627 }
0x5124   :  { %v9630_v61 = vpop.permute.xlu1 %9629 }
0x5125   :  { %v12384_v40 = vpack.c.bf16 %v9630_v61, %v9628_v18 }
0x5127   :  { %12385 = vmatprep.subr.bf16.mxu0 %v12384_v40 }
0x5128   :  { %12387 = vmatpush3.bf16.msra.mxu0 %v12384_v40 }
0x5129   :  { %12393 = vmatprep.subr.bf16.mxu0 %v14258_v20 }
0x512b   :  { %11909 = vmatmul.mubr.msk.f32.vlgmr.msra.gmra.mrb[78].mxu0 %vm205_vm0, %v14824_v27 }
0x512c   :  { %12395 = vmatpush3.bf16.msra.mxu0 %v14258_v20  ;;  %v12932_v20 = vld [vmem:[%s15213_s14 + $0x1] ss:$0 sm:$0xff] }
0x512d   :  { %12397 = vmatprep.subr.bf16.mxu0 %v14263_v39 }
0x5130   :  { %12399 = vmatpush3.bf16.msra.mxu0 %v14263_v39  ;;  %v5773_v39 = vmul.f32 %v12932_v20, %v14964_v8 }
0x5131   :  { %12401 = vmatprep.subr.bf16.mxu0 %v14275_v9 }
0x5134   :  { %12403 = vmatpush3.bf16.msra.mxu0 %v14275_v9  ;;  %v5772_v9 = vmul.f32 %v12932_v20, %v14958_v44 }
0x5135   :  { %12412 = vmatprep.subr.bf16.mxu0 %v15256_v29 }
0x5136   :  { %v5774_v52 = vadd.f32 %v5772_v9, %v14160_v17  ;;  %v12934_v17 = vld [vmem:[%s15216_s17 + $0x1] sm:$0x1]  ;;  %s10486_s17 = sld [smem:[#allocation4]] }
0x51fe   :  { %v11910_v43 = vpop.f32.mrb[78].mxu0 }
0x51ff   :  { %9787 = vrot.lane.b32.xlu1 %v11910_v43, %s12977_s25  ;;  %v9699_v54 = vpop.f32.mrb[79].mxu0 }
0x5200   :  { %v12388_v45 = vpack.c.bf16 %v11910_v43, %v9699_v54  ;;  %9785 = vrot.lane.b32.xlu0 %v9699_v54, %s12977_s25 }
0x5202   :  { %12389 = vmatprep.subr.bf16.mxu1 %v12388_v45 }
0x5203   :  { %12391 = vmatpush3.bf16.msra.mxu1 %v12388_v45 }
0x5204   :  { %12405 = vmatprep.subr.bf16.mxu1 %v14236_v12 }
0x5206   :  { %11916 = vmatmul.mubr.msk.f32.vlgmr.msra.gmra.mrb[80].mxu1 %vm205_vm0, %v14824_v27 }
0x5207   :  { %12407 = vmatpush3.bf16.msra.mxu1 %v14236_v12  ;;  %11937 = vmatprep.mubr.msk.f32.mxu1 %vm205_vm0, %v9628_v18  ;;  %v5775_v12 = vadd.f32 %v14158_v34, %v5773_v39 }
0x5208   :  { %12408 = vmatprep.subr.bf16.mxu1 %v15256_v29 }
0x520a   :  { %11938 = vmatmul.mubr.msk.f32.vlgmr.msra.gmra.mrb[82].mxu1 %vm205_vm0, %v9630_v61 }
0x520b   :  { %11944 = vmatprep.mubr.msk.f32.mxu1 %vm12979_vm2, %v15257_v48 }
0x5271   :  { %v9788_v41 = vpop.permute.xlu1 %9787 }
0x5272   :  { %v9786_v26 = vpop.permute.xlu0 %9785  ;;  %v9800_v56 = vsel %vm205_vm0, %v9630_v61, %v9788_v41  ;;  %v12935_v41 = vld [vmem:[%s15209_s10] ss:$0 sm:$0xff] }
0x5273   :  { %v9799_v42 = vsel %vm205_vm0, %v9628_v18, %v9786_v26 }
0x52d9   :  { %v11917_v27 = vpop.f32.mrb[80].mxu1 }
0x52da   :  { %v9774_v25 = vpop.f32.mrb[81].mxu1 }
0x52db   :  { %9793 = vrot.lane.b32.xlu0 %v9774_v25, %s12973_s1 }
0x52dd   :  { %v11939_v29 = vpop.f32.mrb[82].mxu1 }
0x52de   :  { %v9968_v16 = vadd.f32 %v11939_v29, %v5775_v12  ;;  %v9958_v11 = vpop.f32.mrb[83].mxu1 }
0x52df   :  { %v9967_v46 = vadd.f32 %v9958_v11, %v5774_v52  ;;  %9795 = vrot.lane.b32.xlu0 %v11917_v27, %s12973_s1 }
0x52e0   :  { %v9970_v32 = vmul.f32 %v12933_v7, %v9968_v16 }
0x52e1   :  { %v12524_v28 = vpack.i.bf16 %v9968_v16, %v9967_v46  ;;  %v15015_v14 = vpack.c.bf16 %v9968_v16, %v9967_v46  ;;  %v9969_v34 = vmul.f32 %v12933_v7, %v9967_v46 }
0x52e3   :  { %10091 = vrot.lane.b32.xlu0 %v9970_v32, %s12976_s24  ;;  %12525 = vrot.lane.b32.xlu1 %v12524_v28, %s12976_s24  ;;  %v9971_v1 = vsel %vm205_vm0, %v9969_v34, 0.0 }
0x52e4   :  { %12411 = vmatpush3.bf16.xpose.msk.msra.mxu1 %vm13311_vm3, %v15015_v14 }
0x52e7   :  { %10089 = vrot.lane.b32.xlu1 %v9969_v34, %s12976_s24 }
0x52eb   :  { %11945 = vmatmul.mubr.msk.f32.vlgmr.msra.gmra.mrb[84].mxu1 %vm205_vm0, %v12934_v17 }
0x534d   :  { %v9794_v31 = vpop.permute.xlu0 %9793 }
0x534e   :  { %v9801_v4 = vsel %vm959_vm4, %v9799_v42, %v9794_v31 }
0x534f   :  { %11930 = vmatprep.mubr.msk.f32.mxu0 %vm962_vm5, %v9801_v4 }
0x5351   :  { %v9796_v15 = vpop.permute.xlu0 %9795 }
0x5352   :  { %v9802_v33 = vsel %vm959_vm4, %v9800_v56, %v9796_v15  ;;  %v12937_v56 = vld [vmem:[%s15210_s11] ss:$0 sm:$0xff] }
0x5353   :  { %11931 = vmatmul.mubr.msk.f32.vlgmr.msra.gmra.mrb[80].mxu0 %vm962_vm5, %v9802_v33 }
0x5354   :  { %11951 = vmatprep.mubr.msk.f32.mxu0 %vm12979_vm2, %v15257_v48  ;;  %v9974_v48 = vsel %vm205_vm0, %v9970_v32, 0.0 }
0x5355   :  { %v10092_v57 = vpop.permute.xlu0 %10091  ;;  %v12526_v36 = vpop.permute.xlu1 %12525 }
0x5356   :  { %v10098_v30 = vsel %vm205_vm0, %v10092_v57, 0.0  ;;  %v12528_v37 = vunpack.i.h.bf16 %v12526_v36  ;;  %v12527_v23 = vunpack.i.l.bf16 %v12526_v36 }
0x5357   :  { %10099 = vadd.xlane.f32.xlu0 %v10098_v30 }
0x5358   :  { %v12413_v13 = vpack.c.bf16 %v12528_v37, %v12527_v23 }
0x5359   :  { %v10090_v35 = vpop.permute.xlu1 %10089 }
0x535a   :  { %v10095_v58 = vsel %vm205_vm0, %v10090_v35, 0.0  ;;  %12415 = vmatpush3.bf16.xpose.msk.msra.mxu0 %vm13311_vm3, %v12413_v13  ;;  %12417 = vmatprep.subr.bf16.mxu1 %v12413_v13 }
0x535b   :  { %12419 = vmatpush3.bf16.msra.mxu1 %v12413_v13  ;;  %10096 = vadd.xlane.f32.xlu1 %v10095_v58 }
0x535c   :  { %9972 = vadd.xlane.f32.xlu0 %v9971_v1  ;;  %12421 = vmatprep.subr.bf16.mxu1 %v15015_v14 }
0x535f   :  { %9975 = vadd.xlane.f32.xlu1 %v9974_v48 }
0x5361   :  { %11952 = vmatmul.mubr.msk.f32.vlgmr.msra.gmra.mrb[82].mxu0 %vm205_vm0, %v14329_v53 }
0x5372   :  { %608 = vperm.xlu0 %12523, %v13173_v22  }
0x5376   :  { %624 = vperm.xlu0 %12523, %v13216_v63  }
0x537a   :  { %5753 = vperm.xlu0 %12523, %v14166_v51  }
0x53be   :  { %v10049_v60 = vpop.f32.mrb[84].mxu1 }
0x53bf   :  { %v11946_v3 = vpop.f32.mrb[85].mxu1  ;;  %v10056_v61 = vrot.slane %v10049_v60, %v13307_v59 }
0x53c0   :  { %v15085_v3 = vld [vmem:[%s15209_s10 + $0x3] ss:$0 sm:$0xff] }
0x53e4   :  { %v10100_v6 = vpop.xlane.xlu0 %10099 }
0x53e8   :  { %v10097_v18 = vpop.xlane.xlu1 %10096 }
0x53e9   :  { %v9973_v40 = vpop.xlane.xlu0 %9972 }
0x53ea   :  { %v10057_v43 = vadd.f32 %v10056_v61, %v9973_v40 }
0x53ec   :  { %v9976_v54 = vpop.xlane.xlu1 %9975  ;;  %v10059_v63 = vmul.f32 0.2, %v10057_v43 }
0x53ed   :  { %v10058_v20 = vadd.f32 %v10056_v61, %v9976_v54 }
0x53ee   :  { %v10061_v25 = vmax.f32 %v10057_v43, %v10059_v63 }
0x53ef   :  { %v10060_v12 = vmul.f32 0.2, %v10058_v20 }
0x53f0   :  { %v10063_v32 = vadd.f32 %v10061_v25, %v13370_v49 }
0x53f1   :  { %v10062_v46 = vmax.f32 %v10058_v20, %v10060_v12  ;;  %v15098_v20 = vld [vmem:[%s15209_s10 + $0x4] ss:$0 sm:$0xff]  ;;  %v15110_v12 = vld [vmem:[%s15209_s10 + $0x5] ss:$0 sm:$0xff] }
0x53f2   :  { %v10065_v28 = vsel %vm205_vm0, %v10063_v32, -inf }
0x53f3   :  { %v10064_v34 = vadd.f32 %v10062_v46, %v13372_v50 }
0x53f5   :  { %v10068_v17 = vsel %vm205_vm0, %v10064_v34, -inf }
0x5426   :  { %v15047_v2 = vpop.f32.mrb[80].mxu0 }
0x5427   :  { %v15049_v47 = vpop.f32.mrb[81].mxu0 }
0x5434   :  { %v10175_v53 = vpop.f32.mrb[82].mxu0 }
0x5435   :  { %v10182_v22 = vrot.slane %v10175_v53, %v13307_v59  ;;  %v11953_v45 = vpop.f32.mrb[83].mxu0 }
0x5436   :  { %v15262_v45 = vld [vmem:[#allocation11_spill] sm:$0xff] }
0x5437   :  { %v10183_v51 = vadd.f32 %v10182_v22, %v10097_v18  ;;  %v10184_v39 = vadd.f32 %v10182_v22, %v10100_v6  ;;  %v5744_v6 = vmul.f32 %v15085_v3, %v14958_v44  ;;  %v15261_v18 = vld [vmem:[#allocation10_spill] sm:$0xff]  ;;  %v15104_v44 = vld [vmem:[%s15210_s11 + $0x1] ss:$0 sm:$0xff] }
0x5439   :  { %v10185_v9 = vmul.f32 0.2, %v10183_v51  ;;  %v10186_v27 = vmul.f32 0.2, %v10184_v39 }
0x543b   :  { %v10187_v29 = vmax.f32 %v10183_v51, %v10185_v9  ;;  %v10188_v52 = vmax.f32 %v10184_v39, %v10186_v27  ;;  %v5746_v39 = vadd.f32 %v15104_v44, %v5744_v6 }
0x543d   :  { %v10190_v16 = vadd.f32 %v10188_v52, %v13372_v50  ;;  %v10189_v11 = vadd.f32 %v10187_v29, %v13370_v49  ;;  %v609_v49 = vpop.permute.xlu0 %608 }
0x543f   :  { %v10194_v7 = vsel %vm205_vm0, %v10190_v16, -inf  ;;  %v10191_v59 = vsel %vm205_vm0, %v10189_v11, -inf }
0x5440   :  { %10195 = vmax.xlane.f32.xlu1 %v10194_v7  ;;  %10192 = vmax.xlane.f32.xlu0 %v10191_v59 }
0x5441   :  { %v625_v26 = vpop.permute.xlu0 %624 }
0x5444   :  { %10066 = vmax.xlane.f32.xlu0 %v10065_v28 }
0x5445   :  { %v15066_v42 = vpop.permute.xlu0 %5753 }
0x5446   :  { %v5757_v6 = vmul.f32 %v15098_v20, %v15066_v42 }
0x5448   :  { %10069 = vmax.xlane.f32.xlu0 %v10068_v17 }
0x5451   :  { %612 = vperm.xlu1 %12522, %v13171_v21   ;;  %v604_v21 = vmul.f32 %v12935_v41, %v13981_v10  ;;  %v12938_v10 = vld [vmem:[%s15209_s10 + $0x2] ss:$0 sm:$0xff] }
0x5453   :  { %v606_v15 = vadd.f32 %v12937_v56, %v604_v21 }
0x5455   :  { %620 = vperm.xlu1 %12522, %v13220_v5   ;;  %v603_v5 = vmul.f32 %v12935_v41, %v13983_v19  ;;  %v628_v19 = vmul.f32 %v12938_v10, %v625_v26 }
0x5457   :  { %v605_v36 = vadd.f32 %v12937_v56, %v603_v5  ;;  %v15263_v5 = vld [vmem:[#allocation9_spill] sm:$0xff] }
0x5459   :  { %5749 = vperm.xlu1 %12522, %v14168_v55   ;;  %v12936_v55 = vld [vmem:[%s15209_s10 + $0x1] ss:$0 sm:$0xff] }
0x545d   :  { %5761 = vperm.xlu1 %12522, %v14211_v24   ;;  %v615_v24 = vmul.f32 %v12936_v55, %v609_v49  ;;  %v10800_v49 = vld [vmem:[%s15217_s18] ss:$0 sm:$0xff] }
0x545e   :  { %v10394_v21 = vmul.f32 %v10800_v49, %v14974_v38 }
0x545f   :  { %v617_v23 = vadd.f32 %v615_v24, %v605_v36 }
0x5461   :  { %5765 = vperm.xlu1 %12522, %v14207_v62  }
0x54cd   :  { %v10196_v31 = vpop.xlane.xlu1 %10195  ;;  %v10193_v50 = vpop.xlane.xlu0 %10192 }
0x54ce   :  { %v10197_v13 = vsub.f32 %v10189_v11, %v10193_v50  ;;  %v10198_v54 = vsub.f32 %v10190_v16, %v10196_v31 }
0x54d0   :  { %v10199_v53 = vmul.f32 1.442695, %v10197_v13  ;;  %v10201_v9 = vmul.f32 1.442695, %v10198_v54 }
0x54d1   :  { %v613_v62 = vpop.permute.xlu1 %612  ;;  %v10067_v4 = vpop.xlane.xlu0 %10066 }
0x54d2   :  { %v616_v33 = vmul.f32 %v12936_v55, %v613_v62  ;;  %v10071_v57 = vsub.f32 %v10063_v32, %v10067_v4  ;;  %v15264_v62 = vld [vmem:[#allocation8_spill] sm:$0xff] }
0x54d4   :  { %v618_v30 = vadd.f32 %v616_v33, %v606_v15  ;;  %v10073_v37 = vmul.f32 1.442695, %v10071_v57  ;;  %v10395_v33 = vmul.f32 %v10800_v49, %v14979_v0 }
0x54d5   :  { %v621_v35 = vpop.permute.xlu1 %620  ;;  %v10070_v58 = vpop.xlane.xlu0 %10069 }
0x54d6   :  { %v630_v1 = vadd.f32 %v628_v19, %v618_v30  ;;  %12857 = vpow2.f32 %v10073_v37  ;;  %v627_v48 = vmul.f32 %v12938_v10, %v621_v35  ;;  %v10072_v60 = vsub.f32 %v10064_v34, %v10070_v58 }
0x54d8   :  { %v15090_v61 = vadd.f32 %v15261_v18, %v630_v1  ;;  %v629_v40 = vadd.f32 %v627_v48, %v617_v23  ;;  %v10075_v43 = vmul.f32 1.442695, %v10072_v60  ;;  %v10804_v1 = vld [vmem:[%s15217_s18 + $0x1] ss:$0 sm:$0xff]  ;;  %v5745_v60 = vmul.f32 %v15085_v3, %v14964_v8  ;;  %v10801_v8 = vld [vmem:[%s15218_s19] ss:$0 sm:$0xff] }
0x54d9   :  { %v5750_v22 = vpop.permute.xlu1 %5749 }
0x54da   :  { %v15093_v63 = vadd.f32 %v15262_v45, %v629_v40  ;;  %v5756_v51 = vmul.f32 %v15098_v20, %v5750_v22  ;;  %12859 = vpow2.f32 %v10075_v43  ;;  %v5747_v18 = vadd.f32 %v15104_v44, %v5745_v60 }
0x54db   :  { %12861 = vpow2.f32 %v10199_v53 }
0x54dc   :  { %v5758_v25 = vadd.f32 %v5756_v51, %v5746_v39  ;;  %12863 = vpow2.f32 %v10201_v9  ;;  %v5759_v43 = vadd.f32 %v5757_v6, %v5747_v18 }
0x54dd   :  { %v5762_v27 = vpop.permute.xlu1 %5761 }
0x54de   :  { %v5768_v29 = vmul.f32 %v15110_v12, %v5762_v27 }
0x54e0   :  { %v12858_v52 = vpop.eup %12857  ;;  %v5770_v16 = vadd.f32 %v5768_v29, %v5758_v25 }
0x54e1   :  { %v10077_v11 = vsel %vm205_vm0, %v12858_v52, 0.0  ;;  %v5766_v0 = vpop.permute.xlu1 %5765 }
0x54e2   :  { %v9884_v46 = vadd.f32 %v15049_v47, %v5770_v16  ;;  %10078 = vadd.xlane.f32.xlu0 %v10077_v11  ;;  %v5769_v40 = vmul.f32 %v15110_v12, %v5766_v0  ;;  %v10808_v16 = vld [vmem:[%s15217_s18 + $0x2] ss:$0 sm:$0xff] }
0x54e3   :  { %v15265_v11 = vld [vmem:[#allocation12_spill] sm:$0xff] }
0x54e4   :  { %v12860_v7 = vpop.eup %12859  ;;  %v5771_v54 = vadd.f32 %v5769_v40, %v5759_v43 }
0x54e5   :  { %v10080_v59 = vsel %vm205_vm0, %v12860_v7, 0.0  ;;  %v12862_v32 = vpop.eup %12861 }
0x54e6   :  { %10081 = vadd.xlane.f32.xlu0 %v10080_v59  ;;  %v10203_v28 = vsel %vm205_vm0, %v12862_v32, 0.0  ;;  %v12864_v34 = vpop.eup %12863  ;;  %v9885_v53 = vadd.f32 %v15047_v2, %v5771_v54 }
0x54e7   :  { %v10206_v17 = vsel %vm205_vm0, %v12864_v34, 0.0 }
0x54ea   :  { %10204 = vadd.xlane.f32.xlu0 %v10203_v28 }
0x54ee   :  { %10207 = vadd.xlane.f32.xlu0 %v10206_v17  ;;  %v10487_v17 = vstv %s10486_s17 }
0x5504   :  { %10388 = vrot.lane.b32.xlu0 %v10800_v49, %s12977_s25  ;;  %v10491_v49 = vstv %s10810_s30 }
0x556f   :  { %v10079_v47 = vpop.xlane.xlu0 %10078 }
0x5573   :  { %v10082_v26 = vpop.xlane.xlu0 %10081 }
0x5577   :  { %v10205_v31 = vpop.xlane.xlu0 %10204 }
0x5578   :  { %12865 = vrcp.f32 %v10205_v31 }
0x5579   :  { %12867 = vrcp.f32 %v10079_v47 }
0x557b   :  { %v10208_v50 = vpop.xlane.xlu0 %10207 }
0x557c   :  { %12869 = vrcp.f32 %v10208_v50 }
0x557d   :  { %12871 = vrcp.f32 %v10082_v26 }
0x557e   :  { %12873 = vtanh.f32 %v15090_v61 }
0x557f   :  { %v10389_v41 = vpop.permute.xlu0 %10388  ;;  %12875 = vtanh.f32 %v15093_v63 }
0x5580   :  { %v10391_v55 = vmul.f32 %v10389_v41, %v15263_v5  ;;  %v10392_v4 = vmul.f32 %v10389_v41, %v15264_v62  ;;  %12877 = vtanh.f32 %v9884_v46  ;;  %v5239_v46 = vmul.f32 0.5, %v15265_v11 }
0x5581   :  { %12879 = vtanh.f32 %v9885_v53 }
0x5582   :  { %v12866_v24 = vpop.eup %12865  ;;  %v10396_v56 = vadd.f32 %v10394_v21, %v10391_v55  ;;  %v10397_v10 = vadd.f32 %v10395_v33, %v10392_v4  ;;  %12881 = vtanh.f32 %v5239_v46 }
0x5583   :  { %v10211_v15 = vmul.f32 %v12866_v24, %v12862_v32  ;;  %v12868_v57 = vpop.eup %12867 }
0x5584   :  { %10400 = vrot.lane.b32.xlu1 %v10396_v56, %s12976_s24  ;;  %v10085_v38 = vmul.f32 %v12868_v57, %v12858_v52 }
0x5585   :  { %11958 = vmatprep.mubr.msk.f32.mxu1 %vm205_vm0, %v10211_v15 }
0x5586   :  { %v12870_v36 = vpop.eup %12869 }
0x5587   :  { %v10212_v19 = vmul.f32 %v12870_v36, %v12864_v34  ;;  %v12872_v30 = vpop.eup %12871  ;;  %v10805_v34 = vld [vmem:[%s15218_s19 + $0x1] ss:$0 sm:$0xff] }
0x5588   :  { %10402 = vrot.lane.b32.xlu1 %v10397_v10, %s12976_s24  ;;  %v10086_v37 = vmul.f32 %v12872_v30, %v12860_v7  ;;  %v12874_v3 = vpop.eup %12873  ;;  %v15266_v7 = vld [vmem:[#allocation13_spill] sm:$0xff] }
0x5589   :  { %11959 = vmatmul.mubr.msk.f32.vlgmr.msra.gmra.mrb[86].mxu1 %vm205_vm0, %v10212_v19  ;;  %v12876_v45 = vpop.eup %12875  ;;  %v10431_v51 = vmul.f32 %v12874_v3, %v10804_v1  ;;  %v5238_v59 = vmul.f32 0.5, %v15266_v7 }
0x558a   :  { %12423 = vmatpush3.bf16.msra.mxu1 %v15015_v14  ;;  %11965 = vmatprep.mubr.msk.f32.mxu1 %vm205_vm0, %v10085_v38  ;;  %v12878_v20 = vpop.eup %12877  ;;  %v10430_v27 = vmul.f32 %v12876_v45, %v10804_v1 }
0x558b   :  { %v12880_v2 = vpop.eup %12879  ;;  %12883 = vtanh.f32 %v5238_v59 }
0x558c   :  { %v12882_v21 = vpop.eup %12881 }
0x558d   :  { %v10464_v57 = vmul.f32 %v12882_v21, %v10808_v16 }
0x5591   :  { %11966 = vmatmul.mubr.msk.f32.vlgmr.msra.gmra.mrb[86].mxu1 %vm205_vm0, %v10086_v37 }
0x5595   :  { %v12884_v24 = vpop.eup %12883 }
0x5596   :  { %v10463_v38 = vmul.f32 %v12884_v24, %v10808_v16 }
0x55f6   :  { %v10401_v23 = vpop.permute.xlu1 %10400 }
0x55f7   :  { %v10406_v13 = vsel %vm205_vm0, %v10401_v23, 0.0 }
0x55f8   :  { %10407 = vadd.xlane.f32.xlu1 %v10406_v13  ;;  %v10809_v13 = vld [vmem:[%s15218_s19 + $0x2] ss:$0 sm:$0xff] }
0x55fa   :  { %v10403_v35 = vpop.permute.xlu1 %10402 }
0x55fb   :  { %v10409_v58 = vsel %vm205_vm0, %v10403_v35, 0.0  ;;  %v10497_v35 = vstv %s10811_s23 }
0x55fc   :  { %10410 = vadd.xlane.f32.xlu0 %v10409_v58 }
0x5609   :  { %10432 = vrot.lane.b32.xlu1 %v10804_v1, %s12976_s24 }
0x5664   :  { %v11967_v14 = vpop.f32.mrb[86].mxu1 }
0x5665   :  { %v10368_v48 = vpop.f32.mrb[87].mxu1  ;;  %v10378_v32 = vmul.f32 0.5, %v11967_v14 }
0x5666   :  { %v10377_v28 = vmul.f32 0.5, %v10368_v48 }
0x5667   :  { %12885 = vtanh.f32 %v10378_v32 }
0x5668   :  { %12887 = vtanh.f32 %v10377_v28 }
0x5671   :  { %v12886_v62 = vpop.eup %12885 }
0x5672   :  { %v12888_v15 = vpop.eup %12887 }
0x5685   :  { %v10408_v42 = vpop.xlane.xlu1 %10407 }
0x5686   :  { %v10418_v22 = vadd.f32 %v10801_v8, %v10408_v42 }
0x5688   :  { %10812 = vst.msk [vmem:[%s15219_s20 + $0x10] sm:$0xff] %vm10502_vm8, %v10418_v22  ;;  %v10488_v31 = vmul.f32 %v10487_v17, %v10418_v22 }
0x5689   :  { %v10411_v61 = vpop.xlane.xlu0 %10410  ;;  %v10433_v63 = vpop.permute.xlu1 %10432 }
0x568a   :  { %v10419_v44 = vadd.f32 %v10801_v8, %v10411_v61  ;;  %v10435_v39 = vmul.f32 %v12878_v20, %v10433_v63  ;;  %v10436_v9 = vmul.f32 %v12880_v2, %v10433_v63 }
0x568c   :  { %10813 = vst.msk [vmem:[%s15219_s20 + $0x18] sm:$0xff] %vm10502_vm8, %v10419_v44  ;;  %v10437_v25 = vadd.f32 %v10435_v39, %v10430_v27  ;;  %v10438_v12 = vadd.f32 %v10436_v9, %v10431_v51  ;;  %v10489_v4 = vmul.f32 %v10487_v17, %v10419_v44 }
0x568e   :  { %v10439_v29 = vsel %vm205_vm0, %v10437_v25, 0.0  ;;  %v10442_v52 = vsel %vm205_vm0, %v10438_v12, 0.0 }
0x568f   :  { %10440 = vadd.xlane.f32.xlu0 %v10439_v29 }
0x5693   :  { %10443 = vadd.xlane.f32.xlu0 %v10442_v52 }
0x56a9   :  { %10465 = vrot.lane.b32.xlu0 %v10808_v16, %s12976_s24 }
0x571c   :  { %v10441_v47 = vpop.xlane.xlu0 %10440 }
0x571d   :  { %v10451_v26 = vadd.f32 %v10805_v34, %v10441_v47 }
0x571f   :  { %v10492_v50 = vmul.f32 %v10491_v49, %v10451_v26  ;;  %10814 = vst.msk [vmem:[%s15219_s20 + $0x20] sm:$0xff] %vm10502_vm8, %v10451_v26 }
0x5720   :  { %v10444_v41 = vpop.xlane.xlu0 %10443 }
0x5721   :  { %v10494_v5 = vadd.f32 %v10492_v50, %v10488_v31  ;;  %v10452_v55 = vadd.f32 %v10805_v34, %v10444_v41 }
0x5723   :  { %v10493_v56 = vmul.f32 %v10491_v49, %v10452_v55  ;;  %10815 = vst.msk [vmem:[%s15219_s20 + $0x28] sm:$0xff] %vm10502_vm8, %v10452_v55 }
0x5724   :  { %v10466_v33 = vpop.permute.xlu0 %10465 }
0x5725   :  { %v10495_v36 = vadd.f32 %v10493_v56, %v10489_v4  ;;  %v10468_v10 = vmul.f32 %v12888_v15, %v10466_v33  ;;  %v10469_v19 = vmul.f32 %v12886_v62, %v10466_v33 }
0x5727   :  { %v10471_v30 = vadd.f32 %v10469_v19, %v10464_v57  ;;  %v10470_v37 = vadd.f32 %v10468_v10, %v10463_v38 }
0x5729   :  { %v10475_v0 = vsel %vm205_vm0, %v10471_v30, 0.0  ;;  %v10472_v23 = vsel %vm205_vm0, %v10470_v37, 0.0 }
0x572a   :  { %10476 = vadd.xlane.f32.xlu0 %v10475_v0  ;;  %10473 = vadd.xlane.f32.xlu1 %v10472_v23 }
0x57b7   :  { %v10477_v58 = vpop.xlane.xlu0 %10476  ;;  %v10474_v1 = vpop.xlane.xlu1 %10473 }
0x57b8   :  { %v10485_v14 = vadd.f32 %v10809_v13, %v10477_v58  ;;  %v10484_v48 = vadd.f32 %v10809_v13, %v10474_v1 }
0x57ba   :  { %v10499_v60 = vmul.f32 %v10497_v35, %v10485_v14  ;;  %10817 = vst.msk [vmem:[%s15219_s20 + $0x38] sm:$0xff] %vm10502_vm8, %v10485_v14  ;;  %v10498_v6 = vmul.f32 %v10497_v35, %v10484_v48  ;;  %10816 = vst.msk [vmem:[%s15219_s20 + $0x30] sm:$0xff] %vm10502_vm8, %v10484_v48 }
0x57bc   :  { %v10501_v18 = vadd.f32 %v10499_v60, %v10495_v36  ;;  %v10500_v40 = vadd.f32 %v10498_v6, %v10494_v5 }
0x57be   :  { %10504 = vst.msk [vmem:[%s15219_s20 + $0x8] sm:$0xff] %vm10502_vm8, %v10501_v18  ;;  %10503 = vst.msk [vmem:[%s15219_s20] sm:$0xff] %vm10502_vm8, %v10500_v40 }
0x57bf   :  { %10518 = vsyncpa [#allocation3], 1 }
0x57c0   :  { %10519 = vsyncpa [#allocation5], 1 }

</bundles_post_ra>
